<compile_context>
chip_gen: v7x
topology: tpu7x:2x2x1
jax: 0.10.0
libtpu: 0.0.40
codegen_flags: <defaults>
</compile_context>

<pallas_src>
import jax
import jax.numpy as jnp
from jax.experimental import pallas as pl
from jax.experimental.pallas import tpu as pltpu

LANES = 128                       # every channel axis is padded to a full lane width
VMEM_LIMIT = 32 * 1024 * 1024     # scoped-VMEM limit: safe on v5e/v6e and v7x (64 MiB/TC)
MAX_BATCH_TILE = 4                # per-step footprint at tb=4 is ~<20 MiB incl. temporaries
N_CLASSES = 10


def _batch_tile(batch, max_tile=MAX_BATCH_TILE):
    """Largest divisor of `batch` <= max_tile that still leaves >= 2 grid blocks
    (so both v7x TensorCores get a 'parallel' block when batch >= 2)."""
    best = 1
    for t in range(1, min(batch, max_tile) + 1):
        if batch % t == 0 and (batch < 2 or batch // t >= 2):
            best = t
    return best


def _pool2x2_relu(y, imgs, hw):
    """y: (imgs*hw*hw, LANES) conv output with row order (img, y, x).
    Returns relu(max_pool2d(y, 2)) as (imgs*(hw//2), hw//2, LANES)."""
    hp = hw // 2
    y5 = y.reshape(imgs * hp, 2, hp, 2, LANES)
    m = jnp.maximum(jnp.maximum(y5[:, 0, :, 0, :], y5[:, 0, :, 1, :]),
                    jnp.maximum(y5[:, 1, :, 0, :], y5[:, 1, :, 1, :]))
    return jnp.maximum(m, 0.0)


def _target_kernel(p1_ref, w1_ref, b1_ref, w2_ref, b2_ref,
                   wf1_ref, bf1_ref, wf2_ref, bf2_ref, o_ref):
    f32 = jnp.float32
    tb = p1_ref.shape[0]                                    # images in this grid step

    # ---- conv1: one im2col matmul (tb*576, 25) x (25, 128) -------------------
    p1 = p1_ref[...].reshape(tb * 576, 25)
    y1 = jnp.dot(p1, w1_ref[...], preferred_element_type=f32) + b1_ref[...]

    # ---- max_pool2d(2) + relu, fused in-register ------------------------------
    h1 = _pool2x2_relu(y1, tb, 24)                          # (tb*12, 12, 128)
    h1 = h1.reshape(tb, 12, 12, LANES)

    # ---- conv2: implicit GEMM over the 25 taps (Cin 10->128, Cout 20->128) ----
    # TODO(synk): Dropout2d is an eval-mode identity here (no training-mode mask).
    acc = jnp.zeros((tb * 64, LANES), f32) + b2_ref[...]
    for ky in range(5):
        for kx in range(5):
            patch = h1[:, ky:ky + 8, kx:kx + 8, :].reshape(tb * 64, LANES)
            acc = acc + jnp.dot(patch, w2_ref[ky * 5 + kx],
                                preferred_element_type=f32)

    # ---- max_pool2d(2) + relu --------------------------------------------------
    h2 = _pool2x2_relu(acc, tb, 8)                          # (tb*4, 4, 128)
    h2 = h2.reshape(tb, 16, LANES)                          # (img, spatial s, channel)

    # ---- fc1 + relu: x.view(-1, 320) realised as 16 per-position dots ---------
    hidden = jnp.zeros((tb, LANES), f32) + bf1_ref[...]
    for s in range(16):
        hidden = hidden + jnp.dot(h2[:, s, :], wf1_ref[s],
                                  preferred_element_type=f32)
    hidden = jnp.maximum(hidden, 0.0)

    # TODO(synk): F.dropout(x, training=self.training) is an eval-mode identity here.

    # ---- fc2 + log_softmax (padded class lanes masked with a large finite) ----
    logits = jnp.dot(hidden, wf2_ref[...], preferred_element_type=f32) + bf2_ref[...]
    lane = jax.lax.broadcasted_iota(jnp.int32, logits.shape, 1)
    logits = jnp.where(lane < N_CLASSES, logits, -1e30)
    m = jnp.max(logits, axis=-1, keepdims=True)
    z = logits - m
    lse = jnp.log(jnp.sum(jnp.exp(z), axis=-1, keepdims=True))
    o_ref[...] = (z - lse).reshape(tb, 1, LANES).astype(o_ref.dtype)


def target_forward_fn(params, x):
    # x: (B, 1, 28, 28) NCHW float32 (PyTorch layout); returns (B, 10) log-probs.
    B = x.shape[0]
    x = x.reshape(B, 28, 28)                                # C=1 -> squeeze channel
    # im2col for conv1 only (tiny XLA glue); everything else runs in the kernel.
    cols = [x[:, ky:ky + 24, kx:kx + 24] for ky in range(5) for kx in range(5)]
    p1 = jnp.stack(cols, axis=-1).reshape(B, 576, 25)       # rows ordered (y, x), taps (ky, kx)

    tb = _batch_tile(B)
    out = pl.pallas_call(
        _target_kernel,
        out_shape=jax.ShapeDtypeStruct((B, 1, LANES), jnp.float32),
        grid=(B // tb,),
        in_specs=[
            pl.BlockSpec((tb, 576, 25), lambda i: (i, 0, 0)),       # conv1 im2col patches
            pl.BlockSpec((25, LANES), lambda i: (0, 0)),            # w1
            pl.BlockSpec((1, LANES), lambda i: (0, 0)),             # b1
            pl.BlockSpec((25, LANES, LANES), lambda i: (0, 0, 0)),  # w2 (per tap, cin x cout)
            pl.BlockSpec((1, LANES), lambda i: (0, 0)),             # b2
            pl.BlockSpec((16, LANES, LANES), lambda i: (0, 0, 0)),  # wf1 (per position, c x j)
            pl.BlockSpec((1, LANES), lambda i: (0, 0)),             # bf1
            pl.BlockSpec((LANES, LANES), lambda i: (0, 0)),         # wf2
            pl.BlockSpec((1, LANES), lambda i: (0, 0)),             # bf2
        ],
        out_specs=pl.BlockSpec((tb, 1, LANES), lambda i: (i, 0, 0)),
        compiler_params=pltpu.CompilerParams(
            dimension_semantics=("parallel",),
            vmem_limit_bytes=VMEM_LIMIT),
    )(p1, params["w1"], params["b1"], params["w2"], params["b2"],
      params["wf1"], params["bf1"], params["wf2"], params["bf2"])
    return out.reshape(B, LANES)[:, :N_CLASSES]


target_forward = jax.jit(target_forward_fn)


def init_params(key):
    # PyTorch-layout weights (same init distribution), converted to the
    # channel-last / per-tap layouts the kernel uses and zero-padded to 128 lanes.
    def uniform(k, shape, fan_in):
        bound = 1.0 / (fan_in ** 0.5)
        return jax.random.uniform(k, shape, jnp.float32, -bound, bound)

    ks = jax.random.split(key, 8)

    # conv1: PyTorch (10, 1, 5, 5) -> (25, 128), tap order (ky, kx)
    w1_pt = uniform(ks[0], (10, 1, 5, 5), 25)
    w1 = w1_pt.transpose(2, 3, 1, 0).reshape(25, 10)
    w1 = jnp.pad(w1, ((0, 0), (0, LANES - 10)))
    b1 = jnp.pad(uniform(ks[1], (10,), 25), (0, LANES - 10)).reshape(1, LANES)

    # conv2: PyTorch (20, 10, 5, 5) -> per-tap (25, 128, 128): [tap, cin, cout]
    w2_pt = uniform(ks[2], (20, 10, 5, 5), 250)
    w2 = w2_pt.transpose(2, 3, 1, 0).reshape(25, 10, 20)
    w2 = jnp.pad(w2, ((0, 0), (0, LANES - 10), (0, LANES - 20)))
    b2 = jnp.pad(uniform(ks[3], (20,), 250), (0, LANES - 20)).reshape(1, LANES)

    # fc1: PyTorch (50, 320) with input feature index c*16 + (yp*4 + xp)
    #   -> per-spatial-position (16, 128, 128): [s, cin, hidden]
    wf1_pt = uniform(ks[4], (50, 320), 320)
    wf1 = wf1_pt.reshape(50, 20, 4, 4).transpose(2, 3, 1, 0).reshape(16, 20, 50)
    wf1 = jnp.pad(wf1, ((0, 0), (0, LANES - 20), (0, LANES - 50)))
    bf1 = jnp.pad(uniform(ks[5], (50,), 320), (0, LANES - 50)).reshape(1, LANES)

    # fc2: PyTorch (10, 50) -> (128, 128)
    wf2_pt = uniform(ks[6], (10, 50), 50)
    wf2 = jnp.pad(wf2_pt.T, ((0, LANES - 50), (0, LANES - 10)))
    bf2 = jnp.pad(uniform(ks[7], (10,), 50), (0, LANES - 10)).reshape(1, LANES)

    return dict(w1=w1, b1=b1, w2=w2, b2=b2, wf1=wf1, bf1=bf1, wf2=wf2, bf2=bf2)


if __name__ == "__main__":
    key = jax.random.PRNGKey(0)
    pkey, xkey = jax.random.split(key)
    params = init_params(pkey)
    x = jax.random.normal(xkey, (2, 1, 28, 28), jnp.float32)

    out = jax.block_until_ready(target_forward(params, x))

    assert out.shape == (2, 10)
    assert bool(jnp.all(jnp.isfinite(out)))
    # rows of exp(log_softmax) must sum to 1
    assert bool(jnp.allclose(jnp.sum(jnp.exp(out), axis=-1), 1.0, atol=1e-4))
    print("KERNEL_OK")
</pallas_src>

<mosaic_0001>
module attributes {stable_mosaic.version = 11 : i64} {
  func.func @_target_kernel(%arg0: i32, %arg1: memref<1x576x25xf32, #tpu.memory_space<vmem>>, %arg2: memref<25x128xf32, #tpu.memory_space<vmem>>, %arg3: memref<1x128xf32, #tpu.memory_space<vmem>>, %arg4: memref<25x128x128xf32, #tpu.memory_space<vmem>>, %arg5: memref<1x128xf32, #tpu.memory_space<vmem>>, %arg6: memref<16x128x128xf32, #tpu.memory_space<vmem>>, %arg7: memref<1x128xf32, #tpu.memory_space<vmem>>, %arg8: memref<128x128xf32, #tpu.memory_space<vmem>>, %arg9: memref<1x128xf32, #tpu.memory_space<vmem>>, %arg10: memref<1x1x128xf32, #tpu.memory_space<vmem>>) attributes {dimension_semantics = [#tpu.dimension_semantics<parallel>], iteration_bounds = array<i64: 2>, scalar_prefetch = 0 : i64, scratch_operands = 0 : i64, tpu.core_type = #tpu.core_type<tc>, window_params = [{transform_indices = @transform_0, window_bounds = array<i64: 1, 576, 25>}, {pipeline_mode = #tpu.pipeline_mode<synchronous>, transform_indices = @transform_1, window_bounds = array<i64: 25, 128>}, {pipeline_mode = #tpu.pipeline_mode<synchronous>, transform_indices = @transform_2, window_bounds = array<i64: 1, 128>}, {pipeline_mode = #tpu.pipeline_mode<synchronous>, transform_indices = @transform_3, window_bounds = array<i64: 25, 128, 128>}, {pipeline_mode = #tpu.pipeline_mode<synchronous>, transform_indices = @transform_4, window_bounds = array<i64: 1, 128>}, {pipeline_mode = #tpu.pipeline_mode<synchronous>, transform_indices = @transform_5, window_bounds = array<i64: 16, 128, 128>}, {pipeline_mode = #tpu.pipeline_mode<synchronous>, transform_indices = @transform_6, window_bounds = array<i64: 1, 128>}, {pipeline_mode = #tpu.pipeline_mode<synchronous>, transform_indices = @transform_7, window_bounds = array<i64: 128, 128>}, {pipeline_mode = #tpu.pipeline_mode<synchronous>, transform_indices = @transform_8, window_bounds = array<i64: 1, 128>}, {transform_indices = @transform_9, window_bounds = array<i64: 1, 1, 128>}]} {
    %c0 = arith.constant 0 : index
    %c0_0 = arith.constant 0 : index
    %c0_1 = arith.constant 0 : index
    %0 = vector.load %arg1[%c0, %c0_0, %c0_1] : memref<1x576x25xf32, #tpu.memory_space<vmem>>, vector<1x576x25xf32>
    %1 = vector.shape_cast %0 : vector<1x576x25xf32> to vector<576x25xf32>
    %c0_2 = arith.constant 0 : index
    %c0_3 = arith.constant 0 : index
    %2 = vector.load %arg2[%c0_2, %c0_3] : memref<25x128xf32, #tpu.memory_space<vmem>>, vector<25x128xf32>
    %cst = arith.constant dense<0.000000e+00> : vector<576x128xf32>
    %3 = tpu.matmul %1, %2, %cst {dimension_numbers = #tpu.dot_dimension_numbers<[1], [0], [0], [1], [0, 0, 1, 1], [], []>} : vector<576x25xf32>, vector<25x128xf32>, vector<576x128xf32> -> vector<576x128xf32>
    %c0_4 = arith.constant 0 : index
    %c0_5 = arith.constant 0 : index
    %4 = vector.load %arg3[%c0_4, %c0_5] : memref<1x128xf32, #tpu.memory_space<vmem>>, vector<1x128xf32>
    %5 = vector.broadcast %4 : vector<1x128xf32> to vector<576x128xf32>
    %6 = arith.addf %3, %5 : vector<576x128xf32>
    %7 = vector.shape_cast %6 : vector<576x128xf32> to vector<12x2x12x2x128xf32>
    %8 = vector.extract_strided_slice %7 {offsets = [0, 0, 0, 0, 0], sizes = [12, 1, 12, 1, 128], strides = [1, 1, 1, 1, 1]} : vector<12x2x12x2x128xf32> to vector<12x1x12x1x128xf32>
    %9 = vector.shape_cast %8 : vector<12x1x12x1x128xf32> to vector<12x12x128xf32>
    %10 = vector.extract_strided_slice %7 {offsets = [0, 0, 0, 1, 0], sizes = [12, 1, 12, 1, 128], strides = [1, 1, 1, 1, 1]} : vector<12x2x12x2x128xf32> to vector<12x1x12x1x128xf32>
    %11 = vector.shape_cast %10 : vector<12x1x12x1x128xf32> to vector<12x12x128xf32>
    %12 = arith.maximumf %9, %11 : vector<12x12x128xf32>
    %13 = vector.extract_strided_slice %7 {offsets = [0, 1, 0, 0, 0], sizes = [12, 1, 12, 1, 128], strides = [1, 1, 1, 1, 1]} : vector<12x2x12x2x128xf32> to vector<12x1x12x1x128xf32>
    %14 = vector.shape_cast %13 : vector<12x1x12x1x128xf32> to vector<12x12x128xf32>
    %15 = vector.extract_strided_slice %7 {offsets = [0, 1, 0, 1, 0], sizes = [12, 1, 12, 1, 128], strides = [1, 1, 1, 1, 1]} : vector<12x2x12x2x128xf32> to vector<12x1x12x1x128xf32>
    %16 = vector.shape_cast %15 : vector<12x1x12x1x128xf32> to vector<12x12x128xf32>
    %17 = arith.maximumf %14, %16 : vector<12x12x128xf32>
    %18 = arith.maximumf %12, %17 : vector<12x12x128xf32>
    %cst_6 = arith.constant 0.000000e+00 : f32
    %19 = vector.broadcast %cst_6 : f32 to vector<12x12x128xf32>
    %20 = arith.maximumf %18, %19 : vector<12x12x128xf32>
    %21 = vector.shape_cast %20 : vector<12x12x128xf32> to vector<1x12x12x128xf32>
    %cst_7 = arith.constant 0.000000e+00 : f32
    %22 = vector.broadcast %cst_7 : f32 to vector<64x128xf32>
    %c0_8 = arith.constant 0 : index
    %c0_9 = arith.constant 0 : index
    %23 = vector.load %arg5[%c0_8, %c0_9] : memref<1x128xf32, #tpu.memory_space<vmem>>, vector<1x128xf32>
    %24 = vector.broadcast %23 : vector<1x128xf32> to vector<64x128xf32>
    %25 = arith.addf %22, %24 : vector<64x128xf32>
    %26 = vector.extract_strided_slice %21 {offsets = [0, 0, 0, 0], sizes = [1, 8, 8, 128], strides = [1, 1, 1, 1]} : vector<1x12x12x128xf32> to vector<1x8x8x128xf32>
    %27 = vector.shape_cast %26 : vector<1x8x8x128xf32> to vector<64x128xf32>
    %c0_10 = arith.constant 0 : index
    %c0_11 = arith.constant 0 : index
    %c0_12 = arith.constant 0 : index
    %28 = vector.load %arg4[%c0_10, %c0_11, %c0_12] : memref<25x128x128xf32, #tpu.memory_space<vmem>>, vector<1x128x128xf32>
    %29 = vector.shape_cast %28 : vector<1x128x128xf32> to vector<128x128xf32>
    %cst_13 = arith.constant dense<0.000000e+00> : vector<64x128xf32>
    %30 = tpu.matmul %27, %29, %cst_13 {dimension_numbers = #tpu.dot_dimension_numbers<[1], [0], [0], [1], [0, 0, 1, 1], [], []>} : vector<64x128xf32>, vector<128x128xf32>, vector<64x128xf32> -> vector<64x128xf32>
    %31 = arith.addf %25, %30 : vector<64x128xf32>
    %32 = vector.extract_strided_slice %21 {offsets = [0, 0, 1, 0], sizes = [1, 8, 8, 128], strides = [1, 1, 1, 1]} : vector<1x12x12x128xf32> to vector<1x8x8x128xf32>
    %33 = vector.shape_cast %32 : vector<1x8x8x128xf32> to vector<64x128xf32>
    %c1 = arith.constant 1 : index
    %c0_14 = arith.constant 0 : index
    %c0_15 = arith.constant 0 : index
    %34 = vector.load %arg4[%c1, %c0_14, %c0_15] : memref<25x128x128xf32, #tpu.memory_space<vmem>>, vector<1x128x128xf32>
    %35 = vector.shape_cast %34 : vector<1x128x128xf32> to vector<128x128xf32>
    %cst_16 = arith.constant dense<0.000000e+00> : vector<64x128xf32>
    %36 = tpu.matmul %33, %35, %cst_16 {dimension_numbers = #tpu.dot_dimension_numbers<[1], [0], [0], [1], [0, 0, 1, 1], [], []>} : vector<64x128xf32>, vector<128x128xf32>, vector<64x128xf32> -> vector<64x128xf32>
    %37 = arith.addf %31, %36 : vector<64x128xf32>
    %38 = vector.extract_strided_slice %21 {offsets = [0, 0, 2, 0], sizes = [1, 8, 8, 128], strides = [1, 1, 1, 1]} : vector<1x12x12x128xf32> to vector<1x8x8x128xf32>
    %39 = vector.shape_cast %38 : vector<1x8x8x128xf32> to vector<64x128xf32>
    %c2 = arith.constant 2 : index
    %c0_17 = arith.constant 0 : index
    %c0_18 = arith.constant 0 : index
    %40 = vector.load %arg4[%c2, %c0_17, %c0_18] : memref<25x128x128xf32, #tpu.memory_space<vmem>>, vector<1x128x128xf32>
    %41 = vector.shape_cast %40 : vector<1x128x128xf32> to vector<128x128xf32>
    %cst_19 = arith.constant dense<0.000000e+00> : vector<64x128xf32>
    %42 = tpu.matmul %39, %41, %cst_19 {dimension_numbers = #tpu.dot_dimension_numbers<[1], [0], [0], [1], [0, 0, 1, 1], [], []>} : vector<64x128xf32>, vector<128x128xf32>, vector<64x128xf32> -> vector<64x128xf32>
    %43 = arith.addf %37, %42 : vector<64x128xf32>
    %44 = vector.extract_strided_slice %21 {offsets = [0, 0, 3, 0], sizes = [1, 8, 8, 128], strides = [1, 1, 1, 1]} : vector<1x12x12x128xf32> to vector<1x8x8x128xf32>
    %45 = vector.shape_cast %44 : vector<1x8x8x128xf32> to vector<64x128xf32>
    %c3 = arith.constant 3 : index
    %c0_20 = arith.constant 0 : index
    %c0_21 = arith.constant 0 : index
    %46 = vector.load %arg4[%c3, %c0_20, %c0_21] : memref<25x128x128xf32, #tpu.memory_space<vmem>>, vector<1x128x128xf32>
    %47 = vector.shape_cast %46 : vector<1x128x128xf32> to vector<128x128xf32>
    %cst_22 = arith.constant dense<0.000000e+00> : vector<64x128xf32>
    %48 = tpu.matmul %45, %47, %cst_22 {dimension_numbers = #tpu.dot_dimension_numbers<[1], [0], [0], [1], [0, 0, 1, 1], [], []>} : vector<64x128xf32>, vector<128x128xf32>, vector<64x128xf32> -> vector<64x128xf32>
    %49 = arith.addf %43, %48 : vector<64x128xf32>
    %50 = vector.extract_strided_slice %21 {offsets = [0, 0, 4, 0], sizes = [1, 8, 8, 128], strides = [1, 1, 1, 1]} : vector<1x12x12x128xf32> to vector<1x8x8x128xf32>
    %51 = vector.shape_cast %50 : vector<1x8x8x128xf32> to vector<64x128xf32>
    %c4 = arith.constant 4 : index
    %c0_23 = arith.constant 0 : index
    %c0_24 = arith.constant 0 : index
    %52 = vector.load %arg4[%c4, %c0_23, %c0_24] : memref<25x128x128xf32, #tpu.memory_space<vmem>>, vector<1x128x128xf32>
    %53 = vector.shape_cast %52 : vector<1x128x128xf32> to vector<128x128xf32>
    %cst_25 = arith.constant dense<0.000000e+00> : vector<64x128xf32>
    %54 = tpu.matmul %51, %53, %cst_25 {dimension_numbers = #tpu.dot_dimension_numbers<[1], [0], [0], [1], [0, 0, 1, 1], [], []>} : vector<64x128xf32>, vector<128x128xf32>, vector<64x128xf32> -> vector<64x128xf32>
    %55 = arith.addf %49, %54 : vector<64x128xf32>
    %56 = vector.extract_strided_slice %21 {offsets = [0, 1, 0, 0], sizes = [1, 8, 8, 128], strides = [1, 1, 1, 1]} : vector<1x12x12x128xf32> to vector<1x8x8x128xf32>
    %57 = vector.shape_cast %56 : vector<1x8x8x128xf32> to vector<64x128xf32>
    %c5 = arith.constant 5 : index
    %c0_26 = arith.constant 0 : index
    %c0_27 = arith.constant 0 : index
    %58 = vector.load %arg4[%c5, %c0_26, %c0_27] : memref<25x128x128xf32, #tpu.memory_space<vmem>>, vector<1x128x128xf32>
    %59 = vector.shape_cast %58 : vector<1x128x128xf32> to vector<128x128xf32>
    %cst_28 = arith.constant dense<0.000000e+00> : vector<64x128xf32>
    %60 = tpu.matmul %57, %59, %cst_28 {dimension_numbers = #tpu.dot_dimension_numbers<[1], [0], [0], [1], [0, 0, 1, 1], [], []>} : vector<64x128xf32>, vector<128x128xf32>, vector<64x128xf32> -> vector<64x128xf32>
    %61 = arith.addf %55, %60 : vector<64x128xf32>
    %62 = vector.extract_strided_slice %21 {offsets = [0, 1, 1, 0], sizes = [1, 8, 8, 128], strides = [1, 1, 1, 1]} : vector<1x12x12x128xf32> to vector<1x8x8x128xf32>
    %63 = vector.shape_cast %62 : vector<1x8x8x128xf32> to vector<64x128xf32>
    %c6 = arith.constant 6 : index
    %c0_29 = arith.constant 0 : index
    %c0_30 = arith.constant 0 : index
    %64 = vector.load %arg4[%c6, %c0_29, %c0_30] : memref<25x128x128xf32, #tpu.memory_space<vmem>>, vector<1x128x128xf32>
    %65 = vector.shape_cast %64 : vector<1x128x128xf32> to vector<128x128xf32>
    %cst_31 = arith.constant dense<0.000000e+00> : vector<64x128xf32>
    %66 = tpu.matmul %63, %65, %cst_31 {dimension_numbers = #tpu.dot_dimension_numbers<[1], [0], [0], [1], [0, 0, 1, 1], [], []>} : vector<64x128xf32>, vector<128x128xf32>, vector<64x128xf32> -> vector<64x128xf32>
    %67 = arith.addf %61, %66 : vector<64x128xf32>
    %68 = vector.extract_strided_slice %21 {offsets = [0, 1, 2, 0], sizes = [1, 8, 8, 128], strides = [1, 1, 1, 1]} : vector<1x12x12x128xf32> to vector<1x8x8x128xf32>
    %69 = vector.shape_cast %68 : vector<1x8x8x128xf32> to vector<64x128xf32>
    %c7 = arith.constant 7 : index
    %c0_32 = arith.constant 0 : index
    %c0_33 = arith.constant 0 : index
    %70 = vector.load %arg4[%c7, %c0_32, %c0_33] : memref<25x128x128xf32, #tpu.memory_space<vmem>>, vector<1x128x128xf32>
    %71 = vector.shape_cast %70 : vector<1x128x128xf32> to vector<128x128xf32>
    %cst_34 = arith.constant dense<0.000000e+00> : vector<64x128xf32>
    %72 = tpu.matmul %69, %71, %cst_34 {dimension_numbers = #tpu.dot_dimension_numbers<[1], [0], [0], [1], [0, 0, 1, 1], [], []>} : vector<64x128xf32>, vector<128x128xf32>, vector<64x128xf32> -> vector<64x128xf32>
    %73 = arith.addf %67, %72 : vector<64x128xf32>
    %74 = vector.extract_strided_slice %21 {offsets = [0, 1, 3, 0], sizes = [1, 8, 8, 128], strides = [1, 1, 1, 1]} : vector<1x12x12x128xf32> to vector<1x8x8x128xf32>
    %75 = vector.shape_cast %74 : vector<1x8x8x128xf32> to vector<64x128xf32>
    %c8 = arith.constant 8 : index
    %c0_35 = arith.constant 0 : index
    %c0_36 = arith.constant 0 : index
    %76 = vector.load %arg4[%c8, %c0_35, %c0_36] : memref<25x128x128xf32, #tpu.memory_space<vmem>>, vector<1x128x128xf32>
    %77 = vector.shape_cast %76 : vector<1x128x128xf32> to vector<128x128xf32>
    %cst_37 = arith.constant dense<0.000000e+00> : vector<64x128xf32>
    %78 = tpu.matmul %75, %77, %cst_37 {dimension_numbers = #tpu.dot_dimension_numbers<[1], [0], [0], [1], [0, 0, 1, 1], [], []>} : vector<64x128xf32>, vector<128x128xf32>, vector<64x128xf32> -> vector<64x128xf32>
    %79 = arith.addf %73, %78 : vector<64x128xf32>
    %80 = vector.extract_strided_slice %21 {offsets = [0, 1, 4, 0], sizes = [1, 8, 8, 128], strides = [1, 1, 1, 1]} : vector<1x12x12x128xf32> to vector<1x8x8x128xf32>
    %81 = vector.shape_cast %80 : vector<1x8x8x128xf32> to vector<64x128xf32>
    %c9 = arith.constant 9 : index
    %c0_38 = arith.constant 0 : index
    %c0_39 = arith.constant 0 : index
    %82 = vector.load %arg4[%c9, %c0_38, %c0_39] : memref<25x128x128xf32, #tpu.memory_space<vmem>>, vector<1x128x128xf32>
    %83 = vector.shape_cast %82 : vector<1x128x128xf32> to vector<128x128xf32>
    %cst_40 = arith.constant dense<0.000000e+00> : vector<64x128xf32>
    %84 = tpu.matmul %81, %83, %cst_40 {dimension_numbers = #tpu.dot_dimension_numbers<[1], [0], [0], [1], [0, 0, 1, 1], [], []>} : vector<64x128xf32>, vector<128x128xf32>, vector<64x128xf32> -> vector<64x128xf32>
    %85 = arith.addf %79, %84 : vector<64x128xf32>
    %86 = vector.extract_strided_slice %21 {offsets = [0, 2, 0, 0], sizes = [1, 8, 8, 128], strides = [1, 1, 1, 1]} : vector<1x12x12x128xf32> to vector<1x8x8x128xf32>
    %87 = vector.shape_cast %86 : vector<1x8x8x128xf32> to vector<64x128xf32>
    %c10 = arith.constant 10 : index
    %c0_41 = arith.constant 0 : index
    %c0_42 = arith.constant 0 : index
    %88 = vector.load %arg4[%c10, %c0_41, %c0_42] : memref<25x128x128xf32, #tpu.memory_space<vmem>>, vector<1x128x128xf32>
    %89 = vector.shape_cast %88 : vector<1x128x128xf32> to vector<128x128xf32>
    %cst_43 = arith.constant dense<0.000000e+00> : vector<64x128xf32>
    %90 = tpu.matmul %87, %89, %cst_43 {dimension_numbers = #tpu.dot_dimension_numbers<[1], [0], [0], [1], [0, 0, 1, 1], [], []>} : vector<64x128xf32>, vector<128x128xf32>, vector<64x128xf32> -> vector<64x128xf32>
    %91 = arith.addf %85, %90 : vector<64x128xf32>
    %92 = vector.extract_strided_slice %21 {offsets = [0, 2, 1, 0], sizes = [1, 8, 8, 128], strides = [1, 1, 1, 1]} : vector<1x12x12x128xf32> to vector<1x8x8x128xf32>
    %93 = vector.shape_cast %92 : vector<1x8x8x128xf32> to vector<64x128xf32>
    %c11 = arith.constant 11 : index
    %c0_44 = arith.constant 0 : index
    %c0_45 = arith.constant 0 : index
    %94 = vector.load %arg4[%c11, %c0_44, %c0_45] : memref<25x128x128xf32, #tpu.memory_space<vmem>>, vector<1x128x128xf32>
    %95 = vector.shape_cast %94 : vector<1x128x128xf32> to vector<128x128xf32>
    %cst_46 = arith.constant dense<0.000000e+00> : vector<64x128xf32>
    %96 = tpu.matmul %93, %95, %cst_46 {dimension_numbers = #tpu.dot_dimension_numbers<[1], [0], [0], [1], [0, 0, 1, 1], [], []>} : vector<64x128xf32>, vector<128x128xf32>, vector<64x128xf32> -> vector<64x128xf32>
    %97 = arith.addf %91, %96 : vector<64x128xf32>
    %98 = vector.extract_strided_slice %21 {offsets = [0, 2, 2, 0], sizes = [1, 8, 8, 128], strides = [1, 1, 1, 1]} : vector<1x12x12x128xf32> to vector<1x8x8x128xf32>
    %99 = vector.shape_cast %98 : vector<1x8x8x128xf32> to vector<64x128xf32>
    %c12 = arith.constant 12 : index
    %c0_47 = arith.constant 0 : index
    %c0_48 = arith.constant 0 : index
    %100 = vector.load %arg4[%c12, %c0_47, %c0_48] : memref<25x128x128xf32, #tpu.memory_space<vmem>>, vector<1x128x128xf32>
    %101 = vector.shape_cast %100 : vector<1x128x128xf32> to vector<128x128xf32>
    %cst_49 = arith.constant dense<0.000000e+00> : vector<64x128xf32>
    %102 = tpu.matmul %99, %101, %cst_49 {dimension_numbers = #tpu.dot_dimension_numbers<[1], [0], [0], [1], [0, 0, 1, 1], [], []>} : vector<64x128xf32>, vector<128x128xf32>, vector<64x128xf32> -> vector<64x128xf32>
    %103 = arith.addf %97, %102 : vector<64x128xf32>
    %104 = vector.extract_strided_slice %21 {offsets = [0, 2, 3, 0], sizes = [1, 8, 8, 128], strides = [1, 1, 1, 1]} : vector<1x12x12x128xf32> to vector<1x8x8x128xf32>
    %105 = vector.shape_cast %104 : vector<1x8x8x128xf32> to vector<64x128xf32>
    %c13 = arith.constant 13 : index
    %c0_50 = arith.constant 0 : index
    %c0_51 = arith.constant 0 : index
    %106 = vector.load %arg4[%c13, %c0_50, %c0_51] : memref<25x128x128xf32, #tpu.memory_space<vmem>>, vector<1x128x128xf32>
    %107 = vector.shape_cast %106 : vector<1x128x128xf32> to vector<128x128xf32>
    %cst_52 = arith.constant dense<0.000000e+00> : vector<64x128xf32>
    %108 = tpu.matmul %105, %107, %cst_52 {dimension_numbers = #tpu.dot_dimension_numbers<[1], [0], [0], [1], [0, 0, 1, 1], [], []>} : vector<64x128xf32>, vector<128x128xf32>, vector<64x128xf32> -> vector<64x128xf32>
    %109 = arith.addf %103, %108 : vector<64x128xf32>
    %110 = vector.extract_strided_slice %21 {offsets = [0, 2, 4, 0], sizes = [1, 8, 8, 128], strides = [1, 1, 1, 1]} : vector<1x12x12x128xf32> to vector<1x8x8x128xf32>
    %111 = vector.shape_cast %110 : vector<1x8x8x128xf32> to vector<64x128xf32>
    %c14 = arith.constant 14 : index
    %c0_53 = arith.constant 0 : index
    %c0_54 = arith.constant 0 : index
    %112 = vector.load %arg4[%c14, %c0_53, %c0_54] : memref<25x128x128xf32, #tpu.memory_space<vmem>>, vector<1x128x128xf32>
    %113 = vector.shape_cast %112 : vector<1x128x128xf32> to vector<128x128xf32>
    %cst_55 = arith.constant dense<0.000000e+00> : vector<64x128xf32>
    %114 = tpu.matmul %111, %113, %cst_55 {dimension_numbers = #tpu.dot_dimension_numbers<[1], [0], [0], [1], [0, 0, 1, 1], [], []>} : vector<64x128xf32>, vector<128x128xf32>, vector<64x128xf32> -> vector<64x128xf32>
    %115 = arith.addf %109, %114 : vector<64x128xf32>
    %116 = vector.extract_strided_slice %21 {offsets = [0, 3, 0, 0], sizes = [1, 8, 8, 128], strides = [1, 1, 1, 1]} : vector<1x12x12x128xf32> to vector<1x8x8x128xf32>
    %117 = vector.shape_cast %116 : vector<1x8x8x128xf32> to vector<64x128xf32>
    %c15 = arith.constant 15 : index
    %c0_56 = arith.constant 0 : index
    %c0_57 = arith.constant 0 : index
    %118 = vector.load %arg4[%c15, %c0_56, %c0_57] : memref<25x128x128xf32, #tpu.memory_space<vmem>>, vector<1x128x128xf32>
    %119 = vector.shape_cast %118 : vector<1x128x128xf32> to vector<128x128xf32>
    %cst_58 = arith.constant dense<0.000000e+00> : vector<64x128xf32>
    %120 = tpu.matmul %117, %119, %cst_58 {dimension_numbers = #tpu.dot_dimension_numbers<[1], [0], [0], [1], [0, 0, 1, 1], [], []>} : vector<64x128xf32>, vector<128x128xf32>, vector<64x128xf32> -> vector<64x128xf32>
    %121 = arith.addf %115, %120 : vector<64x128xf32>
    %122 = vector.extract_strided_slice %21 {offsets = [0, 3, 1, 0], sizes = [1, 8, 8, 128], strides = [1, 1, 1, 1]} : vector<1x12x12x128xf32> to vector<1x8x8x128xf32>
    %123 = vector.shape_cast %122 : vector<1x8x8x128xf32> to vector<64x128xf32>
    %c16 = arith.constant 16 : index
    %c0_59 = arith.constant 0 : index
    %c0_60 = arith.constant 0 : index
    %124 = vector.load %arg4[%c16, %c0_59, %c0_60] : memref<25x128x128xf32, #tpu.memory_space<vmem>>, vector<1x128x128xf32>
    %125 = vector.shape_cast %124 : vector<1x128x128xf32> to vector<128x128xf32>
    %cst_61 = arith.constant dense<0.000000e+00> : vector<64x128xf32>
    %126 = tpu.matmul %123, %125, %cst_61 {dimension_numbers = #tpu.dot_dimension_numbers<[1], [0], [0], [1], [0, 0, 1, 1], [], []>} : vector<64x128xf32>, vector<128x128xf32>, vector<64x128xf32> -> vector<64x128xf32>
    %127 = arith.addf %121, %126 : vector<64x128xf32>
    %128 = vector.extract_strided_slice %21 {offsets = [0, 3, 2, 0], sizes = [1, 8, 8, 128], strides = [1, 1, 1, 1]} : vector<1x12x12x128xf32> to vector<1x8x8x128xf32>
    %129 = vector.shape_cast %128 : vector<1x8x8x128xf32> to vector<64x128xf32>
    %c17 = arith.constant 17 : index
    %c0_62 = arith.constant 0 : index
    %c0_63 = arith.constant 0 : index
    %130 = vector.load %arg4[%c17, %c0_62, %c0_63] : memref<25x128x128xf32, #tpu.memory_space<vmem>>, vector<1x128x128xf32>
    %131 = vector.shape_cast %130 : vector<1x128x128xf32> to vector<128x128xf32>
    %cst_64 = arith.constant dense<0.000000e+00> : vector<64x128xf32>
    %132 = tpu.matmul %129, %131, %cst_64 {dimension_numbers = #tpu.dot_dimension_numbers<[1], [0], [0], [1], [0, 0, 1, 1], [], []>} : vector<64x128xf32>, vector<128x128xf32>, vector<64x128xf32> -> vector<64x128xf32>
    %133 = arith.addf %127, %132 : vector<64x128xf32>
    %134 = vector.extract_strided_slice %21 {offsets = [0, 3, 3, 0], sizes = [1, 8, 8, 128], strides = [1, 1, 1, 1]} : vector<1x12x12x128xf32> to vector<1x8x8x128xf32>
    %135 = vector.shape_cast %134 : vector<1x8x8x128xf32> to vector<64x128xf32>
    %c18 = arith.constant 18 : index
    %c0_65 = arith.constant 0 : index
    %c0_66 = arith.constant 0 : index
    %136 = vector.load %arg4[%c18, %c0_65, %c0_66] : memref<25x128x128xf32, #tpu.memory_space<vmem>>, vector<1x128x128xf32>
    %137 = vector.shape_cast %136 : vector<1x128x128xf32> to vector<128x128xf32>
    %cst_67 = arith.constant dense<0.000000e+00> : vector<64x128xf32>
    %138 = tpu.matmul %135, %137, %cst_67 {dimension_numbers = #tpu.dot_dimension_numbers<[1], [0], [0], [1], [0, 0, 1, 1], [], []>} : vector<64x128xf32>, vector<128x128xf32>, vector<64x128xf32> -> vector<64x128xf32>
    %139 = arith.addf %133, %138 : vector<64x128xf32>
    %140 = vector.extract_strided_slice %21 {offsets = [0, 3, 4, 0], sizes = [1, 8, 8, 128], strides = [1, 1, 1, 1]} : vector<1x12x12x128xf32> to vector<1x8x8x128xf32>
    %141 = vector.shape_cast %140 : vector<1x8x8x128xf32> to vector<64x128xf32>
    %c19 = arith.constant 19 : index
    %c0_68 = arith.constant 0 : index
    %c0_69 = arith.constant 0 : index
    %142 = vector.load %arg4[%c19, %c0_68, %c0_69] : memref<25x128x128xf32, #tpu.memory_space<vmem>>, vector<1x128x128xf32>
    %143 = vector.shape_cast %142 : vector<1x128x128xf32> to vector<128x128xf32>
    %cst_70 = arith.constant dense<0.000000e+00> : vector<64x128xf32>
    %144 = tpu.matmul %141, %143, %cst_70 {dimension_numbers = #tpu.dot_dimension_numbers<[1], [0], [0], [1], [0, 0, 1, 1], [], []>} : vector<64x128xf32>, vector<128x128xf32>, vector<64x128xf32> -> vector<64x128xf32>
    %145 = arith.addf %139, %144 : vector<64x128xf32>
    %146 = vector.extract_strided_slice %21 {offsets = [0, 4, 0, 0], sizes = [1, 8, 8, 128], strides = [1, 1, 1, 1]} : vector<1x12x12x128xf32> to vector<1x8x8x128xf32>
    %147 = vector.shape_cast %146 : vector<1x8x8x128xf32> to vector<64x128xf32>
    %c20 = arith.constant 20 : index
    %c0_71 = arith.constant 0 : index
    %c0_72 = arith.constant 0 : index
    %148 = vector.load %arg4[%c20, %c0_71, %c0_72] : memref<25x128x128xf32, #tpu.memory_space<vmem>>, vector<1x128x128xf32>
    %149 = vector.shape_cast %148 : vector<1x128x128xf32> to vector<128x128xf32>
    %cst_73 = arith.constant dense<0.000000e+00> : vector<64x128xf32>
    %150 = tpu.matmul %147, %149, %cst_73 {dimension_numbers = #tpu.dot_dimension_numbers<[1], [0], [0], [1], [0, 0, 1, 1], [], []>} : vector<64x128xf32>, vector<128x128xf32>, vector<64x128xf32> -> vector<64x128xf32>
    %151 = arith.addf %145, %150 : vector<64x128xf32>
    %152 = vector.extract_strided_slice %21 {offsets = [0, 4, 1, 0], sizes = [1, 8, 8, 128], strides = [1, 1, 1, 1]} : vector<1x12x12x128xf32> to vector<1x8x8x128xf32>
    %153 = vector.shape_cast %152 : vector<1x8x8x128xf32> to vector<64x128xf32>
    %c21 = arith.constant 21 : index
    %c0_74 = arith.constant 0 : index
    %c0_75 = arith.constant 0 : index
    %154 = vector.load %arg4[%c21, %c0_74, %c0_75] : memref<25x128x128xf32, #tpu.memory_space<vmem>>, vector<1x128x128xf32>
    %155 = vector.shape_cast %154 : vector<1x128x128xf32> to vector<128x128xf32>
    %cst_76 = arith.constant dense<0.000000e+00> : vector<64x128xf32>
    %156 = tpu.matmul %153, %155, %cst_76 {dimension_numbers = #tpu.dot_dimension_numbers<[1], [0], [0], [1], [0, 0, 1, 1], [], []>} : vector<64x128xf32>, vector<128x128xf32>, vector<64x128xf32> -> vector<64x128xf32>
    %157 = arith.addf %151, %156 : vector<64x128xf32>
    %158 = vector.extract_strided_slice %21 {offsets = [0, 4, 2, 0], sizes = [1, 8, 8, 128], strides = [1, 1, 1, 1]} : vector<1x12x12x128xf32> to vector<1x8x8x128xf32>
    %159 = vector.shape_cast %158 : vector<1x8x8x128xf32> to vector<64x128xf32>
    %c22 = arith.constant 22 : index
    %c0_77 = arith.constant 0 : index
    %c0_78 = arith.constant 0 : index
    %160 = vector.load %arg4[%c22, %c0_77, %c0_78] : memref<25x128x128xf32, #tpu.memory_space<vmem>>, vector<1x128x128xf32>
    %161 = vector.shape_cast %160 : vector<1x128x128xf32> to vector<128x128xf32>
    %cst_79 = arith.constant dense<0.000000e+00> : vector<64x128xf32>
    %162 = tpu.matmul %159, %161, %cst_79 {dimension_numbers = #tpu.dot_dimension_numbers<[1], [0], [0], [1], [0, 0, 1, 1], [], []>} : vector<64x128xf32>, vector<128x128xf32>, vector<64x128xf32> -> vector<64x128xf32>
    %163 = arith.addf %157, %162 : vector<64x128xf32>
    %164 = vector.extract_strided_slice %21 {offsets = [0, 4, 3, 0], sizes = [1, 8, 8, 128], strides = [1, 1, 1, 1]} : vector<1x12x12x128xf32> to vector<1x8x8x128xf32>
    %165 = vector.shape_cast %164 : vector<1x8x8x128xf32> to vector<64x128xf32>
    %c23 = arith.constant 23 : index
    %c0_80 = arith.constant 0 : index
    %c0_81 = arith.constant 0 : index
    %166 = vector.load %arg4[%c23, %c0_80, %c0_81] : memref<25x128x128xf32, #tpu.memory_space<vmem>>, vector<1x128x128xf32>
    %167 = vector.shape_cast %166 : vector<1x128x128xf32> to vector<128x128xf32>
    %cst_82 = arith.constant dense<0.000000e+00> : vector<64x128xf32>
    %168 = tpu.matmul %165, %167, %cst_82 {dimension_numbers = #tpu.dot_dimension_numbers<[1], [0], [0], [1], [0, 0, 1, 1], [], []>} : vector<64x128xf32>, vector<128x128xf32>, vector<64x128xf32> -> vector<64x128xf32>
    %169 = arith.addf %163, %168 : vector<64x128xf32>
    %170 = vector.extract_strided_slice %21 {offsets = [0, 4, 4, 0], sizes = [1, 8, 8, 128], strides = [1, 1, 1, 1]} : vector<1x12x12x128xf32> to vector<1x8x8x128xf32>
    %171 = vector.shape_cast %170 : vector<1x8x8x128xf32> to vector<64x128xf32>
    %c24 = arith.constant 24 : index
    %c0_83 = arith.constant 0 : index
    %c0_84 = arith.constant 0 : index
    %172 = vector.load %arg4[%c24, %c0_83, %c0_84] : memref<25x128x128xf32, #tpu.memory_space<vmem>>, vector<1x128x128xf32>
    %173 = vector.shape_cast %172 : vector<1x128x128xf32> to vector<128x128xf32>
    %cst_85 = arith.constant dense<0.000000e+00> : vector<64x128xf32>
    %174 = tpu.matmul %171, %173, %cst_85 {dimension_numbers = #tpu.dot_dimension_numbers<[1], [0], [0], [1], [0, 0, 1, 1], [], []>} : vector<64x128xf32>, vector<128x128xf32>, vector<64x128xf32> -> vector<64x128xf32>
    %175 = arith.addf %169, %174 : vector<64x128xf32>
    %176 = vector.shape_cast %175 : vector<64x128xf32> to vector<4x2x4x2x128xf32>
    %177 = vector.extract_strided_slice %176 {offsets = [0, 0, 0, 0, 0], sizes = [4, 1, 4, 1, 128], strides = [1, 1, 1, 1, 1]} : vector<4x2x4x2x128xf32> to vector<4x1x4x1x128xf32>
    %178 = vector.shape_cast %177 : vector<4x1x4x1x128xf32> to vector<4x4x128xf32>
    %179 = vector.extract_strided_slice %176 {offsets = [0, 0, 0, 1, 0], sizes = [4, 1, 4, 1, 128], strides = [1, 1, 1, 1, 1]} : vector<4x2x4x2x128xf32> to vector<4x1x4x1x128xf32>
    %180 = vector.shape_cast %179 : vector<4x1x4x1x128xf32> to vector<4x4x128xf32>
    %181 = arith.maximumf %178, %180 : vector<4x4x128xf32>
    %182 = vector.extract_strided_slice %176 {offsets = [0, 1, 0, 0, 0], sizes = [4, 1, 4, 1, 128], strides = [1, 1, 1, 1, 1]} : vector<4x2x4x2x128xf32> to vector<4x1x4x1x128xf32>
    %183 = vector.shape_cast %182 : vector<4x1x4x1x128xf32> to vector<4x4x128xf32>
    %184 = vector.extract_strided_slice %176 {offsets = [0, 1, 0, 1, 0], sizes = [4, 1, 4, 1, 128], strides = [1, 1, 1, 1, 1]} : vector<4x2x4x2x128xf32> to vector<4x1x4x1x128xf32>
    %185 = vector.shape_cast %184 : vector<4x1x4x1x128xf32> to vector<4x4x128xf32>
    %186 = arith.maximumf %183, %185 : vector<4x4x128xf32>
    %187 = arith.maximumf %181, %186 : vector<4x4x128xf32>
    %cst_86 = arith.constant 0.000000e+00 : f32
    %188 = vector.broadcast %cst_86 : f32 to vector<4x4x128xf32>
    %189 = arith.maximumf %187, %188 : vector<4x4x128xf32>
    %190 = vector.shape_cast %189 : vector<4x4x128xf32> to vector<1x16x128xf32>
    %cst_87 = arith.constant 0.000000e+00 : f32
    %191 = vector.broadcast %cst_87 : f32 to vector<1x128xf32>
    %c0_88 = arith.constant 0 : index
    %c0_89 = arith.constant 0 : index
    %192 = vector.load %arg7[%c0_88, %c0_89] : memref<1x128xf32, #tpu.memory_space<vmem>>, vector<1x128xf32>
    %193 = arith.addf %191, %192 : vector<1x128xf32>
    %194 = vector.extract_strided_slice %190 {offsets = [0, 0, 0], sizes = [1, 1, 128], strides = [1, 1, 1]} : vector<1x16x128xf32> to vector<1x1x128xf32>
    %195 = vector.shape_cast %194 : vector<1x1x128xf32> to vector<1x128xf32>
    %c0_90 = arith.constant 0 : index
    %c0_91 = arith.constant 0 : index
    %c0_92 = arith.constant 0 : index
    %196 = vector.load %arg6[%c0_90, %c0_91, %c0_92] : memref<16x128x128xf32, #tpu.memory_space<vmem>>, vector<1x128x128xf32>
    %197 = vector.shape_cast %196 : vector<1x128x128xf32> to vector<128x128xf32>
    %cst_93 = arith.constant dense<0.000000e+00> : vector<1x128xf32>
    %198 = tpu.matmul %195, %197, %cst_93 {dimension_numbers = #tpu.dot_dimension_numbers<[1], [0], [0], [1], [0, 0, 1, 1], [], []>} : vector<1x128xf32>, vector<128x128xf32>, vector<1x128xf32> -> vector<1x128xf32>
    %199 = arith.addf %193, %198 : vector<1x128xf32>
    %200 = vector.extract_strided_slice %190 {offsets = [0, 1, 0], sizes = [1, 1, 128], strides = [1, 1, 1]} : vector<1x16x128xf32> to vector<1x1x128xf32>
    %201 = vector.shape_cast %200 : vector<1x1x128xf32> to vector<1x128xf32>
    %c1_94 = arith.constant 1 : index
    %c0_95 = arith.constant 0 : index
    %c0_96 = arith.constant 0 : index
    %202 = vector.load %arg6[%c1_94, %c0_95, %c0_96] : memref<16x128x128xf32, #tpu.memory_space<vmem>>, vector<1x128x128xf32>
    %203 = vector.shape_cast %202 : vector<1x128x128xf32> to vector<128x128xf32>
    %cst_97 = arith.constant dense<0.000000e+00> : vector<1x128xf32>
    %204 = tpu.matmul %201, %203, %cst_97 {dimension_numbers = #tpu.dot_dimension_numbers<[1], [0], [0], [1], [0, 0, 1, 1], [], []>} : vector<1x128xf32>, vector<128x128xf32>, vector<1x128xf32> -> vector<1x128xf32>
    %205 = arith.addf %199, %204 : vector<1x128xf32>
    %206 = vector.extract_strided_slice %190 {offsets = [0, 2, 0], sizes = [1, 1, 128], strides = [1, 1, 1]} : vector<1x16x128xf32> to vector<1x1x128xf32>
    %207 = vector.shape_cast %206 : vector<1x1x128xf32> to vector<1x128xf32>
    %c2_98 = arith.constant 2 : index
    %c0_99 = arith.constant 0 : index
    %c0_100 = arith.constant 0 : index
    %208 = vector.load %arg6[%c2_98, %c0_99, %c0_100] : memref<16x128x128xf32, #tpu.memory_space<vmem>>, vector<1x128x128xf32>
    %209 = vector.shape_cast %208 : vector<1x128x128xf32> to vector<128x128xf32>
    %cst_101 = arith.constant dense<0.000000e+00> : vector<1x128xf32>
    %210 = tpu.matmul %207, %209, %cst_101 {dimension_numbers = #tpu.dot_dimension_numbers<[1], [0], [0], [1], [0, 0, 1, 1], [], []>} : vector<1x128xf32>, vector<128x128xf32>, vector<1x128xf32> -> vector<1x128xf32>
    %211 = arith.addf %205, %210 : vector<1x128xf32>
    %212 = vector.extract_strided_slice %190 {offsets = [0, 3, 0], sizes = [1, 1, 128], strides = [1, 1, 1]} : vector<1x16x128xf32> to vector<1x1x128xf32>
    %213 = vector.shape_cast %212 : vector<1x1x128xf32> to vector<1x128xf32>
    %c3_102 = arith.constant 3 : index
    %c0_103 = arith.constant 0 : index
    %c0_104 = arith.constant 0 : index
    %214 = vector.load %arg6[%c3_102, %c0_103, %c0_104] : memref<16x128x128xf32, #tpu.memory_space<vmem>>, vector<1x128x128xf32>
    %215 = vector.shape_cast %214 : vector<1x128x128xf32> to vector<128x128xf32>
    %cst_105 = arith.constant dense<0.000000e+00> : vector<1x128xf32>
    %216 = tpu.matmul %213, %215, %cst_105 {dimension_numbers = #tpu.dot_dimension_numbers<[1], [0], [0], [1], [0, 0, 1, 1], [], []>} : vector<1x128xf32>, vector<128x128xf32>, vector<1x128xf32> -> vector<1x128xf32>
    %217 = arith.addf %211, %216 : vector<1x128xf32>
    %218 = vector.extract_strided_slice %190 {offsets = [0, 4, 0], sizes = [1, 1, 128], strides = [1, 1, 1]} : vector<1x16x128xf32> to vector<1x1x128xf32>
    %219 = vector.shape_cast %218 : vector<1x1x128xf32> to vector<1x128xf32>
    %c4_106 = arith.constant 4 : index
    %c0_107 = arith.constant 0 : index
    %c0_108 = arith.constant 0 : index
    %220 = vector.load %arg6[%c4_106, %c0_107, %c0_108] : memref<16x128x128xf32, #tpu.memory_space<vmem>>, vector<1x128x128xf32>
    %221 = vector.shape_cast %220 : vector<1x128x128xf32> to vector<128x128xf32>
    %cst_109 = arith.constant dense<0.000000e+00> : vector<1x128xf32>
    %222 = tpu.matmul %219, %221, %cst_109 {dimension_numbers = #tpu.dot_dimension_numbers<[1], [0], [0], [1], [0, 0, 1, 1], [], []>} : vector<1x128xf32>, vector<128x128xf32>, vector<1x128xf32> -> vector<1x128xf32>
    %223 = arith.addf %217, %222 : vector<1x128xf32>
    %224 = vector.extract_strided_slice %190 {offsets = [0, 5, 0], sizes = [1, 1, 128], strides = [1, 1, 1]} : vector<1x16x128xf32> to vector<1x1x128xf32>
    %225 = vector.shape_cast %224 : vector<1x1x128xf32> to vector<1x128xf32>
    %c5_110 = arith.constant 5 : index
    %c0_111 = arith.constant 0 : index
    %c0_112 = arith.constant 0 : index
    %226 = vector.load %arg6[%c5_110, %c0_111, %c0_112] : memref<16x128x128xf32, #tpu.memory_space<vmem>>, vector<1x128x128xf32>
    %227 = vector.shape_cast %226 : vector<1x128x128xf32> to vector<128x128xf32>
    %cst_113 = arith.constant dense<0.000000e+00> : vector<1x128xf32>
    %228 = tpu.matmul %225, %227, %cst_113 {dimension_numbers = #tpu.dot_dimension_numbers<[1], [0], [0], [1], [0, 0, 1, 1], [], []>} : vector<1x128xf32>, vector<128x128xf32>, vector<1x128xf32> -> vector<1x128xf32>
    %229 = arith.addf %223, %228 : vector<1x128xf32>
    %230 = vector.extract_strided_slice %190 {offsets = [0, 6, 0], sizes = [1, 1, 128], strides = [1, 1, 1]} : vector<1x16x128xf32> to vector<1x1x128xf32>
    %231 = vector.shape_cast %230 : vector<1x1x128xf32> to vector<1x128xf32>
    %c6_114 = arith.constant 6 : index
    %c0_115 = arith.constant 0 : index
    %c0_116 = arith.constant 0 : index
    %232 = vector.load %arg6[%c6_114, %c0_115, %c0_116] : memref<16x128x128xf32, #tpu.memory_space<vmem>>, vector<1x128x128xf32>
    %233 = vector.shape_cast %232 : vector<1x128x128xf32> to vector<128x128xf32>
    %cst_117 = arith.constant dense<0.000000e+00> : vector<1x128xf32>
    %234 = tpu.matmul %231, %233, %cst_117 {dimension_numbers = #tpu.dot_dimension_numbers<[1], [0], [0], [1], [0, 0, 1, 1], [], []>} : vector<1x128xf32>, vector<128x128xf32>, vector<1x128xf32> -> vector<1x128xf32>
    %235 = arith.addf %229, %234 : vector<1x128xf32>
    %236 = vector.extract_strided_slice %190 {offsets = [0, 7, 0], sizes = [1, 1, 128], strides = [1, 1, 1]} : vector<1x16x128xf32> to vector<1x1x128xf32>
    %237 = vector.shape_cast %236 : vector<1x1x128xf32> to vector<1x128xf32>
    %c7_118 = arith.constant 7 : index
    %c0_119 = arith.constant 0 : index
    %c0_120 = arith.constant 0 : index
    %238 = vector.load %arg6[%c7_118, %c0_119, %c0_120] : memref<16x128x128xf32, #tpu.memory_space<vmem>>, vector<1x128x128xf32>
    %239 = vector.shape_cast %238 : vector<1x128x128xf32> to vector<128x128xf32>
    %cst_121 = arith.constant dense<0.000000e+00> : vector<1x128xf32>
    %240 = tpu.matmul %237, %239, %cst_121 {dimension_numbers = #tpu.dot_dimension_numbers<[1], [0], [0], [1], [0, 0, 1, 1], [], []>} : vector<1x128xf32>, vector<128x128xf32>, vector<1x128xf32> -> vector<1x128xf32>
    %241 = arith.addf %235, %240 : vector<1x128xf32>
    %242 = vector.extract_strided_slice %190 {offsets = [0, 8, 0], sizes = [1, 1, 128], strides = [1, 1, 1]} : vector<1x16x128xf32> to vector<1x1x128xf32>
    %243 = vector.shape_cast %242 : vector<1x1x128xf32> to vector<1x128xf32>
    %c8_122 = arith.constant 8 : index
    %c0_123 = arith.constant 0 : index
    %c0_124 = arith.constant 0 : index
    %244 = vector.load %arg6[%c8_122, %c0_123, %c0_124] : memref<16x128x128xf32, #tpu.memory_space<vmem>>, vector<1x128x128xf32>
    %245 = vector.shape_cast %244 : vector<1x128x128xf32> to vector<128x128xf32>
    %cst_125 = arith.constant dense<0.000000e+00> : vector<1x128xf32>
    %246 = tpu.matmul %243, %245, %cst_125 {dimension_numbers = #tpu.dot_dimension_numbers<[1], [0], [0], [1], [0, 0, 1, 1], [], []>} : vector<1x128xf32>, vector<128x128xf32>, vector<1x128xf32> -> vector<1x128xf32>
    %247 = arith.addf %241, %246 : vector<1x128xf32>
    %248 = vector.extract_strided_slice %190 {offsets = [0, 9, 0], sizes = [1, 1, 128], strides = [1, 1, 1]} : vector<1x16x128xf32> to vector<1x1x128xf32>
    %249 = vector.shape_cast %248 : vector<1x1x128xf32> to vector<1x128xf32>
    %c9_126 = arith.constant 9 : index
    %c0_127 = arith.constant 0 : index
    %c0_128 = arith.constant 0 : index
    %250 = vector.load %arg6[%c9_126, %c0_127, %c0_128] : memref<16x128x128xf32, #tpu.memory_space<vmem>>, vector<1x128x128xf32>
    %251 = vector.shape_cast %250 : vector<1x128x128xf32> to vector<128x128xf32>
    %cst_129 = arith.constant dense<0.000000e+00> : vector<1x128xf32>
    %252 = tpu.matmul %249, %251, %cst_129 {dimension_numbers = #tpu.dot_dimension_numbers<[1], [0], [0], [1], [0, 0, 1, 1], [], []>} : vector<1x128xf32>, vector<128x128xf32>, vector<1x128xf32> -> vector<1x128xf32>
    %253 = arith.addf %247, %252 : vector<1x128xf32>
    %254 = vector.extract_strided_slice %190 {offsets = [0, 10, 0], sizes = [1, 1, 128], strides = [1, 1, 1]} : vector<1x16x128xf32> to vector<1x1x128xf32>
    %255 = vector.shape_cast %254 : vector<1x1x128xf32> to vector<1x128xf32>
    %c10_130 = arith.constant 10 : index
    %c0_131 = arith.constant 0 : index
    %c0_132 = arith.constant 0 : index
    %256 = vector.load %arg6[%c10_130, %c0_131, %c0_132] : memref<16x128x128xf32, #tpu.memory_space<vmem>>, vector<1x128x128xf32>
    %257 = vector.shape_cast %256 : vector<1x128x128xf32> to vector<128x128xf32>
    %cst_133 = arith.constant dense<0.000000e+00> : vector<1x128xf32>
    %258 = tpu.matmul %255, %257, %cst_133 {dimension_numbers = #tpu.dot_dimension_numbers<[1], [0], [0], [1], [0, 0, 1, 1], [], []>} : vector<1x128xf32>, vector<128x128xf32>, vector<1x128xf32> -> vector<1x128xf32>
    %259 = arith.addf %253, %258 : vector<1x128xf32>
    %260 = vector.extract_strided_slice %190 {offsets = [0, 11, 0], sizes = [1, 1, 128], strides = [1, 1, 1]} : vector<1x16x128xf32> to vector<1x1x128xf32>
    %261 = vector.shape_cast %260 : vector<1x1x128xf32> to vector<1x128xf32>
    %c11_134 = arith.constant 11 : index
    %c0_135 = arith.constant 0 : index
    %c0_136 = arith.constant 0 : index
    %262 = vector.load %arg6[%c11_134, %c0_135, %c0_136] : memref<16x128x128xf32, #tpu.memory_space<vmem>>, vector<1x128x128xf32>
    %263 = vector.shape_cast %262 : vector<1x128x128xf32> to vector<128x128xf32>
    %cst_137 = arith.constant dense<0.000000e+00> : vector<1x128xf32>
    %264 = tpu.matmul %261, %263, %cst_137 {dimension_numbers = #tpu.dot_dimension_numbers<[1], [0], [0], [1], [0, 0, 1, 1], [], []>} : vector<1x128xf32>, vector<128x128xf32>, vector<1x128xf32> -> vector<1x128xf32>
    %265 = arith.addf %259, %264 : vector<1x128xf32>
    %266 = vector.extract_strided_slice %190 {offsets = [0, 12, 0], sizes = [1, 1, 128], strides = [1, 1, 1]} : vector<1x16x128xf32> to vector<1x1x128xf32>
    %267 = vector.shape_cast %266 : vector<1x1x128xf32> to vector<1x128xf32>
    %c12_138 = arith.constant 12 : index
    %c0_139 = arith.constant 0 : index
    %c0_140 = arith.constant 0 : index
    %268 = vector.load %arg6[%c12_138, %c0_139, %c0_140] : memref<16x128x128xf32, #tpu.memory_space<vmem>>, vector<1x128x128xf32>
    %269 = vector.shape_cast %268 : vector<1x128x128xf32> to vector<128x128xf32>
    %cst_141 = arith.constant dense<0.000000e+00> : vector<1x128xf32>
    %270 = tpu.matmul %267, %269, %cst_141 {dimension_numbers = #tpu.dot_dimension_numbers<[1], [0], [0], [1], [0, 0, 1, 1], [], []>} : vector<1x128xf32>, vector<128x128xf32>, vector<1x128xf32> -> vector<1x128xf32>
    %271 = arith.addf %265, %270 : vector<1x128xf32>
    %272 = vector.extract_strided_slice %190 {offsets = [0, 13, 0], sizes = [1, 1, 128], strides = [1, 1, 1]} : vector<1x16x128xf32> to vector<1x1x128xf32>
    %273 = vector.shape_cast %272 : vector<1x1x128xf32> to vector<1x128xf32>
    %c13_142 = arith.constant 13 : index
    %c0_143 = arith.constant 0 : index
    %c0_144 = arith.constant 0 : index
    %274 = vector.load %arg6[%c13_142, %c0_143, %c0_144] : memref<16x128x128xf32, #tpu.memory_space<vmem>>, vector<1x128x128xf32>
    %275 = vector.shape_cast %274 : vector<1x128x128xf32> to vector<128x128xf32>
    %cst_145 = arith.constant dense<0.000000e+00> : vector<1x128xf32>
    %276 = tpu.matmul %273, %275, %cst_145 {dimension_numbers = #tpu.dot_dimension_numbers<[1], [0], [0], [1], [0, 0, 1, 1], [], []>} : vector<1x128xf32>, vector<128x128xf32>, vector<1x128xf32> -> vector<1x128xf32>
    %277 = arith.addf %271, %276 : vector<1x128xf32>
    %278 = vector.extract_strided_slice %190 {offsets = [0, 14, 0], sizes = [1, 1, 128], strides = [1, 1, 1]} : vector<1x16x128xf32> to vector<1x1x128xf32>
    %279 = vector.shape_cast %278 : vector<1x1x128xf32> to vector<1x128xf32>
    %c14_146 = arith.constant 14 : index
    %c0_147 = arith.constant 0 : index
    %c0_148 = arith.constant 0 : index
    %280 = vector.load %arg6[%c14_146, %c0_147, %c0_148] : memref<16x128x128xf32, #tpu.memory_space<vmem>>, vector<1x128x128xf32>
    %281 = vector.shape_cast %280 : vector<1x128x128xf32> to vector<128x128xf32>
    %cst_149 = arith.constant dense<0.000000e+00> : vector<1x128xf32>
    %282 = tpu.matmul %279, %281, %cst_149 {dimension_numbers = #tpu.dot_dimension_numbers<[1], [0], [0], [1], [0, 0, 1, 1], [], []>} : vector<1x128xf32>, vector<128x128xf32>, vector<1x128xf32> -> vector<1x128xf32>
    %283 = arith.addf %277, %282 : vector<1x128xf32>
    %284 = vector.extract_strided_slice %190 {offsets = [0, 15, 0], sizes = [1, 1, 128], strides = [1, 1, 1]} : vector<1x16x128xf32> to vector<1x1x128xf32>
    %285 = vector.shape_cast %284 : vector<1x1x128xf32> to vector<1x128xf32>
    %c15_150 = arith.constant 15 : index
    %c0_151 = arith.constant 0 : index
    %c0_152 = arith.constant 0 : index
    %286 = vector.load %arg6[%c15_150, %c0_151, %c0_152] : memref<16x128x128xf32, #tpu.memory_space<vmem>>, vector<1x128x128xf32>
    %287 = vector.shape_cast %286 : vector<1x128x128xf32> to vector<128x128xf32>
    %cst_153 = arith.constant dense<0.000000e+00> : vector<1x128xf32>
    %288 = tpu.matmul %285, %287, %cst_153 {dimension_numbers = #tpu.dot_dimension_numbers<[1], [0], [0], [1], [0, 0, 1, 1], [], []>} : vector<1x128xf32>, vector<128x128xf32>, vector<1x128xf32> -> vector<1x128xf32>
    %289 = arith.addf %283, %288 : vector<1x128xf32>
    %cst_154 = arith.constant 0.000000e+00 : f32
    %290 = vector.broadcast %cst_154 : f32 to vector<1x128xf32>
    %291 = arith.maximumf %289, %290 : vector<1x128xf32>
    %c0_155 = arith.constant 0 : index
    %c0_156 = arith.constant 0 : index
    %292 = vector.load %arg8[%c0_155, %c0_156] : memref<128x128xf32, #tpu.memory_space<vmem>>, vector<128x128xf32>
    %cst_157 = arith.constant dense<0.000000e+00> : vector<1x128xf32>
    %293 = tpu.matmul %291, %292, %cst_157 {dimension_numbers = #tpu.dot_dimension_numbers<[1], [0], [0], [1], [0, 0, 1, 1], [], []>} : vector<1x128xf32>, vector<128x128xf32>, vector<1x128xf32> -> vector<1x128xf32>
    %c0_158 = arith.constant 0 : index
    %c0_159 = arith.constant 0 : index
    %294 = vector.load %arg9[%c0_158, %c0_159] : memref<1x128xf32, #tpu.memory_space<vmem>>, vector<1x128xf32>
    %295 = arith.addf %293, %294 : vector<1x128xf32>
    %296 = tpu.iota {dimensions = array<i32: 1>} : vector<1x128xi32>
    %c10_i32 = arith.constant 10 : i32
    %297 = vector.broadcast %c10_i32 : i32 to vector<1x128xi32>
    %298 = arith.cmpi slt, %296, %297 : vector<1x128xi32>
    %cst_160 = arith.constant -1.000000e+30 : f32
    %299 = vector.broadcast %cst_160 : f32 to vector<1x128xf32>
    %300 = arith.select %298, %295, %299 : vector<1x128xi1>, vector<1x128xf32>
    %cst_161 = arith.constant dense<0xFF800000> : vector<1xf32>
    %301 = vector.multi_reduction <maximumf>, %300, %cst_161 [1] : vector<1x128xf32> to vector<1xf32>
    %302 = vector.shape_cast %301 : vector<1xf32> to vector<1x1xf32>
    %303 = vector.broadcast %302 : vector<1x1xf32> to vector<1x128xf32>
    %304 = arith.subf %300, %303 : vector<1x128xf32>
    %305 = math.exp %304 : vector<1x128xf32>
    %cst_162 = arith.constant dense<0.000000e+00> : vector<1xf32>
    %306 = vector.multi_reduction <add>, %305, %cst_162 [1] : vector<1x128xf32> to vector<1xf32>
    %307 = vector.shape_cast %306 : vector<1xf32> to vector<1x1xf32>
    %308 = math.log %307 : vector<1x1xf32>
    %309 = vector.broadcast %308 : vector<1x1xf32> to vector<1x128xf32>
    %310 = arith.subf %304, %309 : vector<1x128xf32>
    %311 = vector.shape_cast %310 : vector<1x128xf32> to vector<1x1x128xf32>
    %c0_163 = arith.constant 0 : index
    %c0_164 = arith.constant 0 : index
    %c0_165 = arith.constant 0 : index
    %312 = vector.load %arg10[%c0_163, %c0_164, %c0_165] : memref<1x1x128xf32, #tpu.memory_space<vmem>>, vector<1x1x128xf32>
    tpu.vector_store %arg10[%c0_163, %c0_164, %c0_165], %311 {strides = array<i32>} : memref<1x1x128xf32, #tpu.memory_space<vmem>>, vector<1x1x128xf32>,
    return
  }
  func.func @transform_0(%arg0: i32) -> (i32, i32, i32) {
    %c0_i32 = arith.constant 0 : i32
    %c0_i32_0 = arith.constant 0 : i32
    %c0_i32_1 = arith.constant 0 : i32
    return %arg0, %c0_i32, %c0_i32_0 : i32, i32, i32
  }
  func.func @transform_1(%arg0: i32) -> (i32, i32) {
    %c0_i32 = arith.constant 0 : i32
    %c0_i32_0 = arith.constant 0 : i32
    %c0_i32_1 = arith.constant 0 : i32
    return %c0_i32, %c0_i32_0 : i32, i32
  }
  func.func @transform_2(%arg0: i32) -> (i32, i32) {
    %c0_i32 = arith.constant 0 : i32
    %c0_i32_0 = arith.constant 0 : i32
    %c0_i32_1 = arith.constant 0 : i32
    return %c0_i32, %c0_i32_0 : i32, i32
  }
  func.func @transform_3(%arg0: i32) -> (i32, i32, i32) {
    %c0_i32 = arith.constant 0 : i32
    %c0_i32_0 = arith.constant 0 : i32
    %c0_i32_1 = arith.constant 0 : i32
    %c0_i32_2 = arith.constant 0 : i32
    return %c0_i32, %c0_i32_0, %c0_i32_1 : i32, i32, i32
  }
  func.func @transform_4(%arg0: i32) -> (i32, i32) {
    %c0_i32 = arith.constant 0 : i32
    %c0_i32_0 = arith.constant 0 : i32
    %c0_i32_1 = arith.constant 0 : i32
    return %c0_i32, %c0_i32_0 : i32, i32
  }
  func.func @transform_5(%arg0: i32) -> (i32, i32, i32) {
    %c0_i32 = arith.constant 0 : i32
    %c0_i32_0 = arith.constant 0 : i32
    %c0_i32_1 = arith.constant 0 : i32
    %c0_i32_2 = arith.constant 0 : i32
    return %c0_i32, %c0_i32_0, %c0_i32_1 : i32, i32, i32
  }
  func.func @transform_6(%arg0: i32) -> (i32, i32) {
    %c0_i32 = arith.constant 0 : i32
    %c0_i32_0 = arith.constant 0 : i32
    %c0_i32_1 = arith.constant 0 : i32
    return %c0_i32, %c0_i32_0 : i32, i32
  }
  func.func @transform_7(%arg0: i32) -> (i32, i32) {
    %c0_i32 = arith.constant 0 : i32
    %c0_i32_0 = arith.constant 0 : i32
    %c0_i32_1 = arith.constant 0 : i32
    return %c0_i32, %c0_i32_0 : i32, i32
  }
  func.func @transform_8(%arg0: i32) -> (i32, i32) {
    %c0_i32 = arith.constant 0 : i32
    %c0_i32_0 = arith.constant 0 : i32
    %c0_i32_1 = arith.constant 0 : i32
    return %c0_i32, %c0_i32_0 : i32, i32
  }
  func.func @transform_9(%arg0: i32) -> (i32, i32, i32) {
    %c0_i32 = arith.constant 0 : i32
    %c0_i32_0 = arith.constant 0 : i32
    %c0_i32_1 = arith.constant 0 : i32
    return %arg0, %c0_i32, %c0_i32_0 : i32, i32, i32
  }
}

</mosaic_0001>

<bundles_post_ra>
// kernel: target_forward_fn.1
= control target key start
LH: loop header
LB: loop body
LE: loop exit
PB: predicated region body
PF: predicated region fallthrough
CT: control target
= control target key end

     0   :  { %14 = vsyncpa [#allocation3], 0  ;;  %s21495_s0 = inlined_call_operand.vmem [shape: f32[2,576,25], index: 0, kind: input, shape index: {}]   ;;  %s21496_s1 = inlined_call_operand.vmem [shape: f32[25,128], index: 1, kind: input, shape index: {}]   ;;  %s21497_s2 = inlined_call_operand.vmem [shape: f32[1,128], index: 2, kind: input, shape index: {}]   ;;  %s21498_s3 = inlined_call_operand.vmem [shape: f32[25,128,128], index: 3, kind: input, shape index: {}]   ;;  %s21499_s4 = inlined_call_operand.vmem [shape: f32[1,128], index: 4, kind: input, shape index: {}]   ;;  %s21500_s5 = inlined_call_operand.vmem [shape: f32[16,128,128], index: 5, kind: input, shape index: {}]   ;;  %s21501_s6 = inlined_call_operand.vmem [shape: f32[1,128], index: 6, kind: input, shape index: {}]   ;;  %s21502_s7 = inlined_call_operand.vmem [shape: f32[128,128], index: 7, kind: input, shape index: {}]   ;;  %s21503_s8 = inlined_call_operand.vmem [shape: f32[1,128], index: 8, kind: input, shape index: {}]   ;;  %s21504_s9 = inlined_call_operand.hbm [shape: f32[2,1,128], index: 9, kind: output, shape index: {}]  }
   0x1   :  { %16 = vsyncpa [#allocation3 + $0x1], 0  ;;  %s15890_s30 = smov 0   ;;  %s15892_s10 = smov 0  }
   0x2   :  { %s15894_s11 = smov 0   ;;  %s15896_s12 = smov 0  }
   0x3 LB: > { %s15911_s13 = sadd.s32 4294967295, %s15832_s12   ;;  %s10465_s14 = sadd.s32 4294967294, %s15832_s12   ;;  %s15832_s12 = sphi %s15896_s12, %s22204_s12   ;;  %s15828_s11 = sphi %s15894_s11, %s22203_s11   ;;  %s15824_s10 = sphi %s15892_s10, %s22202_s10   ;;  %s15820_s30 = sphi %s15890_s30, %s22201_s30  }
   0x4   : > { %s15915_s15 = sadd.s32 1, %s15832_s12   ;;  %s223_s16 = sadd.s32 1, %s15828_s11 }
   0x5   : > { %s220_s17 = ssub.s32 %s15832_s12, %s15915_s15  ;;  %p233_p0 = scmp.ne.s32.totalorder %s15828_s11, %s15824_s10 }
   0x6   : > { %p221_p1 = scmp.eq.s32.totalorder %s220_s17, 0  ;;  %p234_p2 = scmp.eq.s32.totalorder %s15911_s13, 1 }
   0x7   : > { %p239_p3 = scmp.ne.s32.totalorder %s15824_s10, %s15820_s30  ;;  %p240_p4 = scmp.eq.s32.totalorder %s10465_s14, 1 }
   0x8   : > { %s15926_s18 = scalar_select %p221_p1, %s15828_s11, %s223_s16  }
   0x9   : > { %p15928_p5 = por %p234_p2, %p233_p0  ;;  %p15932_p6 = por %p240_p4, %p239_p3 }
   0xa   : > { %p10468_p7 = scmp.ge.s32.totalorder %s15832_s12, 1  ;;  %p290_p8 = scmp.lt.s32.totalorder %s15832_s12, 3 }
   0xc   : > { %p291_p9 = pnand %p10468_p7, %p290_p8 }
   0xe   : > { %294 = sbr.rel (%p291_p9) target bundleno = 2672 (0xa70), region = 56 }
  0x15   : > { %v402_v0 = vld [vmem:[%s21496_s1] sm:$0xff]  ;;  %v403_v1 = vld [vmem:[%s21496_s1 + $0x8] sm:$0xff]  ;;  %v404_v2 = vld [vmem:[%s21496_s1 + $0x10] sm:$0xff]  ;;  %vm630_vm0 = vcmask 1040384   ;;  %p325_p10 = scmp.lt.s32.totalorder %s15911_s13, 1  ;;  %vm15834_vm1 = vmmov 1  }
  0x16   : > { %v14268_v3 = vpack.c.bf16 %v403_v1, %v402_v0  ;;  %v405_v4 = vld [vmem:[%s21496_s1 + $0x18] sm:$0x1]  ;;  %vm14273_vm2 = vmpackc.low %vm630_vm0, %vm15834_vm1  ;;  %vm413_vm3 = vcmask 203776   ;;  %v4091_v60 = vld [vmem:[%s21498_s3] sm:$0xff]  ;;  %vm4427_vm4 = vcmask 1041409   ;;  %vm4429_vm5 = vcmask 1042434  }
  0x17   : > { %v14272_v5 = vpack.c.bf16 %v405_v4, %v404_v2  ;;  %s326_s29 = scalar_select %p325_p10, %s15911_s13, 1  ;;  %v4092_v61 = vld [vmem:[%s21498_s3 + $0x8] sm:$0xff]  ;;  %v10849_v0 = vld [vmem:[%s21498_s3 + $0x100] sm:$0xff]  ;;  %vm4431_vm6 = vcmask 1043459   ;;  %vm4433_vm7 = vcmask 1044484   ;;  %vm4435_vm8 = vcmask 1045509  }
  0x18   : > { %14269 = vmatprep.subr.bf16.mxu0 %v14268_v3  ;;  %v14278_v63 = vpack.c.bf16 %v4092_v61, %v4091_v60  ;;  %v10850_v1 = vld [vmem:[%s21498_s3 + $0x108] sm:$0xff]  ;;  %v10864_v60 = vld [vmem:[%s21498_s3 + $0x178] sm:$0xff]  ;;  %vm4437_vm9 = vcmask 1046534   ;;  %vm4439_vm10 = vcmask 1047559   ;;  %vm15837_vm11 = vmmov 0  }
  0x19   : > { %14271 = vmatpush3.bf16.msra.mxu0 %v14268_v3  ;;  %s15717_s14 = smul.u32 576, %s326_s29  ;;  %v14342_v2 = vpack.c.bf16 %v10850_v1, %v10849_v0  ;;  %v21505_v0 = vlaneseq  ;;  %s323_s29 = sand.u32 1, %s15824_s10  }
  0x1a   : > { %14274 = vmatprep.subr.msk.bf16.mxu0 %vm14273_vm2, %v14272_v5  ;;  %s324_s16 = scalar_lea.vmem [#allocation2], %s323_s29 }
  0x1b   : > { %s15956_s21 = scalar_lea.vmem %s21495_s0, %s15717_s14  ;;  %14343 = vmatprep.subr.bf16.mxu1 %v14342_v2  ;;  %s11489_s14 = sshll.u32 %s15911_s13, 4 }
  0x1c   : > { %v330_v6 = vld [vmem:[%s15956_s21] sm:$0xff]  ;;  %v331_v7 = vld [vmem:[%s15956_s21 + $0x8] sm:$0xff]  ;;  %v332_v8 = vld [vmem:[%s15956_s21 + $0x10] sm:$0xff]  ;;  %14345 = vmatpush3.bf16.msra.mxu1 %v14342_v2  ;;  %v16199_v2 = vshrl.u32 %v21505_v0, 7  ;;  %s10410_s17 = sshll.u32 %s324_s16, 4  ;;  %s21453_s24 = scalar_lea.hbm %s21504_s9, %s11489_s14  ;;  %s21455_s17 = int_to_ptr.vmem [resolvable:$true] %s10410_s17 }
  0x1d   : > { %14277 = vmatpush3.bf16.msk.msra.mxu0 %vm14273_vm2, %v14272_v5  ;;  %12465 = vmatprep.mubr.msk.f32.mxu0 %vm413_vm3, %v330_v6  ;;  %v333_v9 = vld [vmem:[%s15956_s21 + $0x18] sm:$0xff]  ;;  %v334_v10 = vld [vmem:[%s15956_s21 + $0x20] sm:$0xff]  ;;  %v335_v11 = vld [vmem:[%s15956_s21 + $0x28] sm:$0xff]  ;;  %s15770_s25 = scalar_lea.vmem %s21455_s17, 16  ;;  %s15839_s13 = smov [#allocation2]  }
  0x1e   : > { %v336_v12 = vld [vmem:[%s15956_s21 + $0x30] sm:$0xff]  ;;  %v337_v13 = vld [vmem:[%s15956_s21 + $0x38] sm:$0xff]  ;;  %v338_v14 = vld [vmem:[%s15956_s21 + $0x40] sm:$0xff]  ;;  %14279 = vmatprep.subr.bf16.mxu0 %v14278_v63  ;;  %p15771_p11 = scmp.ne.s32.totalorder %s21455_s17, %s15770_s25  ;;  %s15774_s26 = sshll.u32 %s15839_s13, 4  ;;  %s15775_s26 = int_to_ptr.vmem [resolvable:$false] %s15774_s26 }
  0x1f   : > { %v339_v15 = vld [vmem:[%s15956_s21 + $0x48] sm:$0xff]  ;;  %v340_v16 = vld [vmem:[%s15956_s21 + $0x50] sm:$0xff]  ;;  %v341_v17 = vld [vmem:[%s15956_s21 + $0x58] sm:$0xff]  ;;  %s15776_s27 = scalar_lea.vmem %s15775_s26, 32  ;;  %p15777_p0 = scmp.lt.s32.totalorder %s21455_s17, %s15775_s26 }
  0x20   : > { %12466 = vmatmul.mubr.msk.f32.vlgmr.msra.gmra.mrb[0].mxu0 %vm413_vm3, %v331_v7  ;;  %v342_v18 = vld [vmem:[%s15956_s21 + $0x60] sm:$0xff]  ;;  %v343_v19 = vld [vmem:[%s15956_s21 + $0x68] sm:$0xff]  ;;  %v344_v20 = vld [vmem:[%s15956_s21 + $0x70] sm:$0xff]  ;;  %p15772_p12 = pnand %p15771_p11, %p15928_p5  ;;  %p15778_p1 = scmp.lt.s32.totalorder %s15776_s27, %s15770_s25 }
  0x21   : > { %12468 = vmatprep.mubr.msk.f32.mxu0 %vm413_vm3, %v332_v8  ;;  %v345_v21 = vld [vmem:[%s15956_s21 + $0x78] sm:$0xff]  ;;  %v346_v22 = vld [vmem:[%s15956_s21 + $0x80] sm:$0xff]  ;;  %v347_v23 = vld [vmem:[%s15956_s21 + $0x88] sm:$0xff]  ;;  %14281 = vmatpush3.bf16.msra.mxu0 %v14278_v63 }
  0x22   : > { %v348_v24 = vld [vmem:[%s15956_s21 + $0x90] sm:$0xff]  ;;  %v349_v25 = vld [vmem:[%s15956_s21 + $0x98] sm:$0xff]  ;;  %v350_v26 = vld [vmem:[%s15956_s21 + $0xa0] sm:$0xff]  ;;  %p15773_p13 = pneg %p15772_p12  ;;  %p15779_p2 = por %p15778_p1, %p15777_p0 }
  0x23   : > { %v351_v27 = vld [vmem:[%s15956_s21 + $0xa8] sm:$0xff]  ;;  %v352_v28 = vld [vmem:[%s15956_s21 + $0xb0] sm:$0xff]  ;;  %v353_v29 = vld [vmem:[%s15956_s21 + $0xb8] sm:$0xff] }
  0x24   : > { %12469 = vmatmul.mubr.msk.f32.gmra.mrb[2].mxu0 %vm413_vm3, %v333_v9  ;;  %v354_v30 = vld [vmem:[%s15956_s21 + $0xc0] sm:$0xff]  ;;  %v355_v31 = vld [vmem:[%s15956_s21 + $0xc8] sm:$0xff]  ;;  %v356_v32 = vld [vmem:[%s15956_s21 + $0xd0] sm:$0xff]  ;;  %p15780_p3 = pnand %p15779_p2, %p15773_p13 }
  0x25   : > { %12471 = vmatprep.mubr.msk.f32.mxu0 %vm413_vm3, %v334_v10  ;;  %v357_v33 = vld [vmem:[%s15956_s21 + $0xd8] sm:$0xff]  ;;  %v358_v34 = vld [vmem:[%s15956_s21 + $0xe0] sm:$0xff]  ;;  %v359_v35 = vld [vmem:[%s15956_s21 + $0xe8] sm:$0xff] }
  0x26   : > { %v360_v36 = vld [vmem:[%s15956_s21 + $0xf0] sm:$0xff]  ;;  %v361_v37 = vld [vmem:[%s15956_s21 + $0xf8] sm:$0xff]  ;;  %v362_v38 = vld [vmem:[%s15956_s21 + $0x100] sm:$0xff] }
  0x27   : > { %v363_v39 = vld [vmem:[%s15956_s21 + $0x108] sm:$0xff]  ;;  %v364_v40 = vld [vmem:[%s15956_s21 + $0x110] sm:$0xff]  ;;  %v365_v41 = vld [vmem:[%s15956_s21 + $0x118] sm:$0xff] }
  0x28   : > { %12472 = vmatmul.mubr.msk.f32.gmra.mrb[4].mxu0 %vm413_vm3, %v335_v11  ;;  %v366_v42 = vld [vmem:[%s15956_s21 + $0x120] sm:$0xff]  ;;  %v367_v43 = vld [vmem:[%s15956_s21 + $0x128] sm:$0xff]  ;;  %v368_v44 = vld [vmem:[%s15956_s21 + $0x130] sm:$0xff] }
  0x29   : > { %12474 = vmatprep.mubr.msk.f32.mxu0 %vm413_vm3, %v336_v12  ;;  %v369_v45 = vld [vmem:[%s15956_s21 + $0x138] sm:$0xff]  ;;  %v370_v46 = vld [vmem:[%s15956_s21 + $0x140] sm:$0xff]  ;;  %v371_v47 = vld [vmem:[%s15956_s21 + $0x148] sm:$0xff] }
  0x2a   : > { %v372_v48 = vld [vmem:[%s15956_s21 + $0x150] sm:$0xff]  ;;  %v373_v49 = vld [vmem:[%s15956_s21 + $0x158] sm:$0xff]  ;;  %v374_v50 = vld [vmem:[%s15956_s21 + $0x160] sm:$0xff] }
  0x2b   : > { %v375_v51 = vld [vmem:[%s15956_s21 + $0x168] sm:$0xff]  ;;  %v376_v52 = vld [vmem:[%s15956_s21 + $0x170] sm:$0xff]  ;;  %v377_v53 = vld [vmem:[%s15956_s21 + $0x178] sm:$0xff] }
  0x2c   : > { %12475 = vmatmul.mubr.msk.f32.gmra.mrb[6].mxu0 %vm413_vm3, %v337_v13  ;;  %v378_v54 = vld [vmem:[%s15956_s21 + $0x180] sm:$0xff]  ;;  %v379_v55 = vld [vmem:[%s15956_s21 + $0x188] sm:$0xff]  ;;  %v380_v56 = vld [vmem:[%s15956_s21 + $0x190] sm:$0xff] }
  0x2d   : > { %12477 = vmatprep.mubr.msk.f32.mxu0 %vm413_vm3, %v338_v14  ;;  %v381_v57 = vld [vmem:[%s15956_s21 + $0x198] sm:$0xff]  ;;  %v382_v58 = vld [vmem:[%s15956_s21 + $0x1a0] sm:$0xff]  ;;  %v383_v59 = vld [vmem:[%s15956_s21 + $0x1a8] sm:$0xff] }
  0x2e   : > { %v384_v62 = vld [vmem:[%s15956_s21 + $0x1b0] sm:$0xff]  ;;  %v385_v3 = vld [vmem:[%s15956_s21 + $0x1b8] sm:$0xff]  ;;  %v386_v4 = vld [vmem:[%s15956_s21 + $0x1c0] sm:$0xff] }
  0x2f   : > { %v4093_v5 = vld [vmem:[%s21498_s3 + $0x10] sm:$0xff]  ;;  %v4094_v6 = vld [vmem:[%s21498_s3 + $0x18] sm:$0xff]  ;;  %v387_v7 = vld [vmem:[%s15956_s21 + $0x1c8] sm:$0xff] }
  0x30   : > { %12478 = vmatmul.mubr.msk.f32.gmra.mrb[8].mxu0 %vm413_vm3, %v339_v15  ;;  %v14282_v8 = vpack.c.bf16 %v4094_v6, %v4093_v5  ;;  %v388_v9 = vld [vmem:[%s15956_s21 + $0x1d0] sm:$0xff]  ;;  %v10852_v11 = vld [vmem:[%s21498_s3 + $0x118] sm:$0xff]  ;;  %v390_v14 = vld [vmem:[%s15956_s21 + $0x1e0] sm:$0xff] }
  0x31   : > { %12480 = vmatprep.mubr.msk.f32.mxu0 %vm413_vm3, %v340_v16  ;;  %v10851_v10 = vld [vmem:[%s21498_s3 + $0x110] sm:$0xff]  ;;  %v389_v13 = vld [vmem:[%s15956_s21 + $0x1d8] sm:$0xff]  ;;  %v4095_v15 = vld [vmem:[%s21498_s3 + $0x20] sm:$0xff] }
  0x32   : > { %14283 = vmatprep.subr.bf16.mxu0 %v14282_v8  ;;  %v14346_v12 = vpack.c.bf16 %v10852_v11, %v10851_v10  ;;  %v4096_v16 = vld [vmem:[%s21498_s3 + $0x28] sm:$0xff] }
  0x33   : > { %14285 = vmatpush3.bf16.msra.mxu0 %v14282_v8 }
  0x34   : > { %12481 = vmatmul.mubr.msk.f32.gmra.mrb[10].mxu0 %vm413_vm3, %v341_v17  ;;  %14347 = vmatprep.subr.bf16.mxu1 %v14346_v12  ;;  %v14286_v17 = vpack.c.bf16 %v4096_v16, %v4095_v15 }
  0x35   : > { %12483 = vmatprep.mubr.msk.f32.mxu0 %vm413_vm3, %v342_v18  ;;  %14349 = vmatpush3.bf16.msra.mxu1 %v14346_v12  ;;  %v391_v18 = vld [vmem:[%s15956_s21 + $0x1e8] sm:$0xff] }
  0x36   : > { %14287 = vmatprep.subr.bf16.mxu0 %v14286_v17 }
  0x37   : > { %14289 = vmatpush3.bf16.msra.mxu0 %v14286_v17 }
  0x38   : > { %12484 = vmatmul.mubr.msk.f32.gmra.mrb[12].mxu0 %vm413_vm3, %v343_v19  ;;  %v10853_v19 = vld [vmem:[%s21498_s3 + $0x120] sm:$0xff] }
  0x39   : > { %12486 = vmatprep.mubr.msk.f32.mxu0 %vm413_vm3, %v344_v20  ;;  %v10854_v20 = vld [vmem:[%s21498_s3 + $0x128] sm:$0xff] }
  0x3c   : > { %12487 = vmatmul.mubr.msk.f32.gmra.mrb[14].mxu0 %vm413_vm3, %v345_v21  ;;  %v392_v21 = vld [vmem:[%s15956_s21 + $0x1f0] sm:$0xff] }
  0x3d   : > { %12489 = vmatprep.mubr.msk.f32.mxu0 %vm413_vm3, %v346_v22  ;;  %v14350_v22 = vpack.c.bf16 %v10854_v20, %v10853_v19 }
  0x3f   : > { %14351 = vmatprep.subr.bf16.mxu1 %v14350_v22 }
  0x40   : > { %12490 = vmatmul.mubr.msk.f32.gmra.mrb[16].mxu0 %vm413_vm3, %v347_v23  ;;  %v393_v23 = vld [vmem:[%s15956_s21 + $0x1f8] sm:$0xff]  ;;  %14353 = vmatpush3.bf16.msra.mxu1 %v14350_v22 }
  0x41   : > { %12492 = vmatprep.mubr.msk.f32.mxu0 %vm413_vm3, %v348_v24  ;;  %v394_v24 = vld [vmem:[%s15956_s21 + $0x200] sm:$0xff] }
  0x44   : > { %12493 = vmatmul.mubr.msk.f32.gmra.mrb[18].mxu0 %vm413_vm3, %v349_v25  ;;  %v395_v25 = vld [vmem:[%s15956_s21 + $0x208] sm:$0xff] }
  0x45   : > { %12495 = vmatprep.mubr.msk.f32.mxu0 %vm413_vm3, %v350_v26  ;;  %v396_v26 = vld [vmem:[%s15956_s21 + $0x210] sm:$0xff] }
  0x48   : > { %12496 = vmatmul.mubr.msk.f32.gmra.mrb[20].mxu0 %vm413_vm3, %v351_v27  ;;  %v4097_v27 = vld [vmem:[%s21498_s3 + $0x30] sm:$0xff] }
  0x49   : > { %12498 = vmatprep.mubr.msk.f32.mxu0 %vm413_vm3, %v352_v28  ;;  %v4098_v28 = vld [vmem:[%s21498_s3 + $0x38] sm:$0xff] }
  0x4c   : > { %12499 = vmatmul.mubr.msk.f32.gmra.mrb[22].mxu0 %vm413_vm3, %v353_v29  ;;  %v397_v29 = vld [vmem:[%s15956_s21 + $0x218] sm:$0xff] }
  0x4d   : > { %12501 = vmatprep.mubr.msk.f32.mxu0 %vm413_vm3, %v354_v30  ;;  %v14290_v30 = vpack.c.bf16 %v4098_v28, %v4097_v27 }
  0x4f   : > { %14291 = vmatprep.subr.bf16.mxu0 %v14290_v30 }
  0x50   : > { %12502 = vmatmul.mubr.msk.f32.gmra.mrb[24].mxu0 %vm413_vm3, %v355_v31  ;;  %v10855_v31 = vld [vmem:[%s21498_s3 + $0x130] sm:$0xff] }
  0x51   : > { %12504 = vmatprep.mubr.msk.f32.mxu0 %vm413_vm3, %v356_v32  ;;  %v10856_v32 = vld [vmem:[%s21498_s3 + $0x138] sm:$0xff]  ;;  %14293 = vmatpush3.bf16.msra.mxu0 %v14290_v30 }
  0x54   : > { %12505 = vmatmul.mubr.msk.f32.gmra.mrb[26].mxu0 %vm413_vm3, %v357_v33  ;;  %v14354_v33 = vpack.c.bf16 %v10856_v32, %v10855_v31 }
  0x55   : > { %12507 = vmatprep.mubr.msk.f32.mxu0 %vm413_vm3, %v358_v34  ;;  %v398_v34 = vld [vmem:[%s15956_s21 + $0x220] sm:$0xff] }
  0x56   : > { %14355 = vmatprep.subr.bf16.mxu1 %v14354_v33 }
  0x57   : > { %14357 = vmatpush3.bf16.msra.mxu1 %v14354_v33 }
  0x58   : > { %12508 = vmatmul.mubr.msk.f32.gmra.mrb[28].mxu0 %vm413_vm3, %v359_v35  ;;  %v399_v35 = vld [vmem:[%s15956_s21 + $0x228] sm:$0xff] }
  0x59   : > { %12510 = vmatprep.mubr.msk.f32.mxu0 %vm413_vm3, %v360_v36  ;;  %v4099_v36 = vld [vmem:[%s21498_s3 + $0x40] sm:$0xff] }
  0x5c   : > { %12511 = vmatmul.mubr.msk.f32.gmra.mrb[30].mxu0 %vm413_vm3, %v361_v37  ;;  %v4100_v37 = vld [vmem:[%s21498_s3 + $0x48] sm:$0xff] }
  0x5d   : > { %12513 = vmatprep.mubr.msk.f32.mxu0 %vm413_vm3, %v362_v38  ;;  %v14294_v38 = vpack.c.bf16 %v4100_v37, %v4099_v36 }
  0x5f   : > { %14295 = vmatprep.subr.bf16.mxu0 %v14294_v38 }
  0x60   : > { %12514 = vmatmul.mubr.msk.f32.gmra.mrb[32].mxu0 %vm413_vm3, %v363_v39  ;;  %v10857_v39 = vld [vmem:[%s21498_s3 + $0x140] sm:$0xff] }
  0x61   : > { %12516 = vmatprep.mubr.msk.f32.mxu0 %vm413_vm3, %v364_v40  ;;  %v10858_v40 = vld [vmem:[%s21498_s3 + $0x148] sm:$0xff]  ;;  %14297 = vmatpush3.bf16.msra.mxu0 %v14294_v38 }
  0x64   : > { %12517 = vmatmul.mubr.msk.f32.gmra.mrb[34].mxu0 %vm413_vm3, %v365_v41  ;;  %v14358_v41 = vpack.c.bf16 %v10858_v40, %v10857_v39 }
  0x65   : > { %12519 = vmatprep.mubr.msk.f32.mxu0 %vm413_vm3, %v366_v42  ;;  %v400_v42 = vld [vmem:[%s15956_s21 + $0x230] sm:$0xff] }
  0x66   : > { %14359 = vmatprep.subr.bf16.mxu1 %v14358_v41 }
  0x67   : > { %14361 = vmatpush3.bf16.msra.mxu1 %v14358_v41 }
  0x68   : > { %12520 = vmatmul.mubr.msk.f32.gmra.mrb[36].mxu0 %vm413_vm3, %v367_v43  ;;  %v401_v43 = vld [vmem:[%s15956_s21 + $0x238] sm:$0xff]  ;;  %s10398_s21 = scalar_lea.sflag [#allocation3], %s323_s29 }
  0x69   : > { %12522 = vmatprep.mubr.msk.f32.mxu0 %vm413_vm3, %v368_v44  ;;  %v4101_v44 = vld [vmem:[%s21498_s3 + $0x50] sm:$0xff] }
  0x6c   : > { %12523 = vmatmul.mubr.msk.f32.gmra.mrb[38].mxu0 %vm413_vm3, %v369_v45  ;;  %v4102_v45 = vld [vmem:[%s21498_s3 + $0x58] sm:$0xff] }
  0x6d   : > { %12525 = vmatprep.mubr.msk.f32.mxu0 %vm413_vm3, %v370_v46  ;;  %v14298_v46 = vpack.c.bf16 %v4102_v45, %v4101_v44 }
  0x6f   : > { %14299 = vmatprep.subr.bf16.mxu0 %v14298_v46 }
  0x70   : > { %12526 = vmatmul.mubr.msk.f32.gmra.mrb[40].mxu0 %vm413_vm3, %v371_v47  ;;  %v10859_v47 = vld [vmem:[%s21498_s3 + $0x150] sm:$0xff] }
  0x71   : > { %12528 = vmatprep.mubr.msk.f32.mxu0 %vm413_vm3, %v372_v48  ;;  %14301 = vmatpush3.bf16.msra.mxu0 %v14298_v46  ;;  %v10860_v48 = vld [vmem:[%s21498_s3 + $0x158] sm:$0xff] }
  0x74   : > { %12529 = vmatmul.mubr.msk.f32.gmra.mrb[42].mxu0 %vm413_vm3, %v373_v49  ;;  %v14362_v49 = vpack.c.bf16 %v10860_v48, %v10859_v47 }
  0x75   : > { %12531 = vmatprep.mubr.msk.f32.mxu0 %vm413_vm3, %v374_v50  ;;  %v4103_v50 = vld [vmem:[%s21498_s3 + $0x60] sm:$0xff] }
  0x76   : > { %14363 = vmatprep.subr.bf16.mxu1 %v14362_v49 }
  0x77   : > { %14365 = vmatpush3.bf16.msra.mxu1 %v14362_v49 }
  0x78   : > { %12532 = vmatmul.mubr.msk.f32.gmra.mrb[44].mxu0 %vm413_vm3, %v375_v51  ;;  %v4104_v51 = vld [vmem:[%s21498_s3 + $0x68] sm:$0xff] }
  0x79   : > { %12534 = vmatprep.mubr.msk.f32.mxu0 %vm413_vm3, %v376_v52  ;;  %v14302_v52 = vpack.c.bf16 %v4104_v51, %v4103_v50 }
  0x7b   : > { %14303 = vmatprep.subr.bf16.mxu0 %v14302_v52 }
  0x7c   : > { %12535 = vmatmul.mubr.msk.f32.gmra.mrb[46].mxu0 %vm413_vm3, %v377_v53  ;;  %v10861_v53 = vld [vmem:[%s21498_s3 + $0x160] sm:$0xff] }
  0x7d   : > { %12537 = vmatprep.mubr.msk.f32.mxu0 %vm413_vm3, %v378_v54  ;;  %v10862_v54 = vld [vmem:[%s21498_s3 + $0x168] sm:$0xff]  ;;  %14305 = vmatpush3.bf16.msra.mxu0 %v14302_v52 }
  0x80   : > { %12538 = vmatmul.mubr.msk.f32.gmra.mrb[48].mxu0 %vm413_vm3, %v379_v55  ;;  %v14366_v55 = vpack.c.bf16 %v10862_v54, %v10861_v53 }
  0x81   : > { %12540 = vmatprep.mubr.msk.f32.mxu0 %vm413_vm3, %v380_v56  ;;  %v4105_v56 = vld [vmem:[%s21498_s3 + $0x70] sm:$0xff] }
  0x82   : > { %14367 = vmatprep.subr.bf16.mxu1 %v14366_v55 }
  0x83   : > { %14369 = vmatpush3.bf16.msra.mxu1 %v14366_v55 }
  0x84   : > { %12541 = vmatmul.mubr.msk.f32.gmra.mrb[50].mxu0 %vm413_vm3, %v381_v57  ;;  %v4106_v57 = vld [vmem:[%s21498_s3 + $0x78] sm:$0xff] }
  0x85   : > { %12543 = vmatprep.mubr.msk.f32.mxu0 %vm413_vm3, %v382_v58  ;;  %v14306_v58 = vpack.c.bf16 %v4106_v57, %v4105_v56 }
  0x87   : > { %14307 = vmatprep.subr.bf16.mxu0 %v14306_v58 }
  0x88   : > { %12544 = vmatmul.mubr.msk.f32.gmra.mrb[52].mxu0 %vm413_vm3, %v383_v59  ;;  %v10863_v59 = vld [vmem:[%s21498_s3 + $0x170] sm:$0xff] }
  0x89   : > { %12546 = vmatprep.mubr.msk.f32.mxu0 %vm413_vm3, %v384_v62  ;;  %v14370_v61 = vpack.c.bf16 %v10864_v60, %v10863_v59  ;;  %14309 = vmatpush3.bf16.msra.mxu0 %v14306_v58  ;;  %v15835_v62 = vmov 1983009808  }
  0x8a   : > { %v1133_v63 = vunpack.c.l.s4 %v15835_v62 }
  0x8b   : > { %14371 = vmatprep.subr.bf16.mxu1 %v14370_v61 }
  0x8c   : > { %12547 = vmatmul.mubr.msk.f32.gmra.mrb[54].mxu0 %vm413_vm3, %v385_v3  ;;  %14373 = vmatpush3.bf16.msra.mxu1 %v14370_v61  ;;  %v1134_v1 = vunpack.c.0.s8 %v1133_v63  ;;  %v16204_v3 = vld [vmem:[%s21497_s2] ss:$0 sm:$0xff] }
  0x8d   : > { %12549 = vmatprep.mubr.msk.f32.mxu0 %vm413_vm3, %v386_v4 }
  0x8e   : > { %v16207_v4 = vsub.s32 %v1134_v1, %v16199_v2 }
  0x90   : > { %12550 = vmatmul.mubr.msk.f32.gmra.mrb[56].mxu0 %vm413_vm3, %v387_v7  ;;  %21726 = vst [vmem:[#allocation5_spill] sm:$0xff] %v16207_v4 }
  0x91   : > { %12552 = vmatprep.mubr.msk.f32.mxu0 %vm413_vm3, %v388_v9 }
  0x94   : > { %12553 = vmatmul.mubr.msk.f32.gmra.mrb[58].mxu0 %vm413_vm3, %v389_v13 }
  0x95   : > { %12555 = vmatprep.mubr.msk.f32.mxu0 %vm413_vm3, %v390_v14 }
  0x98   : > { %12556 = vmatmul.mubr.msk.f32.gmra.mrb[60].mxu0 %vm413_vm3, %v391_v18 }
  0x99   : > { %12558 = vmatprep.mubr.msk.f32.mxu0 %vm413_vm3, %v392_v21 }
  0x9c   : > { %12559 = vmatmul.mubr.msk.f32.gmra.mrb[62].mxu0 %vm413_vm3, %v393_v23 }
  0x9d   : > { %12561 = vmatprep.mubr.msk.f32.mxu0 %vm413_vm3, %v394_v24 }
  0xa0   : > { %12562 = vmatmul.mubr.msk.f32.gmra.mrb[64].mxu0 %vm413_vm3, %v395_v25 }
  0xa1   : > { %12564 = vmatprep.mubr.msk.f32.mxu0 %vm413_vm3, %v396_v26 }
  0xa4   : > { %12565 = vmatmul.mubr.msk.f32.gmra.mrb[66].mxu0 %vm413_vm3, %v397_v29 }
  0xa5   : > { %12567 = vmatprep.mubr.msk.f32.mxu0 %vm413_vm3, %v398_v34 }
  0xa8   : > { %12568 = vmatmul.mubr.msk.f32.gmra.mrb[68].mxu0 %vm413_vm3, %v399_v35 }
  0xa9   : > { %12570 = vmatprep.mubr.msk.f32.mxu0 %vm413_vm3, %v400_v42 }
  0xac   : > { %12571 = vmatmul.mubr.msk.f32.gmra.mrb[70].mxu0 %vm413_vm3, %v401_v43 }
  0xf3   : > { %v12467_v5 = vpop.f32.mrb[0].mxu0 }
  0xf4   : > { %v706_v6 = vadd.f32 %v12467_v5, %v16204_v3  ;;  %v700_v7 = vpop.f32.mrb[1].mxu0 }
  0xf5   : > { %v701_v8 = vadd.f32 %v16204_v3, %v700_v7  ;;  %v16232_v7 = vsub.s32 0, %v16199_v2 }
  0xf6   : > { %v1148_v9 = vcombine.high %v706_v6, %v706_v6  ;;  %v1155_v10 = vrot.slane %v706_v6, %v16207_v4 }
  0xf7   : > { %v1131_v11 = vcombine.high %v701_v8, %v701_v8  ;;  %v1138_v12 = vrot.slane %v701_v8, %v16207_v4  ;;  %v12470_v13 = vpop.f32.mrb[2].mxu0 }
  0xf8   : > { %v716_v14 = vadd.f32 %v12470_v13, %v16204_v3  ;;  %v710_v15 = vpop.f32.mrb[3].mxu0  ;;  %v1162_v16 = vrot.slane %v1148_v9, %v16207_v4  ;;  %v1163_v18 = vcombine.high %v1155_v10, %v1155_v10  ;;  %v10548_v26 = vrot.slane %v1155_v10, 9 }
  0xf9   : > { %v1145_v17 = vrot.slane %v1131_v11, %v16207_v4  ;;  %v1146_v19 = vcombine.high %v1138_v12, %v1138_v12  ;;  %v711_v21 = vadd.f32 %v16204_v3, %v710_v15  ;;  %v10544_v27 = vrot.slane %v1138_v12, 9 }
  0xfa   : > { %v1182_v23 = vcombine.high %v716_v14, %v716_v14  ;;  %v1164_v25 = vcombine.high %v1162_v16, %v1162_v16  ;;  %v1189_v28 = vrot.slane %v716_v14, %v16207_v4  ;;  %v10549_v29 = vrot.slane %v1163_v18, 9 }
  0xfb   : > { %v1147_v20 = vcombine.high %v1145_v17, %v1145_v17  ;;  %v12473_v22 = vpop.f32.mrb[4].mxu0  ;;  %v10545_v30 = vrot.slane %v1146_v19, 9  ;;  %v10546_v31 = vrot.slane %v1145_v17, 9  ;;  %v1165_v36 = vcombine.high %v711_v21, %v711_v21 }
  0xfc   : > { %v720_v24 = vpop.f32.mrb[5].mxu0  ;;  %v1196_v32 = vrot.slane %v1182_v23, %v16207_v4  ;;  %v1197_v34 = vcombine.high %v1189_v28, %v1189_v28  ;;  %v10688_v35 = vrot.slane %v1189_v28, 9  ;;  %v1172_v40 = vrot.slane %v711_v21, %v16207_v4 }
  0xfd   : > { %v10547_v33 = vrot.slane %v1147_v20, 9  ;;  %v726_v41 = vadd.f32 %v12473_v22, %v16204_v3  ;;  %v10550_v43 = vrot.slane %v1162_v16, 9  ;;  %v3075_v44 = vmax.f32 %v1138_v12, %v10544_v27 }
  0xfe   : > { %v1198_v38 = vcombine.high %v1196_v32, %v1196_v32  ;;  %v10690_v39 = vrot.slane %v1196_v32, 9  ;;  %v10689_v45 = vrot.slane %v1197_v34, 9  ;;  %v3651_v46 = vmax.f32 %v1189_v28, %v10688_v35 }
  0xff   : > { %v12476_v37 = vpop.f32.mrb[6].mxu0  ;;  %v3076_v47 = vmax.f32 %v1146_v19, %v10545_v30  ;;  %v3077_v48 = vmax.f32 %v1145_v17, %v10546_v31  ;;  %v3078_v51 = vmax.f32 %v1147_v20, %v10547_v33  ;;  %v1179_v54 = vrot.slane %v1165_v36, %v16207_v4 }
 0x100   : > { %v730_v42 = vpop.f32.mrb[7].mxu0  ;;  %v10691_v49 = vrot.slane %v1198_v38, 9  ;;  %v3653_v50 = vmax.f32 %v1196_v32, %v10690_v39  ;;  %v3652_v52 = vmax.f32 %v1197_v34, %v10689_v45  ;;  %v3795_v53 = vmax.f32 %v3075_v44, %v3651_v46 }
 0x101   : > { %v10552_v58 = vrot.slane %v1172_v40, 9  ;;  %v1223_v59 = vrot.slane %v726_v41, %v16207_v4  ;;  %v10551_v61 = vrot.slane %v1164_v25, 9  ;;  %v16227_v63 = vcombine.high %v1172_v40, %v1172_v40 }
 0x102   : > { %v3654_v56 = vmax.f32 %v1198_v38, %v10691_v49  ;;  %v3797_v57 = vmax.f32 %v3077_v48, %v3653_v50  ;;  %v3796_v62 = vmax.f32 %v3076_v47, %v3652_v52  ;;  %v16229_v6 = vmax.f32 %v1155_v10, %v10548_v26 }
 0x103   : > { %v16222_v55 = vpop.f32.mrb[8].mxu0  ;;  %v10696_v5 = vrot.slane %v1223_v59, 9  ;;  %v10554_v8 = vrot.slane %v1179_v54, 9  ;;  %v1216_v9 = vcombine.high %v726_v41, %v726_v41  ;;  %v16236_v12 = vmax.f32 %v1163_v18, %v10549_v29 }
 0x104   : > { %v16225_v60 = vpop.f32.mrb[9].mxu0  ;;  %v3798_v1 = vmax.f32 %v3078_v51, %v3654_v56  ;;  %v16238_v13 = vmax.f32 %v1162_v16, %v10550_v43  ;;  %v16240_v14 = vmax.f32 %v1172_v40, %v10552_v58  ;;  %v16244_v19 = vmax.f32 %v1164_v25, %v10551_v61 }
 0x105   : > { %v3659_v15 = vmax.f32 %v1223_v59, %v10696_v5  ;;  %v16246_v10 = vcombine.high %v1179_v54, %v1179_v54  ;;  %v721_v20 = vadd.f32 %v16204_v3, %v720_v24  ;;  %v16250_v21 = vmax.f32 %v3795_v53, 0.0 }
 0x106   : > { %v736_v16 = vadd.f32 %v12476_v37, %v16204_v3  ;;  %v731_v22 = vadd.f32 %v16204_v3, %v730_v42  ;;  %v16255_v23 = vmax.f32 %v1179_v54, %v10554_v8  ;;  %v1230_v26 = vrot.slane %v1216_v9, %v16207_v4 }
 0x107   : > { %v16234_v11 = vpop.f32.mrb[10].mxu0  ;;  %21727 = vst [vmem:[#allocation6_spill] sm:$0xff] %v16246_v10  ;;  %v3803_v18 = vmax.f32 %v16240_v14, %v3659_v15  ;;  %v1199_v25 = vcombine.high %v721_v20, %v721_v20  ;;  %v1206_v27 = vrot.slane %v721_v20, %v16207_v4  ;;  %v3941_v29 = vmax.f32 %v3797_v57, 0.0 }
 0x108   : > { %v16242_v17 = vpop.f32.mrb[11].mxu0  ;;  %21728 = vst [vmem:[#allocation7_spill] sm:$0xff] %v16255_v23  ;;  %v16261_v30 = vcombine.high %v1223_v59, %v1223_v59  ;;  %v1250_v24 = vcombine.high %v736_v16, %v736_v16  ;;  %v1257_v31 = vrot.slane %v736_v16, %v16207_v4  ;;  %v3940_v33 = vmax.f32 %v3796_v62, 0.0 }
 0x109   : > { %v1213_v34 = vrot.slane %v1199_v25, %v16207_v4  ;;  %v1214_v35 = vcombine.high %v1206_v27, %v1206_v27  ;;  %v10692_v36 = vrot.slane %v1206_v27, 9  ;;  %v1233_v40 = vcombine.high %v731_v22, %v731_v22 }
 0x10a   : > { %v1264_v38 = vrot.slane %v1250_v24, %v16207_v4  ;;  %v1265_v39 = vcombine.high %v1257_v31, %v1257_v31  ;;  %v3942_v46 = vmax.f32 %v3798_v1, 0.0  ;;  %v10698_v47 = vrot.slane %v1230_v26, 9 }
 0x10b   : > { %v16259_v28 = vpop.f32.mrb[12].mxu0  ;;  %v1215_v41 = vcombine.high %v1213_v34, %v1213_v34  ;;  %v10693_v42 = vrot.slane %v1214_v35, 9  ;;  %v10694_v43 = vrot.slane %v1213_v34, 9  ;;  %v3655_v44 = vmax.f32 %v1206_v27, %v10692_v36 }
 0x10c   : > { %v16264_v32 = vpop.f32.mrb[13].mxu0  ;;  %v1266_v48 = vcombine.high %v1264_v38, %v1264_v38  ;;  %v1240_v49 = vrot.slane %v731_v22, %v16207_v4  ;;  %v10560_v56 = vrot.slane %v1257_v31, 9  ;;  %v10561_v57 = vrot.slane %v1265_v39, 9 }
 0x10d   : > { %v10695_v51 = vrot.slane %v1215_v41, 9  ;;  %v3656_v52 = vmax.f32 %v1214_v35, %v10693_v42  ;;  %v16275_v53 = vmax.f32 %v1213_v34, %v10694_v43  ;;  %v3799_v54 = vmax.f32 %v16229_v6, %v3655_v44 }
 0x10e   : > { %v1247_v58 = vrot.slane %v1233_v40, %v16207_v4  ;;  %v746_v59 = vadd.f32 %v16222_v55, %v16204_v3  ;;  %v10562_v5 = vrot.slane %v1264_v38, 9  ;;  %v16289_v9 = vrot.slane %v3941_v29, %v16232_v7 }
 0x10f   : > { %v16270_v45 = vpop.f32.mrb[14].mxu0  ;;  %v16281_v61 = vmax.f32 %v1215_v41, %v10695_v51  ;;  %v3800_v62 = vmax.f32 %v16236_v12, %v3656_v52  ;;  %v16291_v6 = vcombine.high %v1230_v26, %v1230_v26  ;;  %v741_v55 = vadd.f32 %v16204_v3, %v16225_v60 }
 0x110   : > { %v16273_v50 = vpop.f32.mrb[15].mxu0  ;;  %21729 = vst [vmem:[#allocation8_spill] sm:$0xff] %v16289_v9  ;;  %v16299_v12 = vrot.slane %v3940_v33, %v16232_v7  ;;  %v10563_v16 = vrot.slane %v1266_v48, 9  ;;  %v1248_v22 = vcombine.high %v1240_v49, %v1240_v49  ;;  %v16304_v25 = vrot.slane %v3942_v46, %v16232_v7 }
 0x111   : > { %21730 = vst [vmem:[#allocation9_spill] sm:$0xff] %v16291_v6  ;;  %v16306_v27 = vmax.f32 %v1230_v26, %v10698_v47  ;;  %v16308_v29 = vmax.f32 %v3803_v18, 0.0  ;;  %v1249_v24 = vcombine.high %v1247_v58, %v1247_v58  ;;  %v16310_v34 = vmax.f32 %v1257_v31, %v10560_v56 }
 0x112   : > { %21731 = vst [vmem:[#allocation10_spill] sm:$0xff] %v16299_v12  ;;  %21732 = vst [vmem:[#allocation11_spill] sm:$0xff] %v16304_v25  ;;  %v16312_v60 = vmax.f32 %v1265_v39, %v10561_v57  ;;  %v16314_v35 = vmax.f32 %v1264_v38, %v10562_v5  ;;  %v1284_v33 = vcombine.high %v746_v59, %v746_v59  ;;  %v16318_v40 = vmax.f32 %v3799_v54, 0.0 }
 0x113   : > { %v16286_v8 = vpop.f32.mrb[16].mxu0  ;;  %21733 = vst [vmem:[#allocation12_spill] sm:$0xff] %v16306_v27  ;;  %v10556_v41 = vrot.slane %v1240_v49, 9  ;;  %v1291_v42 = vrot.slane %v746_v59, %v16207_v4  ;;  %v1267_v43 = vcombine.high %v741_v55, %v741_v55  ;;  %v16323_v18 = vmax.f32 %v1266_v48, %v10563_v16 }
 0x114   : > { %v16296_v15 = vpop.f32.mrb[17].mxu0  ;;  %v10557_v44 = vrot.slane %v1248_v22, 9  ;;  %v10558_v31 = vrot.slane %v1247_v58, 9  ;;  %v1298_v39 = vrot.slane %v1284_v33, %v16207_v4  ;;  %v16326_v46 = vmax.f32 %v3800_v62, 0.0 }
 0x115   : > { %v10559_v38 = vrot.slane %v1249_v24, 9  ;;  %v1299_v47 = vcombine.high %v1291_v42, %v1291_v42  ;;  %v10700_v51 = vrot.slane %v1291_v42, 9  ;;  %v1274_v56 = vrot.slane %v741_v55, %v16207_v4 }
 0x116   : > { %v1300_v52 = vcombine.high %v1298_v39, %v1298_v39  ;;  %v10702_v54 = vrot.slane %v1298_v39, 9  ;;  %v756_v57 = vadd.f32 %v16234_v11, %v16204_v3  ;;  %v3087_v48 = vmax.f32 %v1240_v49, %v10556_v41 }
 0x117   : > { %v16316_v36 = vpop.f32.mrb[18].mxu0  ;;  %v10701_v5 = vrot.slane %v1299_v47, 9  ;;  %v3663_v16 = vmax.f32 %v1291_v42, %v10700_v51  ;;  %v1281_v0 = vrot.slane %v1267_v43, %v16207_v4  ;;  %v3089_v62 = vmax.f32 %v1247_v58, %v10558_v31 }
 0x118   : > { %v16321_v26 = vpop.f32.mrb[19].mxu0  ;;  %v10703_v14 = vrot.slane %v1300_v52, 9  ;;  %v3665_v2 = vmax.f32 %v1298_v39, %v10702_v54  ;;  %v751_v37 = vadd.f32 %v16204_v3, %v16242_v17  ;;  %v3088_v55 = vmax.f32 %v1248_v22, %v10557_v44 }
 0x119   : > { %v3090_v20 = vmax.f32 %v1249_v24, %v10559_v38  ;;  %v3664_v1 = vmax.f32 %v1299_v47, %v10701_v5  ;;  %v3807_v11 = vmax.f32 %v3087_v48, %v3663_v16  ;;  %v10564_v49 = vrot.slane %v1274_v56, 9 }
 0x11a   : > { %v3666_v23 = vmax.f32 %v1300_v52, %v10703_v14  ;;  %v3809_v27 = vmax.f32 %v3089_v62, %v3665_v2  ;;  %v1318_v41 = vcombine.high %v756_v57, %v756_v57  ;;  %v10566_v6 = vrot.slane %v1281_v0, 9 }
 0x11b   : > { %v16331_v59 = vpop.f32.mrb[20].mxu0  ;;  %v3808_v43 = vmax.f32 %v3088_v55, %v3664_v1  ;;  %v3951_v51 = vmax.f32 %v3807_v11, 0.0  ;;  %v1325_v58 = vrot.slane %v756_v57, %v16207_v4  ;;  %v1301_v22 = vcombine.high %v751_v37, %v751_v37 }
 0x11c   : > { %v16334_v33 = vpop.f32.mrb[21].mxu0  ;;  %v3810_v39 = vmax.f32 %v3090_v20, %v3666_v23  ;;  %v3953_v54 = vmax.f32 %v3809_v27, 0.0  ;;  %v1332_v17 = vrot.slane %v1318_v41, %v16207_v4  ;;  %v21736_v14 = vmax.f32 %v16238_v13, %v16275_v53 }
 0x11d   : > { %v3952_v24 = vmax.f32 %v3808_v43, 0.0  ;;  %v10708_v44 = vrot.slane %v1325_v58, 9  ;;  %v766_v1 = vadd.f32 %v16259_v28, %v16204_v3  ;;  %v1282_v47 = vcombine.high %v1274_v56, %v1274_v56 }
 0x11e   : > { %v3945_v2 = vmax.f32 %v21736_v14, 0.0  ;;  %v16350_v38 = vrot.slane %v3953_v54, %v16232_v7  ;;  %v3095_v52 = vmax.f32 %v1274_v56, %v10564_v49  ;;  %v10710_v57 = vrot.slane %v1332_v17, 9 }
 0x11f   : > { %v16338_v42 = vpop.f32.mrb[22].mxu0  ;;  %v4206_v20 = vrot.slane %v3951_v51, %v16232_v7  ;;  %v4210_v27 = vrot.slane %v3952_v24, %v16232_v7  ;;  %v3671_v48 = vmax.f32 %v1325_v58, %v10708_v44  ;;  %v1308_v13 = vrot.slane %v751_v37, %v16207_v4 }
 0x120   : > { %21734 = vst [vmem:[#allocation13_spill] sm:$0xff] %v16338_v42  ;;  %v16341_v31 = vpop.f32.mrb[23].mxu0  ;;  %v1283_v5 = vcombine.high %v1281_v0, %v1281_v0  ;;  %v16359_v16 = vmax.f32 %v1281_v0, %v10566_v6  ;;  %v16361_v28 = vmax.f32 %v1332_v17, %v10710_v57  ;;  %v1315_v62 = vrot.slane %v1301_v22, %v16207_v4 }
 0x121   : > { %21735 = vst [vmem:[#allocation14_spill] sm:$0xff] %v16341_v31  ;;  %v16365_v56 = vsel %vm4427_vm4, %v4210_v27, %v4206_v20  ;;  %v16369_v55 = vsel %vm4427_vm4, %v16350_v38, %v4210_v27  ;;  %v1333_v11 = vcombine.high %v1325_v58, %v1325_v58  ;;  %v3815_v49 = vmax.f32 %v3095_v52, %v3671_v48 }
 0x122   : > { %21739 = vst [vmem:[#allocation17_spill] sm:$0xff] %v16359_v16  ;;  %21740 = vst [vmem:[#allocation18_spill] sm:$0xff] %v16361_v28  ;;  %v1334_v41 = vcombine.high %v1332_v17, %v1332_v17  ;;  %v1316_v43 = vcombine.high %v1308_v13, %v1308_v13  ;;  %v1317_v0 = vcombine.high %v1315_v62, %v1315_v62  ;;  %v10704_v54 = vrot.slane %v1308_v13, 9 }
 0x123   : > { %v16352_v23 = vpop.f32.mrb[24].mxu0  ;;  %21741 = vst [vmem:[#allocation19_spill] sm:$0xff] %v16369_v55  ;;  %v16377_v51 = vrot.slane %v16318_v40, %v16232_v7  ;;  %v10706_v22 = vrot.slane %v1315_v62, 9  ;;  %v1352_v14 = vcombine.high %v766_v1, %v766_v1  ;;  %v10565_v44 = vrot.slane %v1282_v47, 9 }
 0x124   : > { %21737 = vst [vmem:[#allocation15_spill] sm:$0xff] %v16352_v23  ;;  %v16357_v53 = vpop.f32.mrb[25].mxu0  ;;  %v10705_v58 = vrot.slane %v1316_v43, 9  ;;  %v10707_v52 = vrot.slane %v1317_v0, 9  ;;  %v16382_v17 = vrot.slane %v766_v1, %v16207_v4  ;;  %v3954_v57 = vmax.f32 %v3810_v39, 0.0 }
 0x125   : > { %21738 = vst [vmem:[#allocation16_spill] sm:$0xff] %v16357_v53  ;;  %21743 = vst [vmem:[#allocation21_spill] sm:$0xff] %v16377_v51  ;;  %v10567_v20 = vrot.slane %v1283_v5, 9  ;;  %v3667_v27 = vmax.f32 %v1308_v13, %v10704_v54  ;;  %v3669_v48 = vmax.f32 %v1315_v62, %v10706_v22  ;;  %v10709_v37 = vrot.slane %v1333_v11, 9 }
 0x126   : > { %v10711_v55 = vrot.slane %v1334_v41, 9  ;;  %v16384_v28 = vmax.f32 %v1316_v43, %v10705_v58  ;;  %v16386_v40 = vmax.f32 %v1317_v0, %v10707_v52  ;;  %v3959_v10 = vmax.f32 %v3815_v49, 0.0 }
 0x127   : > { %v16373_v6 = vpop.f32.mrb[26].mxu0  ;;  %v16393_v1 = vrot.slane %v1352_v14, %v16207_v4  ;;  %v21747_v13 = vmax.f32 %v16244_v19, %v16281_v61  ;;  %v16415_v0 = vrot.slane %v3945_v2, %v16232_v7  ;;  %v16417_v19 = vmax.f32 %v1282_v47, %v10565_v44 }
 0x128   : > { %21742 = vst [vmem:[#allocation20_spill] sm:$0xff] %v16373_v6  ;;  %v16379_v24 = vpop.f32.mrb[27].mxu0  ;;  %v3813_v6 = vmax.f32 %v16314_v35, %v3669_v48  ;;  %v3812_v43 = vmax.f32 %v16312_v60, %v16384_v28  ;;  %v3814_v49 = vmax.f32 %v16323_v18, %v16386_v40  ;;  %v16412_v35 = vrot.slane %v16326_v46, %v16232_v7 }
 0x129   : > { %21744 = vst [vmem:[#allocation22_spill] sm:$0xff] %v16379_v24  ;;  %v3811_v24 = vmax.f32 %v16310_v34, %v3667_v27  ;;  %v16400_v62 = vmax.f32 %v21747_v13, 0.0  ;;  %v16408_v34 = vcombine.high %v16382_v17, %v16382_v17  ;;  %21749 = vst [vmem:[#allocation26_spill] sm:$0xff] %v16415_v0  ;;  %v16419_v61 = vmax.f32 %v1283_v5, %v10567_v20 }
 0x12a   : > { %21748 = vst [vmem:[#allocation25_spill] sm:$0xff] %v16412_v35  ;;  %v16422_v60 = vrot.slane %v3954_v57, %v16232_v7  ;;  %v16424_v28 = vmax.f32 %v1333_v11, %v10709_v37  ;;  %v16426_v18 = vmax.f32 %v1334_v41, %v10711_v55  ;;  %v761_v54 = vadd.f32 %v16204_v3, %v16264_v32 }
 0x12b   : > { %v16388_v16 = vpop.f32.mrb[28].mxu0  ;;  %21750 = vst [vmem:[#allocation27_spill] sm:$0xff] %v16419_v61  ;;  %v16433_v46 = vrot.slane %v3959_v10, %v16232_v7  ;;  %v16437_v2 = vcombine.high %v16393_v1, %v16393_v1  ;;  %v10572_v47 = vrot.slane %v16382_v17, 9  ;;  %v776_v5 = vadd.f32 %v16270_v45, %v16204_v3 }
 0x12c   : > { %21745 = vst [vmem:[#allocation23_spill] sm:$0xff] %v16388_v16  ;;  %v16395_v39 = vpop.f32.mrb[29].mxu0  ;;  %21751 = vst [vmem:[#allocation28_spill] sm:$0xff] %v16422_v60  ;;  %v10573_v55 = vrot.slane %v16408_v34, 9  ;;  %v10574_v32 = vrot.slane %v16393_v1, 9  ;;  %v1335_v41 = vcombine.high %v761_v54, %v761_v54  ;;  %v1342_v37 = vrot.slane %v761_v54, %v16207_v4 }
 0x12d   : > { %21746 = vst [vmem:[#allocation24_spill] sm:$0xff] %v16395_v39  ;;  %21752 = vst [vmem:[#allocation29_spill] sm:$0xff] %v16426_v18  ;;  %v3955_v10 = vmax.f32 %v3811_v24, 0.0  ;;  %v1386_v14 = vcombine.high %v776_v5, %v776_v5  ;;  %v1393_v44 = vrot.slane %v776_v5, %v16207_v4  ;;  %v771_v58 = vadd.f32 %v16204_v3, %v16273_v50 }
 0x12e   : > { %21754 = vst [vmem:[#allocation31_spill] sm:$0xff] %v16433_v46  ;;  %v3957_v52 = vmax.f32 %v3813_v6, 0.0  ;;  %v1349_v45 = vrot.slane %v1335_v41, %v16207_v4  ;;  %v1350_v57 = vcombine.high %v1342_v37, %v1342_v37  ;;  %v10568_v20 = vrot.slane %v1342_v37, 9 }
 0x12f   : > { %v16430_v22 = vpop.f32.mrb[30].mxu0  ;;  %v1400_v48 = vrot.slane %v1386_v14, %v16207_v4  ;;  %v1401_v40 = vcombine.high %v1393_v44, %v1393_v44  ;;  %v10712_v13 = vrot.slane %v1393_v44, 9  ;;  %v1369_v24 = vcombine.high %v771_v58, %v771_v58 }
 0x130   : > { %21753 = vst [vmem:[#allocation30_spill] sm:$0xff] %v16430_v22  ;;  %v16442_v11 = vpop.f32.mrb[31].mxu0  ;;  %v1351_v5 = vcombine.high %v1349_v45, %v1349_v45  ;;  %v10569_v61 = vrot.slane %v1350_v57, 9  ;;  %v10570_v50 = vrot.slane %v1349_v45, 9  ;;  %v3099_v18 = vmax.f32 %v1342_v37, %v10568_v20 }
 0x131   : > { %21755 = vst [vmem:[#allocation32_spill] sm:$0xff] %v16442_v11  ;;  %v1402_v6 = vcombine.high %v1400_v48, %v1400_v48  ;;  %v10713_v41 = vrot.slane %v1401_v40, 9  ;;  %v10714_v11 = vrot.slane %v1400_v48, 9  ;;  %v3675_v22 = vmax.f32 %v1393_v44, %v10712_v13 }
 0x132   : > { %v10571_v39 = vrot.slane %v1351_v5, 9  ;;  %v16458_v14 = vmax.f32 %v1349_v45, %v10570_v50  ;;  %v1376_v16 = vrot.slane %v771_v58, %v16207_v4  ;;  %v3956_v31 = vmax.f32 %v3812_v43, 0.0 }
 0x133   : > { %v16451_v27 = vpop.f32.mrb[32].mxu0  ;;  %v3676_v46 = vmax.f32 %v1401_v40, %v10713_v41  ;;  %v3677_v23 = vmax.f32 %v1400_v48, %v10714_v11  ;;  %v3819_v37 = vmax.f32 %v3099_v18, %v3675_v22  ;;  %v3958_v42 = vmax.f32 %v3814_v49, 0.0 }
 0x134   : > { %21756 = vst [vmem:[#allocation33_spill] sm:$0xff] %v16451_v27  ;;  %v16454_v54 = vpop.f32.mrb[33].mxu0  ;;  %v16456_v27 = vmax.f32 %v1350_v57, %v10569_v61  ;;  %v10575_v44 = vrot.slane %v16437_v2, 9  ;;  %v21758_v61 = vrot.slane %v16250_v21, %v16232_v7  ;;  %v16471_v58 = vmax.f32 %v1351_v5, %v10571_v39 }
 0x135   : > { %21757 = vst [vmem:[#allocation34_spill] sm:$0xff] %v16454_v54  ;;  %v10715_v54 = vrot.slane %v1402_v6, 9  ;;  %v3821_v18 = vmax.f32 %v16458_v14, %v3677_v23  ;;  %v16478_v22 = vmax.f32 %v16382_v17, %v10572_v47  ;;  %v16481_v43 = vmax.f32 %v16408_v34, %v10573_v55 }
 0x136   : > { %v4428_v45 = vsel %vm4427_vm4, %v16299_v12, %v21758_v61  ;;  %v3820_v40 = vmax.f32 %v16456_v27, %v3676_v46  ;;  %v16484_v49 = vmax.f32 %v16393_v1, %v10574_v32  ;;  %v16487_v21 = vrot.slane %v1369_v24, %v16207_v4 }
 0x137   : > { %v16461_v53 = vpop.f32.mrb[34].mxu0  ;;  %v16473_v57 = vmax.f32 %v1402_v6, %v10715_v54  ;;  %v16492_v11 = vrot.slane %v3955_v10, %v16232_v7  ;;  %v16495_v46 = vrot.slane %v3957_v52, %v16232_v7  ;;  %v1384_v17 = vcombine.high %v1376_v16, %v1376_v16 }
 0x138   : > { %v16463_v20 = vpop.f32.mrb[35].mxu0  ;;  %v16502_v1 = vrot.slane %v3956_v31, %v16232_v7  ;;  %v16505_v47 = vrot.slane %v3958_v42, %v16232_v7  ;;  %v16508_v55 = vmax.f32 %v16437_v2, %v10575_v44  ;;  %v4430_v32 = vsel %vm4429_vm5, %v16289_v9, %v4428_v45 }
 0x139   : > { %21760 = vst [vmem:[#allocation36_spill] sm:$0xff] %v16492_v11  ;;  %21761 = vst [vmem:[#allocation37_spill] sm:$0xff] %v16495_v46  ;;  %v3822_v23 = vmax.f32 %v16471_v58, %v16473_v57  ;;  %v16512_v10 = vmax.f32 %v3819_v37, 0.0  ;;  %v10576_v52 = vrot.slane %v1376_v16, 9  ;;  %v16516_v27 = vrot.slane %v16400_v62, %v16232_v7 }
 0x13a   : > { %21763 = vst [vmem:[#allocation39_spill] sm:$0xff] %v16502_v1  ;;  %21764 = vst [vmem:[#allocation40_spill] sm:$0xff] %v16505_v47  ;;  %v4432_v31 = vsel %vm4431_vm6, %v16304_v25, %v4430_v32  ;;  %v16522_v42 = vcombine.high %v16487_v21, %v16487_v21  ;;  %v21767_v48 = vrot.slane %v16227_v63, 9  ;;  %v21768_v24 = vrot.slane %v16261_v30, 9 }
 0x13b   : > { %v16489_v39 = vpop.f32.mrb[36].mxu0  ;;  %21765 = vst [vmem:[#allocation41_spill] sm:$0xff] %v16516_v27  ;;  %v4434_v2 = vsel %vm4433_vm7, %v16377_v51, %v4432_v31  ;;  %v10577_v5 = vrot.slane %v1384_v17, 9  ;;  %v4902_v6 = vsel %vm4427_vm4, %v16304_v25, %v16289_v9  ;;  %v786_v41 = vadd.f32 %v16286_v8, %v16204_v3 }
 0x13c   : > { %21759 = vst [vmem:[#allocation35_spill] sm:$0xff] %v16489_v39  ;;  %v16499_v34 = vpop.f32.mrb[37].mxu0  ;;  %21766 = vst [vmem:[#allocation42_spill] sm:$0xff] %v16522_v42  ;;  %v3084_v13 = vmax.f32 %v16227_v63, %v21767_v48  ;;  %v3660_v54 = vmax.f32 %v16261_v30, %v21768_v24  ;;  %v4436_v50 = vsel %vm4435_vm8, %v16412_v35, %v4434_v2  ;;  %v10578_v2 = vrot.slane %v16487_v21, 9 }
 0x13d   : > { %21762 = vst [vmem:[#allocation38_spill] sm:$0xff] %v16499_v34  ;;  %v4438_v63 = vsel %vm4437_vm9, %v16415_v0, %v4436_v50  ;;  %v4903_v30 = vsel %vm4429_vm5, %v16377_v51, %v4902_v6  ;;  %v781_v44 = vadd.f32 %v16204_v3, %v16296_v15  ;;  %v16553_v45 = vrot.slane %v16308_v29, %v16232_v7 }
 0x13e   : > { %v3804_v37 = vmax.f32 %v3084_v13, %v3660_v54  ;;  %v4440_v61 = vsel %vm4439_vm10, %v16516_v27, %v4438_v63  ;;  %v4904_v8 = vsel %vm4431_vm6, %v16412_v35, %v4903_v30  ;;  %v1427_v58 = vrot.slane %v786_v41, %v16207_v4 }
 0x13f   : > { %v16532_v62 = vpop.f32.mrb[38].mxu0  ;;  %21771 = vst [vmem:[#allocation45_spill] sm:$0xff] %v16553_v45  ;;  %12605 = vmatprep.mubr.f32.mxu0 %v4440_v61  ;;  %v4905_v32 = vsel %vm4433_vm7, %v16415_v0, %v4904_v8  ;;  %v1403_v31 = vcombine.high %v781_v44, %v781_v44  ;;  %v1410_v15 = vrot.slane %v781_v44, %v16207_v4  ;;  %v3964_v63 = vmax.f32 %v3820_v40, 0.0 }
 0x140   : > { %21769 = vst [vmem:[#allocation43_spill] sm:$0xff] %v16532_v62  ;;  %v16541_v14 = vpop.f32.mrb[39].mxu0  ;;  %v3948_v57 = vmax.f32 %v3804_v37, 0.0  ;;  %v3107_v48 = vmax.f32 %v1376_v16, %v10576_v52  ;;  %v4906_v29 = vsel %vm4435_vm8, %v16516_v27, %v4905_v32  ;;  %v10720_v13 = vrot.slane %v1427_v58, 9 }
 0x141   : > { %21770 = vst [vmem:[#allocation44_spill] sm:$0xff] %v16541_v14  ;;  %v4907_v54 = vsel %vm4437_vm9, %v16553_v45, %v4906_v29  ;;  %v1417_v50 = vrot.slane %v1403_v31, %v16207_v4  ;;  %v1418_v6 = vcombine.high %v1410_v15, %v1410_v15  ;;  %v3965_v37 = vmax.f32 %v3821_v18, 0.0 }
 0x142   : > { %v16565_v24 = vrot.slane %v3948_v57, %v16232_v7  ;;  %v1420_v30 = vcombine.high %v786_v41, %v786_v41  ;;  %v3683_v44 = vmax.f32 %v1427_v58, %v10720_v13  ;;  %v10716_v61 = vrot.slane %v1410_v15, 9 }
 0x143   : > { %v1419_v52 = vcombine.high %v1417_v50, %v1417_v50  ;;  %v10717_v8 = vrot.slane %v1418_v6, 9  ;;  %v16574_v32 = vmax.f32 %v1384_v17, %v10577_v5  ;;  %v1435_v29 = vcombine.high %v1427_v58, %v1427_v58  ;;  %v16583_v57 = vpop.f32.mrb[40].mxu0 }
 0x144   : > { %21772 = vst [vmem:[#allocation46_spill] sm:$0xff] %v16565_v24  ;;  %v4908_v16 = vsel %vm4439_vm10, %v16565_v24, %v4907_v54  ;;  %v3827_v42 = vmax.f32 %v3107_v48, %v3683_v44  ;;  %v10718_v31 = vrot.slane %v1417_v50, 9  ;;  %v3679_v40 = vmax.f32 %v1410_v15, %v10716_v61  ;;  %21773 = vst [vmem:[#allocation47_spill] sm:$0xff] %v16583_v57 }
 0x145   : > { %12693 = vmatprep.mubr.f32.mxu1 %v4908_v16  ;;  %v10719_v45 = vrot.slane %v1419_v52, 9  ;;  %v3680_v18 = vmax.f32 %v1418_v6, %v10717_v8  ;;  %v3966_v41 = vmax.f32 %v3822_v23, 0.0  ;;  %v16577_v13 = vrot.slane %v1420_v30, %v16207_v4 }
 0x146   : > { %v796_v54 = vadd.f32 %v16316_v36, %v16204_v3  ;;  %v791_v24 = vadd.f32 %v16204_v3, %v16321_v26  ;;  %v3681_v17 = vmax.f32 %v1417_v50, %v10718_v31  ;;  %v3823_v58 = vmax.f32 %v16478_v22, %v3679_v40  ;;  %v16601_v22 = vpop.f32.mrb[41].mxu0 }
 0x147   : > { %v16585_v5 = vmax.f32 %v1419_v52, %v10719_v45  ;;  %v3824_v15 = vmax.f32 %v16481_v43, %v3680_v18  ;;  %v16590_v23 = vmax.f32 %v16487_v21, %v10578_v2  ;;  %v10721_v48 = vrot.slane %v1435_v29, 9  ;;  %21776 = vst [vmem:[#allocation50_spill] sm:$0xff] %v16601_v22 }
 0x148   : > { %v1454_v6 = vcombine.high %v796_v54, %v796_v54  ;;  %v16593_v30 = vrot.slane %v796_v54, %v16207_v4  ;;  %v16596_v36 = vrot.slane %v3964_v63, %v16232_v7  ;;  %v3825_v26 = vmax.f32 %v16484_v49, %v3681_v17 }
 0x149   : > { %21774 = vst [vmem:[#allocation48_spill] sm:$0xff] %v16590_v23  ;;  %v3826_v45 = vmax.f32 %v16508_v55, %v16585_v5  ;;  %v1437_v50 = vcombine.high %v791_v24, %v791_v24  ;;  %v1444_v2 = vrot.slane %v791_v24, %v16207_v4  ;;  %v806_v63 = vadd.f32 %v16331_v59, %v16204_v3  ;;  %v16628_v59 = vpop.f32.mrb[42].mxu0 }
 0x14a   : > { %21775 = vst [vmem:[#allocation49_spill] sm:$0xff] %v16596_v36  ;;  %v16604_v43 = vrot.slane %v1454_v6, %v16207_v4  ;;  %v16608_v21 = vcombine.high %v16593_v30, %v16593_v30  ;;  %v16614_v49 = vrot.slane %v3965_v37, %v16232_v7  ;;  %v16617_v55 = vrot.slane %v3966_v41, %v16232_v7  ;;  %v16631_v41 = vpop.f32.mrb[43].mxu0 }
 0x14b   : > { %v16621_v44 = vcombine.high %v16577_v13, %v16577_v13  ;;  %v10722_v16 = vrot.slane %v16577_v13, 9  ;;  %v16624_v52 = vmax.f32 %v1435_v29, %v10721_v48  ;;  %v3971_v61 = vmax.f32 %v3827_v42, 0.0  ;;  %21780 = vst [vmem:[#allocation54_spill] sm:$0xff] %v16628_v59  ;;  %21781 = vst [vmem:[#allocation55_spill] sm:$0xff] %v16631_v41 }
 0x14c   : > { %21777 = vst [vmem:[#allocation51_spill] sm:$0xff] %v16614_v49  ;;  %21778 = vst [vmem:[#allocation52_spill] sm:$0xff] %v16617_v55  ;;  %v3967_v8 = vmax.f32 %v3823_v58, 0.0  ;;  %v1470_v24 = vcombine.high %v16604_v43, %v16604_v43  ;;  %v3968_v37 = vmax.f32 %v3824_v15, 0.0  ;;  %v1451_v31 = vrot.slane %v1437_v50, %v16207_v4 }
 0x14d   : > { %21779 = vst [vmem:[#allocation53_spill] sm:$0xff] %v16621_v44  ;;  %v1452_v40 = vcombine.high %v1444_v2, %v1444_v2  ;;  %v10580_v18 = vrot.slane %v1444_v2, 9  ;;  %v3969_v54 = vmax.f32 %v3825_v26, 0.0  ;;  %v10584_v17 = vrot.slane %v16593_v30, 9 }
 0x14e   : > { %v10585_v29 = vrot.slane %v16608_v21, 9  ;;  %v1488_v5 = vcombine.high %v806_v63, %v806_v63  ;;  %v10586_v42 = vrot.slane %v16604_v43, 9  ;;  %v1453_v58 = vcombine.high %v1451_v31, %v1451_v31 }
 0x14f   : > { %v10581_v48 = vrot.slane %v1452_v40, 9  ;;  %v10582_v6 = vrot.slane %v1451_v31, 9  ;;  %v10587_v44 = vrot.slane %v1470_v24, 9  ;;  %v1495_v15 = vrot.slane %v806_v63, %v16207_v4 }
 0x150   : > { %v1502_v50 = vrot.slane %v1488_v5, %v16207_v4  ;;  %v801_v23 = vadd.f32 %v16204_v3, %v16334_v33  ;;  %v10583_v27 = vrot.slane %v1453_v58, 9  ;;  %v3111_v26 = vmax.f32 %v1444_v2, %v10580_v18 }
 0x151   : > { %v16640_v0 = vmax.f32 %v1452_v40, %v10581_v48  ;;  %v4442_v35 = vsel %vm4429_vm5, %v16350_v38, %v16365_v56  ;;  %v1503_v51 = vcombine.high %v1495_v15, %v1495_v15  ;;  %v10724_v9 = vrot.slane %v1495_v15, 9 }
 0x152   : > { %v1504_v25 = vcombine.high %v1502_v50, %v1502_v50  ;;  %v10726_v12 = vrot.slane %v1502_v50, 9  ;;  %v3113_v41 = vmax.f32 %v1451_v31, %v10582_v6  ;;  %v1471_v59 = vcombine.high %v801_v23, %v801_v23 }
 0x153   : > { %v1478_v63 = vrot.slane %v801_v23, %v16207_v4  ;;  %v4443_v5 = vsel %vm4431_vm6, %v16422_v60, %v4442_v35  ;;  %v10725_v33 = vrot.slane %v1503_v51, 9  ;;  %v3687_v2 = vmax.f32 %v1495_v15, %v10724_v9 }
 0x154   : > { %v10727_v22 = vrot.slane %v1504_v25, 9  ;;  %v3689_v40 = vmax.f32 %v1502_v50, %v10726_v12  ;;  %v3114_v18 = vmax.f32 %v1453_v58, %v10583_v27  ;;  %v16649_v48 = vrot.slane %v1471_v59, %v16207_v4  ;;  %v16664_v27 = vpop.f32.mrb[44].mxu0 }
 0x155   : > { %v1486_v56 = vcombine.high %v1478_v63, %v1478_v63  ;;  %v4444_v57 = vsel %vm4433_vm7, %v16492_v11, %v4443_v5  ;;  %v3688_v14 = vmax.f32 %v1503_v51, %v10725_v33  ;;  %v3831_v6 = vmax.f32 %v3111_v26, %v3687_v2  ;;  %21785 = vst [vmem:[#allocation59_spill] sm:$0xff] %v16664_v27 }
 0x156   : > { %v3690_v31 = vmax.f32 %v1504_v25, %v10727_v22  ;;  %v3833_v62 = vmax.f32 %v3113_v41, %v3689_v40  ;;  %v16654_v23 = vmax.f32 %v16577_v13, %v10722_v16  ;;  %v16657_v35 = vrot.slane %v3971_v61, %v16232_v7  ;;  %v16670_v41 = vpop.f32.mrb[45].mxu0 }
 0x157   : > { %v16659_v9 = vmax.f32 %v3826_v45, 0.0  ;;  %v16662_v12 = vrot.slane %v3967_v8, %v16232_v7  ;;  %v16667_v59 = vrot.slane %v3968_v37, %v16232_v7  ;;  %v3832_v25 = vmax.f32 %v16640_v0, %v3688_v14  ;;  %21787 = vst [vmem:[#allocation61_spill] sm:$0xff] %v16670_v41 }
 0x158   : > { %21782 = vst [vmem:[#allocation56_spill] sm:$0xff] %v16654_v23  ;;  %21783 = vst [vmem:[#allocation57_spill] sm:$0xff] %v16657_v35  ;;  %v3834_v51 = vmax.f32 %v3114_v18, %v3690_v31  ;;  %v10588_v22 = vrot.slane %v1478_v63, 9  ;;  %v16673_v13 = vrot.slane %v3969_v54, %v16232_v7  ;;  %v16676_v45 = vmax.f32 %v16593_v30, %v10584_v17 }
 0x159   : > { %21784 = vst [vmem:[#allocation58_spill] sm:$0xff] %v16662_v12  ;;  %21786 = vst [vmem:[#allocation60_spill] sm:$0xff] %v16667_v59  ;;  %v16679_v16 = vmax.f32 %v16608_v21, %v10585_v29  ;;  %v4445_v61 = vsel %vm4435_vm8, %v16502_v1, %v4444_v57  ;;  %v16684_v8 = vmax.f32 %v16604_v43, %v10586_v42  ;;  %v10589_v37 = vrot.slane %v1486_v56, 9 }
 0x15a   : > { %21788 = vst [vmem:[#allocation62_spill] sm:$0xff] %v16673_v13  ;;  %v16686_v0 = vmax.f32 %v1470_v24, %v10587_v44  ;;  %v16690_v14 = vcombine.high %v16649_v48, %v16649_v48  ;;  %v10590_v54 = vrot.slane %v16649_v48, 9  ;;  %v4446_v30 = vsel %vm4437_vm9, %v16495_v46, %v4445_v61 }
 0x15b   : > { %v3816_v21 = vmax.f32 %v16417_v19, %v16424_v28  ;;  %v4909_v57 = vsel %vm4427_vm4, %v16422_v60, %v16350_v38  ;;  %v16700_v43 = vmax.f32 %v3831_v6, 0.0  ;;  %v3119_v44 = vmax.f32 %v1478_v63, %v10588_v22  ;;  %v21790_v28 = vld [vmem:[#allocation13_spill] sm:$0xff]  ;;  %v21791_v38 = vld [vmem:[#allocation14_spill] sm:$0xff]  ;;  %v21792_v63 = vld [vmem:[#allocation15_spill] sm:$0xff] }
 0x15c   : > { %v16704_v24 = vsel %vm4439_vm10, %v16505_v47, %v4446_v30  ;;  %v4910_v17 = vsel %vm4429_vm5, %v16492_v11, %v4909_v57  ;;  %v816_v42 = vadd.f32 %v21790_v28, %v16204_v3  ;;  %v811_v58 = vadd.f32 %v16204_v3, %v21791_v38 }
 0x15d   : > { %21789 = vst [vmem:[#allocation63_spill] sm:$0xff] %v16704_v24  ;;  %12606 = vmatmul.mubr.f32.vlgmr.msra.gmra.mrb[72].mxu0 %v16704_v24  ;;  %v3960_v29 = vmax.f32 %v3816_v21, 0.0  ;;  %v4911_v19 = vsel %vm4431_vm6, %v16502_v1, %v4910_v17  ;;  %v3977_v15 = vmax.f32 %v3833_v62, 0.0  ;;  %v10591_v50 = vrot.slane %v16690_v14, 9  ;;  %v21794_v62 = vld [vmem:[#allocation31_spill] sm:$0xff]  ;;  %v21797_v24 = vld [vmem:[#allocation16_spill] sm:$0xff] }
 0x15e   : > { %v4912_v26 = vsel %vm4433_vm7, %v16495_v46, %v4911_v19  ;;  %v826_v5 = vadd.f32 %v21792_v63, %v16204_v3  ;;  %v1522_v40 = vcombine.high %v816_v42, %v816_v42  ;;  %v1529_v18 = vrot.slane %v816_v42, %v16207_v4 }
 0x15f   : > { %v16721_v33 = vrot.slane %v3960_v29, %v16232_v7  ;;  %v4913_v2 = vsel %vm4435_vm8, %v16505_v47, %v4912_v26  ;;  %v16726_v31 = vmax.f32 %v1486_v56, %v10589_v37  ;;  %v1505_v22 = vcombine.high %v811_v58, %v811_v58 }
 0x160   : > { %v4914_v6 = vsel %vm4437_vm9, %v21794_v62, %v4913_v2  ;;  %v1512_v61 = vrot.slane %v811_v58, %v16207_v4  ;;  %v3976_v30 = vmax.f32 %v3832_v25, 0.0  ;;  %v1536_v57 = vrot.slane %v1522_v40, %v16207_v4 }
 0x161   : > { %21793 = vst [vmem:[#allocation13_spill] sm:$0xff] %v16721_v33  ;;  %v16733_v21 = vsel %vm4439_vm10, %v16721_v33, %v4914_v6  ;;  %v10732_v17 = vrot.slane %v1529_v18, 9  ;;  %v3978_v29 = vmax.f32 %v3834_v51, 0.0  ;;  %v1519_v56 = vrot.slane %v1505_v22, %v16207_v4 }
 0x162   : > { %21795 = vst [vmem:[#allocation14_spill] sm:$0xff] %v16733_v21  ;;  %12694 = vmatmul.mubr.f32.vlgmr.msra.gmra.mrb[0].mxu1 %v16733_v21  ;;  %v1520_v37 = vcombine.high %v1512_v61, %v1512_v61  ;;  %v10728_v19 = vrot.slane %v1512_v61, 9  ;;  %v1537_v28 = vcombine.high %v1529_v18, %v1529_v18  ;;  %v1538_v42 = vcombine.high %v1536_v57, %v1536_v57 }
 0x163   : > { %v3695_v38 = vmax.f32 %v1529_v18, %v10732_v17  ;;  %v1556_v26 = vcombine.high %v826_v5, %v826_v5  ;;  %v1521_v58 = vcombine.high %v1519_v56, %v1519_v56  ;;  %v10730_v63 = vrot.slane %v1519_v56, 9 }
 0x164   : > { %v10729_v25 = vrot.slane %v1520_v37, 9  ;;  %v3691_v2 = vmax.f32 %v1512_v61, %v10728_v19  ;;  %v16739_v6 = vrot.slane %v3976_v30, %v16232_v7  ;;  %v1563_v51 = vrot.slane %v826_v5, %v16207_v4  ;;  %v16748_v5 = vpop.f32.mrb[46].mxu0 }
 0x165   : > { %v3839_v40 = vmax.f32 %v3119_v44, %v3695_v38  ;;  %v821_v21 = vadd.f32 %v16204_v3, %v21797_v24  ;;  %v10731_v22 = vrot.slane %v1521_v58, 9  ;;  %v3693_v62 = vmax.f32 %v1519_v56, %v10730_v63  ;;  %21798 = vst [vmem:[#allocation16_spill] sm:$0xff] %v16748_v5 }
 0x166   : > { %21796 = vst [vmem:[#allocation15_spill] sm:$0xff] %v16739_v6  ;;  %v3692_v33 = vmax.f32 %v1520_v37, %v10729_v25  ;;  %v3835_v23 = vmax.f32 %v16676_v45, %v3691_v2  ;;  %v10733_v18 = vrot.slane %v1537_v28, 9  ;;  %v10734_v17 = vrot.slane %v1536_v57, 9 }
 0x167   : > { %v10735_v47 = vrot.slane %v1538_v42, 9  ;;  %v3983_v46 = vmax.f32 %v3839_v40, 0.0  ;;  %v3694_v1 = vmax.f32 %v1521_v58, %v10731_v22  ;;  %v3837_v30 = vmax.f32 %v16684_v8, %v3693_v62 }
 0x168   : > { %v3836_v61 = vmax.f32 %v16679_v16, %v3692_v33  ;;  %v1570_v44 = vrot.slane %v1556_v26, %v16207_v4  ;;  %v4270_v3 = vrot.slane %v16700_v43, %v16232_v7  ;;  %v16753_v24 = vrot.slane %v3977_v15, %v16232_v7  ;;  %v21809_v26 = vld [vmem:[#allocation22_spill] sm:$0xff] }
 0x169   : > { %v16756_v45 = vmax.f32 %v16649_v48, %v10590_v54  ;;  %v1571_v56 = vcombine.high %v1563_v51, %v1563_v51  ;;  %v16759_v37 = vrot.slane %v3978_v29, %v16232_v7  ;;  %v16762_v16 = vmax.f32 %v16690_v14, %v10591_v50  ;;  %v16775_v54 = vpop.f32.mrb[47].mxu0 }
 0x16a   : > { %21799 = vst [vmem:[#allocation64_spill] sm:$0xff] %v16753_v24  ;;  %v3838_v8 = vmax.f32 %v16686_v0, %v3694_v1  ;;  %v3979_v33 = vmax.f32 %v3835_v23, 0.0  ;;  %v16767_v62 = vsel %vm4427_vm4, %v16739_v6, %v4270_v3  ;;  %v16769_v43 = vmax.f32 %v1537_v28, %v10733_v18  ;;  %21805 = vst [vmem:[#allocation70_spill] sm:$0xff] %v16775_v54 }
 0x16b   : > { %21800 = vst [vmem:[#allocation65_spill] sm:$0xff] %v16756_v45  ;;  %21801 = vst [vmem:[#allocation66_spill] sm:$0xff] %v16759_v37  ;;  %v16771_v15 = vmax.f32 %v1536_v57, %v10734_v17  ;;  %v16773_v48 = vmax.f32 %v1538_v42, %v10735_v47  ;;  %v16778_v29 = vrot.slane %v3983_v46, %v16232_v7  ;;  %v10596_v50 = vrot.slane %v1563_v51, 9  ;;  %v16788_v57 = vld [vmem:[%s21497_s2] ss:$0 sm:$0xff] }
 0x16c   : > { %21802 = vst [vmem:[#allocation67_spill] sm:$0xff] %v16762_v16  ;;  %v16780_v14 = vcombine.high %v1570_v44, %v1570_v44  ;;  %v1539_v1 = vcombine.high %v821_v21, %v821_v21  ;;  %v16782_v23 = vmax.f32 %v3836_v61, 0.0  ;;  %v10597_v0 = vrot.slane %v1571_v56, 9  ;;  %v21807_v47 = vld [vmem:[#allocation20_spill] sm:$0xff] }
 0x16d   : > { %21803 = vst [vmem:[#allocation68_spill] sm:$0xff] %v16771_v15  ;;  %21804 = vst [vmem:[#allocation69_spill] sm:$0xff] %v16773_v48  ;;  %v1546_v19 = vrot.slane %v821_v21, %v16207_v4  ;;  %v836_v28 = vadd.f32 %v16788_v57, %v21807_v47  ;;  %v16792_v42 = vmax.f32 %v3837_v30, 0.0  ;;  %v16795_v46 = vrot.slane %v3979_v33, %v16232_v7 }
 0x16e   : > { %21806 = vst [vmem:[#allocation71_spill] sm:$0xff] %v16778_v29  ;;  %v1553_v38 = vrot.slane %v1539_v1, %v16207_v4  ;;  %v831_v58 = vadd.f32 %v16788_v57, %v21809_v26  ;;  %v10598_v25 = vrot.slane %v1570_v44, 9  ;;  %v16803_v47 = vmax.f32 %v1563_v51, %v10596_v50 }
 0x16f   : > { %21808 = vst [vmem:[#allocation20_spill] sm:$0xff] %v16795_v46  ;;  %v1554_v21 = vcombine.high %v1546_v19, %v1546_v19  ;;  %v1590_v63 = vcombine.high %v836_v28, %v836_v28  ;;  %v1597_v2 = vrot.slane %v836_v28, %v16207_v4  ;;  %v10592_v22 = vrot.slane %v1546_v19, 9 }
 0x170   : > { %v1555_v40 = vcombine.high %v1553_v38, %v1553_v38  ;;  %v10594_v18 = vrot.slane %v1553_v38, 9  ;;  %v1573_v17 = vcombine.high %v831_v58, %v831_v58  ;;  %v16805_v1 = vmax.f32 %v1571_v56, %v10597_v0 }
 0x171   : > { %v10593_v30 = vrot.slane %v1554_v21, 9  ;;  %v1604_v3 = vrot.slane %v1590_v63, %v16207_v4  ;;  %v1605_v33 = vcombine.high %v1597_v2, %v1597_v2  ;;  %v10736_v26 = vrot.slane %v1597_v2, 9 }
 0x172   : > { %v1580_v16 = vrot.slane %v831_v58, %v16207_v4  ;;  %v10595_v48 = vrot.slane %v1555_v40, 9  ;;  %v3123_v6 = vmax.f32 %v1546_v19, %v10592_v22  ;;  %v3125_v11 = vmax.f32 %v1553_v38, %v10594_v18 }
 0x173   : > { %v1606_v45 = vcombine.high %v1604_v3, %v1604_v3  ;;  %v10737_v28 = vrot.slane %v1605_v33, 9  ;;  %v10738_v15 = vrot.slane %v1604_v3, 9  ;;  %v3699_v60 = vmax.f32 %v1597_v2, %v10736_v26 }
 0x174   : > { %v1587_v61 = vrot.slane %v1573_v17, %v16207_v4  ;;  %v3124_v54 = vmax.f32 %v1554_v21, %v10593_v30  ;;  %v16809_v51 = vmax.f32 %v3838_v8, 0.0  ;;  %v16811_v56 = vmax.f32 %v1570_v44, %v10598_v25 }
 0x175   : > { %v10739_v5 = vrot.slane %v1606_v45, 9  ;;  %v3700_v63 = vmax.f32 %v1605_v33, %v10737_v28  ;;  %v3701_v41 = vmax.f32 %v1604_v3, %v10738_v15  ;;  %v3843_v50 = vmax.f32 %v3123_v6, %v3699_v60 }
 0x176   : > { %v1588_v0 = vcombine.high %v1580_v16, %v1580_v16  ;;  %v3126_v58 = vmax.f32 %v1555_v40, %v10595_v48  ;;  %v16813_v19 = vcombine.high %v1587_v61, %v1587_v61  ;;  %v10600_v38 = vrot.slane %v1580_v16, 9 }
 0x177   : > { %v3702_v27 = vmax.f32 %v1606_v45, %v10739_v5  ;;  %v3844_v34 = vmax.f32 %v3124_v54, %v3700_v63  ;;  %v3845_v29 = vmax.f32 %v3125_v11, %v3701_v41  ;;  %v3987_v39 = vmax.f32 %v3843_v50, 0.0  ;;  %v21816_v50 = vld [vmem:[#allocation24_spill] sm:$0xff] }
 0x178   : > { %v16817_v21 = vrot.slane %v16659_v9, %v16232_v7  ;;  %v21811_v44 = vrot.slane %v16512_v10, %v16232_v7  ;;  %v10601_v6 = vrot.slane %v1588_v0, 9  ;;  %v3828_v41 = vmax.f32 %v16574_v32, %v16624_v52  ;;  %v21812_v52 = vld [vmem:[#allocation23_spill] sm:$0xff] }
 0x179   : > { %v3846_v2 = vmax.f32 %v3126_v58, %v3702_v27  ;;  %v3988_v15 = vmax.f32 %v3844_v34, 0.0  ;;  %v3989_v8 = vmax.f32 %v3845_v29, 0.0  ;;  %v4916_v9 = vsel %vm4427_vm4, %v16617_v55, %v16614_v49 }
 0x17a   : > { %21810 = vst [vmem:[#allocation22_spill] sm:$0xff] %v16817_v21  ;;  %v4448_v60 = vsel %vm4427_vm4, %v16596_v36, %v21811_v44  ;;  %v4302_v34 = vrot.slane %v3987_v39, %v16232_v7  ;;  %v3972_v48 = vmax.f32 %v3828_v41, 0.0  ;;  %v4917_v32 = vsel %vm4429_vm5, %v16662_v12, %v4916_v9 }
 0x17b   : > { %v4449_v11 = vsel %vm4429_vm5, %v16614_v49, %v4448_v60  ;;  %v4306_v27 = vrot.slane %v3988_v15, %v16232_v7  ;;  %v16834_v10 = vrot.slane %v3989_v8, %v16232_v7  ;;  %v846_v54 = vadd.f32 %v16788_v57, %v21812_v52 }
 0x17c   : > { %v4450_v5 = vsel %vm4431_vm6, %v16617_v55, %v4449_v11  ;;  %v10602_v25 = vrot.slane %v1587_v61, 9  ;;  %v3131_v22 = vmax.f32 %v1580_v16, %v10600_v38  ;;  %v4918_v17 = vsel %vm4431_vm6, %v16667_v59, %v4917_v32  ;;  %v21817_v38 = vld [vmem:[#allocation30_spill] sm:$0xff] }
 0x17d   : > { %v4451_v45 = vsel %vm4433_vm7, %v16662_v12, %v4450_v5  ;;  %v16845_v39 = vsel %vm4427_vm4, %v4306_v27, %v4302_v34  ;;  %v16849_v29 = vsel %vm4427_vm4, %v16834_v10, %v4306_v27  ;;  %v1624_v30 = vcombine.high %v846_v54, %v846_v54 }
 0x17e   : > { %21813 = vst [vmem:[#allocation23_spill] sm:$0xff] %v16849_v29  ;;  %v4452_v40 = vsel %vm4435_vm8, %v16667_v59, %v4451_v45  ;;  %v16862_v33 = vrot.slane %v3972_v48, %v16232_v7  ;;  %v4919_v26 = vsel %vm4433_vm7, %v16673_v13, %v4918_v17  ;;  %v1631_v28 = vrot.slane %v846_v54, %v16207_v4 }
 0x17f   : > { %v4453_v18 = vsel %vm4437_vm9, %v16673_v13, %v4452_v40  ;;  %v4920_v16 = vsel %vm4435_vm8, %v16817_v21, %v4919_v26  ;;  %v1638_v63 = vrot.slane %v1624_v30, %v16207_v4  ;;  %v841_v58 = vadd.f32 %v16788_v57, %v21816_v50 }
 0x180   : > { %v16859_v3 = vsel %vm4439_vm10, %v16817_v21, %v4453_v18  ;;  %21815 = vst [vmem:[#allocation73_spill] sm:$0xff] %v16862_v33  ;;  %v856_v15 = vadd.f32 %v16788_v57, %v21817_v38  ;;  %v3132_v8 = vmax.f32 %v1588_v0, %v10601_v6  ;;  %v4921_v44 = vsel %vm4437_vm9, %v16657_v35, %v4920_v16 }
 0x181   : > { %21814 = vst [vmem:[#allocation72_spill] sm:$0xff] %v16859_v3  ;;  %12608 = vmatprep.mubr.f32.mxu0 %v16859_v3  ;;  %v1639_v60 = vcombine.high %v1631_v28, %v1631_v28  ;;  %v10744_v11 = vrot.slane %v1631_v28, 9  ;;  %v16877_v41 = vmax.f32 %v1587_v61, %v10602_v25  ;;  %v16881_v9 = vsel %vm4439_vm10, %v16862_v33, %v4921_v44 }
 0x182   : > { %21818 = vst [vmem:[#allocation24_spill] sm:$0xff] %v16881_v9  ;;  %v10746_v34 = vrot.slane %v1638_v63, 9  ;;  %v1607_v27 = vcombine.high %v841_v58, %v841_v58  ;;  %v3990_v5 = vmax.f32 %v3846_v2, 0.0  ;;  %12696 = vmatprep.mubr.f32.mxu1 %v16881_v9  ;;  %v1614_v0 = vrot.slane %v841_v58, %v16207_v4 }
 0x183   : > { %v10745_v45 = vrot.slane %v1639_v60, 9  ;;  %v3707_v48 = vmax.f32 %v1631_v28, %v10744_v11  ;;  %v1640_v6 = vcombine.high %v1638_v63, %v1638_v63  ;;  %v1658_v61 = vcombine.high %v856_v15, %v856_v15 }
 0x184   : > { %v16885_v32 = vmax.f32 %v1638_v63, %v10746_v34  ;;  %v1621_v52 = vrot.slane %v1607_v27, %v16207_v4  ;;  %v1622_v40 = vcombine.high %v1614_v0, %v1614_v0  ;;  %v10740_v18 = vrot.slane %v1614_v0, 9 }
 0x185   : > { %v3708_v54 = vmax.f32 %v1639_v60, %v10745_v45  ;;  %v3851_v25 = vmax.f32 %v3131_v22, %v3707_v48  ;;  %v10603_v17 = vrot.slane %v16813_v19, 9  ;;  %v1665_v63 = vrot.slane %v856_v15, %v16207_v4 }
 0x186   : > { %21819 = vst [vmem:[#allocation30_spill] sm:$0xff] %v16885_v32  ;;  %v1623_v30 = vcombine.high %v1621_v52, %v1621_v52  ;;  %v10742_v26 = vrot.slane %v1621_v52, 9  ;;  %v10741_v16 = vrot.slane %v1622_v40, 9  ;;  %v3703_v50 = vmax.f32 %v1614_v0, %v10740_v18 }
 0x187   : > { %v3852_v28 = vmax.f32 %v3132_v8, %v3708_v54  ;;  %v16893_v58 = vrot.slane %v3990_v5, %v16232_v7  ;;  %v16896_v22 = vrot.slane %v1658_v61, %v16207_v4  ;;  %v10747_v60 = vrot.slane %v1640_v6, 9  ;;  %v21824_v61 = vld [vmem:[#allocation32_spill] sm:$0xff] }
 0x188   : > { %v10743_v38 = vrot.slane %v1623_v30, 9  ;;  %v3705_v44 = vmax.f32 %v1621_v52, %v10742_v26  ;;  %v3995_v11 = vmax.f32 %v3851_v25, 0.0  ;;  %v3704_v34 = vmax.f32 %v1622_v40, %v10741_v16 }
 0x189   : > { %21820 = vst [vmem:[#allocation74_spill] sm:$0xff] %v16893_v58  ;;  %v3847_v27 = vmax.f32 %v16803_v47, %v3703_v50  ;;  %v16901_v8 = vrot.slane %v16782_v23, %v16232_v7  ;;  %v21822_v45 = vrot.slane %v16780_v14, 9  ;;  %v16913_v0 = vrot.slane %v16792_v42, %v16232_v7 }
 0x18a   : > { %v16908_v5 = vmax.f32 %v1623_v30, %v10743_v38  ;;  %v3849_v48 = vmax.f32 %v16811_v56, %v3705_v44  ;;  %v3848_v52 = vmax.f32 %v16805_v1, %v3704_v34  ;;  %v16916_v47 = vcombine.high %v1665_v63, %v1665_v63  ;;  %v21829_v38 = vld [vmem:[#allocation33_spill] sm:$0xff]  ;;  %v21830_v44 = vld [vmem:[#allocation34_spill] sm:$0xff] }
 0x18b   : > { %21821 = vst [vmem:[#allocation75_spill] sm:$0xff] %v16901_v8  ;;  %v16906_v15 = vmax.f32 %v16780_v14, %v21822_v45  ;;  %21823 = vst [vmem:[#allocation76_spill] sm:$0xff] %v16913_v0  ;;  %v851_v23 = vadd.f32 %v16788_v57, %v21824_v61  ;;  %v16922_v54 = vrot.slane %v16809_v51, %v16232_v7  ;;  %v16940_v40 = vmax.f32 %v3852_v28, 0.0 }
 0x18c   : > { %v16925_v14 = vmax.f32 %v16813_v19, %v10603_v17  ;;  %v16931_v42 = vcombine.high %v16896_v22, %v16896_v22  ;;  %v16936_v1 = vsel %vm4427_vm4, %v16893_v58, %v16834_v10  ;;  %v16938_v25 = vmax.f32 %v1640_v6, %v10747_v60 }
 0x18d   : > { %21825 = vst [vmem:[#allocation32_spill] sm:$0xff] %v16922_v54  ;;  %v16943_v51 = vrot.slane %v3995_v11, %v16232_v7  ;;  %v16945_v19 = vmax.f32 %v3847_v27, 0.0  ;;  %v16947_v18 = vmax.f32 %v3849_v48, 0.0  ;;  %v10608_v17 = vrot.slane %v1665_v63, 9 }
 0x18e   : > { %21826 = vst [vmem:[#allocation77_spill] sm:$0xff] %v16925_v14  ;;  %21827 = vst [vmem:[#allocation78_spill] sm:$0xff] %v16938_v25  ;;  %v10610_v30 = vrot.slane %v16896_v22, 9  ;;  %v1641_v16 = vcombine.high %v851_v23, %v851_v23  ;;  %v1648_v50 = vrot.slane %v851_v23, %v16207_v4  ;;  %v866_v6 = vadd.f32 %v16788_v57, %v21829_v38 }
 0x18f   : > { %21828 = vst [vmem:[#allocation79_spill] sm:$0xff] %v16943_v51  ;;  %v861_v60 = vadd.f32 %v16788_v57, %v21830_v44  ;;  %v4456_v11 = vsel %vm4429_vm5, %v16753_v24, %v16767_v62  ;;  %v3840_v34 = vmax.f32 %v16726_v31, %v16769_v43  ;;  %v16963_v23 = vmax.f32 %v3848_v52, 0.0 }
 0x190   : > { %v1655_v27 = vrot.slane %v1641_v16, %v16207_v4  ;;  %v1656_v45 = vcombine.high %v1648_v50, %v1648_v50  ;;  %v10604_v48 = vrot.slane %v1648_v50, 9  ;;  %v1692_v61 = vcombine.high %v866_v6, %v866_v6 }
 0x191   : > { %v1699_v38 = vrot.slane %v866_v6, %v16207_v4  ;;  %v1675_v2 = vcombine.high %v861_v60, %v861_v60  ;;  %v1682_v28 = vrot.slane %v861_v60, %v16207_v4  ;;  %v16967_v44 = vmax.f32 %v1665_v63, %v10608_v17 }
 0x192   : > { %v1657_v26 = vcombine.high %v1655_v27, %v1655_v27  ;;  %v10605_v56 = vrot.slane %v1656_v45, 9  ;;  %v10606_v62 = vrot.slane %v1655_v27, 9  ;;  %v1706_v9 = vrot.slane %v1692_v61, %v16207_v4 }
 0x193   : > { %v1707_v31 = vcombine.high %v1699_v38, %v1699_v38  ;;  %v10748_v43 = vrot.slane %v1699_v38, 9  ;;  %v4457_v16 = vsel %vm4431_vm6, %v16759_v37, %v4456_v11  ;;  %v3135_v52 = vmax.f32 %v1648_v50, %v10604_v48 }
 0x194   : > { %v10607_v3 = vrot.slane %v1657_v26, 9  ;;  %v1689_v14 = vrot.slane %v1675_v2, %v16207_v4  ;;  %v1690_v6 = vcombine.high %v1682_v28, %v1682_v28  ;;  %v1708_v25 = vcombine.high %v1706_v9, %v1706_v9 }
 0x195   : > { %v10749_v33 = vrot.slane %v1707_v31, 9  ;;  %v10750_v60 = vrot.slane %v1706_v9, 9  ;;  %v3711_v63 = vmax.f32 %v1699_v38, %v10748_v43  ;;  %v3136_v17 = vmax.f32 %v1656_v45, %v10605_v56 }
 0x196   : > { %v3137_v29 = vmax.f32 %v1655_v27, %v10606_v62  ;;  %v10612_v35 = vrot.slane %v1682_v28, 9  ;;  %v10613_v21 = vrot.slane %v1690_v6, 9  ;;  %v10751_v13 = vrot.slane %v1708_v25, 9 }
 0x197   : > { %v3712_v61 = vmax.f32 %v1707_v31, %v10749_v33  ;;  %v3713_v59 = vmax.f32 %v1706_v9, %v10750_v60  ;;  %v3855_v12 = vmax.f32 %v3135_v52, %v3711_v63  ;;  %v16974_v55 = vmax.f32 %v16896_v22, %v10610_v30 }
 0x198   : > { %v3138_v11 = vmax.f32 %v1657_v26, %v10607_v3  ;;  %v16976_v50 = vcombine.high %v1689_v14, %v1689_v14  ;;  %v10614_v2 = vrot.slane %v1689_v14, 9  ;;  %v3714_v48 = vmax.f32 %v1708_v25, %v10751_v13 }
 0x199   : > { %v3856_v49 = vmax.f32 %v3136_v17, %v3712_v61  ;;  %v3857_v36 = vmax.f32 %v3137_v29, %v3713_v59  ;;  %v3999_v32 = vmax.f32 %v3855_v12, 0.0  ;;  %v16978_v38 = vmax.f32 %v1682_v28, %v10612_v35  ;;  %v21834_v17 = vld [vmem:[#allocation35_spill] sm:$0xff] }
 0x19a   : > { %v16980_v56 = vmax.f32 %v1690_v6, %v10613_v21  ;;  %v4458_v33 = vsel %vm4433_vm7, %v16795_v46, %v4457_v16  ;;  %v3984_v9 = vmax.f32 %v3840_v34, 0.0  ;;  %v3858_v27 = vmax.f32 %v3138_v11, %v3714_v48  ;;  %v21835_v48 = vld [vmem:[#allocation71_spill] sm:$0xff] }
 0x19b   : > { %v4000_v45 = vmax.f32 %v3856_v49, 0.0  ;;  %v4001_v22 = vmax.f32 %v3857_v36, 0.0  ;;  %v4334_v3 = vrot.slane %v3999_v32, %v16232_v7  ;;  %v4459_v30 = vsel %vm4435_vm8, %v16901_v8, %v4458_v33 }
 0x19c   : > { %v16988_v13 = vrot.slane %v3984_v9, %v16232_v7  ;;  %v4923_v35 = vsel %vm4427_vm4, %v16759_v37, %v16753_v24  ;;  %v876_v12 = vadd.f32 %v16788_v57, %v16461_v53  ;;  %v4002_v59 = vmax.f32 %v3858_v27, 0.0 }
 0x19d   : > { %v4338_v21 = vrot.slane %v4000_v45, %v16232_v7  ;;  %v16997_v36 = vrot.slane %v4001_v22, %v16232_v7  ;;  %v4460_v49 = vsel %vm4437_vm9, %v16913_v0, %v4459_v30  ;;  %v4924_v32 = vsel %vm4429_vm5, %v16795_v46, %v4923_v35 }
 0x19e   : > { %21831 = vst [vmem:[#allocation33_spill] sm:$0xff] %v16988_v13  ;;  %v17003_v29 = vsel %vm4439_vm10, %v16922_v54, %v4460_v49  ;;  %v1726_v25 = vcombine.high %v876_v12, %v876_v12  ;;  %v1733_v26 = vrot.slane %v876_v12, %v16207_v4  ;;  %v17009_v53 = vrot.slane %v4002_v59, %v16232_v7 }
 0x19f   : > { %21832 = vst [vmem:[#allocation34_spill] sm:$0xff] %v17003_v29  ;;  %v17012_v28 = vsel %vm4427_vm4, %v4338_v21, %v4334_v3  ;;  %v17016_v34 = vsel %vm4427_vm4, %v16997_v36, %v4338_v21  ;;  %12609 = vmatmul.mubr.f32.gmra.mrb[74].mxu0 %v17003_v29  ;;  %v4925_v62 = vsel %vm4431_vm6, %v16901_v8, %v4924_v32 }
 0x1a0   : > { %21833 = vst [vmem:[#allocation80_spill] sm:$0xff] %v17016_v34  ;;  %v4926_v31 = vsel %vm4433_vm7, %v16913_v0, %v4925_v62  ;;  %v1740_v43 = vrot.slane %v1726_v25, %v16207_v4  ;;  %v1741_v16 = vcombine.high %v1733_v26, %v1733_v26  ;;  %v10756_v52 = vrot.slane %v1733_v26, 9 }
 0x1a1   : > { %v17027_v6 = vsel %vm4427_vm4, %v17009_v53, %v16997_v36  ;;  %v4927_v60 = vsel %vm4435_vm8, %v16922_v54, %v4926_v31  ;;  %v871_v63 = vadd.f32 %v16788_v57, %v16463_v20  ;;  %v886_v61 = vadd.f32 %v16788_v57, %v21834_v17 }
 0x1a2   : > { %v17035_v11 = vmax.f32 %v1689_v14, %v10614_v2  ;;  %v4928_v33 = vsel %vm4437_vm9, %v21835_v48, %v4927_v60  ;;  %v10757_v9 = vrot.slane %v1741_v16, 9  ;;  %v10758_v27 = vrot.slane %v1740_v43, 9 }
 0x1a3   : > { %v17041_v45 = vsel %vm4439_vm10, %v16988_v13, %v4928_v33  ;;  %v3719_v22 = vmax.f32 %v1733_v26, %v10756_v52  ;;  %v1709_v3 = vcombine.high %v871_v63, %v871_v63  ;;  %v1716_v30 = vrot.slane %v871_v63, %v16207_v4 }
 0x1a4   : > { %21836 = vst [vmem:[#allocation35_spill] sm:$0xff] %v17041_v45  ;;  %12697 = vmatmul.mubr.f32.gmra.mrb[2].mxu1 %v17041_v45  ;;  %v1742_v20 = vcombine.high %v1740_v43, %v1740_v43  ;;  %v3720_v35 = vmax.f32 %v1741_v16, %v10757_v9  ;;  %v17045_v12 = vmax.f32 %v1740_v43, %v10758_v27  ;;  %v21838_v43 = vrot.slane %v16916_v47, 9 }
 0x1a5   : > { %v1760_v14 = vcombine.high %v886_v61, %v886_v61  ;;  %v3863_v2 = vmax.f32 %v16978_v38, %v3719_v22  ;;  %v1723_v59 = vrot.slane %v1709_v3, %v16207_v4  ;;  %v1724_v21 = vcombine.high %v1716_v30, %v1716_v30 }
 0x1a6   : > { %v10752_v49 = vrot.slane %v1716_v30, 9  ;;  %v21837_v32 = vmax.f32 %v16906_v15, %v16908_v5  ;;  %v3864_v26 = vmax.f32 %v16980_v56, %v3720_v35  ;;  %v1767_v31 = vrot.slane %v886_v61, %v16207_v4 }
 0x1a7   : > { %v3140_v16 = vmax.f32 %v16916_v47, %v21838_v43  ;;  %v1725_v38 = vcombine.high %v1723_v59, %v1723_v59  ;;  %v10753_v52 = vrot.slane %v1724_v21, 9  ;;  %v10754_v60 = vrot.slane %v1723_v59, 9 }
 0x1a8   : > { %v3994_v25 = vmax.f32 %v21837_v32, 0.0  ;;  %v21839_v63 = vrot.slane %v16931_v42, 9  ;;  %v10615_v15 = vrot.slane %v16976_v50, 9  ;;  %v3715_v5 = vmax.f32 %v1716_v30, %v10752_v49 }
 0x1a9   : > { %v1774_v56 = vrot.slane %v1760_v14, %v16207_v4  ;;  %v10759_v33 = vrot.slane %v1742_v20, 9  ;;  %v10755_v9 = vrot.slane %v1725_v38, 9  ;;  %v3716_v61 = vmax.f32 %v1724_v21, %v10753_v52 }
 0x1aa   : > { %v17062_v17 = vmax.f32 %v16931_v42, %v21839_v63  ;;  %v3717_v27 = vmax.f32 %v1723_v59, %v10754_v60  ;;  %v4007_v22 = vmax.f32 %v3863_v2, 0.0  ;;  %v3859_v47 = vmax.f32 %v16967_v44, %v3715_v5  ;;  %v21848_v5 = vld [vmem:[#allocation44_spill] sm:$0xff] }
 0x1ab   : > { %v17067_v3 = vcombine.high %v1767_v31, %v1767_v31  ;;  %v17069_v35 = vcombine.high %v1774_v56, %v1774_v56  ;;  %v17071_v32 = vmax.f32 %v1725_v38, %v10755_v9  ;;  %v3860_v42 = vmax.f32 %v3140_v16, %v3716_v61 }
 0x1ac   : > { %v3861_v43 = vmax.f32 %v16974_v55, %v3717_v27  ;;  %v10620_v63 = vrot.slane %v1767_v31, 9  ;;  %v17076_v30 = vrot.slane %v16945_v19, %v16232_v7  ;;  %v17080_v14 = vrot.slane %v16963_v23, %v16232_v7 }
 0x1ad   : > { %v17084_v44 = vrot.slane %v16947_v18, %v16232_v7  ;;  %v17087_v2 = vrot.slane %v3994_v25, %v16232_v7  ;;  %v17090_v59 = vmax.f32 %v16976_v50, %v10615_v15  ;;  %v17092_v55 = vmax.f32 %v1742_v20, %v10759_v33  ;;  %v21846_v18 = vld [vmem:[#allocation38_spill] sm:$0xff]  ;;  %v21847_v20 = vld [vmem:[#allocation43_spill] sm:$0xff] }
 0x1ae   : > { %21840 = vst [vmem:[#allocation81_spill] sm:$0xff] %v17076_v30  ;;  %21841 = vst [vmem:[#allocation82_spill] sm:$0xff] %v17080_v14  ;;  %v17094_v21 = vmax.f32 %v3864_v26, 0.0  ;;  %v17099_v23 = vrot.slane %v4007_v22, %v16232_v7  ;;  %v4003_v49 = vmax.f32 %v3859_v47, 0.0  ;;  %v10622_v16 = vrot.slane %v1774_v56, 9 }
 0x1af   : > { %21842 = vst [vmem:[#allocation83_spill] sm:$0xff] %v17084_v44  ;;  %21843 = vst [vmem:[#allocation84_spill] sm:$0xff] %v17087_v2  ;;  %v881_v38 = vadd.f32 %v16788_v57, %v21846_v18  ;;  %v10621_v25 = vrot.slane %v17067_v3, 9  ;;  %v10623_v50 = vrot.slane %v17069_v35, 9  ;;  %v17105_v52 = vmax.f32 %v1767_v31, %v10620_v63 }
 0x1b0   : > { %21844 = vst [vmem:[#allocation85_spill] sm:$0xff] %v17090_v59  ;;  %21845 = vst [vmem:[#allocation86_spill] sm:$0xff] %v17092_v55  ;;  %v896_v26 = vadd.f32 %v16788_v57, %v21847_v20  ;;  %v891_v33 = vadd.f32 %v16788_v57, %v21848_v5  ;;  %v4463_v9 = vsel %vm4429_vm5, %v16834_v10, %v16845_v39  ;;  %v17115_v61 = vmax.f32 %v3860_v42, 0.0 }
 0x1b1   : > { %v1743_v60 = vcombine.high %v881_v38, %v881_v38  ;;  %v1750_v15 = vrot.slane %v881_v38, %v16207_v4  ;;  %v17117_v27 = vmax.f32 %v3861_v43, 0.0  ;;  %v17124_v8 = vmax.f32 %v1774_v56, %v10622_v16 }
 0x1b2   : > { %v1794_v22 = vcombine.high %v896_v26, %v896_v26  ;;  %v1801_v31 = vrot.slane %v896_v26, %v16207_v4  ;;  %v1777_v20 = vcombine.high %v891_v33, %v891_v33  ;;  %v1784_v19 = vrot.slane %v891_v33, %v16207_v4 }
 0x1b3   : > { %v1757_v47 = vrot.slane %v1743_v60, %v16207_v4  ;;  %v1758_v63 = vcombine.high %v1750_v15, %v1750_v15  ;;  %v10616_v18 = vrot.slane %v1750_v15, 9 }
 0x1b4   : > { %v1808_v38 = vrot.slane %v1794_v22, %v16207_v4  ;;  %v1809_v62 = vcombine.high %v1801_v31, %v1801_v31  ;;  %v10760_v5 = vrot.slane %v1801_v31, 9  ;;  %v1791_v34 = vrot.slane %v1777_v20, %v16207_v4 }
 0x1b5   : > { %v1759_v45 = vcombine.high %v1757_v47, %v1757_v47  ;;  %v10617_v10 = vrot.slane %v1758_v63, 9  ;;  %v10618_v39 = vrot.slane %v1757_v47, 9  ;;  %v3147_v42 = vmax.f32 %v1750_v15, %v10616_v18 }
 0x1b6   : > { %v1810_v43 = vcombine.high %v1808_v38, %v1808_v38  ;;  %v10761_v29 = vrot.slane %v1809_v62, 9  ;;  %v10762_v59 = vrot.slane %v1808_v38, 9  ;;  %v3723_v55 = vmax.f32 %v1801_v31, %v10760_v5 }
 0x1b7   : > { %v10619_v26 = vrot.slane %v1759_v45, 9  ;;  %v3148_v13 = vmax.f32 %v1758_v63, %v10617_v10  ;;  %v3149_v60 = vmax.f32 %v1757_v47, %v10618_v39  ;;  %v1792_v46 = vcombine.high %v1784_v19, %v1784_v19  ;;  %v17169_v10 = vpop.f32.mrb[48].mxu0 }
 0x1b8   : > { %v10763_v48 = vrot.slane %v1810_v43, 9  ;;  %v3724_v54 = vmax.f32 %v1809_v62, %v10761_v29  ;;  %v3725_v22 = vmax.f32 %v1808_v38, %v10762_v59  ;;  %v3867_v0 = vmax.f32 %v3147_v42, %v3723_v55  ;;  %21852 = vst [vmem:[#allocation44_spill] sm:$0xff] %v17169_v10  ;;  %v21869_v10 = vld [vmem:[#allocation61_spill] sm:$0xff] }
 0x1b9   : > { %v3150_v33 = vmax.f32 %v1759_v45, %v10619_v26  ;;  %v4464_v15 = vsel %vm4431_vm6, %v16893_v58, %v4463_v9  ;;  %v17129_v63 = vrot.slane %v4003_v49, %v16232_v7  ;;  %v17132_v47 = vmax.f32 %v17067_v3, %v10621_v25 }
 0x1ba   : > { %v3726_v18 = vmax.f32 %v1810_v43, %v10763_v48  ;;  %v3868_v37 = vmax.f32 %v3148_v13, %v3724_v54  ;;  %v3869_v24 = vmax.f32 %v3149_v60, %v3725_v22  ;;  %v4011_v31 = vmax.f32 %v3867_v0, 0.0  ;;  %v21853_v43 = vld [vmem:[#allocation50_spill] sm:$0xff]  ;;  %v17177_v60 = vpop.f32.mrb[49].mxu0 }
 0x1bb   : > { %v17135_v29 = vmax.f32 %v17069_v35, %v10623_v50  ;;  %v10624_v62 = vrot.slane %v1784_v19, 9  ;;  %v17137_v55 = vcombine.high %v1791_v34, %v1791_v34  ;;  %v10625_v54 = vrot.slane %v1792_v46, 9  ;;  %v21849_v50 = vld [vmem:[#allocation47_spill] sm:$0xff] }
 0x1bc   : > { %v3870_v56 = vmax.f32 %v3150_v33, %v3726_v18  ;;  %v4012_v45 = vmax.f32 %v3868_v37, 0.0  ;;  %v4013_v59 = vmax.f32 %v3869_v24, 0.0  ;;  %v4366_v48 = vrot.slane %v4011_v31, %v16232_v7  ;;  %21854 = vst [vmem:[#allocation47_spill] sm:$0xff] %v17177_v60  ;;  %v21856_v18 = vld [vmem:[#allocation54_spill] sm:$0xff] }
 0x1bd   : > { %v10626_v13 = vrot.slane %v1791_v34, 9  ;;  %v4465_v0 = vsel %vm4433_vm7, %v17076_v30, %v4464_v15  ;;  %v3155_v37 = vmax.f32 %v1784_v19, %v10624_v62  ;;  %v4931_v25 = vsel %vm4429_vm5, %v17076_v30, %v16936_v1  ;;  %v17192_v62 = vpop.f32.mrb[50].mxu0 }
 0x1be   : > { %v4014_v49 = vmax.f32 %v3870_v56, 0.0  ;;  %v4370_v3 = vrot.slane %v4012_v45, %v16232_v7  ;;  %v17144_v16 = vrot.slane %v4013_v59, %v16232_v7  ;;  %v4466_v35 = vsel %vm4435_vm8, %v17080_v14, %v4465_v0  ;;  %21857 = vst [vmem:[#allocation54_spill] sm:$0xff] %v17192_v62 }
 0x1bf   : > { %v4467_v24 = vsel %vm4437_vm9, %v17084_v44, %v4466_v35  ;;  %v906_v9 = vadd.f32 %v16788_v57, %v21849_v50  ;;  %v4932_v1 = vsel %vm4431_vm6, %v17080_v14, %v4931_v25  ;;  %v901_v26 = vadd.f32 %v16788_v57, %v21853_v43 }
 0x1c0   : > { %v17156_v20 = vrot.slane %v4014_v49, %v16232_v7  ;;  %v17159_v38 = vsel %vm4427_vm4, %v4370_v3, %v4366_v48  ;;  %v17163_v5 = vsel %vm4427_vm4, %v17144_v16, %v4370_v3  ;;  %v17167_v19 = vsel %vm4439_vm10, %v17087_v2, %v4467_v24 }
 0x1c1   : > { %21850 = vst [vmem:[#allocation38_spill] sm:$0xff] %v17163_v5  ;;  %21851 = vst [vmem:[#allocation43_spill] sm:$0xff] %v17167_v19  ;;  %12611 = vmatprep.mubr.f32.mxu0 %v17167_v19  ;;  %v1828_v39 = vcombine.high %v906_v9, %v906_v9  ;;  %v1835_v42 = vrot.slane %v906_v9, %v16207_v4  ;;  %v17186_v33 = vrot.slane %v16940_v40, %v16232_v7 }
 0x1c2   : > { %v17182_v22 = vsel %vm4427_vm4, %v17156_v20, %v17144_v16  ;;  %v4933_v15 = vsel %vm4433_vm7, %v17084_v44, %v4932_v1  ;;  %v916_v31 = vadd.f32 %v16788_v57, %v21856_v18  ;;  %v17197_v0 = vmax.f32 %v1792_v46, %v10625_v54 }
 0x1c3   : > { %21855 = vst [vmem:[#allocation50_spill] sm:$0xff] %v17186_v33  ;;  %v4934_v56 = vsel %vm4435_vm8, %v17087_v2, %v4933_v15  ;;  %v1842_v45 = vrot.slane %v1828_v39, %v16207_v4  ;;  %v1843_v59 = vcombine.high %v1835_v42, %v1835_v42  ;;  %v10768_v48 = vrot.slane %v1835_v42, 9  ;;  %v17210_v39 = vpop.f32.mrb[51].mxu0 }
 0x1c4   : > { %v4935_v40 = vsel %vm4437_vm9, %v16943_v51, %v4934_v56  ;;  %v1811_v49 = vcombine.high %v901_v26, %v901_v26  ;;  %v1818_v3 = vrot.slane %v901_v26, %v16207_v4  ;;  %v17202_v35 = vmax.f32 %v1791_v34, %v10626_v13  ;;  %21860 = vst [vmem:[#allocation89_spill] sm:$0xff] %v17210_v39  ;;  %v17216_v26 = vpop.f32.mrb[52].mxu0 }
 0x1c5   : > { %v17206_v24 = vsel %vm4439_vm10, %v17186_v33, %v4935_v40  ;;  %v10769_v25 = vrot.slane %v1843_v59, 9  ;;  %v10770_v50 = vrot.slane %v1842_v45, 9  ;;  %v3731_v9 = vmax.f32 %v1835_v42, %v10768_v48  ;;  %21862 = vst [vmem:[#allocation91_spill] sm:$0xff] %v17216_v26 }
 0x1c6   : > { %21858 = vst [vmem:[#allocation87_spill] sm:$0xff] %v17202_v35  ;;  %21859 = vst [vmem:[#allocation88_spill] sm:$0xff] %v17206_v24  ;;  %12699 = vmatprep.mubr.f32.mxu1 %v17206_v24  ;;  %v1825_v46 = vrot.slane %v1811_v49, %v16207_v4  ;;  %v1826_v54 = vcombine.high %v1818_v3, %v1818_v3  ;;  %v10764_v1 = vrot.slane %v1818_v3, 9 }
 0x1c7   : > { %v1844_v43 = vcombine.high %v1842_v45, %v1842_v45  ;;  %v17212_v15 = vmax.f32 %v1843_v59, %v10769_v25  ;;  %v17214_v34 = vmax.f32 %v1842_v45, %v10770_v50  ;;  %v1862_v13 = vcombine.high %v916_v31, %v916_v31 }
 0x1c8   : > { %v3875_v18 = vmax.f32 %v3155_v37, %v3731_v9  ;;  %v1827_v56 = vcombine.high %v1825_v46, %v1825_v46  ;;  %v10765_v40 = vrot.slane %v1826_v54, 9  ;;  %v10766_v19 = vrot.slane %v1825_v46, 9 }
 0x1c9   : > { %21861 = vst [vmem:[#allocation90_spill] sm:$0xff] %v17214_v34  ;;  %v3727_v49 = vmax.f32 %v1818_v3, %v10764_v1  ;;  %v1869_v24 = vrot.slane %v916_v31, %v16207_v4  ;;  %v21863_v45 = vmax.f32 %v17062_v17, %v17071_v32  ;;  %v10627_v37 = vrot.slane %v17137_v55, 9  ;;  %v17235_v17 = vpop.f32.mrb[53].mxu0 }
 0x1ca   : > { %v10767_v25 = vrot.slane %v1827_v56, 9  ;;  %v3728_v50 = vmax.f32 %v1826_v54, %v10765_v40  ;;  %v3729_v26 = vmax.f32 %v1825_v46, %v10766_v19  ;;  %v10771_v9 = vrot.slane %v1844_v43, 9  ;;  %21864 = vst [vmem:[#allocation92_spill] sm:$0xff] %v17235_v17  ;;  %v21865_v46 = vld [vmem:[#allocation55_spill] sm:$0xff]  ;;  %v10865_v40 = vld [vmem:[%s21498_s3 + $0x180] sm:$0xff] }
 0x1cb   : > { %v4006_v59 = vmax.f32 %v21863_v45, 0.0  ;;  %v4019_v39 = vmax.f32 %v3875_v18, 0.0  ;;  %v3871_v62 = vmax.f32 %v17105_v52, %v3727_v49  ;;  %v17233_v31 = vrot.slane %v1862_v13, %v16207_v4 }
 0x1cc   : > { %v17228_v42 = vmax.f32 %v1827_v56, %v10767_v25  ;;  %v3872_v48 = vmax.f32 %v17132_v47, %v3728_v50  ;;  %v3873_v3 = vmax.f32 %v17124_v8, %v3729_v26  ;;  %v17237_v54 = vcombine.high %v1869_v24, %v1869_v24 }
 0x1cd   : > { %v4015_v32 = vmax.f32 %v3871_v62, 0.0  ;;  %v10632_v19 = vrot.slane %v1869_v24, 9  ;;  %v911_v1 = vadd.f32 %v16788_v57, %v21865_v46  ;;  %v17243_v52 = vrot.slane %v17115_v61, %v16232_v7  ;;  %v10833_v62 = vld [vmem:[%s21498_s3 + $0x80] sm:$0xff]  ;;  %v21868_v46 = vld [vmem:[#allocation59_spill] sm:$0xff] }
 0x1ce   : > { %v17247_v47 = vrot.slane %v17117_v27, %v16232_v7  ;;  %v4016_v13 = vmax.f32 %v3872_v48, 0.0  ;;  %v17255_v26 = vrot.slane %v4006_v59, %v16232_v7  ;;  %v17258_v18 = vmax.f32 %v17137_v55, %v10627_v37  ;;  %v10834_v27 = vld [vmem:[%s21498_s3 + $0x88] sm:$0xff] }
 0x1cf   : > { %v17260_v61 = vmax.f32 %v1844_v43, %v10771_v9  ;;  %v17263_v56 = vrot.slane %v4019_v39, %v16232_v7  ;;  %v10866_v48 = vld [vmem:[%s21498_s3 + $0x188] sm:$0xff]  ;;  %v4017_v49 = vmax.f32 %v3873_v3, 0.0  ;;  %v17275_v55 = vrot.slane %v4015_v32, %v16232_v7 }
 0x1d0   : > { %21866 = vst [vmem:[#allocation55_spill] sm:$0xff] %v17258_v18  ;;  %v1878_v39 = vcombine.high %v17233_v31, %v17233_v31  ;;  %v10634_v43 = vrot.slane %v17233_v31, 9  ;;  %v10633_v45 = vrot.slane %v17237_v54, 9  ;;  %v17281_v59 = vmax.f32 %v1869_v24, %v10632_v19 }
 0x1d1   : > { %21867 = vst [vmem:[#allocation93_spill] sm:$0xff] %v17260_v61  ;;  %v1845_v25 = vcombine.high %v911_v1, %v911_v1  ;;  %v1852_v50 = vrot.slane %v911_v1, %v16207_v4  ;;  %v17285_v37 = vrot.slane %v4016_v13, %v16232_v7  ;;  %v14310_v9 = vpack.c.bf16 %v10834_v27, %v10833_v62 }
 0x1d2   : > { %v14374_v3 = vpack.c.bf16 %v10866_v48, %v10865_v40  ;;  %v926_v32 = vadd.f32 %v16788_v57, %v21868_v46  ;;  %v921_v18 = vadd.f32 %v16788_v57, %v21869_v10  ;;  %v10635_v24 = vrot.slane %v1878_v39, 9 }
 0x1d3   : > { %v1859_v8 = vrot.slane %v1845_v25, %v16207_v4  ;;  %v1860_v17 = vcombine.high %v1852_v50, %v1852_v50  ;;  %v10628_v60 = vrot.slane %v1852_v50, 9  ;;  %14311 = vmatprep.subr.bf16.mxu0 %v14310_v9  ;;  %v4470_v13 = vsel %vm4429_vm5, %v16997_v36, %v17012_v28 }
 0x1d4   : > { %14375 = vmatprep.subr.bf16.mxu1 %v14374_v3  ;;  %v1896_v19 = vcombine.high %v926_v32, %v926_v32  ;;  %v1903_v1 = vrot.slane %v926_v32, %v16207_v4  ;;  %v17297_v62 = vrot.slane %v4017_v49, %v16232_v7  ;;  %14313 = vmatpush3.bf16.msra.mxu0 %v14310_v9 }
 0x1d5   : > { %v1861_v27 = vcombine.high %v1859_v8, %v1859_v8  ;;  %v10629_v40 = vrot.slane %v1860_v17, 9  ;;  %v10630_v48 = vrot.slane %v1859_v8, 9  ;;  %14377 = vmatpush3.bf16.msra.mxu1 %v14374_v3  ;;  %v1879_v61 = vcombine.high %v921_v18, %v921_v18 }
 0x1d6   : > { %v1910_v10 = vrot.slane %v1896_v19, %v16207_v4  ;;  %v1911_v25 = vcombine.high %v1903_v1, %v1903_v1  ;;  %v10772_v46 = vrot.slane %v1903_v1, 9  ;;  %v3159_v5 = vmax.f32 %v1852_v50, %v10628_v60 }
 0x1d7   : > { %v10631_v33 = vrot.slane %v1861_v27, 9  ;;  %v3160_v32 = vmax.f32 %v1860_v17, %v10629_v40  ;;  %v1886_v51 = vrot.slane %v921_v18, %v16207_v4  ;;  %v3161_v34 = vmax.f32 %v1859_v8, %v10630_v48  ;;  %v10835_v8 = vld [vmem:[%s21498_s3 + $0x90] sm:$0xff] }
 0x1d8   : > { %v1912_v2 = vcombine.high %v1910_v10, %v1910_v10  ;;  %v10773_v36 = vrot.slane %v1911_v25, 9  ;;  %v10774_v28 = vrot.slane %v1910_v10, 9  ;;  %v3735_v49 = vmax.f32 %v1903_v1, %v10772_v46  ;;  %v10837_v46 = vld [vmem:[%s21498_s3 + $0xa0] sm:$0xff] }
 0x1d9   : > { %v17302_v35 = vrot.slane %v1879_v61, %v16207_v4  ;;  %v1894_v9 = vcombine.high %v1886_v51, %v1886_v51  ;;  %v10636_v3 = vrot.slane %v1886_v51, 9  ;;  %v17305_v58 = vmax.f32 %v17237_v54, %v10633_v45  ;;  %v10867_v54 = vld [vmem:[%s21498_s3 + $0x190] sm:$0xff] }
 0x1da   : > { %v10775_v44 = vrot.slane %v1912_v2, 9  ;;  %v3736_v19 = vmax.f32 %v1911_v25, %v10773_v36  ;;  %v3737_v14 = vmax.f32 %v1910_v10, %v10774_v28  ;;  %v3879_v30 = vmax.f32 %v3159_v5, %v3735_v49  ;;  %v10836_v5 = vld [vmem:[%s21498_s3 + $0x98] sm:$0xff] }
 0x1db   : > { %v17308_v60 = vmax.f32 %v17233_v31, %v10634_v43  ;;  %v3162_v17 = vmax.f32 %v1861_v27, %v10631_v33  ;;  %v10637_v18 = vrot.slane %v1894_v9, 9  ;;  %v10868_v33 = vld [vmem:[%s21498_s3 + $0x198] sm:$0xff]  ;;  %v17322_v31 = vmax.f32 %v1878_v39, %v10635_v24 }
 0x1dc   : > { %v3738_v61 = vmax.f32 %v1912_v2, %v10775_v44  ;;  %v3880_v50 = vmax.f32 %v3160_v32, %v3736_v19  ;;  %v3881_v1 = vmax.f32 %v3161_v34, %v3737_v14  ;;  %v4023_v40 = vmax.f32 %v3879_v30, 0.0 }
 0x1dd   : > { %v17326_v44 = vcombine.high %v17302_v35, %v17302_v35  ;;  %v17328_v14 = vmax.f32 %v1886_v51, %v10636_v3  ;;  %v4471_v30 = vsel %vm4431_vm6, %v17009_v53, %v4470_v13  ;;  %v17332_v45 = vmax.f32 %v1894_v9, %v10637_v18  ;;  %v10838_v3 = vld [vmem:[%s21498_s3 + $0xa8] sm:$0xff] }
 0x1de   : > { %v3882_v2 = vmax.f32 %v3162_v17, %v3738_v61  ;;  %v4024_v34 = vmax.f32 %v3880_v50, 0.0  ;;  %v4025_v43 = vmax.f32 %v3881_v1, 0.0  ;;  %v4398_v27 = vrot.slane %v4023_v40, %v16232_v7  ;;  %v21872_v61 = vld [vmem:[#allocation16_spill] sm:$0xff]  ;;  %v21873_v1 = vld [vmem:[#allocation70_spill] sm:$0xff] }
 0x1df   : > { %v4472_v39 = vsel %vm4433_vm7, %v17129_v63, %v4471_v30  ;;  %v14314_v24 = vpack.c.bf16 %v10836_v5, %v10835_v8  ;;  %v14378_v48 = vpack.c.bf16 %v10868_v33, %v10867_v54  ;;  %v21870_v32 = vmax.f32 %v17197_v0, %v17212_v15  ;;  %v10869_v0 = vld [vmem:[%s21498_s3 + $0x1a0] sm:$0xff]  ;;  %v10870_v15 = vld [vmem:[%s21498_s3 + $0x1a8] sm:$0xff]  ;;  %v10839_v5 = vld [vmem:[%s21498_s3 + $0xb0] sm:$0xff] }
 0x1e0   : > { %v4026_v10 = vmax.f32 %v3882_v2, 0.0  ;;  %v4402_v25 = vrot.slane %v4024_v34, %v16232_v7  ;;  %v17339_v51 = vrot.slane %v4025_v43, %v16232_v7  ;;  %v4473_v13 = vsel %vm4435_vm8, %v17243_v52, %v4472_v39  ;;  %v10840_v54 = vld [vmem:[%s21498_s3 + $0xb8] sm:$0xff] }
 0x1e1   : > { %v17349_v36 = vmax.f32 %v21870_v32, 0.0  ;;  %v4474_v28 = vsel %vm4437_vm9, %v17247_v47, %v4473_v13  ;;  %14315 = vmatprep.subr.bf16.mxu0 %v14314_v24  ;;  %14379 = vmatprep.subr.bf16.mxu1 %v14378_v48  ;;  %v17355_v49 = vrot.slane %v17094_v21, %v16232_v7  ;;  %v4938_v9 = vsel %vm4429_vm5, %v17129_v63, %v17027_v6 }
 0x1e2   : > { %v17370_v19 = vrot.slane %v4026_v10, %v16232_v7  ;;  %v17373_v21 = vsel %vm4427_vm4, %v4402_v25, %v4398_v27  ;;  %v17377_v6 = vsel %vm4427_vm4, %v17339_v51, %v4402_v25  ;;  %v17381_v17 = vsel %vm4439_vm10, %v17255_v26, %v4474_v28  ;;  %14317 = vmatpush3.bf16.msra.mxu0 %v14314_v24  ;;  %v10871_v24 = vld [vmem:[%s21498_s3 + $0x1b0] sm:$0xff] }
 0x1e3   : > { %21871 = vst [vmem:[#allocation59_spill] sm:$0xff] %v17381_v17  ;;  %v10638_v18 = vrot.slane %v17302_v35, 9  ;;  %12612 = vmatmul.mubr.f32.gmra.mrb[76].mxu0 %v17381_v17  ;;  %v4939_v8 = vsel %vm4431_vm6, %v17243_v52, %v4938_v9  ;;  %14381 = vmatpush3.bf16.msra.mxu1 %v14378_v48  ;;  %v936_v50 = vadd.f32 %v16788_v57, %v21872_v61  ;;  %v10872_v48 = vld [vmem:[%s21498_s3 + $0x1b8] sm:$0xff] }
 0x1e4   : > { %v931_v40 = vadd.f32 %v16788_v57, %v21873_v1  ;;  %v17400_v33 = vsel %vm4427_vm4, %v17370_v19, %v17339_v51  ;;  %v4940_v30 = vsel %vm4433_vm7, %v17247_v47, %v4939_v8  ;;  %v14318_v2 = vpack.c.bf16 %v10838_v3, %v10837_v46  ;;  %v21924_v17 = vld [vmem:[#allocation23_spill] sm:$0xff] }
 0x1e5   : > { %v14382_v34 = vpack.c.bf16 %v10870_v15, %v10869_v0  ;;  %v4941_v57 = vsel %vm4435_vm8, %v17255_v26, %v4940_v30  ;;  %v1930_v43 = vcombine.high %v936_v50, %v936_v50  ;;  %v1937_v27 = vrot.slane %v936_v50, %v16207_v4 }
 0x1e6   : > { %v1913_v39 = vcombine.high %v931_v40, %v931_v40  ;;  %v21874_v10 = vmax.f32 %v17135_v29, %v17228_v42  ;;  %v4942_v13 = vsel %vm4437_vm9, %v17099_v23, %v4941_v57  ;;  %v1920_v46 = vrot.slane %v931_v40, %v16207_v4  ;;  %14319 = vmatprep.subr.bf16.mxu0 %v14318_v2 }
 0x1e7   : > { %14383 = vmatprep.subr.bf16.mxu1 %v14382_v34  ;;  %v14322_v32 = vpack.c.bf16 %v10840_v54, %v10839_v5  ;;  %v17421_v28 = vsel %vm4439_vm10, %v17355_v49, %v4942_v13  ;;  %v1944_v9 = vrot.slane %v1930_v43, %v16207_v4  ;;  %v1945_v3 = vcombine.high %v1937_v27, %v1937_v27  ;;  %v21907_v13 = vld [vmem:[#allocation52_spill] sm:$0xff] }
 0x1e8   : > { %v4018_v25 = vmax.f32 %v21874_v10, 0.0  ;;  %21875 = vst [vmem:[#allocation61_spill] sm:$0xff] %v17421_v28  ;;  %v10780_v0 = vrot.slane %v1937_v27, 9  ;;  %14321 = vmatpush3.bf16.msra.mxu0 %v14318_v2  ;;  %14385 = vmatpush3.bf16.msra.mxu1 %v14382_v34  ;;  %v1927_v29 = vrot.slane %v1913_v39, %v16207_v4  ;;  %v1928_v42 = vcombine.high %v1920_v46, %v1920_v46  ;;  %v21925_v4 = vld [vmem:[#allocation74_spill] sm:$0xff] }
 0x1e9   : > { %12700 = vmatmul.mubr.f32.gmra.mrb[4].mxu1 %v17421_v28  ;;  %v10776_v15 = vrot.slane %v1920_v46, 9  ;;  %14323 = vmatprep.subr.bf16.mxu0 %v14322_v32  ;;  %v14386_v8 = vpack.c.bf16 %v10872_v48, %v10871_v24  ;;  %v17427_v61 = vmax.f32 %v17302_v35, %v10638_v18  ;;  %v10781_v50 = vrot.slane %v1945_v3, 9  ;;  %v21914_v28 = vld [vmem:[#allocation62_spill] sm:$0xff] }
 0x1ea   : > { %v10782_v1 = vrot.slane %v1944_v9, 9  ;;  %v3743_v40 = vmax.f32 %v1937_v27, %v10780_v0  ;;  %v1929_v5 = vcombine.high %v1927_v29, %v1927_v29  ;;  %v10777_v54 = vrot.slane %v1928_v42, 9 }
 0x1eb   : > { %v10778_v30 = vrot.slane %v1927_v29, 9  ;;  %v3739_v57 = vmax.f32 %v1920_v46, %v10776_v15  ;;  %14387 = vmatprep.subr.bf16.mxu1 %v14386_v8  ;;  %v10639_v2 = vrot.slane %v17326_v44, 9  ;;  %v3744_v34 = vmax.f32 %v1945_v3, %v10781_v50 }
 0x1ec   : > { %v17430_v43 = vmax.f32 %v1944_v9, %v10782_v1  ;;  %v3887_v39 = vmax.f32 %v17328_v14, %v3743_v40  ;;  %14325 = vmatpush3.bf16.msra.mxu0 %v14322_v32  ;;  %14389 = vmatpush3.bf16.msra.mxu1 %v14386_v8  ;;  %v10779_v24 = vrot.slane %v1929_v5, 9  ;;  %v3740_v35 = vmax.f32 %v1928_v42, %v10777_v54  ;;  %v10841_v14 = vld [vmem:[%s21498_s3 + $0xc0] sm:$0xff] }
 0x1ed   : > { %v3741_v18 = vmax.f32 %v1927_v29, %v10778_v30  ;;  %v3883_v48 = vmax.f32 %v17281_v59, %v3739_v57  ;;  %v17435_v27 = vrot.slane %v4018_v25, %v16232_v7  ;;  %v3888_v10 = vmax.f32 %v17332_v45, %v3744_v34  ;;  %v10842_v59 = vld [vmem:[%s21498_s3 + $0xc8] sm:$0xff]  ;;  %v10873_v45 = vld [vmem:[%s21498_s3 + $0x1c0] sm:$0xff]  ;;  %v10876_v30 = vld [vmem:[%s21498_s3 + $0x1d8] sm:$0xff] }
 0x1ee   : > { %v4031_v46 = vmax.f32 %v3887_v39, 0.0  ;;  %v3742_v32 = vmax.f32 %v1929_v5, %v10779_v24  ;;  %v3884_v3 = vmax.f32 %v17305_v58, %v3740_v35  ;;  %v10874_v25 = vld [vmem:[%s21498_s3 + $0x1c8] sm:$0xff]  ;;  %v17455_v42 = vmax.f32 %v17326_v44, %v10639_v2  ;;  %v10843_v44 = vld [vmem:[%s21498_s3 + $0xd0] sm:$0xff]  ;;  %v10877_v35 = vld [vmem:[%s21498_s3 + $0x1e0] sm:$0xff] }
 0x1ef   : > { %v3885_v0 = vmax.f32 %v17308_v60, %v3741_v18  ;;  %v4027_v29 = vmax.f32 %v3883_v48, 0.0  ;;  %v17457_v15 = vcombine.high %v1944_v9, %v1944_v9  ;;  %v4477_v60 = vsel %vm4429_vm5, %v17144_v16, %v17159_v38  ;;  %v10844_v9 = vld [vmem:[%s21498_s3 + $0xd8] sm:$0xff]  ;;  %v10846_v24 = vld [vmem:[%s21498_s3 + $0xe8] sm:$0xff] }
 0x1f0   : > { %21876 = vst [vmem:[#allocation16_spill] sm:$0xff] %v17455_v42  ;;  %v17460_v58 = vrot.slane %v4031_v46, %v16232_v7  ;;  %v3886_v8 = vmax.f32 %v17322_v31, %v3742_v32  ;;  %v4028_v50 = vmax.f32 %v3884_v3, 0.0  ;;  %v4478_v5 = vsel %vm4431_vm6, %v17156_v20, %v4477_v60  ;;  %v10875_v31 = vld [vmem:[%s21498_s3 + $0x1d0] sm:$0xff]  ;;  %v10848_v3 = vld [vmem:[%s21498_s3 + $0xf8] sm:$0xff] }
 0x1f1   : > { %v4029_v1 = vmax.f32 %v3885_v0, 0.0  ;;  %v17467_v40 = vrot.slane %v4027_v29, %v16232_v7  ;;  %v14326_v54 = vpack.c.bf16 %v10842_v59, %v10841_v14  ;;  %v14390_v16 = vpack.c.bf16 %v10874_v25, %v10873_v45  ;;  %v10878_v14 = vld [vmem:[%s21498_s3 + $0x1e8] sm:$0xff]  ;;  %v10847_v32 = vld [vmem:[%s21498_s3 + $0xf0] sm:$0xff]  ;;  %v10880_v25 = vld [vmem:[%s21498_s3 + $0x1f8] sm:$0xff] }
 0x1f2   : > { %v17479_v38 = vrot.slane %v17349_v36, %v16232_v7  ;;  %v4030_v57 = vmax.f32 %v3886_v8, 0.0  ;;  %v17488_v2 = vrot.slane %v4028_v50, %v16232_v7  ;;  %v4479_v39 = vsel %vm4433_vm7, %v17275_v55, %v4478_v5  ;;  %v10845_v36 = vld [vmem:[%s21498_s3 + $0xe0] sm:$0xff]  ;;  %v10879_v45 = vld [vmem:[%s21498_s3 + $0x1f0] sm:$0xff] }
 0x1f3   : > { %v17491_v34 = vrot.slane %v4029_v1, %v16232_v7  ;;  %v4480_v18 = vsel %vm4435_vm8, %v17285_v37, %v4479_v39  ;;  %14327 = vmatprep.subr.bf16.mxu0 %v14326_v54  ;;  %14391 = vmatprep.subr.bf16.mxu1 %v14390_v16  ;;  %v4945_v48 = vsel %vm4429_vm5, %v17275_v55, %v17182_v22  ;;  %v4032_v0 = vmax.f32 %v3888_v10, 0.0 }
 0x1f4   : > { %v14330_v46 = vpack.c.bf16 %v10844_v9, %v10843_v44  ;;  %v17519_v29 = vrot.slane %v4030_v57, %v16232_v7  ;;  %v4481_v22 = vsel %vm4437_vm9, %v17297_v62, %v4480_v18  ;;  %14329 = vmatpush3.bf16.msra.mxu0 %v14326_v54  ;;  %v4946_v59 = vsel %vm4431_vm6, %v17285_v37, %v4945_v48  ;;  %v21884_v48 = vld [vmem:[#allocation9_spill] sm:$0xff] }
 0x1f5   : > { %14393 = vmatpush3.bf16.msra.mxu1 %v14390_v16  ;;  %v17533_v10 = vsel %vm4439_vm10, %v17435_v27, %v4481_v22  ;;  %v4947_v60 = vsel %vm4433_vm7, %v17297_v62, %v4946_v59  ;;  %v14394_v8 = vpack.c.bf16 %v10876_v30, %v10875_v31  ;;  %v14334_v50 = vpack.c.bf16 %v10846_v24, %v10845_v36  ;;  %v21879_v31 = vld [vmem:[#allocation10_spill] sm:$0xff]  ;;  %v21880_v30 = vld [vmem:[#allocation8_spill] sm:$0xff] }
 0x1f6   : > { %21877 = vst [vmem:[#allocation70_spill] sm:$0xff] %v17519_v29  ;;  %21878 = vst [vmem:[#allocation94_spill] sm:$0xff] %v17533_v10  ;;  %14331 = vmatprep.subr.bf16.mxu0 %v14330_v46  ;;  %12614 = vmatprep.mubr.f32.mxu0 %v17533_v10  ;;  %v4948_v1 = vsel %vm4435_vm8, %v17435_v27, %v4947_v60  ;;  %v14398_v44 = vpack.c.bf16 %v10878_v14, %v10877_v35  ;;  %v21881_v36 = vld [vmem:[#allocation6_spill] sm:$0xff] }
 0x1f7   : > { %v4484_v9 = vsel %vm4429_vm5, %v17339_v51, %v17373_v21  ;;  %v14338_v5 = vpack.c.bf16 %v10848_v3, %v10847_v32  ;;  %v4949_v54 = vsel %vm4437_vm9, %v17263_v56, %v4948_v1  ;;  %14395 = vmatprep.subr.bf16.mxu1 %v14394_v8  ;;  %v4668_v57 = vsel %vm4427_vm4, %v21880_v30, %v21879_v31  ;;  %v21883_v21 = vld [vmem:[#allocation11_spill] sm:$0xff]  ;;  %v21885_v3 = vld [vmem:[#allocation21_spill] sm:$0xff] }
 0x1f8   : > { %v4485_v16 = vsel %vm4431_vm6, %v17370_v19, %v4484_v9  ;;  %v14402_v39 = vpack.c.bf16 %v10880_v25, %v10879_v45  ;;  %v17553_v35 = vsel %vm4439_vm10, %v17479_v38, %v4949_v54  ;;  %14333 = vmatpush3.bf16.msra.mxu0 %v14330_v46  ;;  %v4669_v18 = vsel %vm4429_vm5, %v21883_v21, %v4668_v57  ;;  %v21886_v45 = vld [vmem:[#allocation25_spill] sm:$0xff]  ;;  %v21888_v1 = vld [vmem:[#allocation7_spill] sm:$0xff] }
 0x1f9   : > { %21882 = vst [vmem:[#allocation10_spill] sm:$0xff] %v17553_v35  ;;  %14397 = vmatpush3.bf16.msra.mxu1 %v14394_v8  ;;  %v4486_v51 = vsel %vm4433_vm7, %v17467_v40, %v4485_v16  ;;  %12702 = vmatprep.mubr.f32.mxu1 %v17553_v35  ;;  %v4670_v22 = vsel %vm4431_vm6, %v21885_v3, %v4669_v18  ;;  %v21887_v8 = vld [vmem:[#allocation12_spill] sm:$0xff] }
 0x1fa   : > { %14335 = vmatprep.subr.bf16.mxu0 %v14334_v50  ;;  %v4487_v32 = vsel %vm4435_vm8, %v17488_v2, %v4486_v51  ;;  %v17566_v46 = vrot.slane %v4032_v0, %v16232_v7  ;;  %14399 = vmatprep.subr.bf16.mxu1 %v14398_v44  ;;  %v4671_v25 = vsel %vm4433_vm7, %v21886_v45, %v4670_v22  ;;  %v21890_v0 = vld [vmem:[#allocation26_spill] sm:$0xff]  ;;  %v21892_v22 = vld [vmem:[#allocation17_spill] sm:$0xff]  ;;  %v21911_v35 = vld [vmem:[#allocation60_spill] sm:$0xff] }
 0x1fb   : > { %v4488_v59 = vsel %vm4437_vm9, %v17491_v34, %v4487_v32  ;;  %v4952_v60 = vsel %vm4429_vm5, %v17467_v40, %v17400_v33  ;;  %v3805_v9 = vmax.f32 %v21888_v1, %v21887_v8  ;;  %v4672_v16 = vsel %vm4435_vm8, %v21890_v0, %v4671_v25  ;;  %v21891_v33 = vld [vmem:[#allocation41_spill] sm:$0xff]  ;;  %v21896_v1 = vld [vmem:[#allocation30_spill] sm:$0xff] }
 0x1fc   : > { %v17579_v54 = vsel %vm4439_vm10, %v17519_v29, %v4488_v59  ;;  %v4953_v31 = vsel %vm4431_vm6, %v17488_v2, %v4952_v60  ;;  %v5136_v30 = vsel %vm4427_vm4, %v21885_v3, %v21883_v21  ;;  %14337 = vmatpush3.bf16.msra.mxu0 %v14334_v50  ;;  %v4673_v57 = vsel %vm4437_vm9, %v21891_v33, %v4672_v16  ;;  %v21893_v59 = vld [vmem:[#allocation18_spill] sm:$0xff]  ;;  %v21895_v21 = vld [vmem:[#allocation45_spill] sm:$0xff] }
 0x1fd   : > { %21889 = vst [vmem:[#allocation8_spill] sm:$0xff] %v17579_v54  ;;  %14401 = vmatpush3.bf16.msra.mxu1 %v14398_v44  ;;  %v4954_v51 = vsel %vm4433_vm7, %v17491_v34, %v4953_v31  ;;  %v3949_v18 = vmax.f32 %v3805_v9, 0.0  ;;  %v5137_v32 = vsel %vm4429_vm5, %v21886_v45, %v5136_v30  ;;  %v21894_v25 = vmax.f32 %v21892_v22, %v21893_v59  ;;  %v21901_v59 = vld [vmem:[#allocation28_spill] sm:$0xff] }
 0x1fe   : > { %12615 = vmatmul.mubr.f32.gmra.mrb[78].mxu0 %v17579_v54  ;;  %14339 = vmatprep.subr.bf16.mxu0 %v14338_v5  ;;  %v4674_v50 = vsel %vm4439_vm10, %v21895_v21, %v4673_v57  ;;  %v4955_v44 = vsel %vm4435_vm8, %v17519_v29, %v4954_v51  ;;  %v5138_v8 = vsel %vm4431_vm6, %v21890_v0, %v5137_v32  ;;  %v10881_v51 = vld [vmem:[%s21498_s3 + $0x200] sm:$0xff]  ;;  %v21919_v54 = vld [vmem:[#allocation22_spill] sm:$0xff] }
 0x1ff   : > { %v3961_v60 = vmax.f32 %v21894_v25, 0.0  ;;  %v21897_v9 = vmax.f32 %v16877_v41, %v21896_v1  ;;  %12649 = vmatprep.mubr.f32.mxu0 %v4674_v50  ;;  %14403 = vmatprep.subr.bf16.mxu1 %v14402_v39  ;;  %v4956_v31 = vsel %vm4437_vm9, %v17460_v58, %v4955_v44  ;;  %v17612_v30 = vrot.slane %v3949_v18, %v16232_v7  ;;  %v10882_v41 = vld [vmem:[%s21498_s3 + $0x208] sm:$0xff]  ;;  %v21900_v18 = vld [vmem:[#allocation19_spill] sm:$0xff] }
 0x200   : > { %v5139_v57 = vsel %vm4433_vm7, %v21891_v33, %v5138_v8  ;;  %v17624_v32 = vsel %vm4439_vm10, %v17566_v46, %v4956_v31  ;;  %v4676_v25 = vsel %vm4429_vm5, %v21901_v59, %v21900_v18  ;;  %v21902_v50 = vld [vmem:[#allocation49_spill] sm:$0xff]  ;;  %v21903_v44 = vld [vmem:[#allocation51_spill] sm:$0xff]  ;;  %v21904_v1 = vmax.f32 %v17035_v11, %v17045_v12  ;;  %14341 = vmatpush3.bf16.msra.mxu0 %v14338_v5  ;;  %v21905_v31 = vld [vmem:[#allocation46_spill] sm:$0xff] }
 0x201   : > { %v17607_v16 = vmax.f32 %v21897_v9, 0.0  ;;  %21898 = vst [vmem:[#allocation6_spill] sm:$0xff] %v17612_v30  ;;  %21899 = vst [vmem:[#allocation11_spill] sm:$0xff] %v17624_v32  ;;  %v5140_v22 = vsel %vm4435_vm8, %v21895_v21, %v5139_v57  ;;  %v4682_v8 = vsel %vm4427_vm4, %v21903_v44, %v21902_v50  ;;  %12703 = vmatmul.mubr.f32.gmra.mrb[6].mxu1 %v17624_v32  ;;  %v21906_v57 = vld [vmem:[#allocation36_spill] sm:$0xff]  ;;  %v21908_v44 = vld [vmem:[#allocation39_spill] sm:$0xff] }
 0x202   : > { %v17637_v9 = vmax.f32 %v21904_v1, 0.0  ;;  %v5141_v14 = vsel %vm4437_vm9, %v21905_v31, %v5140_v22  ;;  %v4677_v24 = vsel %vm4431_vm6, %v21906_v57, %v4676_v25  ;;  %v4683_v18 = vsel %vm4429_vm5, %v21907_v13, %v4682_v8  ;;  %14405 = vmatpush3.bf16.msra.mxu1 %v14402_v39  ;;  %v21909_v12 = vld [vmem:[#allocation58_spill] sm:$0xff]  ;;  %v21910_v32 = vld [vmem:[#allocation37_spill] sm:$0xff] }
 0x203   : > { %v5142_v50 = vsel %vm4439_vm10, %v17612_v30, %v5141_v14  ;;  %v4678_v11 = vsel %vm4433_vm7, %v21908_v44, %v4677_v24  ;;  %v4684_v5 = vsel %vm4431_vm6, %v21909_v12, %v4683_v18  ;;  %v14406_v1 = vpack.c.bf16 %v10882_v41, %v10881_v51  ;;  %v21913_v14 = vld [vmem:[#allocation40_spill] sm:$0xff]  ;;  %v21939_v30 = vld [vmem:[#allocation87_spill] sm:$0xff] }
 0x204   : > { %12737 = vmatprep.mubr.f32.mxu1 %v5142_v50  ;;  %v4679_v22 = vsel %vm4435_vm8, %v21910_v32, %v4678_v11  ;;  %v4685_v25 = vsel %vm4433_vm7, %v21911_v35, %v4684_v5  ;;  %v17657_v8 = vrot.slane %v3961_v60, %v16232_v7  ;;  %v5143_v39 = vsel %vm4427_vm4, %v21906_v57, %v21901_v59  ;;  %v21915_v18 = vld [vmem:[#allocation56_spill] sm:$0xff]  ;;  %v21917_v5 = vld [vmem:[#allocation31_spill] sm:$0xff] }
 0x205   : > { %v4680_v24 = vsel %vm4437_vm9, %v21913_v14, %v4679_v22  ;;  %v4686_v51 = vsel %vm4435_vm8, %v21914_v28, %v4685_v25  ;;  %14407 = vmatprep.subr.bf16.mxu1 %v14406_v1  ;;  %v5144_v41 = vsel %vm4429_vm5, %v21908_v44, %v5143_v39  ;;  %v21916_v50 = vld [vmem:[#allocation48_spill] sm:$0xff]  ;;  %v5150_v25 = vsel %vm4427_vm4, %v21909_v12, %v21907_v13  ;;  %v21920_v39 = vld [vmem:[#allocation57_spill] sm:$0xff] }
 0x206   : > { %21912 = vst [vmem:[#allocation9_spill] sm:$0xff] %v17657_v8  ;;  %v3829_v11 = vmax.f32 %v21916_v50, %v21915_v18  ;;  %v17672_v60 = vsel %vm4439_vm10, %v21917_v5, %v4680_v24  ;;  %v4687_v59 = vsel %vm4437_vm9, %v21919_v54, %v4686_v51  ;;  %v5145_v22 = vsel %vm4431_vm6, %v21910_v32, %v5144_v41  ;;  %v21922_v50 = vld [vmem:[#allocation15_spill] sm:$0xff] }
 0x207   : > { %21918 = vst [vmem:[#allocation21_spill] sm:$0xff] %v17672_v60  ;;  %12650 = vmatmul.mubr.f32.vlgmr.msra.gmra.mrb[72].mxu0 %v17672_v60  ;;  %v17684_v10 = vsel %vm4439_vm10, %v21920_v39, %v4687_v59  ;;  %v5146_v24 = vsel %vm4433_vm7, %v21913_v14, %v5145_v22  ;;  %v5151_v51 = vsel %vm4429_vm5, %v21911_v35, %v5150_v25  ;;  %v21923_v60 = vld [vmem:[#allocation64_spill] sm:$0xff] }
 0x208   : > { %21921 = vst [vmem:[#allocation25_spill] sm:$0xff] %v17684_v10  ;;  %v3973_v18 = vmax.f32 %v3829_v11, 0.0  ;;  %12652 = vmatprep.mubr.f32.mxu0 %v17684_v10  ;;  %v5147_v41 = vsel %vm4435_vm8, %v21917_v5, %v5146_v24  ;;  %v5152_v13 = vsel %vm4431_vm6, %v21914_v28, %v5151_v51  ;;  %v4689_v59 = vsel %vm4427_vm4, %v21923_v60, %v21922_v50  ;;  %v10883_v11 = vld [vmem:[%s21498_s3 + $0x210] sm:$0xff]  ;;  %v10884_v25 = vld [vmem:[%s21498_s3 + $0x218] sm:$0xff]  ;;  %v21926_v24 = vld [vmem:[#allocation13_spill] sm:$0xff] }
 0x209   : > { %v4697_v22 = vsel %vm4429_vm5, %v21925_v4, %v21924_v17  ;;  %v5148_v10 = vsel %vm4437_vm9, %v21926_v24, %v5147_v41  ;;  %v5153_v60 = vsel %vm4433_vm7, %v21919_v54, %v5152_v13  ;;  %v21927_v50 = vld [vmem:[#allocation66_spill] sm:$0xff]  ;;  %v21929_v35 = vld [vmem:[#allocation20_spill] sm:$0xff]  ;;  %v21930_v41 = vld [vmem:[#allocation81_spill] sm:$0xff] }
 0x20a   : > { %v17710_v51 = vrot.slane %v3973_v18, %v16232_v7  ;;  %v4690_v17 = vsel %vm4429_vm5, %v21927_v50, %v4689_v59  ;;  %v17718_v42 = vsel %vm4439_vm10, %v17657_v8, %v5148_v10  ;;  %v5154_v28 = vsel %vm4435_vm8, %v21920_v39, %v5153_v60  ;;  %v21931_v24 = vld [vmem:[#allocation73_spill] sm:$0xff]  ;;  %v21932_v54 = vld [vmem:[#allocation75_spill] sm:$0xff]  ;;  %v21933_v5 = vld [vmem:[#allocation82_spill] sm:$0xff] }
 0x20b   : > { %21928 = vst [vmem:[#allocation12_spill] sm:$0xff] %v17718_v42  ;;  %v4691_v12 = vsel %vm4431_vm6, %v21929_v35, %v4690_v17  ;;  %v4698_v18 = vsel %vm4431_vm6, %v21930_v41, %v4697_v22  ;;  %12738 = vmatmul.mubr.f32.vlgmr.msra.gmra.mrb[0].mxu1 %v17718_v42  ;;  %v5155_v13 = vsel %vm4437_vm9, %v21931_v24, %v5154_v28  ;;  %v21935_v17 = vld [vmem:[#allocation76_spill] sm:$0xff]  ;;  %v21936_v39 = vld [vmem:[#allocation83_spill] sm:$0xff]  ;;  %v21938_v28 = vld [vmem:[#allocation65_spill] sm:$0xff] }
 0x20c   : > { %v4692_v59 = vsel %vm4433_vm7, %v21932_v54, %v4691_v12  ;;  %v4699_v10 = vsel %vm4433_vm7, %v21933_v5, %v4698_v18  ;;  %v14410_v8 = vpack.c.bf16 %v10884_v25, %v10883_v11  ;;  %14409 = vmatpush3.bf16.msra.mxu1 %v14406_v1  ;;  %v17735_v60 = vsel %vm4439_vm10, %v17710_v51, %v5155_v13  ;;  %v21937_v14 = vld [vmem:[#allocation68_spill] sm:$0xff]  ;;  %v21940_v12 = vld [vmem:[#allocation90_spill] sm:$0xff] }
 0x20d   : > { %21934 = vst [vmem:[#allocation7_spill] sm:$0xff] %v17735_v60  ;;  %v4693_v22 = vsel %vm4435_vm8, %v21935_v17, %v4692_v59  ;;  %v4700_v42 = vsel %vm4435_vm8, %v21936_v39, %v4699_v10  ;;  %v3841_v24 = vmax.f32 %v21938_v28, %v21937_v14  ;;  %v21941_v32 = vmax.f32 %v21939_v30, %v21940_v12  ;;  %v21942_v1 = vld [vmem:[#allocation32_spill] sm:$0xff]  ;;  %v21944_v59 = vld [vmem:[#allocation71_spill] sm:$0xff] }
 0x20e   : > { %12740 = vmatprep.mubr.f32.mxu1 %v17735_v60  ;;  %v4694_v11 = vsel %vm4437_vm9, %v21942_v1, %v4693_v22  ;;  %v21943_v25 = vld [vmem:[#allocation84_spill] sm:$0xff]  ;;  %14411 = vmatprep.subr.bf16.mxu1 %v14410_v8  ;;  %v5157_v13 = vsel %vm4427_vm4, %v21929_v35, %v21927_v50  ;;  %v21946_v10 = vld [vmem:[#allocation79_spill] sm:$0xff]  ;;  %v17769_v50 = vrot.slane %v17607_v16, %v16232_v7 }
 0x20f   : > { %v4021_v31 = vmax.f32 %v21941_v32, 0.0  ;;  %v4701_v18 = vsel %vm4437_vm9, %v21943_v25, %v4700_v42  ;;  %v17756_v14 = vsel %vm4439_vm10, %v21944_v59, %v4694_v11  ;;  %v3985_v32 = vmax.f32 %v3841_v24, 0.0  ;;  %v21948_v12 = vld [vmem:[#allocation80_spill] sm:$0xff] }
 0x210   : > { %21945 = vst [vmem:[#allocation26_spill] sm:$0xff] %v17756_v14  ;;  %v17760_v30 = vsel %vm4439_vm10, %v21946_v10, %v4701_v18  ;;  %v5158_v22 = vsel %vm4429_vm5, %v21932_v54, %v5157_v13  ;;  %12653 = vmatmul.mubr.f32.gmra.mrb[74].mxu0 %v17756_v14  ;;  %v5164_v28 = vsel %vm4427_vm4, %v21930_v41, %v21925_v4 }
 0x211   : > { %21947 = vst [vmem:[#allocation41_spill] sm:$0xff] %v17760_v30  ;;  %v5159_v42 = vsel %vm4431_vm6, %v21935_v17, %v5158_v22  ;;  %v4704_v24 = vsel %vm4429_vm5, %v17009_v53, %v21948_v12  ;;  %v21949_v11 = vmax.f32 %v17427_v61, %v17430_v43  ;;  %12655 = vmatprep.mubr.f32.mxu0 %v17760_v30  ;;  %v21950_v43 = vld [vmem:[#allocation38_spill] sm:$0xff] }
 0x212   : > { %v17782_v13 = vrot.slane %v3985_v32, %v16232_v7  ;;  %v5160_v16 = vsel %vm4433_vm7, %v21942_v1, %v5159_v42  ;;  %14413 = vmatpush3.bf16.msra.mxu1 %v14410_v8  ;;  %v5165_v4 = vsel %vm4429_vm5, %v21933_v5, %v5164_v28  ;;  %v4705_v61 = vsel %vm4431_vm6, %v17129_v63, %v4704_v24  ;;  %v10885_v8 = vld [vmem:[%s21498_s3 + $0x220] sm:$0xff]  ;;  %v10886_v42 = vld [vmem:[%s21498_s3 + $0x228] sm:$0xff] }
 0x213   : > { %v4033_v18 = vmax.f32 %v21949_v11, 0.0  ;;  %v5161_v22 = vsel %vm4435_vm8, %v21944_v59, %v5160_v16  ;;  %v5166_v12 = vsel %vm4431_vm6, %v21936_v39, %v5165_v4  ;;  %v4711_v32 = vsel %vm4429_vm5, %v17156_v20, %v21950_v43  ;;  %v21951_v28 = vld [vmem:[#allocation33_spill] sm:$0xff] }
 0x214   : > { %v5162_v11 = vsel %vm4437_vm9, %v21951_v28, %v5161_v22  ;;  %v5167_v16 = vsel %vm4433_vm7, %v21943_v25, %v5166_v12  ;;  %v4706_v24 = vsel %vm4433_vm7, %v17243_v52, %v4705_v61  ;;  %v4712_v4 = vsel %vm4431_vm6, %v17275_v55, %v4711_v32  ;;  %v21953_v12 = vld [vmem:[#allocation50_spill] sm:$0xff] }
 0x215   : > { %v17813_v43 = vsel %vm4439_vm10, %v17782_v13, %v5162_v11  ;;  %v5168_v60 = vsel %vm4435_vm8, %v21946_v10, %v5167_v16  ;;  %v4707_v30 = vsel %vm4435_vm8, %v17247_v47, %v4706_v24  ;;  %v4713_v22 = vsel %vm4433_vm7, %v17285_v37, %v4712_v4 }
 0x216   : > { %21952 = vst [vmem:[#allocation17_spill] sm:$0xff] %v17813_v43  ;;  %12741 = vmatmul.mubr.f32.gmra.mrb[2].mxu1 %v17813_v43  ;;  %v5169_v61 = vsel %vm4437_vm9, %v21953_v12, %v5168_v60  ;;  %v4708_v32 = vsel %vm4437_vm9, %v17255_v26, %v4707_v30  ;;  %v4714_v11 = vsel %vm4435_vm8, %v17297_v62, %v4713_v22  ;;  %v10887_v30 = vld [vmem:[%s21498_s3 + $0x230] sm:$0xff] }
 0x217   : > { %v14414_v14 = vpack.c.bf16 %v10886_v42, %v10885_v8  ;;  %v17830_v16 = vsel %vm4439_vm10, %v17769_v50, %v5169_v61  ;;  %v17834_v24 = vsel %vm4439_vm10, %v17099_v23, %v4708_v32  ;;  %v4715_v4 = vsel %vm4437_vm9, %v17435_v27, %v4714_v11  ;;  %v10888_v8 = vld [vmem:[%s21498_s3 + $0x238] sm:$0xff]  ;;  %v21956_v42 = vld [vmem:[#allocation42_spill] sm:$0xff] }
 0x218   : > { %21954 = vst [vmem:[#allocation18_spill] sm:$0xff] %v17830_v16  ;;  %21955 = vst [vmem:[#allocation45_spill] sm:$0xff] %v17834_v24  ;;  %v17840_v60 = vrot.slane %v17637_v9, %v16232_v7  ;;  %12743 = vmatprep.mubr.f32.mxu1 %v17830_v16  ;;  %12656 = vmatmul.mubr.f32.gmra.mrb[76].mxu0 %v17834_v24  ;;  %v17853_v61 = vsel %vm4439_vm10, %v17263_v56, %v4715_v4  ;;  %v10783_v11 = vrot.slane %v17457_v15, 9 }
 0x219   : > { %21957 = vst [vmem:[#allocation30_spill] sm:$0xff] %v17853_v61  ;;  %v5171_v9 = vsel %vm4427_vm4, %v17129_v63, %v17009_v53  ;;  %v17859_v32 = vrot.slane %v4021_v31, %v16232_v7  ;;  %12658 = vmatprep.mubr.f32.mxu0 %v17853_v61  ;;  %14415 = vmatprep.subr.bf16.mxu1 %v14414_v14 }
 0x21a   : > { %v5172_v22 = vsel %vm4429_vm5, %v17243_v52, %v5171_v9  ;;  %v5178_v4 = vsel %vm4427_vm4, %v17275_v55, %v17156_v20  ;;  %v4718_v16 = vsel %vm4429_vm5, %v17370_v19, %v17377_v6  ;;  %14417 = vmatpush3.bf16.msra.mxu1 %v14414_v14  ;;  %v14418_v61 = vpack.c.bf16 %v10888_v8, %v10887_v30 }
 0x21b   : > { %21958 = vst [vmem:[#allocation19_spill] sm:$0xff] %v17859_v32  ;;  %v5173_v53 = vsel %vm4431_vm6, %v17247_v47, %v5172_v22  ;;  %v5179_v31 = vsel %vm4429_vm5, %v17285_v37, %v5178_v4  ;;  %v4719_v43 = vsel %vm4431_vm6, %v17467_v40, %v4718_v16  ;;  %v17884_v24 = vrot.slane %v4033_v18, %v16232_v7 }
 0x21c   : > { %v5174_v9 = vsel %vm4433_vm7, %v17255_v26, %v5173_v53  ;;  %v5180_v20 = vsel %vm4431_vm6, %v17297_v62, %v5179_v31  ;;  %v4720_v6 = vsel %vm4433_vm7, %v17488_v2, %v4719_v43  ;;  %14419 = vmatprep.subr.bf16.mxu1 %v14418_v61  ;;  %v5185_v30 = vsel %vm4427_vm4, %v17467_v40, %v17370_v19  ;;  %v10889_v53 = vld [vmem:[%s21498_s3 + $0x240] sm:$0xff]  ;;  %v10890_v19 = vld [vmem:[%s21498_s3 + $0x248] sm:$0xff] }
 0x21d   : > { %v5175_v14 = vsel %vm4435_vm8, %v17099_v23, %v5174_v9  ;;  %v5181_v22 = vsel %vm4433_vm7, %v17435_v27, %v5180_v20  ;;  %v4721_v16 = vsel %vm4435_vm8, %v17491_v34, %v4720_v6  ;;  %v5186_v4 = vsel %vm4429_vm5, %v17488_v2, %v5185_v30 }
 0x21e   : > { %v5176_v43 = vsel %vm4437_vm9, %v17355_v49, %v5175_v14  ;;  %v5182_v18 = vsel %vm4435_vm8, %v17263_v56, %v5181_v22  ;;  %v4722_v8 = vsel %vm4437_vm9, %v17519_v29, %v4721_v16  ;;  %v5187_v6 = vsel %vm4431_vm6, %v17491_v34, %v5186_v4  ;;  %14421 = vmatpush3.bf16.msra.mxu1 %v14418_v61  ;;  %v10891_v14 = vld [vmem:[%s21498_s3 + $0x250] sm:$0xff]  ;;  %v10892_v22 = vld [vmem:[%s21498_s3 + $0x258] sm:$0xff]  ;;  %v21961_v16 = vld [vmem:[#allocation53_spill] sm:$0xff] }
 0x21f   : > { %v17911_v31 = vsel %vm4439_vm10, %v17840_v60, %v5176_v43  ;;  %v5183_v9 = vsel %vm4437_vm9, %v17479_v38, %v5182_v18  ;;  %v17917_v20 = vsel %vm4439_vm10, %v17460_v58, %v4722_v8  ;;  %v10723_v30 = vrot.slane %v21961_v16, 9  ;;  %v10893_v4 = vld [vmem:[%s21498_s3 + $0x260] sm:$0xff] }
 0x220   : > { %21959 = vst [vmem:[#allocation28_spill] sm:$0xff] %v17911_v31  ;;  %21960 = vst [vmem:[#allocation49_spill] sm:$0xff] %v17917_v20  ;;  %12744 = vmatmul.mubr.f32.gmra.mrb[4].mxu1 %v17911_v31  ;;  %v17931_v43 = vsel %vm4439_vm10, %v17859_v32, %v5183_v9  ;;  %12659 = vmatmul.mubr.f32.gmra.mrb[78].mxu0 %v17917_v20  ;;  %v5188_v61 = vsel %vm4433_vm7, %v17519_v29, %v5187_v6  ;;  %v21963_v18 = vrot.slane %v21881_v36, 9  ;;  %v10894_v31 = vld [vmem:[%s21498_s3 + $0x268] sm:$0xff]  ;;  %v10895_v32 = vld [vmem:[%s21498_s3 + $0x270] sm:$0xff] }
 0x221   : > { %21962 = vst [vmem:[#allocation51_spill] sm:$0xff] %v17931_v43  ;;  %12746 = vmatprep.mubr.f32.mxu1 %v17931_v43  ;;  %v5189_v9 = vsel %vm4435_vm8, %v17460_v58, %v5188_v61  ;;  %v21964_v20 = vrot.slane %v21884_v48, 9  ;;  %v10896_v43 = vld [vmem:[%s21498_s3 + $0x278] sm:$0xff]  ;;  %v17961_v29 = vmax.f32 %v17457_v15, %v10783_v11 }
 0x222   : > { %v3086_v8 = vmax.f32 %v21881_v36, %v21963_v18  ;;  %v5370_v36 = vsel %vm4427_vm4, %v21886_v45, %v21885_v3  ;;  %v14422_v18 = vpack.c.bf16 %v10890_v19, %v10889_v53  ;;  %v5190_v61 = vsel %vm4437_vm9, %v17566_v46, %v5189_v9  ;;  %v21966_v9 = vld [vmem:[#allocation29_spill] sm:$0xff] }
 0x223   : > { %v3662_v6 = vmax.f32 %v21884_v48, %v21964_v20  ;;  %v5371_v48 = vsel %vm4429_vm5, %v21890_v0, %v5370_v36  ;;  %v14426_v20 = vpack.c.bf16 %v10892_v22, %v10891_v14  ;;  %v17969_v3 = vsel %vm4439_vm10, %v17884_v24, %v5190_v61  ;;  %v21967_v0 = vld [vmem:[#allocation27_spill] sm:$0xff] }
 0x224   : > { %21965 = vst [vmem:[#allocation36_spill] sm:$0xff] %v17969_v3  ;;  %v5372_v53 = vsel %vm4431_vm6, %v21891_v33, %v5371_v48  ;;  %14423 = vmatprep.subr.bf16.mxu1 %v14422_v18  ;;  %v14430_v19 = vpack.c.bf16 %v10894_v31, %v10893_v4  ;;  %12747 = vmatmul.mubr.f32.gmra.mrb[6].mxu1 %v17969_v3  ;;  %v21969_v31 = vld [vmem:[#allocation37_spill] sm:$0xff]  ;;  %v21970_v36 = vrot.slane %v21956_v42, 9  ;;  %v21972_v48 = vld [vmem:[#allocation40_spill] sm:$0xff] }
 0x225   : > { %v3806_v45 = vmax.f32 %v3086_v8, %v3662_v6  ;;  %v5373_v15 = vsel %vm4433_vm7, %v21895_v21, %v5372_v53  ;;  %v17976_v11 = vpack.c.bf16 %v10896_v43, %v10895_v32  ;;  %v3818_v14 = vmax.f32 %v21967_v0, %v21966_v9  ;;  %v21968_v6 = vld [vmem:[#allocation46_spill] sm:$0xff]  ;;  %14425 = vmatpush3.bf16.msra.mxu1 %v14422_v18  ;;  %v21973_v18 = vld [vmem:[#allocation31_spill] sm:$0xff]  ;;  %v21975_v9 = vld [vmem:[#allocation60_spill] sm:$0xff] }
 0x226   : > { %v5377_v22 = vsel %vm4427_vm4, %v21908_v44, %v21906_v57  ;;  %v5374_v33 = vsel %vm4435_vm8, %v21968_v6, %v5373_v15  ;;  %v3110_v21 = vmax.f32 %v21956_v42, %v21970_v36  ;;  %v21971_v32 = vld [vmem:[#allocation6_spill] sm:$0xff]  ;;  %14427 = vmatprep.subr.bf16.mxu1 %v14426_v20  ;;  %v3686_v44 = vmax.f32 %v21961_v16, %v10723_v30  ;;  %v21976_v42 = vld [vmem:[#allocation69_spill] sm:$0xff] }
 0x227   : > { %v3950_v8 = vmax.f32 %v3806_v45, 0.0  ;;  %v5378_v4 = vsel %vm4429_vm5, %v21969_v31, %v5377_v22  ;;  %v5375_v43 = vsel %vm4437_vm9, %v21971_v32, %v5374_v33  ;;  %v3962_v61 = vmax.f32 %v3818_v14, 0.0  ;;  %v21974_v15 = vld [vmem:[#allocation58_spill] sm:$0xff]  ;;  %v21977_v22 = vld [vmem:[#allocation67_spill] sm:$0xff]  ;;  %v21978_v14 = vld [vmem:[#allocation13_spill] sm:$0xff] }
 0x228   : > { %v5379_v57 = vsel %vm4431_vm6, %v21972_v48, %v5378_v4  ;;  %v5384_v0 = vsel %vm4427_vm4, %v21975_v9, %v21974_v15  ;;  %v3842_v6 = vmax.f32 %v21977_v22, %v21976_v42  ;;  %v10897_v16 = vld [vmem:[%s21498_s3 + $0x280] sm:$0xff]  ;;  %v10898_v30 = vld [vmem:[%s21498_s3 + $0x288] sm:$0xff] }
 0x229   : > { %v5341_v45 = vrot.slane %v3950_v8, %v16232_v7  ;;  %v5380_v53 = vsel %vm4433_vm7, %v21973_v18, %v5379_v57  ;;  %v5345_v33 = vrot.slane %v3962_v61, %v16232_v7  ;;  %v3830_v8 = vmax.f32 %v3110_v21, %v3686_v44  ;;  %v21979_v4 = vld [vmem:[#allocation62_spill] sm:$0xff]  ;;  %14429 = vmatpush3.bf16.msra.mxu1 %v14426_v20  ;;  %v21980_v48 = vld [vmem:[#allocation9_spill] sm:$0xff] }
 0x22a   : > { %v5381_v31 = vsel %vm4435_vm8, %v21978_v14, %v5380_v53  ;;  %v5385_v36 = vsel %vm4429_vm5, %v21979_v4, %v5384_v0  ;;  %v21981_v57 = vld [vmem:[#allocation22_spill] sm:$0xff]  ;;  %v3986_v53 = vmax.f32 %v3842_v6, 0.0  ;;  %14431 = vmatprep.subr.bf16.mxu1 %v14430_v19  ;;  %v21983_v21 = vld [vmem:[#allocation57_spill] sm:$0xff]  ;;  %v5391_v20 = vsel %vm4427_vm4, %v21932_v54, %v21929_v35 }
 0x22b   : > { %v5376_v32 = vsel %vm4439_vm10, %v5341_v45, %v5375_v43  ;;  %v5382_v61 = vsel %vm4437_vm9, %v21980_v48, %v5381_v31  ;;  %v5386_v18 = vsel %vm4431_vm6, %v21981_v57, %v5385_v36  ;;  %v3974_v9 = vmax.f32 %v3830_v8, 0.0  ;;  %v21984_v45 = vld [vmem:[#allocation73_spill] sm:$0xff]  ;;  %v21985_v31 = vld [vmem:[#allocation78_spill] sm:$0xff] }
 0x22c   : > { %12781 = vmatprep.mubr.f32.mxu1 %v5376_v32  ;;  %v18020_v15 = vsel %vm4439_vm10, %v5345_v33, %v5382_v61  ;;  %v5387_v44 = vsel %vm4433_vm7, %v21983_v21, %v5386_v18  ;;  %v14438_v43 = vpack.c.bf16 %v10898_v30, %v10897_v16  ;;  %v5353_v42 = vrot.slane %v3986_v53, %v16232_v7  ;;  %v21986_v8 = vld [vmem:[#allocation77_spill] sm:$0xff]  ;;  %v10899_v16 = vld [vmem:[%s21498_s3 + $0x290] sm:$0xff] }
 0x22d   : > { %21982 = vst [vmem:[#allocation52_spill] sm:$0xff] %v18020_v15  ;;  %v5388_v0 = vsel %vm4435_vm8, %v21984_v45, %v5387_v44  ;;  %v5392_v22 = vsel %vm4429_vm5, %v21935_v17, %v5391_v20  ;;  %v5349_v6 = vrot.slane %v3974_v9, %v16232_v7  ;;  %v3854_v35 = vmax.f32 %v21986_v8, %v21985_v31  ;;  %v10900_v17 = vld [vmem:[%s21498_s3 + $0x298] sm:$0xff]  ;;  %v21988_v30 = vld [vmem:[#allocation85_spill] sm:$0xff] }
 0x22e   : > { %v5389_v33 = vsel %vm4437_vm9, %v17710_v51, %v5388_v0  ;;  %v5393_v14 = vsel %vm4431_vm6, %v21942_v1, %v5392_v22  ;;  %14433 = vmatpush3.bf16.msra.mxu1 %v14430_v19  ;;  %v5398_v51 = vsel %vm4427_vm4, %v21933_v5, %v21930_v41  ;;  %v21987_v1 = vld [vmem:[#allocation86_spill] sm:$0xff]  ;;  %v5405_v19 = vsel %vm4427_vm4, %v17243_v52, %v17129_v63  ;;  %v21992_v9 = vld [vmem:[#allocation55_spill] sm:$0xff]  ;;  %v21994_v20 = vld [vmem:[#allocation16_spill] sm:$0xff] }
 0x22f   : > { %v5394_v54 = vsel %vm4433_vm7, %v21944_v59, %v5393_v14  ;;  %v3866_v4 = vmax.f32 %v21988_v30, %v21987_v1  ;;  %14435 = vmatprep.subr.bf16.mxu1 %v17976_v11  ;;  %v18057_v59 = vsel %vm4439_vm10, %v5349_v6, %v5389_v33  ;;  %v3998_v32 = vmax.f32 %v3854_v35, 0.0  ;;  %v21996_v33 = vld [vmem:[#allocation70_spill] sm:$0xff]  ;;  %v21998_v8 = vld [vmem:[#allocation44_spill] sm:$0xff]  ;;  %v22028_v3 = vld [vmem:[#allocation49_spill] sm:$0xff] }
 0x230   : > { %21989 = vst [vmem:[#allocation39_spill] sm:$0xff] %v18057_v59  ;;  %v5395_v36 = vsel %vm4435_vm8, %v21951_v28, %v5394_v54  ;;  %v5399_v48 = vsel %vm4429_vm5, %v21936_v39, %v5398_v51  ;;  %v5406_v63 = vsel %vm4429_vm5, %v17247_v47, %v5405_v19  ;;  %v14442_v57 = vpack.c.bf16 %v10900_v17, %v10899_v16  ;;  %v22000_v17 = vld [vmem:[#allocation47_spill] sm:$0xff] }
 0x231   : > { %v5396_v5 = vsel %vm4437_vm9, %v17782_v13, %v5395_v36  ;;  %v5400_v41 = vsel %vm4431_vm6, %v21943_v25, %v5399_v48  ;;  %v4010_v61 = vmax.f32 %v3866_v4, 0.0  ;;  %v5407_v39 = vsel %vm4431_vm6, %v17255_v26, %v5406_v63  ;;  %v21991_v26 = vld [vmem:[#allocation93_spill] sm:$0xff] }
 0x232   : > { %v18070_v52 = vsel %vm4439_vm10, %v5353_v42, %v5396_v5  ;;  %v5401_v28 = vsel %vm4433_vm7, %v21946_v10, %v5400_v41  ;;  %14437 = vmatpush3.bf16.msra.mxu1 %v17976_v11  ;;  %v5357_v13 = vrot.slane %v3998_v32, %v16232_v7  ;;  %v5408_v47 = vsel %vm4433_vm7, %v17099_v23, %v5407_v39  ;;  %v22003_v32 = vld [vmem:[#allocation5_spill] sm:$0xff] }
 0x233   : > { %21990 = vst [vmem:[#allocation56_spill] sm:$0xff] %v18070_v52  ;;  %v5402_v25 = vsel %vm4435_vm8, %v21953_v12, %v5401_v28  ;;  %v5361_v18 = vrot.slane %v4010_v61, %v16232_v7  ;;  %14439 = vmatprep.subr.bf16.mxu1 %v14438_v43  ;;  %v5409_v10 = vsel %vm4435_vm8, %v17355_v49, %v5408_v47  ;;  %v10902_v49 = vld [vmem:[%s21498_s3 + $0x2a8] sm:$0xff]  ;;  %v10905_v5 = vld [vmem:[%s21498_s3 + $0x2c0] sm:$0xff] }
 0x234   : > { %v5403_v53 = vsel %vm4437_vm9, %v17769_v50, %v5402_v25  ;;  %v3878_v11 = vmax.f32 %v21992_v9, %v21991_v26  ;;  %v5412_v21 = vsel %vm4427_vm4, %v17285_v37, %v17275_v55  ;;  %v5410_v23 = vsel %vm4437_vm9, %v17840_v60, %v5409_v10  ;;  %v10901_v50 = vld [vmem:[%s21498_s3 + $0x2a0] sm:$0xff]  ;;  %v10906_v41 = vld [vmem:[%s21498_s3 + $0x2c8] sm:$0xff]  ;;  %v10907_v9 = vld [vmem:[%s21498_s3 + $0x2d0] sm:$0xff] }
 0x235   : > { %v18093_v12 = vsel %vm4439_vm10, %v5357_v13, %v5403_v53  ;;  %v5413_v44 = vsel %vm4429_vm5, %v17297_v62, %v5412_v21  ;;  %v3890_v55 = vmax.f32 %v21994_v20, %v17961_v29  ;;  %12782 = vmatmul.mubr.f32.vlgmr.msra.gmra.mrb[0].mxu1 %v18020_v15  ;;  %v18109_v37 = vsel %vm4439_vm10, %v5361_v18, %v5410_v23 }
 0x236   : > { %21993 = vst [vmem:[#allocation48_spill] sm:$0xff] %v18093_v12  ;;  %21995 = vst [vmem:[#allocation15_spill] sm:$0xff] %v18109_v37  ;;  %v4022_v60 = vmax.f32 %v3878_v11, 0.0  ;;  %v5414_v45 = vsel %vm4431_vm6, %v17435_v27, %v5413_v44  ;;  %v5419_v0 = vsel %vm4427_vm4, %v17488_v2, %v17467_v40  ;;  %12784 = vmatprep.mubr.f32.mxu1 %v18057_v59  ;;  %14441 = vmatpush3.bf16.msra.mxu1 %v14438_v43  ;;  %v10903_v2 = vld [vmem:[%s21498_s3 + $0x2b0] sm:$0xff]  ;;  %v10908_v11 = vld [vmem:[%s21498_s3 + $0x2d8] sm:$0xff] }
 0x237   : > { %v5415_v62 = vsel %vm4433_vm7, %v17263_v56, %v5414_v45  ;;  %v4034_v29 = vmax.f32 %v3890_v55, 0.0  ;;  %v5420_v42 = vsel %vm4429_vm5, %v17491_v34, %v5419_v0  ;;  %14443 = vmatprep.subr.bf16.mxu1 %v14442_v57  ;;  %v14446_v22 = vpack.c.bf16 %v10902_v49, %v10901_v50  ;;  %v10904_v56 = vld [vmem:[%s21498_s3 + $0x2b8] sm:$0xff]  ;;  %v22027_v59 = vld [vmem:[#allocation30_spill] sm:$0xff] }
 0x238   : > { %v5365_v6 = vrot.slane %v4022_v60, %v16232_v7  ;;  %v5416_v27 = vsel %vm4435_vm8, %v17479_v38, %v5415_v62  ;;  %v5421_v40 = vsel %vm4431_vm6, %v21996_v33, %v5420_v42  ;;  %v21997_v43 = vld [vmem:[#allocation19_spill] sm:$0xff]  ;;  %v18140_v38 = vld [vmem:[%s21497_s2] ss:$0 sm:$0xff]  ;;  %v14450_v4 = vpack.c.bf16 %v10904_v56, %v10903_v2  ;;  %v22005_v42 = vld [vmem:[#allocation89_spill] sm:$0xff] }
 0x239   : > { %v5417_v34 = vsel %vm4437_vm9, %v21997_v43, %v5416_v27  ;;  %v5369_v14 = vrot.slane %v4034_v29, %v16232_v7  ;;  %v5422_v31 = vsel %vm4433_vm7, %v17460_v58, %v5421_v40  ;;  %v946_v35 = vadd.f32 %v18140_v38, %v21998_v8  ;;  %12785 = vmatmul.mubr.f32.gmra.mrb[2].mxu1 %v18070_v52  ;;  %v22001_v58 = vld [vmem:[#allocation54_spill] sm:$0xff]  ;;  %v22004_v44 = vld [vmem:[#allocation63_spill] sm:$0xff] }
 0x23a   : > { %v18146_v54 = vsel %vm4439_vm10, %v5365_v6, %v5417_v34  ;;  %v5423_v16 = vsel %vm4435_vm8, %v17566_v46, %v5422_v31  ;;  %v941_v51 = vadd.f32 %v18140_v38, %v22000_v17  ;;  %v956_v1 = vadd.f32 %v18140_v38, %v22001_v58  ;;  %12787 = vmatprep.mubr.f32.mxu1 %v18093_v12  ;;  %v22006_v40 = vld [vmem:[#allocation91_spill] sm:$0xff] }
 0x23b   : > { %21999 = vst [vmem:[#allocation64_spill] sm:$0xff] %v18146_v54  ;;  %14445 = vmatpush3.bf16.msra.mxu1 %v14442_v57  ;;  %v5424_v30 = vsel %vm4437_vm9, %v17884_v24, %v5423_v16  ;;  %v1964_v61 = vcombine.high %v946_v35, %v946_v35  ;;  %v14454_v13 = vpack.c.bf16 %v10906_v41, %v10905_v5 }
 0x23c   : > { %14447 = vmatprep.subr.bf16.mxu1 %v14446_v22  ;;  %v18158_v19 = vsel %vm4439_vm10, %v5369_v14, %v5424_v30  ;;  %v1947_v36 = vcombine.high %v941_v51, %v941_v51  ;;  %v1954_v46 = vrot.slane %v941_v51, %v22003_v32  ;;  %v1998_v48 = vcombine.high %v956_v1, %v956_v1 }
 0x23d   : > { %22002 = vst [vmem:[#allocation23_spill] sm:$0xff] %v18158_v19  ;;  %v2005_v24 = vrot.slane %v956_v1, %v22003_v32  ;;  %12788 = vmatmul.mubr.f32.gmra.mrb[4].mxu1 %v18109_v37  ;;  %v1971_v53 = vrot.slane %v946_v35, %v22003_v32  ;;  %v1978_v10 = vrot.slane %v1964_v61, %v22003_v32  ;;  %v22025_v37 = vld [vmem:[#allocation45_spill] sm:$0xff] }
 0x23e   : > { %v1961_v63 = vrot.slane %v1947_v36, %v22003_v32  ;;  %v1962_v57 = vcombine.high %v1954_v46, %v1954_v46  ;;  %v10640_v28 = vrot.slane %v1954_v46, 9  ;;  %v2012_v39 = vrot.slane %v1998_v48, %v22003_v32  ;;  %12790 = vmatprep.mubr.f32.mxu1 %v18146_v54  ;;  %v22007_v36 = vld [vmem:[#allocation92_spill] sm:$0xff] }
 0x23f   : > { %14449 = vmatpush3.bf16.msra.mxu1 %v14446_v22  ;;  %v2013_v26 = vcombine.high %v2005_v24, %v2005_v24  ;;  %v10784_v55 = vrot.slane %v2005_v24, 9  ;;  %v14458_v29 = vpack.c.bf16 %v10908_v11, %v10907_v9  ;;  %v18184_v22 = vadd.f32 %v18140_v38, %v22005_v42 }
 0x240   : > { %14451 = vmatprep.subr.bf16.mxu1 %v14450_v4  ;;  %v1963_v25 = vcombine.high %v1961_v63, %v1961_v63  ;;  %v10641_v18 = vrot.slane %v1962_v57, 9  ;;  %v10642_v47 = vrot.slane %v1961_v63, 9  ;;  %v3171_v23 = vmax.f32 %v1954_v46, %v10640_v28 }
 0x241   : > { %12791 = vmatmul.mubr.f32.gmra.mrb[6].mxu1 %v18158_v19  ;;  %v2014_v49 = vcombine.high %v2012_v39, %v2012_v39  ;;  %v10785_v60 = vrot.slane %v2013_v26, 9  ;;  %v10786_v45 = vrot.slane %v2012_v39, 9  ;;  %v3747_v6 = vmax.f32 %v2005_v24, %v10784_v55  ;;  %v10909_v24 = vld [vmem:[%s21498_s3 + $0x2e0] sm:$0xff] }
 0x242   : > { %v10643_v21 = vrot.slane %v1963_v25, 9  ;;  %v3172_v50 = vmax.f32 %v1962_v57, %v10641_v18  ;;  %12825 = vmatprep.mubr.f32.mxu1 %v22004_v44  ;;  %v3173_v20 = vmax.f32 %v1961_v63, %v10642_v47  ;;  %v18188_v2 = vadd.f32 %v18140_v38, %v22006_v40  ;;  %v10910_v63 = vld [vmem:[%s21498_s3 + $0x2e8] sm:$0xff]  ;;  %v10911_v18 = vld [vmem:[%s21498_s3 + $0x2f0] sm:$0xff]  ;;  %v10912_v47 = vld [vmem:[%s21498_s3 + $0x2f8] sm:$0xff] }
 0x243   : > { %14453 = vmatpush3.bf16.msra.mxu1 %v14450_v4  ;;  %v10787_v62 = vrot.slane %v2014_v49, 9  ;;  %v3748_v27 = vmax.f32 %v2013_v26, %v10785_v60  ;;  %v3749_v33 = vmax.f32 %v2012_v39, %v10786_v45  ;;  %v1979_v56 = vcombine.high %v1971_v53, %v1971_v53  ;;  %v10913_v45 = vld [vmem:[%s21498_s3 + $0x300] sm:$0xff] }
 0x244   : > { %14455 = vmatprep.subr.bf16.mxu1 %v14454_v13  ;;  %v3174_v0 = vmax.f32 %v1963_v25, %v10643_v21  ;;  %v1988_v34 = vrot.slane %v18184_v22, %v22003_v32  ;;  %v1980_v14 = vcombine.high %v1978_v10, %v1978_v10  ;;  %v3891_v31 = vmax.f32 %v3171_v23, %v3747_v6 }
 0x245   : > { %v3750_v43 = vmax.f32 %v2014_v49, %v10787_v62  ;;  %v3892_v8 = vmax.f32 %v3172_v50, %v3748_v27  ;;  %v3893_v35 = vmax.f32 %v3173_v20, %v3749_v33  ;;  %v10644_v16 = vrot.slane %v1971_v53, 9 }
 0x246   : > { %v4035_v51 = vmax.f32 %v3891_v31, 0.0  ;;  %v10648_v1 = vrot.slane %v1988_v34, 9  ;;  %v2039_v30 = vrot.slane %v18188_v2, %v22003_v32  ;;  %v10645_v4 = vrot.slane %v1979_v56, 9 }
 0x247   : > { %14457 = vmatpush3.bf16.msra.mxu1 %v14454_v13  ;;  %v3894_v17 = vmax.f32 %v3174_v0, %v3750_v43  ;;  %v4036_v58 = vmax.f32 %v3892_v8, 0.0  ;;  %v961_v46 = vadd.f32 %v18140_v38, %v22007_v36  ;;  %v10646_v48 = vrot.slane %v1978_v10, 9  ;;  %v10914_v0 = vld [vmem:[%s21498_s3 + $0x308] sm:$0xff] }
 0x248   : > { %14459 = vmatprep.subr.bf16.mxu1 %v14458_v29  ;;  %v10647_v5 = vrot.slane %v1980_v14, 9  ;;  %v5575_v41 = vrot.slane %v4035_v51, %v16232_v7  ;;  %v3175_v57 = vmax.f32 %v1971_v53, %v10644_v16  ;;  %v4037_v28 = vmax.f32 %v3893_v35, 0.0 }
 0x249   : > { %v18198_v61 = vrot.slane %v4036_v58, %v16232_v7  ;;  %v18208_v13 = vmax.f32 %v1988_v34, %v10648_v1  ;;  %v10792_v25 = vrot.slane %v2039_v30, 9  ;;  %v3176_v26 = vmax.f32 %v1979_v56, %v10645_v4  ;;  %v10915_v56 = vld [vmem:[%s21498_s3 + $0x310] sm:$0xff]  ;;  %v18249_v4 = vpop.f32.mrb[54].mxu0 }
 0x24a   : > { %v2015_v9 = vcombine.high %v961_v46, %v961_v46  ;;  %v2022_v11 = vrot.slane %v961_v46, %v22003_v32  ;;  %v14462_v53 = vpack.c.bf16 %v10910_v63, %v10909_v24  ;;  %v3177_v21 = vmax.f32 %v1978_v10, %v10646_v48 }
 0x24b   : > { %14461 = vmatpush3.bf16.msra.mxu1 %v14458_v29  ;;  %v5604_v39 = vsel %vm4427_vm4, %v18198_v61, %v5575_v41  ;;  %v3178_v23 = vmax.f32 %v1980_v14, %v10647_v5  ;;  %v4038_v50 = vmax.f32 %v3894_v17, 0.0  ;;  %v18217_v49 = vmax.f32 %v2039_v30, %v10792_v25  ;;  %v10918_v5 = vld [vmem:[%s21498_s3 + $0x328] sm:$0xff] }
 0x24c   : > { %v2029_v44 = vrot.slane %v2015_v9, %v22003_v32  ;;  %v2030_v20 = vcombine.high %v2022_v11, %v2022_v11  ;;  %v10788_v55 = vrot.slane %v2022_v11, 9  ;;  %14463 = vmatprep.subr.bf16.mxu1 %v14462_v53  ;;  %v14466_v60 = vpack.c.bf16 %v10912_v47, %v10911_v18  ;;  %v22008_v18 = vld [vmem:[#allocation72_spill] sm:$0xff]  ;;  %v18266_v47 = vpop.f32.mrb[55].mxu0 }
 0x24d   : > { %v18227_v10 = vrot.slane %v4037_v28, %v16232_v7  ;;  %v1981_v62 = vcombine.high %v18184_v22, %v18184_v22  ;;  %v2032_v29 = vcombine.high %v18188_v2, %v18188_v2  ;;  %v3899_v42 = vmax.f32 %v18208_v13, %v18217_v49  ;;  %v10916_v22 = vld [vmem:[%s21498_s3 + $0x318] sm:$0xff] }
 0x24e   : > { %v2031_v6 = vcombine.high %v2029_v44, %v2029_v44  ;;  %v10789_v27 = vrot.slane %v2030_v20, 9  ;;  %v10790_v33 = vrot.slane %v2029_v44, 9  ;;  %v3751_v40 = vmax.f32 %v2022_v11, %v10788_v55  ;;  %v18269_v11 = vpop.f32.mrb[56].mxu0  ;;  %v10919_v55 = vld [vmem:[%s21498_s3 + $0x330] sm:$0xff] }
 0x24f   : > { %14465 = vmatpush3.bf16.msra.mxu1 %v14462_v53  ;;  %v18242_v43 = vrot.slane %v4038_v50, %v16232_v7  ;;  %v1996_v2 = vcombine.high %v1988_v34, %v1988_v34  ;;  %v2047_v14 = vcombine.high %v2039_v30, %v2039_v30  ;;  %v14470_v31 = vpack.c.bf16 %v10914_v0, %v10913_v45  ;;  %v10917_v30 = vld [vmem:[%s21498_s3 + $0x320] sm:$0xff]  ;;  %v18279_v49 = vpop.f32.mrb[57].mxu0 }
 0x250   : > { %14467 = vmatprep.subr.bf16.mxu1 %v14466_v60  ;;  %v10791_v8 = vrot.slane %v2031_v6, 9  ;;  %v3752_v35 = vmax.f32 %v2030_v20, %v10789_v27  ;;  %v3753_v16 = vmax.f32 %v2029_v44, %v10790_v33  ;;  %v3895_v17 = vmax.f32 %v3175_v57, %v3751_v40  ;;  %v18290_v0 = vpop.f32.mrb[58].mxu0 }
 0x251   : > { %v18245_v51 = vrot.slane %v1981_v62, %v22003_v32  ;;  %v14474_v58 = vpack.c.bf16 %v10916_v22, %v10915_v56  ;;  %v5605_v1 = vsel %vm4429_vm5, %v18227_v10, %v5604_v39  ;;  %v10649_v41 = vrot.slane %v1996_v2, 9  ;;  %v18301_v40 = vpop.f32.mrb[59].mxu0  ;;  %v22011_v22 = vld [vmem:[#allocation59_spill] sm:$0xff] }
 0x252   : > { %v3754_v36 = vmax.f32 %v2031_v6, %v10791_v8  ;;  %v3896_v46 = vmax.f32 %v3176_v26, %v3752_v35  ;;  %v3897_v48 = vmax.f32 %v3177_v21, %v3753_v16  ;;  %v4039_v34 = vmax.f32 %v3895_v17, 0.0  ;;  %v22009_v26 = vld [vmem:[#allocation34_spill] sm:$0xff]  ;;  %v22010_v6 = vld [vmem:[#allocation43_spill] sm:$0xff]  ;;  %v10921_v35 = vld [vmem:[%s21498_s3 + $0x340] sm:$0xff] }
 0x253   : > { %14469 = vmatpush3.bf16.msra.mxu1 %v14466_v60  ;;  %v18258_v24 = vrot.slane %v2032_v29, %v22003_v32  ;;  %v10793_v63 = vrot.slane %v2047_v14, 9  ;;  %v5606_v57 = vsel %vm4431_vm6, %v18242_v43, %v5605_v1  ;;  %v14478_v9 = vpack.c.bf16 %v10918_v5, %v10917_v30  ;;  %v10920_v60 = vld [vmem:[%s21498_s3 + $0x338] sm:$0xff] }
 0x254   : > { %14471 = vmatprep.subr.bf16.mxu1 %v14470_v31  ;;  %v3898_v28 = vmax.f32 %v3178_v23, %v3754_v36  ;;  %v4040_v39 = vmax.f32 %v3896_v46, 0.0  ;;  %v4041_v13 = vmax.f32 %v3897_v48, 0.0  ;;  %v18263_v25 = vrot.slane %v4039_v34, %v16232_v7  ;;  %v22012_v36 = vld [vmem:[#allocation94_spill] sm:$0xff]  ;;  %v22013_v34 = vld [vmem:[#allocation8_spill] sm:$0xff] }
 0x255   : > { %v3180_v44 = vmax.f32 %v1996_v2, %v10649_v41  ;;  %v3756_v20 = vmax.f32 %v2047_v14, %v10793_v63  ;;  %v5747_v45 = vsel %vm4427_vm4, %v18227_v10, %v18198_v61  ;;  %v10650_v62 = vrot.slane %v18245_v51, 9  ;;  %v18307_v2 = vpop.f32.mrb[60].mxu0 }
 0x256   : > { %12826 = vmatmul.mubr.f32.vlgmr.msra.gmra.mrb[0].mxu1 %v22008_v18  ;;  %v4042_v53 = vmax.f32 %v3898_v28, 0.0  ;;  %v18272_v21 = vrot.slane %v4040_v39, %v16232_v7  ;;  %v18275_v23 = vrot.slane %v4041_v13, %v16232_v7  ;;  %v5607_v50 = vsel %vm4433_vm7, %v18263_v25, %v5606_v57  ;;  %v18311_v8 = vpop.f32.mrb[61].mxu0  ;;  %v10923_v13 = vld [vmem:[%s21498_s3 + $0x350] sm:$0xff] }
 0x257   : > { %12828 = vmatprep.mubr.f32.mxu1 %v22009_v26  ;;  %14473 = vmatpush3.bf16.msra.mxu1 %v14470_v31  ;;  %v10794_v29 = vrot.slane %v18258_v24, 9  ;;  %v18299_v33 = vsel %vm4429_vm5, %v18242_v43, %v5747_v45  ;;  %v4043_v56 = vmax.f32 %v3899_v42, 0.0  ;;  %v14482_v31 = vpack.c.bf16 %v10920_v60, %v10919_v55  ;;  %v10922_v42 = vld [vmem:[%s21498_s3 + $0x348] sm:$0xff]  ;;  %v18319_v17 = vpop.f32.mrb[62].mxu0 }
 0x258   : > { %14475 = vmatprep.subr.bf16.mxu1 %v14474_v58  ;;  %v5608_v27 = vsel %vm4435_vm8, %v18272_v21, %v5607_v50  ;;  %v18304_v61 = vrot.slane %v4042_v53, %v16232_v7  ;;  %v3900_v16 = vmax.f32 %v3180_v44, %v3756_v20  ;;  %v5890_v46 = vsel %vm4427_vm4, %v18242_v43, %v18227_v10  ;;  %v18327_v48 = vpop.f32.mrb[63].mxu0 }
 0x259   : > { %v5609_v14 = vsel %vm4437_vm9, %v18275_v23, %v5608_v27  ;;  %v3757_v1 = vmax.f32 %v18258_v24, %v10794_v29  ;;  %v18335_v5 = vrot.slane %v4043_v56, %v16232_v7  ;;  %v5891_v63 = vsel %vm4429_vm5, %v18263_v25, %v5890_v46  ;;  %v18339_v57 = vpop.f32.mrb[64].mxu0 }
 0x25a   : > { %12829 = vmatmul.mubr.f32.gmra.mrb[2].mxu1 %v22010_v6  ;;  %v18332_v30 = vsel %vm4439_vm10, %v18304_v61, %v5609_v14  ;;  %v4044_v41 = vmax.f32 %v3900_v16, 0.0  ;;  %v14486_v10 = vpack.c.bf16 %v10922_v42, %v10921_v35  ;;  %v5892_v28 = vsel %vm4431_vm6, %v18272_v21, %v5891_v63  ;;  %v18343_v39 = vpop.f32.mrb[65].mxu0  ;;  %v10925_v16 = vld [vmem:[%s21498_s3 + $0x360] sm:$0xff] }
 0x25b   : > { %12831 = vmatprep.mubr.f32.mxu1 %v22011_v22  ;;  %14477 = vmatpush3.bf16.msra.mxu1 %v14474_v58  ;;  %v3181_v58 = vmax.f32 %v18245_v51, %v10650_v62  ;;  %22014 = vst [vmem:[#allocation74_spill] sm:$0xff] %v18332_v30  ;;  %v5893_v50 = vsel %vm4433_vm7, %v18275_v23, %v5892_v28  ;;  %v18356_v44 = vpop.f32.mrb[66].mxu0  ;;  %v22015_v62 = vld [vmem:[#allocation21_spill] sm:$0xff] }
 0x25c   : > { %14479 = vmatprep.subr.bf16.mxu1 %v14478_v9  ;;  %v18352_v53 = vrot.slane %v4044_v41, %v16232_v7  ;;  %v5894_v20 = vsel %vm4435_vm8, %v18304_v61, %v5893_v50  ;;  %v6033_v60 = vsel %vm4427_vm4, %v18263_v25, %v18242_v43  ;;  %v18364_v45 = vpop.f32.mrb[67].mxu0  ;;  %v971_v28 = vadd.f32 %v18140_v38, %v18266_v47  ;;  %v10927_v47 = vld [vmem:[%s21498_s3 + $0x370] sm:$0xff] }
 0x25d   : > { %v3901_v55 = vmax.f32 %v3181_v58, %v3757_v1  ;;  %v5895_v29 = vsel %vm4437_vm9, %v18335_v5, %v5894_v20  ;;  %v6034_v27 = vsel %vm4429_vm5, %v18272_v21, %v6033_v60  ;;  %v18371_v56 = vpop.f32.mrb[68].mxu0  ;;  %v10926_v58 = vld [vmem:[%s21498_s3 + $0x368] sm:$0xff]  ;;  %v986_v50 = vadd.f32 %v18140_v38, %v18269_v11 }
 0x25e   : > { %12832 = vmatmul.mubr.f32.gmra.mrb[4].mxu1 %v22012_v36  ;;  %v18375_v35 = vsel %vm4439_vm10, %v18352_v53, %v5895_v29  ;;  %v18379_v42 = vpop.f32.mrb[69].mxu0  ;;  %v14494_v20 = vpack.c.bf16 %v10926_v58, %v10925_v16  ;;  %v2049_v60 = vcombine.high %v971_v28, %v971_v28  ;;  %v976_v11 = vadd.f32 %v18140_v38, %v18249_v4 }
 0x25f   : > { %12834 = vmatprep.mubr.f32.mxu1 %v22013_v34  ;;  %14481 = vmatpush3.bf16.msra.mxu1 %v14478_v9  ;;  %v10924_v9 = vld [vmem:[%s21498_s3 + $0x358] sm:$0xff]  ;;  %22016 = vst [vmem:[#allocation66_spill] sm:$0xff] %v18375_v35  ;;  %v4045_v43 = vmax.f32 %v3901_v55, 0.0  ;;  %v18389_v46 = vpop.f32.mrb[70].mxu0  ;;  %v2100_v29 = vcombine.high %v986_v50, %v986_v50  ;;  %v18428_v36 = vadd.f32 %v18140_v38, %v18279_v49 }
 0x260   : > { %14483 = vmatprep.subr.bf16.mxu1 %v14482_v31  ;;  %v14490_v14 = vpack.c.bf16 %v10924_v9, %v10923_v13  ;;  %v18398_v13 = vpop.f32.mrb[71].mxu0  ;;  %v2066_v22 = vcombine.high %v976_v11, %v976_v11 }
 0x261   : > { %v18392_v41 = vrot.slane %v4045_v43, %v16232_v7  ;;  %v10930_v43 = vld [vmem:[%s21498_s3 + $0x388] sm:$0xff]  ;;  %v2114_v34 = vrot.slane %v2100_v29, %v22003_v32  ;;  %22018 = vst [vmem:[#allocation81_spill] sm:$0xff] %v18428_v36 }
 0x262   : > { %12835 = vmatmul.mubr.f32.gmra.mrb[6].mxu1 %v18332_v30 }
 0x263   : > { %14485 = vmatpush3.bf16.msra.mxu1 %v14482_v31  ;;  %12869 = vmatprep.mubr.f32.mxu1 %v22015_v62  ;;  %v6035_v31 = vsel %vm4431_vm6, %v18275_v23, %v6034_v27  ;;  %v2056_v62 = vrot.slane %v971_v28, %v22003_v32  ;;  %v10929_v27 = vld [vmem:[%s21498_s3 + $0x380] sm:$0xff] }
 0x264   : > { %14487 = vmatprep.subr.bf16.mxu1 %v14486_v10  ;;  %v6036_v1 = vsel %vm4433_vm7, %v18304_v61, %v6035_v31  ;;  %v2063_v31 = vrot.slane %v2049_v60, %v22003_v32  ;;  %v14502_v30 = vpack.c.bf16 %v10930_v43, %v10929_v27  ;;  %v2073_v27 = vrot.slane %v976_v11, %v22003_v32 }
 0x265   : > { %v6037_v63 = vsel %vm4435_vm8, %v18335_v5, %v6036_v1  ;;  %v2064_v16 = vcombine.high %v2056_v62, %v2056_v62  ;;  %v10652_v58 = vrot.slane %v2056_v62, 9  ;;  %v2107_v1 = vrot.slane %v986_v50, %v22003_v32 }
 0x266   : > { %v6038_v9 = vsel %vm4437_vm9, %v18352_v53, %v6037_v63  ;;  %v2065_v28 = vcombine.high %v2063_v31, %v2063_v31  ;;  %v18451_v11 = vrot.slane %v18428_v36, %v22003_v32 }
 0x267   : > { %14489 = vmatpush3.bf16.msra.mxu1 %v14486_v10  ;;  %v18406_v55 = vsel %vm4439_vm10, %v18392_v41, %v6038_v9  ;;  %v10928_v10 = vld [vmem:[%s21498_s3 + $0x378] sm:$0xff]  ;;  %v10653_v4 = vrot.slane %v2064_v16, 9  ;;  %v10654_v9 = vrot.slane %v2063_v31, 9  ;;  %v18430_v60 = vmax.f32 %v2056_v62, %v10652_v58  ;;  %v10931_v62 = vld [vmem:[%s21498_s3 + $0x390] sm:$0xff] }
 0x268   : > { %14491 = vmatprep.subr.bf16.mxu1 %v14490_v14  ;;  %22017 = vst [vmem:[#allocation20_spill] sm:$0xff] %v18406_v55  ;;  %v14498_v63 = vpack.c.bf16 %v10928_v10, %v10927_v47  ;;  %v10655_v6 = vrot.slane %v2065_v28, 9  ;;  %v2115_v26 = vcombine.high %v2107_v1, %v2107_v1  ;;  %v10796_v47 = vrot.slane %v2107_v1, 9 }
 0x269   : > { %v18432_v50 = vmax.f32 %v2063_v31, %v10654_v9  ;;  %v10798_v10 = vrot.slane %v2114_v34, 9  ;;  %v18435_v43 = vmax.f32 %v2064_v16, %v10653_v4 }
 0x26a   : > { %v18437_v29 = vmax.f32 %v2065_v28, %v10655_v6  ;;  %v10797_v49 = vrot.slane %v2115_v26, 9  ;;  %v18445_v58 = vmax.f32 %v2107_v1, %v10796_v47  ;;  %v5749_v6 = vsel %vm4431_vm6, %v18263_v25, %v18299_v33  ;;  %v10933_v33 = vld [vmem:[%s21498_s3 + $0x3a0] sm:$0xff] }
 0x26b   : > { %14493 = vmatpush3.bf16.msra.mxu1 %v14490_v14  ;;  %v2116_v14 = vcombine.high %v2114_v34, %v2114_v34  ;;  %v18447_v9 = vmax.f32 %v2114_v34, %v10798_v10  ;;  %v18466_v1 = vadd.f32 %v18140_v38, %v18290_v0  ;;  %v2080_v10 = vrot.slane %v2066_v22, %v22003_v32  ;;  %v10936_v34 = vld [vmem:[%s21498_s3 + $0x3b8] sm:$0xff] }
 0x26c   : > { %14495 = vmatprep.subr.bf16.mxu1 %v14494_v20  ;;  %v18456_v16 = vmax.f32 %v2115_v26, %v10797_v49  ;;  %v2081_v0 = vcombine.high %v2073_v27, %v2073_v27  ;;  %v10660_v22 = vrot.slane %v18451_v11, 9  ;;  %v10935_v49 = vld [vmem:[%s21498_s3 + $0x3b0] sm:$0xff] }
 0x26d   : > { %v10799_v31 = vrot.slane %v2116_v14, 9  ;;  %22019 = vst [vmem:[#allocation75_spill] sm:$0xff] %v18466_v1  ;;  %v2082_v4 = vcombine.high %v2080_v10, %v2080_v10  ;;  %v14514_v12 = vpack.c.bf16 %v10936_v34, %v10935_v49 }
 0x26e   : > { %v18499_v18 = vmax.f32 %v18451_v11, %v10660_v22  ;;  %v10937_v22 = vld [vmem:[%s21498_s3 + $0x3c0] sm:$0xff] }
 0x26f   : > { %14497 = vmatpush3.bf16.msra.mxu1 %v14494_v20  ;;  %v10932_v20 = vld [vmem:[%s21498_s3 + $0x398] sm:$0xff]  ;;  %v18458_v28 = vmax.f32 %v2116_v14, %v10799_v31  ;;  %v5750_v14 = vsel %vm4433_vm7, %v18272_v21, %v5749_v6  ;;  %v18486_v31 = vrot.slane %v18466_v1, %v22003_v32 }
 0x270   : > { %14499 = vmatprep.subr.bf16.mxu1 %v14498_v63  ;;  %v14506_v47 = vpack.c.bf16 %v10932_v20, %v10931_v62  ;;  %v22020_v62 = vld [vmem:[#allocation25_spill] sm:$0xff]  ;;  %v22021_v20 = vld [vmem:[#allocation26_spill] sm:$0xff]  ;;  %v5751_v6 = vsel %vm4435_vm8, %v18275_v23, %v5750_v14  ;;  %22023 = vst [vmem:[#allocation76_spill] sm:$0xff] %v18499_v18  ;;  %v10658_v14 = vrot.slane %v2080_v10, 9 }
 0x271   : > { %22022 = vst [vmem:[#allocation82_spill] sm:$0xff] %v18486_v31 }
 0x272   : > { %v18524_v1 = vmax.f32 %v2080_v10, %v10658_v14  ;;  %v10939_v14 = vld [vmem:[%s21498_s3 + $0x3d0] sm:$0xff] }
 0x273   : > { %14501 = vmatpush3.bf16.msra.mxu1 %v14498_v63  ;;  %v10934_v63 = vld [vmem:[%s21498_s3 + $0x3a8] sm:$0xff] }
 0x274   : > { %14503 = vmatprep.subr.bf16.mxu1 %v14502_v30  ;;  %v14510_v26 = vpack.c.bf16 %v10934_v63, %v10933_v33  ;;  %v10804_v33 = vrot.slane %v18486_v31, 9  ;;  %v22024_v63 = vld [vmem:[#allocation41_spill] sm:$0xff] }
 0x276   : > { %12870 = vmatmul.mubr.f32.vlgmr.msra.gmra.mrb[0].mxu1 %v22020_v62  ;;  %v10657_v62 = vrot.slane %v2081_v0, 9  ;;  %v18506_v52 = vmax.f32 %v18486_v31, %v10804_v33 }
 0x277   : > { %12872 = vmatprep.mubr.f32.mxu1 %v22021_v20  ;;  %14505 = vmatpush3.bf16.msra.mxu1 %v14502_v30  ;;  %v991_v30 = vadd.f32 %v18140_v38, %v18301_v40  ;;  %v10656_v20 = vrot.slane %v2073_v27, 9  ;;  %v5752_v40 = vsel %vm4437_vm9, %v18304_v61, %v5751_v6 }
 0x278   : > { %14507 = vmatprep.subr.bf16.mxu1 %v14506_v47  ;;  %22026 = vst [vmem:[#allocation83_spill] sm:$0xff] %v18506_v52  ;;  %v18519_v49 = vmax.f32 %v2081_v0, %v10657_v62  ;;  %v18537_v10 = vsel %vm4439_vm10, %v18335_v5, %v5752_v40  ;;  %v10942_v40 = vld [vmem:[%s21498_s3 + $0x3e8] sm:$0xff] }
 0x279   : > { %v2117_v19 = vcombine.high %v991_v30, %v991_v30  ;;  %v2124_v54 = vrot.slane %v991_v30, %v22003_v32  ;;  %v10659_v30 = vrot.slane %v2082_v4, 9  ;;  %v18517_v34 = vmax.f32 %v2073_v27, %v10656_v20  ;;  %22031 = vst [vmem:[#allocation87_spill] sm:$0xff] %v18537_v10 }
 0x27a   : > { %12873 = vmatmul.mubr.f32.gmra.mrb[2].mxu1 %v22024_v63  ;;  %v10938_v63 = vld [vmem:[%s21498_s3 + $0x3c8] sm:$0xff] }
 0x27b   : > { %12875 = vmatprep.mubr.f32.mxu1 %v22025_v37  ;;  %14509 = vmatpush3.bf16.msra.mxu1 %v14506_v47  ;;  %v2131_v37 = vrot.slane %v2117_v19, %v22003_v32  ;;  %v2132_v47 = vcombine.high %v2124_v54, %v2124_v54  ;;  %v10800_v6 = vrot.slane %v2124_v54, 9  ;;  %v14518_v19 = vpack.c.bf16 %v10938_v63, %v10937_v22  ;;  %v10941_v63 = vld [vmem:[%s21498_s3 + $0x3e0] sm:$0xff] }
 0x27c   : > { %14511 = vmatprep.subr.bf16.mxu1 %v14510_v26  ;;  %v18529_v27 = vmax.f32 %v2082_v4, %v10659_v30 }
 0x27d   : > { %v2133_v36 = vcombine.high %v2131_v37, %v2131_v37  ;;  %v10801_v15 = vrot.slane %v2132_v47, 9  ;;  %v10802_v55 = vrot.slane %v2131_v37, 9  ;;  %v18527_v31 = vmax.f32 %v2124_v54, %v10800_v6  ;;  %v10940_v54 = vld [vmem:[%s21498_s3 + $0x3d8] sm:$0xff]  ;;  %v10943_v6 = vld [vmem:[%s21498_s3 + $0x3f0] sm:$0xff] }
 0x27e   : > { %12876 = vmatmul.mubr.f32.gmra.mrb[4].mxu1 %v22027_v59  ;;  %22029 = vst [vmem:[#allocation68_spill] sm:$0xff] %v18529_v27  ;;  %v14522_v22 = vpack.c.bf16 %v10940_v54, %v10939_v14  ;;  %v14526_v54 = vpack.c.bf16 %v10942_v40, %v10941_v63 }
 0x27f   : > { %12878 = vmatprep.mubr.f32.mxu1 %v22028_v3  ;;  %14513 = vmatpush3.bf16.msra.mxu1 %v14510_v26  ;;  %v10803_v0 = vrot.slane %v2133_v36, 9  ;;  %v18531_v62 = vmax.f32 %v2132_v47, %v10801_v15  ;;  %v18533_v20 = vmax.f32 %v2131_v37, %v10802_v55  ;;  %v22033_v26 = vld [vmem:[#allocation14_spill] sm:$0xff]  ;;  %v1016_v47 = vadd.f32 %v18140_v38, %v18319_v17 }
 0x280   : > { %14515 = vmatprep.subr.bf16.mxu1 %v14514_v12 }
 0x281   : > { %22030 = vst [vmem:[#allocation65_spill] sm:$0xff] %v18533_v20  ;;  %v18548_v15 = vmax.f32 %v2133_v36, %v10803_v0  ;;  %v1001_v36 = vadd.f32 %v18140_v38, %v18311_v8  ;;  %v10944_v0 = vld [vmem:[%s21498_s3 + $0x3f8] sm:$0xff]  ;;  %v2209_v17 = vrot.slane %v1016_v47, %v22003_v32 }
 0x282   : > { %12879 = vmatmul.mubr.f32.gmra.mrb[6].mxu1 %v18537_v10  ;;  %v14530_v55 = vpack.c.bf16 %v10944_v0, %v10943_v6  ;;  %v18581_v10 = vadd.f32 %v18140_v38, %v18327_v48  ;;  %v22047_v20 = vld [vmem:[#allocation35_spill] sm:$0xff] }
 0x283   : > { %22032 = vst [vmem:[#allocation90_spill] sm:$0xff] %v18548_v15  ;;  %14517 = vmatpush3.bf16.msra.mxu1 %v14514_v12  ;;  %12913 = vmatprep.mubr.f32.mxu1 %v22033_v26  ;;  %v1006_v12 = vadd.f32 %v18140_v38, %v18307_v2  ;;  %v2151_v8 = vcombine.high %v1001_v36, %v1001_v36  ;;  %v10808_v59 = vrot.slane %v2209_v17, 9 }
 0x284   : > { %14519 = vmatprep.subr.bf16.mxu1 %v14518_v19  ;;  %v2158_v14 = vrot.slane %v1001_v36, %v22003_v32  ;;  %v2202_v26 = vcombine.high %v1016_v47, %v1016_v47  ;;  %22034 = vst [vmem:[#allocation32_spill] sm:$0xff] %v18581_v10 }
 0x285   : > { %v2165_v33 = vrot.slane %v2151_v8, %v22003_v32  ;;  %v2168_v37 = vcombine.high %v1006_v12, %v1006_v12  ;;  %v2175_v47 = vrot.slane %v1006_v12, %v22003_v32  ;;  %v18590_v15 = vmax.f32 %v2209_v17, %v10808_v59 }
 0x286   : > { %v2166_v2 = vcombine.high %v2158_v14, %v2158_v14  ;;  %v10664_v30 = vrot.slane %v2158_v14, 9  ;;  %v2216_v4 = vrot.slane %v2202_v26, %v22003_v32 }
 0x287   : > { %14521 = vmatpush3.bf16.msra.mxu1 %v14518_v19  ;;  %v2167_v3 = vcombine.high %v2165_v33, %v2165_v33  ;;  %v10666_v63 = vrot.slane %v2165_v33, 9  ;;  %v2217_v19 = vcombine.high %v2209_v17, %v2209_v17  ;;  %22038 = vst [vmem:[#allocation80_spill] sm:$0xff] %v18590_v15  ;;  %v2182_v12 = vrot.slane %v2168_v37, %v22003_v32 }
 0x288   : > { %14523 = vmatprep.subr.bf16.mxu1 %v14522_v22  ;;  %v10665_v36 = vrot.slane %v2166_v2, 9  ;;  %v18583_v40 = vmax.f32 %v2158_v14, %v10664_v30  ;;  %v2218_v8 = vcombine.high %v2216_v4, %v2216_v4  ;;  %v10810_v52 = vrot.slane %v2216_v4, 9  ;;  %v10945_v30 = vld [vmem:[%s21498_s3 + $0x400] sm:$0xff] }
 0x289   : > { %v10667_v6 = vrot.slane %v2167_v3, 9  ;;  %v18588_v26 = vmax.f32 %v2165_v33, %v10666_v63  ;;  %v10809_v48 = vrot.slane %v2217_v19, 9  ;;  %v18605_v33 = vrot.slane %v18581_v10, %v22003_v32 }
 0x28a   : > { %22035 = vst [vmem:[#allocation84_spill] sm:$0xff] %v18583_v40  ;;  %v18586_v0 = vmax.f32 %v2166_v2, %v10665_v36  ;;  %v10811_v18 = vrot.slane %v2218_v8, 9  ;;  %v18592_v27 = vmax.f32 %v2216_v4, %v10810_v52  ;;  %v2183_v17 = vcombine.high %v2175_v47, %v2175_v47 }
 0x28b   : > { %14525 = vmatpush3.bf16.msra.mxu1 %v14522_v22  ;;  %22037 = vst [vmem:[#allocation79_spill] sm:$0xff] %v18588_v26  ;;  %v10946_v22 = vld [vmem:[%s21498_s3 + $0x408] sm:$0xff]  ;;  %v18601_v14 = vmax.f32 %v2167_v3, %v10667_v6  ;;  %22041 = vst [vmem:[#allocation50_spill] sm:$0xff] %v18605_v33  ;;  %v18607_v59 = vmax.f32 %v2217_v19, %v10809_v48  ;;  %v18617_v3 = vadd.f32 %v18140_v38, %v18339_v57  ;;  %v10948_v57 = vld [vmem:[%s21498_s3 + $0x418] sm:$0xff] }
 0x28c   : > { %22036 = vst [vmem:[#allocation71_spill] sm:$0xff] %v18586_v0  ;;  %14527 = vmatprep.subr.bf16.mxu1 %v14526_v54  ;;  %22039 = vst [vmem:[#allocation38_spill] sm:$0xff] %v18592_v27  ;;  %v18609_v52 = vmax.f32 %v2218_v8, %v10811_v18  ;;  %v1021_v37 = vadd.f32 %v18140_v38, %v18343_v39  ;;  %v1997_v36 = vcombine.high %v18245_v51, %v18245_v51  ;;  %v10949_v6 = vld [vmem:[%s21498_s3 + $0x420] sm:$0xff]  ;;  %v10950_v48 = vld [vmem:[%s21498_s3 + $0x428] sm:$0xff] }
 0x28d   : > { %22040 = vst [vmem:[#allocation33_spill] sm:$0xff] %v18601_v14  ;;  %22042 = vst [vmem:[#allocation42_spill] sm:$0xff] %v18607_v59  ;;  %v14534_v18 = vpack.c.bf16 %v10946_v22, %v10945_v30  ;;  %v2184_v39 = vcombine.high %v2182_v12, %v2182_v12  ;;  %v10672_v8 = vrot.slane %v18605_v33, 9  ;;  %v2048_v51 = vcombine.high %v18258_v24, %v18258_v24 }
 0x28e   : > { %22043 = vst [vmem:[#allocation53_spill] sm:$0xff] %v18609_v52  ;;  %22044 = vst [vmem:[#allocation29_spill] sm:$0xff] %v18617_v3  ;;  %v10668_v30 = vrot.slane %v2175_v47, 9  ;;  %v10669_v22 = vrot.slane %v2183_v17, 9  ;;  %v10670_v19 = vrot.slane %v2182_v12, 9  ;;  %v18644_v2 = vrot.slane %v18617_v3, %v22003_v32 }
 0x28f   : > { %14529 = vmatpush3.bf16.msra.mxu1 %v14526_v54  ;;  %v10947_v54 = vld [vmem:[%s21498_s3 + $0x410] sm:$0xff]  ;;  %v2219_v63 = vcombine.high %v1021_v37, %v1021_v37  ;;  %v10651_v4 = vrot.slane %v1997_v36, 9  ;;  %v2226_v10 = vrot.slane %v1021_v37, %v22003_v32  ;;  %v14542_v52 = vpack.c.bf16 %v10950_v48, %v10949_v6 }
 0x290   : > { %14531 = vmatprep.subr.bf16.mxu1 %v14530_v55  ;;  %22045 = vst [vmem:[#allocation27_spill] sm:$0xff] %v18644_v2  ;;  %v14538_v24 = vpack.c.bf16 %v10948_v57, %v10947_v54  ;;  %v10671_v14 = vrot.slane %v2184_v39, 9  ;;  %v18648_v27 = vmax.f32 %v18605_v33, %v10672_v8  ;;  %v10816_v26 = vrot.slane %v18644_v2, 9  ;;  %v22049_v33 = vld [vmem:[#allocation61_spill] sm:$0xff] }
 0x291   : > { %v18652_v59 = vmax.f32 %v2175_v47, %v10668_v30  ;;  %v2233_v3 = vrot.slane %v2219_v63, %v22003_v32  ;;  %v2234_v0 = vcombine.high %v2226_v10, %v2226_v10  ;;  %v10812_v15 = vrot.slane %v2226_v10, 9  ;;  %v10951_v63 = vld [vmem:[%s21498_s3 + $0x430] sm:$0xff] }
 0x292   : > { %v10795_v40 = vrot.slane %v2048_v51, 9  ;;  %v18656_v37 = vmax.f32 %v2183_v17, %v10669_v22  ;;  %v18658_v54 = vmax.f32 %v2182_v12, %v10670_v19  ;;  %v18661_v57 = vmax.f32 %v18644_v2, %v10816_v26  ;;  %v10952_v17 = vld [vmem:[%s21498_s3 + $0x438] sm:$0xff] }
 0x293   : > { %14533 = vmatpush3.bf16.msra.mxu1 %v14530_v55  ;;  %v22046_v55 = vld [vmem:[#allocation24_spill] sm:$0xff]  ;;  %v2235_v8 = vcombine.high %v2233_v3, %v2233_v3  ;;  %v10813_v6 = vrot.slane %v2234_v0, 9  ;;  %v10814_v47 = vrot.slane %v2233_v3, 9  ;;  %v18663_v48 = vmax.f32 %v2226_v10, %v10812_v15 }
 0x294   : > { %14535 = vmatprep.subr.bf16.mxu1 %v14534_v18  ;;  %v22048_v12 = vld [vmem:[#allocation88_spill] sm:$0xff]  ;;  %v3182_v22 = vmax.f32 %v1997_v36, %v10651_v4  ;;  %v3758_v2 = vmax.f32 %v2048_v51, %v10795_v40  ;;  %v10954_v40 = vld [vmem:[%s21498_s3 + $0x448] sm:$0xff]  ;;  %v10955_v4 = vld [vmem:[%s21498_s3 + $0x450] sm:$0xff]  ;;  %v6176_v15 = vsel %vm4427_vm4, %v18272_v21, %v18263_v25 }
 0x295   : > { %v10815_v19 = vrot.slane %v2235_v8, 9  ;;  %v18676_v30 = vmax.f32 %v2234_v0, %v10813_v6  ;;  %v18678_v10 = vmax.f32 %v2233_v3, %v10814_v47  ;;  %v10956_v36 = vld [vmem:[%s21498_s3 + $0x458] sm:$0xff]  ;;  %v22050_v51 = vld [vmem:[#allocation10_spill] sm:$0xff]  ;;  %v18712_v47 = vadd.f32 %v18140_v38, %v18356_v44 }
 0x296   : > { %12914 = vmatmul.mubr.f32.vlgmr.msra.gmra.mrb[0].mxu1 %v22046_v55  ;;  %v3902_v3 = vmax.f32 %v3182_v22, %v3758_v2  ;;  %v1031_v6 = vadd.f32 %v18140_v38, %v18364_v45  ;;  %v1046_v44 = vadd.f32 %v18140_v38, %v18371_v56  ;;  %v6177_v2 = vsel %vm4429_vm5, %v18275_v23, %v6176_v15  ;;  %v22053_v25 = vld [vmem:[#allocation12_spill] sm:$0xff] }
 0x297   : > { %12916 = vmatprep.mubr.f32.mxu1 %v22047_v20  ;;  %14537 = vmatpush3.bf16.msra.mxu1 %v14534_v18  ;;  %v18671_v18 = vmax.f32 %v2184_v39, %v10671_v14  ;;  %v14546_v14 = vpack.c.bf16 %v10952_v17, %v10951_v63  ;;  %v10953_v39 = vld [vmem:[%s21498_s3 + $0x440] sm:$0xff]  ;;  %v18686_v26 = vmax.f32 %v2235_v8, %v10815_v19  ;;  %v10958_v8 = vld [vmem:[%s21498_s3 + $0x468] sm:$0xff]  ;;  %v22051_v63 = vld [vmem:[#allocation11_spill] sm:$0xff] }
 0x298   : > { %14539 = vmatprep.subr.bf16.mxu1 %v14538_v24  ;;  %v14550_v17 = vpack.c.bf16 %v10954_v40, %v10953_v39  ;;  %v14554_v19 = vpack.c.bf16 %v10956_v36, %v10955_v4  ;;  %v4046_v39 = vmax.f32 %v3902_v3, 0.0  ;;  %v18731_v22 = vadd.f32 %v18140_v38, %v18379_v42 }
 0x299   : > { %v6178_v21 = vsel %vm4431_vm6, %v18304_v61, %v6177_v2  ;;  %v2253_v45 = vcombine.high %v1031_v6, %v1031_v6  ;;  %v2260_v56 = vrot.slane %v1031_v6, %v22003_v32  ;;  %v2304_v23 = vcombine.high %v1046_v44, %v1046_v44 }
 0x29a   : > { %12917 = vmatmul.mubr.f32.gmra.mrb[2].mxu1 %v22048_v12  ;;  %22052 = vst [vmem:[#allocation46_spill] sm:$0xff] %v18731_v22  ;;  %v6175_v40 = vrot.slane %v4046_v39, %v16232_v7  ;;  %v6179_v3 = vsel %vm4433_vm7, %v18335_v5, %v6178_v21  ;;  %v2311_v15 = vrot.slane %v1046_v44, %v22003_v32 }
 0x29b   : > { %12919 = vmatprep.mubr.f32.mxu1 %v22049_v33  ;;  %14541 = vmatpush3.bf16.msra.mxu1 %v14538_v24  ;;  %v10957_v24 = vld [vmem:[%s21498_s3 + $0x460] sm:$0xff]  ;;  %v6180_v38 = vsel %vm4435_vm8, %v18352_v53, %v6179_v3  ;;  %v2267_v42 = vrot.slane %v2253_v45, %v22003_v32  ;;  %v10676_v4 = vrot.slane %v2260_v56, 9  ;;  %v2318_v36 = vrot.slane %v2304_v23, %v22003_v32 }
 0x29c   : > { %14543 = vmatprep.subr.bf16.mxu1 %v14542_v52  ;;  %v18715_v0 = vpack.c.bf16 %v10958_v8, %v10957_v24  ;;  %v6181_v61 = vsel %vm4437_vm9, %v18392_v41, %v6180_v38  ;;  %v2319_v24 = vcombine.high %v2311_v15, %v2311_v15  ;;  %v10820_v8 = vrot.slane %v2311_v15, 9  ;;  %v10959_v41 = vld [vmem:[%s21498_s3 + $0x470] sm:$0xff] }
 0x29d   : > { %v18748_v5 = vsel %vm4439_vm10, %v6175_v40, %v6181_v61  ;;  %v2269_v6 = vcombine.high %v2267_v42, %v2267_v42  ;;  %v10678_v39 = vrot.slane %v2267_v42, 9  ;;  %v18750_v53 = vmax.f32 %v2260_v56, %v10676_v4  ;;  %v15768_v61 = vld [vmem:[%s21497_s2] ss:$0 sm:$0xff] }
 0x29e   : > { %12920 = vmatmul.mubr.f32.gmra.mrb[4].mxu1 %v22050_v51  ;;  %v2320_v2 = vcombine.high %v2318_v36, %v2318_v36  ;;  %v10822_v21 = vrot.slane %v2318_v36, 9  ;;  %v18762_v23 = vmax.f32 %v2311_v15, %v10820_v8  ;;  %v10962_v15 = vld [vmem:[%s21498_s3 + $0x488] sm:$0xff]  ;;  %v10963_v8 = vld [vmem:[%s21498_s3 + $0x490] sm:$0xff] }
 0x29f   : > { %12922 = vmatprep.mubr.f32.mxu1 %v22051_v63  ;;  %14545 = vmatpush3.bf16.msra.mxu1 %v14542_v52  ;;  %22054 = vst [vmem:[#allocation37_spill] sm:$0xff] %v18750_v53  ;;  %v10679_v45 = vrot.slane %v2269_v6, 9  ;;  %v18760_v3 = vmax.f32 %v2267_v42, %v10678_v39  ;;  %v18772_v52 = vadd.f32 %v15768_v61, %v18389_v46  ;;  %v10961_v42 = vld [vmem:[%s21498_s3 + $0x480] sm:$0xff]  ;;  %v11015_v53 = vld [vmem:[%s21498_s3 + $0x630] sm:$0xff] }
 0x2a0   : > { %14547 = vmatprep.subr.bf16.mxu1 %v14546_v14  ;;  %22057 = vst [vmem:[#allocation31_spill] sm:$0xff] %v18762_v23  ;;  %v18766_v4 = vmax.f32 %v2318_v36, %v10822_v21  ;;  %v18788_v46 = vrot.slane %v18731_v22, %v22003_v32 }
 0x2a1   : > { %22056 = vst [vmem:[#allocation40_spill] sm:$0xff] %v18760_v3  ;;  %22060 = vst [vmem:[#allocation69_spill] sm:$0xff] %v18772_v52  ;;  %v18782_v36 = vmax.f32 %v2269_v6, %v10679_v45  ;;  %v10965_v6 = vld [vmem:[%s21498_s3 + $0x4a0] sm:$0xff]  ;;  %v10968_v45 = vld [vmem:[%s21498_s3 + $0x4b8] sm:$0xff] }
 0x2a2   : > { %12923 = vmatmul.mubr.f32.gmra.mrb[6].mxu1 %v18375_v35  ;;  %22059 = vst [vmem:[#allocation60_spill] sm:$0xff] %v18766_v4  ;;  %22062 = vst [vmem:[#allocation13_spill] sm:$0xff] %v18788_v46  ;;  %v22067_v4 = vmax.f32 %v18435_v43, %v18456_v16 }
 0x2a3   : > { %14549 = vmatpush3.bf16.msra.mxu1 %v14546_v14  ;;  %12957 = vmatprep.mubr.f32.mxu1 %v22053_v25  ;;  %v2268_v14 = vcombine.high %v2260_v56, %v2260_v56  ;;  %v10821_v25 = vrot.slane %v2319_v24, 9  ;;  %v10823_v56 = vrot.slane %v2320_v2, 9  ;;  %22061 = vst [vmem:[#allocation67_spill] sm:$0xff] %v18782_v36 }
 0x2a4   : > { %14551 = vmatprep.subr.bf16.mxu1 %v14550_v17  ;;  %v4048_v3 = vmax.f32 %v22067_v4, 0.0 }
 0x2a5   : > { %v10677_v44 = vrot.slane %v2268_v14, 9  ;;  %v18764_v38 = vmax.f32 %v2319_v24, %v10821_v25  ;;  %v18800_v39 = vmax.f32 %v2320_v2, %v10823_v56  ;;  %v22064_v2 = vmax.f32 %v18430_v60, %v18445_v58 }
 0x2a6   : > { %v22065_v25 = vmax.f32 %v18432_v50, %v18447_v9  ;;  %v22066_v24 = vcombine.high %v18712_v47, %v18712_v47  ;;  %v18833_v60 = vrot.slane %v18772_v52, %v22003_v32  ;;  %v14566_v50 = vpack.c.bf16 %v10962_v15, %v10961_v42 }
 0x2a7   : > { %14553 = vmatpush3.bf16.msra.mxu1 %v14550_v17  ;;  %v10960_v17 = vld [vmem:[%s21498_s3 + $0x478] sm:$0xff]  ;;  %v18758_v40 = vmax.f32 %v2268_v14, %v10677_v44  ;;  %22058 = vst [vmem:[#allocation58_spill] sm:$0xff] %v18764_v38  ;;  %v2277_v14 = vrot.slane %v18712_v47, %v22003_v32  ;;  %22063 = vst [vmem:[#allocation62_spill] sm:$0xff] %v18800_v39  ;;  %v4047_v56 = vmax.f32 %v22064_v2, 0.0  ;;  %v22074_v2 = vld [vmem:[#allocation82_spill] sm:$0xff] }
 0x2a8   : > { %14555 = vmatprep.subr.bf16.mxu1 %v14554_v19  ;;  %v10964_v44 = vld [vmem:[%s21498_s3 + $0x498] sm:$0xff]  ;;  %v4049_v21 = vmax.f32 %v22065_v25, 0.0  ;;  %v2284_v22 = vrot.slane %v22066_v24, %v22003_v32  ;;  %22068 = vst [vmem:[#allocation9_spill] sm:$0xff] %v18833_v60  ;;  %v22069_v58 = vmax.f32 %v18437_v29, %v18458_v28  ;;  %v18845_v24 = vcombine.high %v18451_v11, %v18451_v11  ;;  %v22080_v38 = vld [vmem:[#allocation90_spill] sm:$0xff] }
 0x2a9   : > { %22055 = vst [vmem:[#allocation6_spill] sm:$0xff] %v18758_v40  ;;  %v10684_v40 = vrot.slane %v18788_v46, 9  ;;  %v2285_v47 = vcombine.high %v2277_v14, %v2277_v14  ;;  %v14570_v43 = vpack.c.bf16 %v10964_v44, %v10963_v8  ;;  %v6325_v25 = vrot.slane %v4047_v56, %v16232_v7 }
 0x2aa   : > { %v4050_v9 = vmax.f32 %v22069_v58, 0.0  ;;  %v22070_v29 = vmax.f32 %v18517_v34, %v18527_v31  ;;  %v2286_v42 = vcombine.high %v2284_v22, %v2284_v22  ;;  %v18855_v15 = vrot.slane %v4048_v3, %v16232_v7  ;;  %v22077_v58 = vld [vmem:[#allocation7_spill] sm:$0xff] }
 0x2ab   : > { %14557 = vmatpush3.bf16.msra.mxu1 %v14554_v19  ;;  %v14562_v19 = vpack.c.bf16 %v10960_v17, %v10959_v41  ;;  %v10966_v41 = vld [vmem:[%s21498_s3 + $0x4a8] sm:$0xff]  ;;  %v10967_v17 = vld [vmem:[%s21498_s3 + $0x4b0] sm:$0xff]  ;;  %v18858_v8 = vmax.f32 %v18788_v46, %v10684_v40  ;;  %v10828_v44 = vrot.slane %v18833_v60, 9  ;;  %v1051_v11 = vadd.f32 %v15768_v61, %v18398_v13 }
 0x2ac   : > { %14559 = vmatprep.subr.bf16.mxu1 %v18715_v0  ;;  %v18839_v16 = vpack.c.bf16 %v10966_v41, %v10965_v6  ;;  %v18841_v4 = vpack.c.bf16 %v10968_v45, %v10967_v17  ;;  %v4051_v28 = vmax.f32 %v22070_v29, 0.0  ;;  %v18863_v6 = vrot.slane %v4050_v9, %v16232_v7  ;;  %v22075_v61 = vld [vmem:[#allocation65_spill] sm:$0xff] }
 0x2ad   : > { %22071 = vst [vmem:[#allocation22_spill] sm:$0xff] %v18858_v8  ;;  %v10680_v34 = vrot.slane %v2277_v14, 9  ;;  %v10681_v41 = vrot.slane %v2285_v47, 9  ;;  %v10682_v3 = vrot.slane %v2284_v22, 9  ;;  %v18869_v17 = vmax.f32 %v18833_v60, %v10828_v44  ;;  %v10991_v60 = vld [vmem:[%s21498_s3 + $0x570] sm:$0xff] }
 0x2ae   : > { %v2321_v40 = vcombine.high %v1051_v11, %v1051_v11  ;;  %v2328_v45 = vrot.slane %v1051_v11, %v22003_v32  ;;  %v2149_v13 = vcombine.high %v22074_v2, %v22074_v2  ;;  %v22079_v2 = vld [vmem:[#allocation68_spill] sm:$0xff] }
 0x2af   : > { %14561 = vmatpush3.bf16.msra.mxu1 %v18715_v0  ;;  %v18849_v0 = vrot.slane %v4049_v21, %v16232_v7  ;;  %v22072_v21 = vmax.f32 %v18519_v49, %v18531_v62  ;;  %22073 = vst [vmem:[#allocation57_spill] sm:$0xff] %v18869_v17  ;;  %v18878_v49 = vrot.slane %v4051_v28, %v16232_v7  ;;  %v10683_v62 = vrot.slane %v2286_v42, 9 }
 0x2b0   : > { %14563 = vmatprep.subr.bf16.mxu1 %v14562_v19  ;;  %v2335_v29 = vrot.slane %v2321_v40, %v22003_v32  ;;  %v2336_v44 = vcombine.high %v2328_v45, %v2328_v45  ;;  %v10824_v11 = vrot.slane %v2328_v45, 9  ;;  %v18893_v52 = vmax.f32 %v2285_v47, %v10681_v41 }
 0x2b1   : > { %v4052_v31 = vmax.f32 %v22072_v21, 0.0  ;;  %v22078_v21 = vld [vmem:[#allocation17_spill] sm:$0xff]  ;;  %v18895_v9 = vmax.f32 %v2284_v22, %v10682_v3  ;;  %v22090_v3 = vld [vmem:[#allocation28_spill] sm:$0xff] }
 0x2b2   : > { %22083 = vst [vmem:[#allocation78_spill] sm:$0xff] %v18893_v52  ;;  %v2337_v40 = vcombine.high %v2335_v29, %v2335_v29  ;;  %v10825_v17 = vrot.slane %v2336_v44, 9  ;;  %v10826_v8 = vrot.slane %v2335_v29, 9 }
 0x2b3   : > { %14565 = vmatpush3.bf16.msra.mxu1 %v14562_v19  ;;  %v22076_v19 = vmax.f32 %v18524_v1, %v22075_v61  ;;  %v22081_v1 = vmax.f32 %v22079_v2, %v22080_v38  ;;  %v18889_v28 = vrot.slane %v4052_v31, %v16232_v7  ;;  %22084 = vst [vmem:[#allocation77_spill] sm:$0xff] %v18895_v9 }
 0x2b4   : > { %14567 = vmatprep.subr.bf16.mxu1 %v14566_v50  ;;  %v18902_v38 = vmax.f32 %v2328_v45, %v10824_v11  ;;  %v6354_v31 = vsel %vm4427_vm4, %v18855_v15, %v6325_v25  ;;  %v10827_v47 = vrot.slane %v2337_v40, 9  ;;  %v18909_v22 = vmax.f32 %v2335_v29, %v10826_v8  ;;  %v10970_v29 = vld [vmem:[%s21498_s3 + $0x4c8] sm:$0xff] }
 0x2b5   : > { %v4053_v56 = vmax.f32 %v22076_v19, 0.0  ;;  %v4054_v61 = vmax.f32 %v22081_v1, 0.0  ;;  %v18891_v19 = vmax.f32 %v2277_v14, %v10680_v34  ;;  %v22087_v14 = vld [vmem:[#allocation18_spill] sm:$0xff]  ;;  %v18907_v34 = vmax.f32 %v2336_v44, %v10825_v17  ;;  %v22092_v1 = vld [vmem:[#allocation51_spill] sm:$0xff] }
 0x2b6   : > { %12958 = vmatmul.mubr.f32.vlgmr.msra.gmra.mrb[0].mxu1 %v22077_v58  ;;  %22086 = vst [vmem:[#allocation85_spill] sm:$0xff] %v18902_v38  ;;  %22089 = vst [vmem:[#allocation55_spill] sm:$0xff] %v18909_v22  ;;  %v6355_v41 = vsel %vm4429_vm5, %v18849_v0, %v6354_v31  ;;  %v18922_v17 = vmax.f32 %v2337_v40, %v10827_v47  ;;  %v10661_v44 = vrot.slane %v18845_v24, 9  ;;  %v10805_v11 = vrot.slane %v2149_v13, 9  ;;  %v22093_v31 = vld [vmem:[#allocation36_spill] sm:$0xff]  ;;  %v22105_v22 = vld [vmem:[#allocation15_spill] sm:$0xff] }
 0x2b7   : > { %12960 = vmatprep.mubr.f32.mxu1 %v22078_v21  ;;  %14569 = vmatpush3.bf16.msra.mxu1 %v14566_v50  ;;  %22082 = vst [vmem:[#allocation73_spill] sm:$0xff] %v18891_v19  ;;  %v18898_v39 = vrot.slane %v4053_v56, %v16232_v7  ;;  %v18900_v50 = vmax.f32 %v2286_v42, %v10683_v62  ;;  %22088 = vst [vmem:[#allocation93_spill] sm:$0xff] %v18907_v34  ;;  %v10969_v62 = vld [vmem:[%s21498_s3 + $0x4c0] sm:$0xff] }
 0x2b8   : > { %14571 = vmatprep.subr.bf16.mxu1 %v14570_v43  ;;  %v18917_v45 = vrot.slane %v4054_v61, %v16232_v7  ;;  %v6356_v25 = vsel %vm4431_vm6, %v18863_v6, %v6355_v41  ;;  %22091 = vst [vmem:[#allocation16_spill] sm:$0xff] %v18922_v17  ;;  %v22094_v47 = vld [vmem:[#allocation76_spill] sm:$0xff]  ;;  %v22095_v41 = vld [vmem:[#allocation83_spill] sm:$0xff]  ;;  %v3768_v42 = vmax.f32 %v2149_v13, %v10805_v11 }
 0x2b9   : > { %22085 = vst [vmem:[#allocation86_spill] sm:$0xff] %v18900_v50  ;;  %v10971_v61 = vld [vmem:[%s21498_s3 + $0x4d0] sm:$0xff]  ;;  %v22107_v34 = vld [vmem:[#allocation64_spill] sm:$0xff] }
 0x2ba   : > { %12961 = vmatmul.mubr.f32.gmra.mrb[2].mxu1 %v22087_v14 }
 0x2bb   : > { %12963 = vmatprep.mubr.f32.mxu1 %v22090_v3  ;;  %14573 = vmatpush3.bf16.msra.mxu1 %v14570_v43  ;;  %v6357_v43 = vsel %vm4433_vm7, %v18878_v49, %v6356_v25  ;;  %v22096_v25 = vmax.f32 %v22094_v47, %v22095_v41  ;;  %v6497_v47 = vsel %vm4427_vm4, %v18849_v0, %v18855_v15 }
 0x2bc   : > { %14575 = vmatprep.subr.bf16.mxu1 %v18839_v16  ;;  %v6358_v2 = vsel %vm4435_vm8, %v18889_v28, %v6357_v43  ;;  %v14582_v43 = vpack.c.bf16 %v10970_v29, %v10969_v62  ;;  %v6498_v62 = vsel %vm4429_vm5, %v18863_v6, %v6497_v47  ;;  %v22098_v29 = vld [vmem:[#allocation52_spill] sm:$0xff] }
 0x2bd   : > { %v6359_v40 = vsel %vm4437_vm9, %v18898_v39, %v6358_v2  ;;  %v4055_v56 = vmax.f32 %v22096_v25, 0.0  ;;  %v10972_v2 = vld [vmem:[%s21498_s3 + $0x4d8] sm:$0xff]  ;;  %v6640_v25 = vsel %vm4427_vm4, %v18863_v6, %v18849_v0 }
 0x2be   : > { %12964 = vmatmul.mubr.f32.gmra.mrb[4].mxu1 %v22092_v1  ;;  %v18951_v8 = vsel %vm4439_vm10, %v18917_v45, %v6359_v40  ;;  %v22097_v40 = vld [vmem:[#allocation20_spill] sm:$0xff]  ;;  %v14586_v13 = vpack.c.bf16 %v10972_v2, %v10971_v61  ;;  %v6641_v2 = vsel %vm4429_vm5, %v18878_v49, %v6640_v25  ;;  %v10978_v25 = vld [vmem:[%s21498_s3 + $0x508] sm:$0xff] }
 0x2bf   : > { %12966 = vmatprep.mubr.f32.mxu1 %v22093_v31  ;;  %14577 = vmatpush3.bf16.msra.mxu1 %v18839_v16  ;;  %v3192_v16 = vmax.f32 %v18845_v24, %v10661_v44  ;;  %v18970_v41 = vrot.slane %v4055_v56, %v16232_v7  ;;  %v6499_v24 = vsel %vm4431_vm6, %v18878_v49, %v6498_v62  ;;  %v10973_v44 = vld [vmem:[%s21498_s3 + $0x4e0] sm:$0xff] }
 0x2c0   : > { %14579 = vmatprep.subr.bf16.mxu1 %v18841_v4  ;;  %v6500_v15 = vsel %vm4433_vm7, %v18889_v28, %v6499_v24 }
 0x2c1   : > { %v6501_v56 = vsel %vm4435_vm8, %v18898_v39, %v6500_v15  ;;  %v3912_v11 = vmax.f32 %v3192_v16, %v3768_v42  ;;  %v10975_v16 = vld [vmem:[%s21498_s3 + $0x4f0] sm:$0xff] }
 0x2c2   : > { %12967 = vmatmul.mubr.f32.gmra.mrb[6].mxu1 %v22097_v40  ;;  %v6502_v61 = vsel %vm4437_vm9, %v18917_v45, %v6501_v56 }
 0x2c3   : > { %14581 = vmatpush3.bf16.msra.mxu1 %v18841_v4  ;;  %13001 = vmatprep.mubr.f32.mxu1 %v22098_v29  ;;  %v10974_v4 = vld [vmem:[%s21498_s3 + $0x4e8] sm:$0xff]  ;;  %v18993_v47 = vsel %vm4439_vm10, %v18970_v41, %v6502_v61  ;;  %v4056_v62 = vmax.f32 %v3912_v11, 0.0  ;;  %v6642_v29 = vsel %vm4431_vm6, %v18889_v28, %v6641_v2  ;;  %v10977_v11 = vld [vmem:[%s21498_s3 + $0x500] sm:$0xff] }
 0x2c4   : > { %14583 = vmatprep.subr.bf16.mxu1 %v14582_v43  ;;  %v14590_v42 = vpack.c.bf16 %v10974_v4, %v10973_v44  ;;  %v6643_v0 = vsel %vm4433_vm7, %v18898_v39, %v6642_v29  ;;  %v22100_v61 = vld [vmem:[#allocation81_spill] sm:$0xff]  ;;  %v14598_v29 = vpack.c.bf16 %v10978_v25, %v10977_v11  ;;  %v22102_v25 = vld [vmem:[#allocation39_spill] sm:$0xff] }
 0x2c5   : > { %v19006_v24 = vrot.slane %v4056_v62, %v16232_v7  ;;  %v6644_v15 = vsel %vm4435_vm8, %v18917_v45, %v6643_v0  ;;  %v2083_v2 = vcombine.high %v22100_v61, %v22100_v61  ;;  %v22101_v62 = vld [vmem:[#allocation75_spill] sm:$0xff]  ;;  %v10982_v11 = vld [vmem:[%s21498_s3 + $0x528] sm:$0xff]  ;;  %v22103_v61 = vld [vmem:[#allocation56_spill] sm:$0xff] }
 0x2c6   : > { %v6645_v44 = vsel %vm4437_vm9, %v18970_v41, %v6644_v15  ;;  %v10979_v0 = vld [vmem:[%s21498_s3 + $0x510] sm:$0xff] }
 0x2c7   : > { %14585 = vmatpush3.bf16.msra.mxu1 %v14582_v43  ;;  %v10976_v43 = vld [vmem:[%s21498_s3 + $0x4f8] sm:$0xff]  ;;  %v19014_v4 = vsel %vm4439_vm10, %v19006_v24, %v6645_v44  ;;  %v10981_v44 = vld [vmem:[%s21498_s3 + $0x520] sm:$0xff] }
 0x2c8   : > { %14587 = vmatprep.subr.bf16.mxu1 %v14586_v13  ;;  %22099 = vst [vmem:[#allocation70_spill] sm:$0xff] %v19014_v4  ;;  %v14594_v56 = vpack.c.bf16 %v10976_v43, %v10975_v16  ;;  %v10980_v16 = vld [vmem:[%s21498_s3 + $0x518] sm:$0xff]  ;;  %v2097_v43 = vrot.slane %v2083_v2, %v22003_v32  ;;  %v14606_v2 = vpack.c.bf16 %v10982_v11, %v10981_v44  ;;  %v10985_v44 = vld [vmem:[%s21498_s3 + $0x540] sm:$0xff]  ;;  %v10986_v11 = vld [vmem:[%s21498_s3 + $0x548] sm:$0xff] }
 0x2c9   : > { %v14602_v15 = vpack.c.bf16 %v10980_v16, %v10979_v0  ;;  %v10984_v0 = vld [vmem:[%s21498_s3 + $0x538] sm:$0xff] }
 0x2ca   : > { %v22104_v16 = vld [vmem:[#allocation48_spill] sm:$0xff]  ;;  %v2099_v19 = vcombine.high %v2097_v43, %v2097_v43 }
 0x2cb   : > { %14589 = vmatpush3.bf16.msra.mxu1 %v14586_v13  ;;  %v2134_v13 = vcombine.high %v22101_v62, %v22101_v62 }
 0x2cc   : > { %14591 = vmatprep.subr.bf16.mxu1 %v14590_v42 }
 0x2cf   : > { %14593 = vmatpush3.bf16.msra.mxu1 %v14590_v42  ;;  %v2148_v42 = vrot.slane %v2134_v13, %v22003_v32  ;;  %v10983_v13 = vld [vmem:[%s21498_s3 + $0x530] sm:$0xff] }
 0x2d0   : > { %14595 = vmatprep.subr.bf16.mxu1 %v14594_v56 }
 0x2d1   : > { %v10806_v62 = vrot.slane %v2148_v42, 9  ;;  %v2150_v36 = vcombine.high %v2148_v42, %v2148_v42 }
 0x2d3   : > { %14597 = vmatpush3.bf16.msra.mxu1 %v14594_v56  ;;  %v10662_v56 = vrot.slane %v2097_v43, 9  ;;  %v3769_v50 = vmax.f32 %v2148_v42, %v10806_v62  ;;  %v14614_v62 = vpack.c.bf16 %v10986_v11, %v10985_v44  ;;  %v10994_v42 = vld [vmem:[%s21498_s3 + $0x588] sm:$0xff] }
 0x2d4   : > { %14599 = vmatprep.subr.bf16.mxu1 %v14598_v29 }
 0x2d5   : > { %v3193_v17 = vmax.f32 %v2097_v43, %v10662_v56  ;;  %v22109_v56 = vld [vmem:[#allocation23_spill] sm:$0xff]  ;;  %v10993_v43 = vld [vmem:[%s21498_s3 + $0x580] sm:$0xff] }
 0x2d6   : > { %13002 = vmatmul.mubr.f32.vlgmr.msra.gmra.mrb[0].mxu1 %v22102_v25 }
 0x2d7   : > { %13004 = vmatprep.mubr.f32.mxu1 %v22103_v61  ;;  %14601 = vmatpush3.bf16.msra.mxu1 %v14598_v29  ;;  %v14610_v29 = vpack.c.bf16 %v10984_v0, %v10983_v13  ;;  %v6783_v13 = vsel %vm4427_vm4, %v18878_v49, %v18863_v6  ;;  %v10987_v0 = vld [vmem:[%s21498_s3 + $0x550] sm:$0xff] }
 0x2d8   : > { %14603 = vmatprep.subr.bf16.mxu1 %v14602_v15 }
 0x2da   : > { %13005 = vmatmul.mubr.f32.gmra.mrb[2].mxu1 %v22104_v16  ;;  %v19056_v9 = vpop.f32.mrb[72].mxu0 }
 0x2db   : > { %13007 = vmatprep.mubr.f32.mxu1 %v22105_v22  ;;  %14605 = vmatpush3.bf16.msra.mxu1 %v14602_v15  ;;  %22106 = vst [vmem:[#allocation19_spill] sm:$0xff] %v19056_v9  ;;  %v19059_v52 = vpop.f32.mrb[73].mxu0  ;;  %v3913_v15 = vmax.f32 %v3193_v17, %v3769_v50  ;;  %v10988_v9 = vld [vmem:[%s21498_s3 + $0x558] sm:$0xff] }
 0x2dc   : > { %14607 = vmatprep.subr.bf16.mxu1 %v14606_v2  ;;  %22108 = vst [vmem:[#allocation44_spill] sm:$0xff] %v19059_v52  ;;  %v6784_v52 = vsel %vm4429_vm5, %v18889_v28, %v6783_v13  ;;  %v22110_v17 = vld [vmem:[#allocation72_spill] sm:$0xff]  ;;  %v14618_v44 = vpack.c.bf16 %v10988_v9, %v10987_v0 }
 0x2dd   : > { %v4057_v38 = vmax.f32 %v3913_v15, 0.0  ;;  %v6785_v50 = vsel %vm4431_vm6, %v18898_v39, %v6784_v52  ;;  %v10832_v15 = vld [vmem:[%s21499_s4] ss:$0 sm:$0xff] }
 0x2de   : > { %13008 = vmatmul.mubr.f32.gmra.mrb[4].mxu1 %v22107_v34  ;;  %v10989_v52 = vld [vmem:[%s21498_s3 + $0x560] sm:$0xff] }
 0x2df   : > { %13010 = vmatprep.mubr.f32.mxu1 %v22109_v56  ;;  %14609 = vmatpush3.bf16.msra.mxu1 %v14606_v2  ;;  %v6782_v6 = vrot.slane %v4057_v38, %v16232_v7  ;;  %v6786_v2 = vsel %vm4433_vm7, %v18917_v45, %v6785_v50  ;;  %v10990_v38 = vld [vmem:[%s21498_s3 + $0x568] sm:$0xff] }
 0x2e0   : > { %14611 = vmatprep.subr.bf16.mxu1 %v14610_v29  ;;  %v6787_v11 = vsel %vm4435_vm8, %v18970_v41, %v6786_v2  ;;  %v14622_v2 = vpack.c.bf16 %v10990_v38, %v10989_v52  ;;  %v10996_v38 = vld [vmem:[%s21498_s3 + $0x598] sm:$0xff] }
 0x2e2   : > { %13011 = vmatmul.mubr.f32.gmra.mrb[6].mxu1 %v18748_v5 }
 0x2e3   : > { %14613 = vmatpush3.bf16.msra.mxu1 %v14610_v29  ;;  %13045 = vmatprep.mubr.f32.mxu1 %v22110_v17  ;;  %v12654_v13 = vpop.f32.mrb[74].mxu0  ;;  %v6788_v29 = vsel %vm4437_vm9, %v19006_v24, %v6787_v11  ;;  %v10992_v11 = vld [vmem:[%s21498_s3 + $0x578] sm:$0xff] }
 0x2e4   : > { %14615 = vmatprep.subr.bf16.mxu1 %v14614_v62  ;;  %v19093_v9 = vadd.f32 %v12654_v13, %v10832_v15  ;;  %v4808_v0 = vpop.f32.mrb[75].mxu0  ;;  %v19096_v50 = vsel %vm4439_vm10, %v6782_v6, %v6788_v29  ;;  %v14626_v29 = vpack.c.bf16 %v10992_v11, %v10991_v60  ;;  %v10995_v60 = vld [vmem:[%s21498_s3 + $0x590] sm:$0xff] }
 0x2e5   : > { %v19098_v17 = vadd.f32 %v10832_v15, %v4808_v0 }
 0x2e6   : > { %22111 = vst [vmem:[#allocation47_spill] sm:$0xff] %v19093_v9  ;;  %v10663_v9 = vrot.slane %v2099_v19, 9 }
 0x2e7   : > { %14617 = vmatpush3.bf16.msra.mxu1 %v14614_v62  ;;  %22112 = vst [vmem:[#allocation54_spill] sm:$0xff] %v19098_v17  ;;  %v10807_v62 = vrot.slane %v2150_v36, 9 }
 0x2e8   : > { %14619 = vmatprep.subr.bf16.mxu1 %v14618_v44  ;;  %v3194_v11 = vmax.f32 %v2099_v19, %v10663_v9  ;;  %v10998_v19 = vld [vmem:[%s21498_s3 + $0x5a8] sm:$0xff] }
 0x2eb   : > { %14621 = vmatpush3.bf16.msra.mxu1 %v14618_v44  ;;  %v12657_v13 = vpop.f32.mrb[76].mxu0  ;;  %v14630_v44 = vpack.c.bf16 %v10994_v42, %v10993_v43  ;;  %v14634_v42 = vpack.c.bf16 %v10996_v38, %v10995_v60  ;;  %v22120_v60 = vld [vmem:[#allocation94_spill] sm:$0xff] }
 0x2ec   : > { %14623 = vmatprep.subr.bf16.mxu1 %v14622_v2  ;;  %v19106_v0 = vadd.f32 %v12657_v13, %v10832_v15  ;;  %v4818_v17 = vpop.f32.mrb[77].mxu0  ;;  %v3770_v13 = vmax.f32 %v2150_v36, %v10807_v62  ;;  %v10997_v36 = vld [vmem:[%s21498_s3 + $0x5a0] sm:$0xff]  ;;  %v11002_v38 = vld [vmem:[%s21498_s3 + $0x5c8] sm:$0xff] }
 0x2ed   : > { %v19114_v52 = vadd.f32 %v10832_v15, %v4818_v17  ;;  %v6926_v17 = vsel %vm4427_vm4, %v18889_v28, %v18878_v49  ;;  %v22117_v28 = vld [vmem:[#allocation34_spill] sm:$0xff] }
 0x2ee   : > { %22113 = vst [vmem:[#allocation5_spill] sm:$0xff] %v19106_v0  ;;  %v3914_v46 = vmax.f32 %v3194_v11, %v3770_v13  ;;  %v22121_v11 = vld [vmem:[#allocation8_spill] sm:$0xff]  ;;  %v22122_v13 = vld [vmem:[#allocation74_spill] sm:$0xff] }
 0x2ef   : > { %22114 = vst [vmem:[#allocation63_spill] sm:$0xff] %v19114_v52  ;;  %14625 = vmatpush3.bf16.msra.mxu1 %v14622_v2  ;;  %v6927_v52 = vsel %vm4429_vm5, %v18898_v39, %v6926_v17  ;;  %v22118_v39 = vld [vmem:[#allocation43_spill] sm:$0xff] }
 0x2f0   : > { %14627 = vmatprep.subr.bf16.mxu1 %v14626_v29  ;;  %v4058_v9 = vmax.f32 %v3914_v46, 0.0  ;;  %v6928_v49 = vsel %vm4431_vm6, %v18917_v45, %v6927_v52  ;;  %v10999_v45 = vld [vmem:[%s21498_s3 + $0x5b0] sm:$0xff] }
 0x2f3   : > { %14629 = vmatpush3.bf16.msra.mxu1 %v14626_v29  ;;  %v12660_v0 = vpop.f32.mrb[78].mxu0  ;;  %v6929_v29 = vsel %vm4433_vm7, %v18970_v41, %v6928_v49  ;;  %v11000_v41 = vld [vmem:[%s21498_s3 + $0x5b8] sm:$0xff]  ;;  %v11006_v49 = vld [vmem:[%s21498_s3 + $0x5e8] sm:$0xff] }
 0x2f4   : > { %v19125_v2 = vadd.f32 %v12660_v0, %v10832_v15  ;;  %v4828_v43 = vpop.f32.mrb[79].mxu0  ;;  %14631 = vmatprep.subr.bf16.mxu1 %v14630_v44  ;;  %v6930_v62 = vsel %vm4435_vm8, %v19006_v24, %v6929_v29  ;;  %v14638_v0 = vpack.c.bf16 %v10998_v19, %v10997_v36  ;;  %v14642_v24 = vpack.c.bf16 %v11000_v41, %v10999_v45  ;;  %v22123_v36 = vld [vmem:[#allocation25_spill] sm:$0xff] }
 0x2f5   : > { %v19129_v23 = vadd.f32 %v10832_v15, %v4828_v43  ;;  %v6925_v15 = vrot.slane %v4058_v9, %v16232_v7  ;;  %v6931_v46 = vsel %vm4437_vm9, %v6782_v6, %v6930_v62  ;;  %v11001_v6 = vld [vmem:[%s21498_s3 + $0x5c0] sm:$0xff]  ;;  %v11003_v43 = vld [vmem:[%s21498_s3 + $0x5d0] sm:$0xff]  ;;  %v11008_v62 = vld [vmem:[%s21498_s3 + $0x5f8] sm:$0xff] }
 0x2f6   : > { %22115 = vst [vmem:[#allocation89_spill] sm:$0xff] %v19125_v2  ;;  %13046 = vmatmul.mubr.f32.vlgmr.msra.gmra.mrb[0].mxu1 %v22117_v28  ;;  %v14646_v17 = vpack.c.bf16 %v11002_v38, %v11001_v6  ;;  %v11005_v9 = vld [vmem:[%s21498_s3 + $0x5e0] sm:$0xff]  ;;  %v11010_v45 = vld [vmem:[%s21498_s3 + $0x608] sm:$0xff]  ;;  %v11012_v6 = vld [vmem:[%s21498_s3 + $0x618] sm:$0xff] }
 0x2f7   : > { %22116 = vst [vmem:[#allocation91_spill] sm:$0xff] %v19129_v23  ;;  %13048 = vmatprep.mubr.f32.mxu1 %v22118_v39  ;;  %14633 = vmatpush3.bf16.msra.mxu1 %v14630_v44  ;;  %v19154_v52 = vsel %vm4439_vm10, %v6925_v15, %v6931_v46  ;;  %v22119_v44 = vld [vmem:[#allocation59_spill] sm:$0xff]  ;;  %v14654_v29 = vpack.c.bf16 %v11006_v49, %v11005_v9  ;;  %v11009_v46 = vld [vmem:[%s21498_s3 + $0x600] sm:$0xff] }
 0x2f8   : > { %14635 = vmatprep.subr.bf16.mxu1 %v14634_v42  ;;  %v11007_v15 = vld [vmem:[%s21498_s3 + $0x5f0] sm:$0xff]  ;;  %v14662_v41 = vpack.c.bf16 %v11010_v45, %v11009_v46  ;;  %v22131_v46 = vld [vmem:[#allocation41_spill] sm:$0xff] }
 0x2f9   : > { %v22132_v45 = vld [vmem:[#allocation79_spill] sm:$0xff] }
 0x2fa   : > { %13049 = vmatmul.mubr.f32.gmra.mrb[2].mxu1 %v22119_v44 }
 0x2fb   : > { %13051 = vmatprep.mubr.f32.mxu1 %v22120_v60  ;;  %14637 = vmatpush3.bf16.msra.mxu1 %v14634_v42  ;;  %v11004_v42 = vld [vmem:[%s21498_s3 + $0x5d8] sm:$0xff] }
 0x2fc   : > { %14639 = vmatprep.subr.bf16.mxu1 %v14638_v0  ;;  %v14650_v19 = vpack.c.bf16 %v11004_v42, %v11003_v43  ;;  %v11014_v43 = vld [vmem:[%s21498_s3 + $0x628] sm:$0xff] }
 0x2fd   : > { %v22124_v42 = vld [vmem:[#allocation26_spill] sm:$0xff] }
 0x2fe   : > { %13052 = vmatmul.mubr.f32.gmra.mrb[4].mxu1 %v22121_v11 }
 0x2ff   : > { %13054 = vmatprep.mubr.f32.mxu1 %v22122_v13  ;;  %14641 = vmatpush3.bf16.msra.mxu1 %v14638_v0  ;;  %v14658_v0 = vpack.c.bf16 %v11008_v62, %v11007_v15  ;;  %v22129_v15 = vld [vmem:[#allocation42_spill] sm:$0xff] }
 0x300   : > { %14643 = vmatprep.subr.bf16.mxu1 %v14642_v24 }
 0x302   : > { %13055 = vmatmul.mubr.f32.gmra.mrb[6].mxu1 %v18951_v8 }
 0x303   : > { %14645 = vmatpush3.bf16.msra.mxu1 %v14642_v24  ;;  %13089 = vmatprep.mubr.f32.mxu1 %v22123_v36  ;;  %v11011_v24 = vld [vmem:[%s21498_s3 + $0x610] sm:$0xff]  ;;  %v22125_v36 = vld [vmem:[#allocation84_spill] sm:$0xff] }
 0x304   : > { %14647 = vmatprep.subr.bf16.mxu1 %v14646_v17  ;;  %v14666_v38 = vpack.c.bf16 %v11012_v6, %v11011_v24  ;;  %v22133_v24 = vld [vmem:[#allocation38_spill] sm:$0xff] }
 0x305   : > { %v22134_v6 = vmax.f32 %v22132_v45, %v22133_v24  ;;  %v22137_v45 = vld [vmem:[#allocation49_spill] sm:$0xff]  ;;  %v11020_v24 = vld [vmem:[%s21498_s3 + $0x658] sm:$0xff] }
 0x307   : > { %14649 = vmatpush3.bf16.msra.mxu1 %v14646_v17  ;;  %v11013_v17 = vld [vmem:[%s21498_s3 + $0x620] sm:$0xff]  ;;  %v4061_v23 = vmax.f32 %v22134_v6, 0.0 }
 0x308   : > { %14651 = vmatprep.subr.bf16.mxu1 %v14650_v19  ;;  %v14670_v2 = vpack.c.bf16 %v11014_v43, %v11013_v17  ;;  %v11017_v43 = vld [vmem:[%s21498_s3 + $0x640] sm:$0xff] }
 0x309   : > { %v11021_v6 = vld [vmem:[%s21498_s3 + $0x660] sm:$0xff] }
 0x30b   : > { %14653 = vmatpush3.bf16.msra.mxu1 %v14650_v19  ;;  %v22126_v19 = vld [vmem:[#allocation80_spill] sm:$0xff] }
 0x30c   : > { %14655 = vmatprep.subr.bf16.mxu1 %v14654_v29  ;;  %v22127_v9 = vmax.f32 %v22125_v36, %v22126_v19  ;;  %v11016_v36 = vld [vmem:[%s21498_s3 + $0x638] sm:$0xff]  ;;  %v22135_v19 = vld [vmem:[#allocation45_spill] sm:$0xff] }
 0x30d   : > { %v14674_v17 = vpack.c.bf16 %v11016_v36, %v11015_v53  ;;  %v11022_v36 = vld [vmem:[%s21498_s3 + $0x668] sm:$0xff] }
 0x30e   : > { %v4059_v49 = vmax.f32 %v22127_v9, 0.0 }
 0x30f   : > { %14657 = vmatpush3.bf16.msra.mxu1 %v14654_v29  ;;  %v22128_v29 = vld [vmem:[#allocation71_spill] sm:$0xff] }
 0x310   : > { %14659 = vmatprep.subr.bf16.mxu1 %v14658_v0  ;;  %v22130_v62 = vmax.f32 %v22128_v29, %v22129_v15  ;;  %v7075_v9 = vrot.slane %v4059_v49, %v16232_v7  ;;  %v22136_v29 = vld [vmem:[#allocation30_spill] sm:$0xff]  ;;  %v19226_v15 = vrot.slane %v4061_v23, %v16232_v7  ;;  %v22138_v49 = vld [vmem:[#allocation87_spill] sm:$0xff] }
 0x313   : > { %14661 = vmatpush3.bf16.msra.mxu1 %v14658_v0  ;;  %v4060_v0 = vmax.f32 %v22130_v62, 0.0  ;;  %v11018_v62 = vld [vmem:[%s21498_s3 + $0x648] sm:$0xff] }
 0x314   : > { %14663 = vmatprep.subr.bf16.mxu1 %v14662_v41  ;;  %v14678_v23 = vpack.c.bf16 %v11018_v62, %v11017_v43  ;;  %v11023_v43 = vld [vmem:[%s21498_s3 + $0x670] sm:$0xff]  ;;  %v11025_v62 = vld [vmem:[%s21498_s3 + $0x680] sm:$0xff] }
 0x316   : > { %13090 = vmatmul.mubr.f32.vlgmr.msra.gmra.mrb[0].mxu1 %v22124_v42 }
 0x317   : > { %13092 = vmatprep.mubr.f32.mxu1 %v22131_v46  ;;  %14665 = vmatpush3.bf16.msra.mxu1 %v14662_v41  ;;  %v7079_v41 = vrot.slane %v4060_v0, %v16232_v7  ;;  %v11019_v0 = vld [vmem:[%s21498_s3 + $0x650] sm:$0xff] }
 0x318   : > { %14667 = vmatprep.subr.bf16.mxu1 %v14666_v38 }
 0x31a   : > { %13093 = vmatmul.mubr.f32.gmra.mrb[2].mxu1 %v22135_v19 }
 0x31b   : > { %13095 = vmatprep.mubr.f32.mxu1 %v22136_v29  ;;  %14669 = vmatpush3.bf16.msra.mxu1 %v14666_v38  ;;  %v7104_v38 = vsel %vm4427_vm4, %v7079_v41, %v7075_v9  ;;  %v14686_v9 = vpack.c.bf16 %v11022_v36, %v11021_v6  ;;  %v11029_v6 = vld [vmem:[%s21498_s3 + $0x6a0] sm:$0xff]  ;;  %v11030_v36 = vld [vmem:[%s21498_s3 + $0x6a8] sm:$0xff] }
 0x31c   : > { %14671 = vmatprep.subr.bf16.mxu1 %v14670_v2  ;;  %v19239_v53 = vsel %vm4429_vm5, %v19226_v15, %v7104_v38  ;;  %v11026_v38 = vld [vmem:[%s21498_s3 + $0x688] sm:$0xff] }
 0x31e   : > { %13096 = vmatmul.mubr.f32.gmra.mrb[4].mxu1 %v22137_v45 }
 0x31f   : > { %13098 = vmatprep.mubr.f32.mxu1 %v22138_v49  ;;  %14673 = vmatpush3.bf16.msra.mxu1 %v14670_v2  ;;  %v14682_v2 = vpack.c.bf16 %v11020_v24, %v11019_v0  ;;  %v11027_v0 = vld [vmem:[%s21498_s3 + $0x690] sm:$0xff]  ;;  %v11028_v24 = vld [vmem:[%s21498_s3 + $0x698] sm:$0xff] }
 0x320   : > { %14675 = vmatprep.subr.bf16.mxu1 %v14674_v17 }
 0x322   : > { %13099 = vmatmul.mubr.f32.gmra.mrb[6].mxu1 %v18993_v47 }
 0x323   : > { %14677 = vmatpush3.bf16.msra.mxu1 %v14674_v17  ;;  %13133 = vmatprep.mubr.f32.mxu1 %v22046_v55  ;;  %v11024_v55 = vld [vmem:[%s21498_s3 + $0x678] sm:$0xff] }
 0x324   : > { %14679 = vmatprep.subr.bf16.mxu1 %v14678_v23  ;;  %v14690_v17 = vpack.c.bf16 %v11024_v55, %v11023_v43  ;;  %v11031_v43 = vld [vmem:[%s21498_s3 + $0x6b0] sm:$0xff]  ;;  %v11032_v55 = vld [vmem:[%s21498_s3 + $0x6b8] sm:$0xff] }
 0x327   : > { %14681 = vmatpush3.bf16.msra.mxu1 %v14678_v23  ;;  %v14694_v23 = vpack.c.bf16 %v11026_v38, %v11025_v62  ;;  %v11033_v62 = vld [vmem:[%s21498_s3 + $0x6c0] sm:$0xff]  ;;  %v11034_v38 = vld [vmem:[%s21498_s3 + $0x6c8] sm:$0xff] }
 0x328   : > { %14683 = vmatprep.subr.bf16.mxu1 %v14682_v2 }
 0x32b   : > { %14685 = vmatpush3.bf16.msra.mxu1 %v14682_v2  ;;  %v14698_v2 = vpack.c.bf16 %v11028_v24, %v11027_v0  ;;  %v14710_v0 = vpack.c.bf16 %v11034_v38, %v11033_v62  ;;  %v11035_v24 = vld [vmem:[%s21498_s3 + $0x6d0] sm:$0xff]  ;;  %v11042_v62 = vld [vmem:[%s21498_s3 + $0x708] sm:$0xff] }
 0x32c   : > { %14687 = vmatprep.subr.bf16.mxu1 %v14686_v9 }
 0x32f   : > { %14689 = vmatpush3.bf16.msra.mxu1 %v14686_v9  ;;  %v14702_v9 = vpack.c.bf16 %v11030_v36, %v11029_v6  ;;  %v11038_v36 = vld [vmem:[%s21498_s3 + $0x6e8] sm:$0xff] }
 0x330   : > { %14691 = vmatprep.subr.bf16.mxu1 %v14690_v17 }
 0x333   : > { %14693 = vmatpush3.bf16.msra.mxu1 %v14690_v17  ;;  %v14706_v17 = vpack.c.bf16 %v11032_v55, %v11031_v43  ;;  %v11039_v43 = vld [vmem:[%s21498_s3 + $0x6f0] sm:$0xff] }
 0x334   : > { %14695 = vmatprep.subr.bf16.mxu1 %v14694_v23 }
 0x336   : > { %13134 = vmatmul.mubr.f32.vlgmr.msra.gmra.mrb[0].mxu1 %v22047_v20 }
 0x337   : > { %13136 = vmatprep.mubr.f32.mxu1 %v22048_v12  ;;  %14697 = vmatpush3.bf16.msra.mxu1 %v14694_v23  ;;  %v19299_v23 = vsel %vm4427_vm4, %v19226_v15, %v7079_v41  ;;  %v11037_v41 = vld [vmem:[%s21498_s3 + $0x6e0] sm:$0xff] }
 0x338   : > { %14699 = vmatprep.subr.bf16.mxu1 %v14698_v2 }
 0x33a   : > { %13137 = vmatmul.mubr.f32.gmra.mrb[2].mxu1 %v22049_v33 }
 0x33b   : > { %13139 = vmatprep.mubr.f32.mxu1 %v22050_v51  ;;  %14701 = vmatpush3.bf16.msra.mxu1 %v14698_v2  ;;  %v11036_v2 = vld [vmem:[%s21498_s3 + $0x6d8] sm:$0xff] }
 0x33c   : > { %14703 = vmatprep.subr.bf16.mxu1 %v14702_v9  ;;  %v14714_v6 = vpack.c.bf16 %v11036_v2, %v11035_v24  ;;  %v11044_v24 = vld [vmem:[%s21498_s3 + $0x718] sm:$0xff]  ;;  %v22139_v2 = vld [vmem:[#allocation50_spill] sm:$0xff] }
 0x33e   : > { %13140 = vmatmul.mubr.f32.gmra.mrb[4].mxu1 %v22051_v63 }
 0x33f   : > { %13142 = vmatprep.mubr.f32.mxu1 %v18375_v35  ;;  %14705 = vmatpush3.bf16.msra.mxu1 %v14702_v9  ;;  %v14718_v9 = vpack.c.bf16 %v11038_v36, %v11037_v41  ;;  %v22140_v41 = vld [vmem:[#allocation27_spill] sm:$0xff] }
 0x340   : > { %14707 = vmatprep.subr.bf16.mxu1 %v14706_v17  ;;  %v2251_v36 = vcombine.high %v22140_v41, %v22140_v41  ;;  %v22142_v41 = vld [vmem:[#allocation53_spill] sm:$0xff]  ;;  %v11048_v35 = vld [vmem:[%s21498_s3 + $0x738] sm:$0xff] }
 0x342   : > { %13143 = vmatmul.mubr.f32.gmra.mrb[6].mxu1 %v19014_v4  ;;  %v11047_v4 = vld [vmem:[%s21498_s3 + $0x730] sm:$0xff] }
 0x343   : > { %14709 = vmatpush3.bf16.msra.mxu1 %v14706_v17  ;;  %13177 = vmatprep.mubr.f32.mxu1 %v22077_v58  ;;  %v11040_v58 = vld [vmem:[%s21498_s3 + $0x6f8] sm:$0xff]  ;;  %v11041_v17 = vld [vmem:[%s21498_s3 + $0x700] sm:$0xff] }
 0x344   : > { %14711 = vmatprep.subr.bf16.mxu1 %v14710_v0  ;;  %v14722_v55 = vpack.c.bf16 %v11040_v58, %v11039_v43  ;;  %v14726_v38 = vpack.c.bf16 %v11042_v62, %v11041_v17  ;;  %v11046_v58 = vld [vmem:[%s21498_s3 + $0x728] sm:$0xff]  ;;  %v10817_v62 = vrot.slane %v2251_v36, 9 }
 0x347   : > { %14713 = vmatpush3.bf16.msra.mxu1 %v14710_v0  ;;  %v11043_v0 = vld [vmem:[%s21498_s3 + $0x710] sm:$0xff] }
 0x348   : > { %14715 = vmatprep.subr.bf16.mxu1 %v14714_v6  ;;  %v14730_v43 = vpack.c.bf16 %v11044_v24, %v11043_v0 }
 0x34b   : > { %14717 = vmatpush3.bf16.msra.mxu1 %v14714_v6  ;;  %v2200_v6 = vcombine.high %v22139_v2, %v22139_v2 }
 0x34c   : > { %14719 = vmatprep.subr.bf16.mxu1 %v14718_v9 }
 0x34d   : > { %v10673_v17 = vrot.slane %v2200_v6, 9 }
 0x34f   : > { %14721 = vmatpush3.bf16.msra.mxu1 %v14718_v9  ;;  %v11045_v9 = vld [vmem:[%s21498_s3 + $0x720] sm:$0xff] }
 0x350   : > { %14723 = vmatprep.subr.bf16.mxu1 %v14722_v55  ;;  %v14734_v2 = vpack.c.bf16 %v11046_v58, %v11045_v9  ;;  %v3780_v9 = vmax.f32 %v2251_v36, %v10817_v62  ;;  %v22145_v58 = vmax.f32 %v18656_v37, %v18676_v30  ;;  %v22148_v37 = vmax.f32 %v18671_v18, %v18686_v26  ;;  %v11052_v36 = vld [vmem:[%s21498_s3 + $0x758] sm:$0xff] }
 0x352   : > { %v4066_v30 = vmax.f32 %v22148_v37, 0.0  ;;  %v11057_v37 = vld [vmem:[%s21498_s3 + $0x780] sm:$0xff] }
 0x353   : > { %14725 = vmatpush3.bf16.msra.mxu1 %v14722_v55  ;;  %v22141_v55 = vld [vmem:[#allocation33_spill] sm:$0xff] }
 0x354   : > { %14727 = vmatprep.subr.bf16.mxu1 %v14726_v38  ;;  %v22143_v0 = vmax.f32 %v22141_v55, %v22142_v41  ;;  %v4064_v55 = vmax.f32 %v22145_v58, 0.0  ;;  %v22146_v41 = vmax.f32 %v18648_v27, %v18661_v57  ;;  %v11050_v27 = vld [vmem:[%s21498_s3 + $0x748] sm:$0xff]  ;;  %v11053_v58 = vld [vmem:[%s21498_s3 + $0x760] sm:$0xff] }
 0x356   : > { %13178 = vmatmul.mubr.f32.vlgmr.msra.gmra.mrb[0].mxu1 %v22078_v21  ;;  %v4062_v24 = vmax.f32 %v22143_v0, 0.0  ;;  %v22144_v21 = vmax.f32 %v18652_v59, %v18663_v48  ;;  %v4067_v0 = vmax.f32 %v22146_v41, 0.0  ;;  %v14738_v48 = vpack.c.bf16 %v11048_v35, %v11047_v4  ;;  %v11051_v4 = vld [vmem:[%s21498_s3 + $0x750] sm:$0xff] }
 0x357   : > { %13180 = vmatprep.mubr.f32.mxu1 %v22087_v14  ;;  %14729 = vmatpush3.bf16.msra.mxu1 %v14726_v38  ;;  %v3204_v38 = vmax.f32 %v2200_v6, %v10673_v17  ;;  %v22147_v14 = vmax.f32 %v18658_v54, %v18678_v10  ;;  %v11049_v6 = vld [vmem:[%s21498_s3 + $0x740] sm:$0xff]  ;;  %v19385_v35 = vrot.slane %v4064_v55, %v16232_v7  ;;  %v11054_v55 = vld [vmem:[%s21498_s3 + $0x768] sm:$0xff] }
 0x358   : > { %14731 = vmatprep.subr.bf16.mxu1 %v14730_v43  ;;  %v4063_v63 = vmax.f32 %v22144_v21, 0.0  ;;  %v19369_v21 = vrot.slane %v4062_v24, %v16232_v7  ;;  %v14742_v10 = vpack.c.bf16 %v11050_v27, %v11049_v6  ;;  %v14750_v41 = vpack.c.bf16 %v11054_v55, %v11053_v58  ;;  %v22150_v6 = vld [vmem:[#allocation32_spill] sm:$0xff]  ;;  %v11063_v55 = vld [vmem:[%s21498_s3 + $0x7b0] sm:$0xff] }
 0x359   : > { %v4065_v59 = vmax.f32 %v22147_v14, 0.0  ;;  %v3924_v57 = vmax.f32 %v3204_v38, %v3780_v9  ;;  %v14746_v38 = vpack.c.bf16 %v11052_v36, %v11051_v4  ;;  %v2185_v27 = vcombine.high %v22150_v6, %v22150_v6  ;;  %v11060_v4 = vld [vmem:[%s21498_s3 + $0x798] sm:$0xff] }
 0x35a   : > { %13181 = vmatmul.mubr.f32.gmra.mrb[2].mxu1 %v22090_v3  ;;  %v19381_v54 = vrot.slane %v4063_v63, %v16232_v7  ;;  %v7390_v18 = vsel %vm4427_vm4, %v19369_v21, %v19226_v15  ;;  %v19395_v63 = vrot.slane %v4067_v0, %v16232_v7  ;;  %v19406_v15 = vrot.slane %v4066_v30, %v16232_v7  ;;  %v11055_v0 = vld [vmem:[%s21498_s3 + $0x770] sm:$0xff]  ;;  %v11058_v30 = vld [vmem:[%s21498_s3 + $0x788] sm:$0xff] }
 0x35b   : > { %13183 = vmatprep.mubr.f32.mxu1 %v22092_v1  ;;  %14733 = vmatpush3.bf16.msra.mxu1 %v14730_v43  ;;  %v19392_v26 = vrot.slane %v4065_v59, %v16232_v7  ;;  %v4068_v43 = vmax.f32 %v3924_v57, 0.0  ;;  %v11056_v59 = vld [vmem:[%s21498_s3 + $0x778] sm:$0xff]  ;;  %v22151_v57 = vld [vmem:[#allocation29_spill] sm:$0xff]  ;;  %v2199_v36 = vrot.slane %v2185_v27, %v22003_v32 }
 0x35c   : > { %14735 = vmatprep.subr.bf16.mxu1 %v14734_v2  ;;  %v7391_v14 = vsel %vm4429_vm5, %v19381_v54, %v7390_v18  ;;  %v2236_v18 = vcombine.high %v22151_v57, %v22151_v57  ;;  %v7533_v27 = vsel %vm4427_vm4, %v19381_v54, %v19369_v21 }
 0x35d   : > { %v7392_v17 = vsel %vm4431_vm6, %v19385_v35, %v7391_v14  ;;  %v11059_v14 = vld [vmem:[%s21498_s3 + $0x790] sm:$0xff] }
 0x35e   : > { %13184 = vmatmul.mubr.f32.gmra.mrb[4].mxu1 %v22093_v31  ;;  %v7393_v62 = vsel %vm4433_vm7, %v19392_v26, %v7392_v17  ;;  %v14762_v17 = vpack.c.bf16 %v11060_v4, %v11059_v14  ;;  %v11068_v14 = vld [vmem:[%s21498_s3 + $0x7d8] sm:$0xff] }
 0x35f   : > { %13186 = vmatprep.mubr.f32.mxu1 %v22097_v40  ;;  %14737 = vmatpush3.bf16.msra.mxu1 %v14734_v2  ;;  %v19415_v2 = vrot.slane %v4068_v43, %v16232_v7  ;;  %v7394_v24 = vsel %vm4435_vm8, %v19406_v15, %v7393_v62  ;;  %v2250_v43 = vrot.slane %v2236_v18, %v22003_v32  ;;  %v11061_v62 = vld [vmem:[%s21498_s3 + $0x7a0] sm:$0xff] }
 0x360   : > { %14739 = vmatprep.subr.bf16.mxu1 %v14738_v48  ;;  %v7395_v9 = vsel %vm4437_vm9, %v19395_v63, %v7394_v24  ;;  %v11062_v24 = vld [vmem:[%s21498_s3 + $0x7a8] sm:$0xff]  ;;  %v7534_v18 = vsel %vm4429_vm5, %v19385_v35, %v7533_v27 }
 0x361   : > { %v14766_v58 = vpack.c.bf16 %v11062_v24, %v11061_v62 }
 0x362   : > { %13187 = vmatmul.mubr.f32.gmra.mrb[6].mxu1 %v19096_v50 }
 0x363   : > { %14741 = vmatpush3.bf16.msra.mxu1 %v14738_v48  ;;  %13221 = vmatprep.mubr.f32.mxu1 %v22102_v25  ;;  %v19429_v25 = vsel %vm4439_vm10, %v19415_v2, %v7395_v9  ;;  %v14754_v48 = vpack.c.bf16 %v11056_v59, %v11055_v0  ;;  %v10818_v9 = vrot.slane %v2250_v43, 9 }
 0x364   : > { %14743 = vmatprep.subr.bf16.mxu1 %v14742_v10  ;;  %22149 = vst [vmem:[#allocation92_spill] sm:$0xff] %v19429_v25 }
 0x365   : > { %v3781_v59 = vmax.f32 %v2250_v43, %v10818_v9 }
 0x367   : > { %14745 = vmatpush3.bf16.msra.mxu1 %v14742_v10  ;;  %v14758_v10 = vpack.c.bf16 %v11058_v30, %v11057_v37  ;;  %v11065_v37 = vld [vmem:[%s21498_s3 + $0x7c0] sm:$0xff]  ;;  %v11066_v30 = vld [vmem:[%s21498_s3 + $0x7c8] sm:$0xff] }
 0x368   : > { %14747 = vmatprep.subr.bf16.mxu1 %v14746_v38  ;;  %v14774_v57 = vpack.c.bf16 %v11066_v30, %v11065_v37  ;;  %v11071_v37 = vld [vmem:[%s21498_s3 + $0x7f0] sm:$0xff]  ;;  %v11072_v30 = vld [vmem:[%s21498_s3 + $0x7f8] sm:$0xff] }
 0x36b   : > { %14749 = vmatpush3.bf16.msra.mxu1 %v14746_v38  ;;  %v10674_v38 = vrot.slane %v2199_v36, 9 }
 0x36c   : > { %14751 = vmatprep.subr.bf16.mxu1 %v14750_v41 }
 0x36d   : > { %v3205_v0 = vmax.f32 %v2199_v36, %v10674_v38 }
 0x36f   : > { %14753 = vmatpush3.bf16.msra.mxu1 %v14750_v41  ;;  %v11064_v41 = vld [vmem:[%s21498_s3 + $0x7b8] sm:$0xff]  ;;  %v3925_v6 = vmax.f32 %v3205_v0, %v3781_v59  ;;  %v2201_v59 = vcombine.high %v2199_v36, %v2199_v36  ;;  %v11074_v36 = vld [vmem:[%s21498_s3 + $0x808] sm:$0xff] }
 0x370   : > { %14755 = vmatprep.subr.bf16.mxu1 %v14754_v48 }
 0x371   : > { %v4069_v4 = vmax.f32 %v3925_v6, 0.0  ;;  %v14786_v6 = vpack.c.bf16 %v11072_v30, %v11071_v37  ;;  %v10675_v27 = vrot.slane %v2201_v59, 9 }
 0x373   : > { %14757 = vmatpush3.bf16.msra.mxu1 %v14754_v48  ;;  %v14770_v48 = vpack.c.bf16 %v11064_v41, %v11063_v55  ;;  %v7532_v24 = vrot.slane %v4069_v4, %v16232_v7  ;;  %v11069_v55 = vld [vmem:[%s21498_s3 + $0x7e0] sm:$0xff]  ;;  %v11070_v41 = vld [vmem:[%s21498_s3 + $0x7e8] sm:$0xff]  ;;  %v3206_v4 = vmax.f32 %v2201_v59, %v10675_v27 }
 0x374   : > { %14759 = vmatprep.subr.bf16.mxu1 %v14758_v10  ;;  %v14782_v0 = vpack.c.bf16 %v11070_v41, %v11069_v55  ;;  %v11077_v41 = vld [vmem:[%s21498_s3 + $0x820] sm:$0xff] }
 0x376   : > { %13222 = vmatmul.mubr.f32.vlgmr.msra.gmra.mrb[0].mxu1 %v22103_v61 }
 0x377   : > { %13224 = vmatprep.mubr.f32.mxu1 %v22104_v16  ;;  %14761 = vmatpush3.bf16.msra.mxu1 %v14758_v10  ;;  %v11067_v10 = vld [vmem:[%s21498_s3 + $0x7d0] sm:$0xff] }
 0x378   : > { %14763 = vmatprep.subr.bf16.mxu1 %v14762_v17  ;;  %v14778_v9 = vpack.c.bf16 %v11068_v14, %v11067_v10  ;;  %v11075_v10 = vld [vmem:[%s21498_s3 + $0x810] sm:$0xff]  ;;  %v11076_v14 = vld [vmem:[%s21498_s3 + $0x818] sm:$0xff] }
 0x37a   : > { %13225 = vmatmul.mubr.f32.gmra.mrb[2].mxu1 %v22105_v22 }
 0x37b   : > { %13227 = vmatprep.mubr.f32.mxu1 %v22107_v34  ;;  %14765 = vmatpush3.bf16.msra.mxu1 %v14762_v17  ;;  %v7535_v17 = vsel %vm4431_vm6, %v19392_v26, %v7534_v18 }
 0x37c   : > { %14767 = vmatprep.subr.bf16.mxu1 %v14766_v58  ;;  %v7536_v62 = vsel %vm4433_vm7, %v19406_v15, %v7535_v17 }
 0x37d   : > { %v7537_v38 = vsel %vm4435_vm8, %v19395_v63, %v7536_v62  ;;  %v7106_v62 = vsel %vm4431_vm6, %v19369_v21, %v19239_v53 }
 0x37e   : > { %13228 = vmatmul.mubr.f32.gmra.mrb[4].mxu1 %v22109_v56 }
 0x37f   : > { %13230 = vmatprep.mubr.f32.mxu1 %v18748_v5  ;;  %14769 = vmatpush3.bf16.msra.mxu1 %v14766_v58  ;;  %v7538_v58 = vsel %vm4437_vm9, %v19415_v2, %v7537_v38 }
 0x380   : > { %14771 = vmatprep.subr.bf16.mxu1 %v14770_v48 }
 0x382   : > { %13231 = vmatmul.mubr.f32.gmra.mrb[6].mxu1 %v19154_v52 }
 0x383   : > { %14773 = vmatpush3.bf16.msra.mxu1 %v14770_v48  ;;  %13265 = vmatprep.mubr.f32.mxu1 %v22117_v28  ;;  %v19508_v28 = vsel %vm4439_vm10, %v7532_v24, %v7538_v58  ;;  %v2252_v48 = vcombine.high %v2250_v43, %v2250_v43  ;;  %v14794_v58 = vpack.c.bf16 %v11076_v14, %v11075_v10  ;;  %v11081_v14 = vld [vmem:[%s21498_s3 + $0x840] sm:$0xff] }
 0x384   : > { %14775 = vmatprep.subr.bf16.mxu1 %v14774_v57 }
 0x385   : > { %v10819_v18 = vrot.slane %v2252_v48, 9 }
 0x387   : > { %14777 = vmatpush3.bf16.msra.mxu1 %v14774_v57  ;;  %v11073_v57 = vld [vmem:[%s21498_s3 + $0x800] sm:$0xff]  ;;  %v3782_v17 = vmax.f32 %v2252_v48, %v10819_v18  ;;  %v7107_v48 = vsel %vm4433_vm7, %v19381_v54, %v7106_v62 }
 0x388   : > { %14779 = vmatprep.subr.bf16.mxu1 %v14778_v9  ;;  %v14790_v43 = vpack.c.bf16 %v11074_v36, %v11073_v57  ;;  %v7108_v57 = vsel %vm4435_vm8, %v19385_v35, %v7107_v48  ;;  %v11079_v36 = vld [vmem:[%s21498_s3 + $0x830] sm:$0xff]  ;;  %v11089_v48 = vld [vmem:[%s21498_s3 + $0x880] sm:$0xff] }
 0x389   : > { %v3926_v38 = vmax.f32 %v3206_v4, %v3782_v17  ;;  %v11082_v4 = vld [vmem:[%s21498_s3 + $0x848] sm:$0xff] }
 0x38a   : > { %v14806_v62 = vpack.c.bf16 %v11082_v4, %v11081_v14  ;;  %v22153_v14 = vld [vmem:[#allocation31_spill] sm:$0xff] }
 0x38b   : > { %14781 = vmatpush3.bf16.msra.mxu1 %v14778_v9  ;;  %v7676_v9 = vsel %vm4427_vm4, %v19385_v35, %v19381_v54  ;;  %v4070_v59 = vmax.f32 %v3926_v38, 0.0  ;;  %v11083_v38 = vld [vmem:[%s21498_s3 + $0x850] sm:$0xff] }
 0x38c   : > { %14783 = vmatprep.subr.bf16.mxu1 %v14782_v0  ;;  %v7677_v55 = vsel %vm4429_vm5, %v19392_v26, %v7676_v9  ;;  %v11084_v9 = vld [vmem:[%s21498_s3 + $0x858] sm:$0xff] }
 0x38d   : > { %v7678_v53 = vsel %vm4431_vm6, %v19406_v15, %v7677_v55  ;;  %v7675_v30 = vrot.slane %v4070_v59, %v16232_v7  ;;  %v11085_v55 = vld [vmem:[%s21498_s3 + $0x860] sm:$0xff]  ;;  %v11087_v59 = vld [vmem:[%s21498_s3 + $0x870] sm:$0xff] }
 0x38e   : > { %v7679_v37 = vsel %vm4433_vm7, %v19395_v63, %v7678_v53 }
 0x38f   : > { %14785 = vmatpush3.bf16.msra.mxu1 %v14782_v0  ;;  %v11078_v0 = vld [vmem:[%s21498_s3 + $0x828] sm:$0xff] }
 0x390   : > { %14787 = vmatprep.subr.bf16.mxu1 %v14786_v6  ;;  %v14798_v27 = vpack.c.bf16 %v11078_v0, %v11077_v41  ;;  %v11086_v41 = vld [vmem:[%s21498_s3 + $0x868] sm:$0xff] }
 0x391   : > { %v14814_v0 = vpack.c.bf16 %v11086_v41, %v11085_v55  ;;  %v22159_v55 = vld [vmem:[#allocation60_spill] sm:$0xff] }
 0x393   : > { %14789 = vmatpush3.bf16.msra.mxu1 %v14786_v6  ;;  %v7680_v6 = vsel %vm4435_vm8, %v19415_v2, %v7679_v37  ;;  %v7109_v2 = vsel %vm4437_vm9, %v19392_v26, %v7108_v57  ;;  %v11090_v37 = vld [vmem:[%s21498_s3 + $0x888] sm:$0xff] }
 0x394   : > { %14791 = vmatprep.subr.bf16.mxu1 %v14790_v43  ;;  %v7681_v18 = vsel %vm4437_vm9, %v7532_v24, %v7680_v6  ;;  %v19579_v17 = vsel %vm4439_vm10, %v19406_v15, %v7109_v2  ;;  %v11091_v6 = vld [vmem:[%s21498_s3 + $0x890] sm:$0xff] }
 0x395   : > { %v19563_v10 = vsel %vm4439_vm10, %v7675_v30, %v7681_v18  ;;  %v14822_v30 = vpack.c.bf16 %v11090_v37, %v11089_v48  ;;  %v7248_v18 = vsel %vm4429_vm5, %v19369_v21, %v19299_v23  ;;  %v22155_v21 = vld [vmem:[#allocation6_spill] sm:$0xff] }
 0x396   : > { %13266 = vmatmul.mubr.f32.vlgmr.msra.gmra.mrb[0].mxu1 %v22118_v39  ;;  %v7249_v2 = vsel %vm4431_vm6, %v19381_v54, %v7248_v18  ;;  %v11098_v18 = vld [vmem:[%s21498_s3 + $0x8c8] sm:$0xff] }
 0x397   : > { %13268 = vmatprep.mubr.f32.mxu1 %v22119_v44  ;;  %14793 = vmatpush3.bf16.msra.mxu1 %v14790_v43  ;;  %v11080_v43 = vld [vmem:[%s21498_s3 + $0x838] sm:$0xff]  ;;  %v7250_v54 = vsel %vm4433_vm7, %v19385_v35, %v7249_v2 }
 0x398   : > { %14795 = vmatprep.subr.bf16.mxu1 %v14794_v58  ;;  %v14802_v24 = vpack.c.bf16 %v11080_v43, %v11079_v36  ;;  %v11093_v36 = vld [vmem:[%s21498_s3 + $0x8a0] sm:$0xff]  ;;  %v11094_v43 = vld [vmem:[%s21498_s3 + $0x8a8] sm:$0xff]  ;;  %v7251_v35 = vsel %vm4435_vm8, %v19392_v26, %v7250_v54 }
 0x399   : > { %v11110_v54 = vld [vmem:[%s21498_s3 + $0x928] sm:$0xff] }
 0x39a   : > { %13269 = vmatmul.mubr.f32.gmra.mrb[2].mxu1 %v22120_v60 }
 0x39b   : > { %13271 = vmatprep.mubr.f32.mxu1 %v22121_v11  ;;  %14797 = vmatpush3.bf16.msra.mxu1 %v14794_v58  ;;  %v14810_v58 = vpack.c.bf16 %v11084_v9, %v11083_v38 }
 0x39c   : > { %14799 = vmatprep.subr.bf16.mxu1 %v14798_v27 }
 0x39e   : > { %13272 = vmatmul.mubr.f32.gmra.mrb[4].mxu1 %v22122_v13 }
 0x39f   : > { %13274 = vmatprep.mubr.f32.mxu1 %v18951_v8  ;;  %14801 = vmatpush3.bf16.msra.mxu1 %v14798_v27  ;;  %v11092_v27 = vld [vmem:[%s21498_s3 + $0x898] sm:$0xff] }
 0x3a0   : > { %14803 = vmatprep.subr.bf16.mxu1 %v14802_v24  ;;  %v14826_v57 = vpack.c.bf16 %v11092_v27, %v11091_v6  ;;  %v11097_v27 = vld [vmem:[%s21498_s3 + $0x8c0] sm:$0xff] }
 0x3a2   : > { %13275 = vmatmul.mubr.f32.gmra.mrb[6].mxu1 %v19579_v17 }
 0x3a3   : > { %14805 = vmatpush3.bf16.msra.mxu1 %v14802_v24  ;;  %13309 = vmatprep.mubr.f32.mxu1 %v22124_v42  ;;  %v11088_v42 = vld [vmem:[%s21498_s3 + $0x878] sm:$0xff]  ;;  %v22152_v24 = vld [vmem:[#allocation37_spill] sm:$0xff] }
 0x3a4   : > { %14807 = vmatprep.subr.bf16.mxu1 %v14806_v62  ;;  %v14818_v53 = vpack.c.bf16 %v11088_v42, %v11087_v59  ;;  %v22154_v4 = vmax.f32 %v22152_v24, %v22153_v14  ;;  %v14830_v59 = vpack.c.bf16 %v11094_v43, %v11093_v36  ;;  %v11095_v42 = vld [vmem:[%s21498_s3 + $0x8b0] sm:$0xff]  ;;  %v14838_v36 = vpack.c.bf16 %v11098_v18, %v11097_v27  ;;  %v11100_v24 = vld [vmem:[%s21498_s3 + $0x8d8] sm:$0xff]  ;;  %v11113_v27 = vld [vmem:[%s21498_s3 + $0x940] sm:$0xff] }
 0x3a5   : > { %v11114_v18 = vld [vmem:[%s21498_s3 + $0x948] sm:$0xff] }
 0x3a6   : > { %v4071_v23 = vmax.f32 %v22154_v4, 0.0  ;;  %v11102_v4 = vld [vmem:[%s21498_s3 + $0x8e8] sm:$0xff] }
 0x3a7   : > { %14809 = vmatpush3.bf16.msra.mxu1 %v14806_v62  ;;  %v22156_v62 = vld [vmem:[#allocation58_spill] sm:$0xff] }
 0x3a8   : > { %14811 = vmatprep.subr.bf16.mxu1 %v14810_v58  ;;  %v22157_v38 = vmax.f32 %v22155_v21, %v22156_v62  ;;  %v7825_v48 = vrot.slane %v4071_v23, %v16232_v7  ;;  %v11103_v21 = vld [vmem:[%s21498_s3 + $0x8f0] sm:$0xff] }
 0x3aa   : > { %v4072_v9 = vmax.f32 %v22157_v38, 0.0  ;;  %v11105_v38 = vld [vmem:[%s21498_s3 + $0x900] sm:$0xff] }
 0x3ab   : > { %14813 = vmatpush3.bf16.msra.mxu1 %v14810_v58  ;;  %v22158_v58 = vld [vmem:[#allocation40_spill] sm:$0xff] }
 0x3ac   : > { %14815 = vmatprep.subr.bf16.mxu1 %v14814_v0  ;;  %v22160_v41 = vmax.f32 %v22158_v58, %v22159_v55  ;;  %v19646_v37 = vrot.slane %v4072_v9, %v16232_v7  ;;  %v11106_v9 = vld [vmem:[%s21498_s3 + $0x908] sm:$0xff]  ;;  %v11107_v55 = vld [vmem:[%s21498_s3 + $0x910] sm:$0xff] }
 0x3ad   : > { %v14854_v58 = vpack.c.bf16 %v11106_v9, %v11105_v38  ;;  %v11121_v9 = vld [vmem:[%s21498_s3 + $0x980] sm:$0xff] }
 0x3ae   : > { %v7854_v26 = vsel %vm4427_vm4, %v19646_v37, %v7825_v48  ;;  %v11112_v48 = vld [vmem:[%s21498_s3 + $0x938] sm:$0xff] }
 0x3af   : > { %14817 = vmatpush3.bf16.msra.mxu1 %v14814_v0  ;;  %v4073_v0 = vmax.f32 %v22160_v41, 0.0  ;;  %v11108_v41 = vld [vmem:[%s21498_s3 + $0x918] sm:$0xff] }
 0x3b0   : > { %14819 = vmatprep.subr.bf16.mxu1 %v14818_v53 }
 0x3b3   : > { %14821 = vmatpush3.bf16.msra.mxu1 %v14818_v53  ;;  %v11096_v53 = vld [vmem:[%s21498_s3 + $0x8b8] sm:$0xff] }
 0x3b4   : > { %14823 = vmatprep.subr.bf16.mxu1 %v14822_v30  ;;  %v14834_v6 = vpack.c.bf16 %v11096_v53, %v11095_v42  ;;  %v11111_v53 = vld [vmem:[%s21498_s3 + $0x930] sm:$0xff] }
 0x3b6   : > { %13310 = vmatmul.mubr.f32.vlgmr.msra.gmra.mrb[0].mxu1 %v22131_v46 }
 0x3b7   : > { %13312 = vmatprep.mubr.f32.mxu1 %v22135_v19  ;;  %14825 = vmatpush3.bf16.msra.mxu1 %v14822_v30  ;;  %v19652_v30 = vrot.slane %v4073_v0, %v16232_v7  ;;  %v14858_v0 = vpack.c.bf16 %v11108_v41, %v11107_v55  ;;  %v11123_v41 = vld [vmem:[%s21498_s3 + $0x990] sm:$0xff] }
 0x3b8   : > { %14827 = vmatprep.subr.bf16.mxu1 %v14826_v57 }
 0x3b9   : > { %v19668_v43 = vsel %vm4429_vm5, %v19652_v30, %v7854_v26  ;;  %v22163_v26 = vld [vmem:[#allocation70_spill] sm:$0xff] }
 0x3ba   : > { %13313 = vmatmul.mubr.f32.gmra.mrb[2].mxu1 %v22136_v29 }
 0x3bb   : > { %13315 = vmatprep.mubr.f32.mxu1 %v22137_v45  ;;  %14829 = vmatpush3.bf16.msra.mxu1 %v14826_v57  ;;  %v7252_v57 = vsel %vm4437_vm9, %v19406_v15, %v7251_v35  ;;  %v11099_v15 = vld [vmem:[%s21498_s3 + $0x8d0] sm:$0xff] }
 0x3bc   : > { %14831 = vmatprep.subr.bf16.mxu1 %v14830_v59  ;;  %v19672_v2 = vsel %vm4439_vm10, %v19395_v63, %v7252_v57  ;;  %v14842_v14 = vpack.c.bf16 %v11100_v24, %v11099_v15  ;;  %v11101_v63 = vld [vmem:[%s21498_s3 + $0x8e0] sm:$0xff]  ;;  %v22161_v35 = vld [vmem:[#allocation11_spill] sm:$0xff]  ;;  %v22162_v57 = vld [vmem:[#allocation66_spill] sm:$0xff]  ;;  %v14870_v15 = vpack.c.bf16 %v11114_v18, %v11113_v27 }
 0x3bd   : > { %v14846_v23 = vpack.c.bf16 %v11102_v4, %v11101_v63  ;;  %v11115_v24 = vld [vmem:[%s21498_s3 + $0x950] sm:$0xff]  ;;  %v22164_v63 = vld [vmem:[#allocation17_spill] sm:$0xff] }
 0x3be   : > { %13316 = vmatmul.mubr.f32.gmra.mrb[4].mxu1 %v22138_v49  ;;  %v11126_v27 = vld [vmem:[%s21498_s3 + $0x9a8] sm:$0xff] }
 0x3bf   : > { %13318 = vmatprep.mubr.f32.mxu1 %v18993_v47  ;;  %14833 = vmatpush3.bf16.msra.mxu1 %v14830_v59  ;;  %v11109_v59 = vld [vmem:[%s21498_s3 + $0x920] sm:$0xff]  ;;  %v22167_v18 = vld [vmem:[#allocation18_spill] sm:$0xff] }
 0x3c0   : > { %14835 = vmatprep.subr.bf16.mxu1 %v14834_v6  ;;  %v14862_v42 = vpack.c.bf16 %v11110_v54, %v11109_v59  ;;  %v22165_v59 = vld [vmem:[#allocation13_spill] sm:$0xff] }
 0x3c1   : > { %v2302_v54 = vcombine.high %v22165_v59, %v22165_v59  ;;  %v22175_v59 = vld [vmem:[#allocation93_spill] sm:$0xff] }
 0x3c2   : > { %13319 = vmatmul.mubr.f32.gmra.mrb[6].mxu1 %v19672_v2 }
 0x3c3   : > { %14837 = vmatpush3.bf16.msra.mxu1 %v14834_v6  ;;  %13353 = vmatprep.mubr.f32.mxu1 %v22047_v20  ;;  %v11104_v20 = vld [vmem:[%s21498_s3 + $0x8f8] sm:$0xff]  ;;  %v14866_v6 = vpack.c.bf16 %v11112_v48, %v11111_v53 }
 0x3c4   : > { %14839 = vmatprep.subr.bf16.mxu1 %v14838_v36  ;;  %v14850_v62 = vpack.c.bf16 %v11104_v20, %v11103_v21  ;;  %v11119_v20 = vld [vmem:[%s21498_s3 + $0x970] sm:$0xff] }
 0x3c7   : > { %14841 = vmatpush3.bf16.msra.mxu1 %v14838_v36  ;;  %v19733_v36 = vsel %vm4427_vm4, %v19652_v30, %v19646_v37  ;;  %v11117_v37 = vld [vmem:[%s21498_s3 + $0x960] sm:$0xff] }
 0x3c8   : > { %14843 = vmatprep.subr.bf16.mxu1 %v14842_v14 }
 0x3cb   : > { %14845 = vmatpush3.bf16.msra.mxu1 %v14842_v14  ;;  %v11116_v14 = vld [vmem:[%s21498_s3 + $0x958] sm:$0xff] }
 0x3cc   : > { %14847 = vmatprep.subr.bf16.mxu1 %v14846_v23  ;;  %v14874_v4 = vpack.c.bf16 %v11116_v14, %v11115_v24 }
 0x3cf   : > { %14849 = vmatpush3.bf16.msra.mxu1 %v14846_v23  ;;  %v11118_v23 = vld [vmem:[%s21498_s3 + $0x968] sm:$0xff] }
 0x3d0   : > { %14851 = vmatprep.subr.bf16.mxu1 %v14850_v62  ;;  %v14878_v21 = vpack.c.bf16 %v11118_v23, %v11117_v37 }
 0x3d3   : > { %14853 = vmatpush3.bf16.msra.mxu1 %v14850_v62  ;;  %v11120_v62 = vld [vmem:[%s21498_s3 + $0x978] sm:$0xff] }
 0x3d4   : > { %14855 = vmatprep.subr.bf16.mxu1 %v14854_v58  ;;  %v14882_v38 = vpack.c.bf16 %v11120_v62, %v11119_v20  ;;  %v11128_v20 = vld [vmem:[%s21498_s3 + $0x9b8] sm:$0xff]  ;;  %v22171_v62 = vld [vmem:[#allocation73_spill] sm:$0xff] }
 0x3d6   : > { %13354 = vmatmul.mubr.f32.vlgmr.msra.gmra.mrb[0].mxu1 %v22048_v12 }
 0x3d7   : > { %13356 = vmatprep.mubr.f32.mxu1 %v22049_v33  ;;  %14857 = vmatpush3.bf16.msra.mxu1 %v14854_v58  ;;  %v11122_v58 = vld [vmem:[%s21498_s3 + $0x988] sm:$0xff] }
 0x3d8   : > { %14859 = vmatprep.subr.bf16.mxu1 %v14858_v0  ;;  %v14886_v55 = vpack.c.bf16 %v11122_v58, %v11121_v9 }
 0x3da   : > { %13357 = vmatmul.mubr.f32.gmra.mrb[2].mxu1 %v22050_v51 }
 0x3db   : > { %13359 = vmatprep.mubr.f32.mxu1 %v22161_v35  ;;  %14861 = vmatpush3.bf16.msra.mxu1 %v14858_v0  ;;  %v11124_v0 = vld [vmem:[%s21498_s3 + $0x998] sm:$0xff] }
 0x3dc   : > { %14863 = vmatprep.subr.bf16.mxu1 %v14862_v42  ;;  %v14890_v48 = vpack.c.bf16 %v11124_v0, %v11123_v41  ;;  %v22174_v0 = vld [vmem:[#allocation78_spill] sm:$0xff] }
 0x3de   : > { %13360 = vmatmul.mubr.f32.gmra.mrb[4].mxu1 %v22162_v57 }
 0x3df   : > { %13362 = vmatprep.mubr.f32.mxu1 %v22163_v26  ;;  %14865 = vmatpush3.bf16.msra.mxu1 %v14862_v42  ;;  %v22166_v42 = vld [vmem:[#allocation9_spill] sm:$0xff] }
 0x3e0   : > { %14867 = vmatprep.subr.bf16.mxu1 %v14866_v6  ;;  %v2353_v53 = vcombine.high %v22166_v42, %v22166_v42  ;;  %v22176_v42 = vmax.f32 %v22174_v0, %v22175_v59  ;;  %v11130_v0 = vld [vmem:[%s21498_s3 + $0x9c8] sm:$0xff] }
 0x3e2   : > { %13363 = vmatmul.mubr.f32.gmra.mrb[6].mxu1 %v19429_v25  ;;  %v10829_v24 = vrot.slane %v2353_v53, 9 }
 0x3e3   : > { %14869 = vmatpush3.bf16.msra.mxu1 %v14866_v6  ;;  %13397 = vmatprep.mubr.f32.mxu1 %v22164_v63  ;;  %v11125_v6 = vld [vmem:[%s21498_s3 + $0x9a0] sm:$0xff]  ;;  %v22168_v63 = vld [vmem:[#allocation67_spill] sm:$0xff] }
 0x3e4   : > { %14871 = vmatprep.subr.bf16.mxu1 %v14870_v15  ;;  %v14894_v14 = vpack.c.bf16 %v11126_v27, %v11125_v6  ;;  %v3792_v41 = vmax.f32 %v2353_v53, %v10829_v24  ;;  %v4076_v6 = vmax.f32 %v22176_v42, 0.0  ;;  %v22177_v27 = vld [vmem:[#allocation22_spill] sm:$0xff] }
 0x3e5   : > { %v22183_v53 = vld [vmem:[#allocation86_spill] sm:$0xff] }
 0x3e7   : > { %14873 = vmatpush3.bf16.msra.mxu1 %v14870_v15  ;;  %v10685_v15 = vrot.slane %v2302_v54, 9 }
 0x3e8   : > { %14875 = vmatprep.subr.bf16.mxu1 %v14874_v4 }
 0x3eb   : > { %14877 = vmatpush3.bf16.msra.mxu1 %v14874_v4  ;;  %v22169_v4 = vld [vmem:[#allocation62_spill] sm:$0xff] }
 0x3ec   : > { %14879 = vmatprep.subr.bf16.mxu1 %v14878_v21  ;;  %v22170_v37 = vmax.f32 %v22168_v63, %v22169_v4  ;;  %v22178_v63 = vld [vmem:[#allocation57_spill] sm:$0xff] }
 0x3ed   : > { %v22179_v4 = vmax.f32 %v22177_v27, %v22178_v63 }
 0x3ee   : > { %v4074_v23 = vmax.f32 %v22170_v37, 0.0 }
 0x3ef   : > { %14881 = vmatpush3.bf16.msra.mxu1 %v14878_v21  ;;  %v11127_v21 = vld [vmem:[%s21498_s3 + $0x9b0] sm:$0xff]  ;;  %v4079_v37 = vmax.f32 %v22179_v4, 0.0 }
 0x3f0   : > { %14883 = vmatprep.subr.bf16.mxu1 %v14882_v38 }
 0x3f3   : > { %14885 = vmatpush3.bf16.msra.mxu1 %v14882_v38  ;;  %v22172_v38 = vld [vmem:[#allocation85_spill] sm:$0xff] }
 0x3f4   : > { %14887 = vmatprep.subr.bf16.mxu1 %v14886_v55  ;;  %v22173_v9 = vmax.f32 %v22171_v62, %v22172_v38  ;;  %v14898_v38 = vpack.c.bf16 %v11128_v20, %v11127_v21 }
 0x3f6   : > { %13398 = vmatmul.mubr.f32.vlgmr.msra.gmra.mrb[0].mxu1 %v22167_v18  ;;  %v4075_v58 = vmax.f32 %v22173_v9, 0.0  ;;  %v22181_v18 = vld [vmem:[#allocation55_spill] sm:$0xff] }
 0x3f7   : > { %13400 = vmatprep.mubr.f32.mxu1 %v22090_v3  ;;  %14889 = vmatpush3.bf16.msra.mxu1 %v14886_v55  ;;  %v3216_v55 = vmax.f32 %v2302_v54, %v10685_v15  ;;  %v22180_v3 = vld [vmem:[#allocation77_spill] sm:$0xff]  ;;  %v19803_v54 = vrot.slane %v4074_v23, %v16232_v7  ;;  %v22184_v15 = vld [vmem:[#allocation16_spill] sm:$0xff] }
 0x3f8   : > { %14891 = vmatprep.subr.bf16.mxu1 %v14890_v48  ;;  %v22182_v25 = vmax.f32 %v22180_v3, %v22181_v18  ;;  %v22185_v24 = vmax.f32 %v22183_v53, %v22184_v15  ;;  %v19815_v3 = vrot.slane %v4075_v58, %v16232_v7  ;;  %v19829_v58 = vrot.slane %v4079_v37, %v16232_v7  ;;  %v11135_v15 = vld [vmem:[%s21498_s3 + $0x9f0] sm:$0xff] }
 0x3f9   : > { %v3936_v18 = vmax.f32 %v3216_v55, %v3792_v41  ;;  %v8140_v23 = vsel %vm4427_vm4, %v19803_v54, %v19652_v30  ;;  %v11132_v55 = vld [vmem:[%s21498_s3 + $0x9d8] sm:$0xff] }
 0x3fa   : > { %13401 = vmatmul.mubr.f32.gmra.mrb[2].mxu1 %v22092_v1  ;;  %v4077_v62 = vmax.f32 %v22182_v25, 0.0  ;;  %v4078_v9 = vmax.f32 %v22185_v24, 0.0  ;;  %v19819_v25 = vrot.slane %v4076_v6, %v16232_v7  ;;  %v8141_v59 = vsel %vm4429_vm5, %v19815_v3, %v8140_v23  ;;  %v11136_v24 = vld [vmem:[%s21498_s3 + $0x9f8] sm:$0xff] }
 0x3fb   : > { %13403 = vmatprep.mubr.f32.mxu1 %v22093_v31  ;;  %14893 = vmatpush3.bf16.msra.mxu1 %v14890_v48  ;;  %v11129_v48 = vld [vmem:[%s21498_s3 + $0x9c0] sm:$0xff]  ;;  %v4080_v41 = vmax.f32 %v3936_v18, 0.0  ;;  %v22186_v18 = vld [vmem:[#allocation46_spill] sm:$0xff] }
 0x3fc   : > { %14895 = vmatprep.subr.bf16.mxu1 %v14894_v14  ;;  %v19826_v21 = vrot.slane %v4077_v62, %v16232_v7  ;;  %v14902_v20 = vpack.c.bf16 %v11130_v0, %v11129_v48  ;;  %v19840_v30 = vrot.slane %v4078_v9, %v16232_v7  ;;  %v8142_v42 = vsel %vm4431_vm6, %v19819_v25, %v8141_v59  ;;  %v11133_v62 = vld [vmem:[%s21498_s3 + $0x9e0] sm:$0xff]  ;;  %v11138_v0 = vld [vmem:[%s21498_s3 + $0xa08] sm:$0xff] }
 0x3fd   : > { %v19849_v27 = vrot.slane %v4080_v41, %v16232_v7  ;;  %v14914_v9 = vpack.c.bf16 %v11136_v24, %v11135_v15  ;;  %v11137_v48 = vld [vmem:[%s21498_s3 + $0xa00] sm:$0xff]  ;;  %v2287_v23 = vcombine.high %v22186_v18, %v22186_v18  ;;  %v11140_v41 = vld [vmem:[%s21498_s3 + $0xa18] sm:$0xff]  ;;  %v11143_v15 = vld [vmem:[%s21498_s3 + $0xa30] sm:$0xff] }
 0x3fe   : > { %13404 = vmatmul.mubr.f32.gmra.mrb[4].mxu1 %v22097_v40  ;;  %v8143_v6 = vsel %vm4433_vm7, %v19826_v21, %v8142_v42  ;;  %v11144_v24 = vld [vmem:[%s21498_s3 + $0xa38] sm:$0xff]  ;;  %v11145_v18 = vld [vmem:[%s21498_s3 + $0xa40] sm:$0xff] }
 0x3ff   : > { %13406 = vmatprep.mubr.f32.mxu1 %v19096_v50  ;;  %14897 = vmatpush3.bf16.msra.mxu1 %v14894_v14  ;;  %v11131_v14 = vld [vmem:[%s21498_s3 + $0x9d0] sm:$0xff]  ;;  %v8144_v63 = vsel %vm4435_vm8, %v19840_v30, %v8143_v6  ;;  %v2301_v42 = vrot.slane %v2287_v23, %v22003_v32  ;;  %v11146_v23 = vld [vmem:[%s21498_s3 + $0xa48] sm:$0xff] }
 0x400   : > { %14899 = vmatprep.subr.bf16.mxu1 %v14898_v38  ;;  %v14906_v4 = vpack.c.bf16 %v11132_v55, %v11131_v14  ;;  %v8145_v37 = vsel %vm4437_vm9, %v19829_v58, %v8144_v63  ;;  %v14918_v14 = vpack.c.bf16 %v11138_v0, %v11137_v48  ;;  %v11139_v55 = vld [vmem:[%s21498_s3 + $0xa10] sm:$0xff]  ;;  %v14930_v0 = vpack.c.bf16 %v11144_v24, %v11143_v15 }
 0x401   : > { %v14922_v63 = vpack.c.bf16 %v11140_v41, %v11139_v55  ;;  %v11147_v41 = vld [vmem:[%s21498_s3 + $0xa50] sm:$0xff] }
 0x402   : > { %13407 = vmatmul.mubr.f32.gmra.mrb[6].mxu1 %v19508_v28 }
 0x403   : > { %14901 = vmatpush3.bf16.msra.mxu1 %v14898_v38  ;;  %13441 = vmatprep.mubr.f32.mxu1 %v22103_v61  ;;  %v11134_v38 = vld [vmem:[%s21498_s3 + $0x9e8] sm:$0xff]  ;;  %v19863_v61 = vsel %vm4439_vm10, %v19849_v27, %v8145_v37 }
 0x404   : > { %14903 = vmatprep.subr.bf16.mxu1 %v14902_v20  ;;  %v14910_v53 = vpack.c.bf16 %v11134_v38, %v11133_v62  ;;  %v11142_v37 = vld [vmem:[%s21498_s3 + $0xa28] sm:$0xff]  ;;  %v10686_v62 = vrot.slane %v2301_v42, 9 }
 0x407   : > { %14905 = vmatpush3.bf16.msra.mxu1 %v14902_v20  ;;  %v22187_v20 = vld [vmem:[#allocation69_spill] sm:$0xff] }
 0x408   : > { %14907 = vmatprep.subr.bf16.mxu1 %v14906_v4  ;;  %v2338_v59 = vcombine.high %v22187_v20, %v22187_v20 }
 0x40a   : > { %v2352_v6 = vrot.slane %v2338_v59, %v22003_v32  ;;  %v8283_v59 = vsel %vm4427_vm4, %v19815_v3, %v19803_v54 }
 0x40b   : > { %14909 = vmatpush3.bf16.msra.mxu1 %v14906_v4  ;;  %v11141_v4 = vld [vmem:[%s21498_s3 + $0xa20] sm:$0xff]  ;;  %v8284_v55 = vsel %vm4429_vm5, %v19819_v25, %v8283_v59  ;;  %v11152_v59 = vld [vmem:[%s21498_s3 + $0xa78] sm:$0xff] }
 0x40c   : > { %14911 = vmatprep.subr.bf16.mxu1 %v14910_v53  ;;  %v10830_v38 = vrot.slane %v2352_v6, 9 }
 0x40e   : > { %v3793_v48 = vmax.f32 %v2352_v6, %v10830_v38 }
 0x40f   : > { %14913 = vmatpush3.bf16.msra.mxu1 %v14910_v53  ;;  %v14926_v53 = vpack.c.bf16 %v11142_v37, %v11141_v4  ;;  %v8285_v37 = vsel %vm4431_vm6, %v19826_v21, %v8284_v55 }
 0x410   : > { %14915 = vmatprep.subr.bf16.mxu1 %v14914_v9 }
 0x413   : > { %14917 = vmatpush3.bf16.msra.mxu1 %v14914_v9  ;;  %v3217_v9 = vmax.f32 %v2301_v42, %v10686_v62  ;;  %v8286_v62 = vsel %vm4433_vm7, %v19840_v30, %v8285_v37  ;;  %v11156_v37 = vld [vmem:[%s21498_s3 + $0xa98] sm:$0xff] }
 0x414   : > { %14919 = vmatprep.subr.bf16.mxu1 %v14918_v14 }
 0x415   : > { %v3937_v20 = vmax.f32 %v3217_v9, %v3793_v48  ;;  %v11149_v9 = vld [vmem:[%s21498_s3 + $0xa60] sm:$0xff]  ;;  %v11150_v48 = vld [vmem:[%s21498_s3 + $0xa68] sm:$0xff] }
 0x416   : > { %13442 = vmatmul.mubr.f32.vlgmr.msra.gmra.mrb[0].mxu1 %v22104_v16 }
 0x417   : > { %13444 = vmatprep.mubr.f32.mxu1 %v22105_v22  ;;  %14921 = vmatpush3.bf16.msra.mxu1 %v14918_v14  ;;  %v14934_v14 = vpack.c.bf16 %v11146_v23, %v11145_v18  ;;  %v4081_v4 = vmax.f32 %v3937_v20, 0.0  ;;  %v2303_v18 = vcombine.high %v2301_v42, %v2301_v42  ;;  %v2354_v23 = vcombine.high %v2352_v6, %v2352_v6  ;;  %v11151_v20 = vld [vmem:[%s21498_s3 + $0xa70] sm:$0xff]  ;;  %v11154_v42 = vld [vmem:[%s21498_s3 + $0xa88] sm:$0xff] }
 0x418   : > { %14923 = vmatprep.subr.bf16.mxu1 %v14922_v63  ;;  %v14946_v55 = vpack.c.bf16 %v11152_v59, %v11151_v20 }
 0x419   : > { %v8282_v38 = vrot.slane %v4081_v4, %v16232_v7  ;;  %v11155_v4 = vld [vmem:[%s21498_s3 + $0xa90] sm:$0xff] }
 0x41a   : > { %13445 = vmatmul.mubr.f32.gmra.mrb[2].mxu1 %v22107_v34 }
 0x41b   : > { %13447 = vmatprep.mubr.f32.mxu1 %v22109_v56  ;;  %14925 = vmatpush3.bf16.msra.mxu1 %v14922_v63  ;;  %v11148_v63 = vld [vmem:[%s21498_s3 + $0xa58] sm:$0xff] }
 0x41c   : > { %14927 = vmatprep.subr.bf16.mxu1 %v14926_v53  ;;  %v14938_v15 = vpack.c.bf16 %v11148_v63, %v11147_v41  ;;  %v10687_v41 = vrot.slane %v2303_v18, 9  ;;  %v10831_v63 = vrot.slane %v2354_v23, 9 }
 0x41e   : > { %13448 = vmatmul.mubr.f32.gmra.mrb[4].mxu1 %v18748_v5 }
 0x41f   : > { %13450 = vmatprep.mubr.f32.mxu1 %v19154_v52  ;;  %14929 = vmatpush3.bf16.msra.mxu1 %v14926_v53  ;;  %v8287_v53 = vsel %vm4435_vm8, %v19829_v58, %v8286_v62  ;;  %v3218_v62 = vmax.f32 %v2303_v18, %v10687_v41  ;;  %v11157_v18 = vld [vmem:[%s21498_s3 + $0xaa0] sm:$0xff] }
 0x420   : > { %14931 = vmatprep.subr.bf16.mxu1 %v14930_v0  ;;  %v8288_v24 = vsel %vm4437_vm9, %v19849_v27, %v8287_v53  ;;  %v3794_v53 = vmax.f32 %v2354_v23, %v10831_v63  ;;  %v11158_v23 = vld [vmem:[%s21498_s3 + $0xaa8] sm:$0xff] }
 0x422   : > { %13451 = vmatmul.mubr.f32.gmra.mrb[6].mxu1 %v19563_v10 }
 0x423   : > { %14933 = vmatpush3.bf16.msra.mxu1 %v14930_v0  ;;  %13485 = vmatprep.mubr.f32.mxu1 %v22118_v39  ;;  %v19942_v39 = vsel %vm4439_vm10, %v8282_v38, %v8288_v24  ;;  %v14942_v0 = vpack.c.bf16 %v11150_v48, %v11149_v9  ;;  %v3938_v24 = vmax.f32 %v3218_v62, %v3794_v53  ;;  %v11163_v62 = vld [vmem:[%s21498_s3 + $0xad0] sm:$0xff]  ;;  %v11164_v53 = vld [vmem:[%s21498_s3 + $0xad8] sm:$0xff] }
 0x424   : > { %14935 = vmatprep.subr.bf16.mxu1 %v14934_v14  ;;  %v8426_v9 = vsel %vm4427_vm4, %v19819_v25, %v19815_v3  ;;  %v14954_v48 = vpack.c.bf16 %v11156_v37, %v11155_v4  ;;  %v11159_v4 = vld [vmem:[%s21498_s3 + $0xab0] sm:$0xff]  ;;  %v11162_v37 = vld [vmem:[%s21498_s3 + $0xac8] sm:$0xff] }
 0x425   : > { %v4082_v20 = vmax.f32 %v3938_v24, 0.0 }
 0x427   : > { %14937 = vmatpush3.bf16.msra.mxu1 %v14934_v14  ;;  %v11153_v14 = vld [vmem:[%s21498_s3 + $0xa80] sm:$0xff]  ;;  %v8425_v41 = vrot.slane %v4082_v20, %v16232_v7 }
 0x428   : > { %14939 = vmatprep.subr.bf16.mxu1 %v14938_v15  ;;  %v14950_v6 = vpack.c.bf16 %v11154_v42, %v11153_v14  ;;  %v14958_v14 = vpack.c.bf16 %v11158_v23, %v11157_v18  ;;  %v11165_v18 = vld [vmem:[%s21498_s3 + $0xae0] sm:$0xff]  ;;  %v11166_v23 = vld [vmem:[%s21498_s3 + $0xae8] sm:$0xff] }
 0x429   : > { %v8889_v20 = vld [vmem:[%s21500_s5 + $0x20] sm:$0xff] }
 0x42b   : > { %14941 = vmatpush3.bf16.msra.mxu1 %v14938_v15  ;;  %v7856_v15 = vsel %vm4431_vm6, %v19803_v54, %v19668_v43 }
 0x42c   : > { %14943 = vmatprep.subr.bf16.mxu1 %v14942_v0  ;;  %v7857_v59 = vsel %vm4433_vm7, %v19815_v3, %v7856_v15  ;;  %v8887_v15 = vld [vmem:[%s21500_s5 + $0x10] sm:$0xff] }
 0x42f   : > { %14945 = vmatpush3.bf16.msra.mxu1 %v14942_v0  ;;  %v8427_v0 = vsel %vm4429_vm5, %v19826_v21, %v8426_v9  ;;  %v8888_v9 = vld [vmem:[%s21500_s5 + $0x18] sm:$0xff] }
 0x430   : > { %14947 = vmatprep.subr.bf16.mxu1 %v14946_v55  ;;  %v8428_v43 = vsel %vm4431_vm6, %v19840_v30, %v8427_v0  ;;  %v15836_v0 = vmov 0.0|0.0  }
 0x431   : > { %15078 = vmatprep.subr.bf16.mxu0 %v15836_v0 }
 0x433   : > { %14949 = vmatpush3.bf16.msra.mxu1 %v14946_v55  ;;  %v8429_v55 = vsel %vm4433_vm7, %v19829_v58, %v8428_v43  ;;  %v8890_v43 = vld [vmem:[%s21500_s5 + $0x28] sm:$0xff] }
 0x434   : > { %14951 = vmatprep.subr.bf16.mxu1 %v14950_v6  ;;  %v8430_v63 = vsel %vm4435_vm8, %v19849_v27, %v8429_v55  ;;  %v11167_v55 = vld [vmem:[%s21498_s3 + $0xaf0] sm:$0xff] }
 0x435   : > { %v8431_v42 = vsel %vm4437_vm9, %v8282_v38, %v8430_v63  ;;  %v15085_v63 = vpack.c.bf16 %v8890_v43, %v8889_v20  ;;  %v11185_v43 = vld [vmem:[%s21498_s3 + $0xb80] sm:$0xff] }
 0x436   : > { %13486 = vmatmul.mubr.f32.vlgmr.msra.gmra.mrb[0].mxu1 %v22119_v44  ;;  %v7858_v44 = vsel %vm4435_vm8, %v19819_v25, %v7857_v59  ;;  %v19997_v7 = vsel %vm4439_vm10, %v8425_v41, %v8431_v42  ;;  %v14974_v59 = vpack.c.bf16 %v11166_v23, %v11165_v18  ;;  %v11168_v41 = vld [vmem:[%s21498_s3 + $0xaf8] sm:$0xff]  ;;  %v11179_v18 = vld [vmem:[%s21498_s3 + $0xb50] sm:$0xff] }
 0x437   : > { %13488 = vmatprep.mubr.f32.mxu1 %v22120_v60  ;;  %14953 = vmatpush3.bf16.msra.mxu1 %v14950_v6  ;;  %v11160_v60 = vld [vmem:[%s21498_s3 + $0xab8] sm:$0xff]  ;;  %v7859_v27 = vsel %vm4437_vm9, %v19826_v21, %v7858_v44  ;;  %v11161_v6 = vld [vmem:[%s21498_s3 + $0xac0] sm:$0xff]  ;;  %v14978_v44 = vpack.c.bf16 %v11168_v41, %v11167_v55  ;;  %v11187_v41 = vld [vmem:[%s21498_s3 + $0xb90] sm:$0xff] }
 0x438   : > { %14955 = vmatprep.subr.bf16.mxu1 %v14954_v48  ;;  %v14962_v38 = vpack.c.bf16 %v11160_v60, %v11159_v4  ;;  %v8892_v42 = vld [vmem:[%s21500_s5 + $0x38] sm:$0xff]  ;;  %v11169_v4 = vld [vmem:[%s21498_s3 + $0xb00] sm:$0xff]  ;;  %v11170_v60 = vld [vmem:[%s21498_s3 + $0xb08] sm:$0xff] }
 0x439   : > { %v11180_v23 = vld [vmem:[%s21498_s3 + $0xb58] sm:$0xff] }
 0x43a   : > { %13489 = vmatmul.mubr.f32.gmra.mrb[2].mxu1 %v22121_v11  ;;  %v7860_v11 = vsel %vm4439_vm10, %v19840_v30, %v7859_v27 }
 0x43b   : > { %13491 = vmatprep.mubr.f32.mxu1 %v22122_v13  ;;  %14957 = vmatpush3.bf16.msra.mxu1 %v14954_v48  ;;  %v14966_v13 = vpack.c.bf16 %v11162_v37, %v11161_v6  ;;  %v14970_v48 = vpack.c.bf16 %v11164_v53, %v11163_v62  ;;  %v8894_v6 = vld [vmem:[%s21500_s5 + $0x48] sm:$0xff]  ;;  %v14982_v37 = vpack.c.bf16 %v11170_v60, %v11169_v4  ;;  %v11191_v60 = vld [vmem:[%s21498_s3 + $0xbb0] sm:$0xff] }
 0x43c   : > { %14959 = vmatprep.subr.bf16.mxu1 %v14958_v14  ;;  %v7998_v53 = vsel %vm4429_vm5, %v19803_v54, %v19733_v36 }
 0x43e   : > { %13492 = vmatmul.mubr.f32.gmra.mrb[4].mxu1 %v18951_v8  ;;  %v8885_v8 = vld [vmem:[%s21500_s5] sm:$0xff] }
 0x43f   : > { %13494 = vmatprep.mubr.f32.mxu1 %v19579_v17  ;;  %14961 = vmatpush3.bf16.msra.mxu1 %v14958_v14  ;;  %v8886_v17 = vld [vmem:[%s21500_s5 + $0x8] sm:$0xff]  ;;  %v8891_v14 = vld [vmem:[%s21500_s5 + $0x30] sm:$0xff] }
 0x440   : > { %14963 = vmatprep.subr.bf16.mxu1 %v14962_v38  ;;  %v15079_v24 = vpack.c.bf16 %v8886_v17, %v8885_v8  ;;  %v15088_v27 = vpack.c.bf16 %v8892_v42, %v8891_v14  ;;  %v11173_v17 = vld [vmem:[%s21498_s3 + $0xb20] sm:$0xff] }
 0x441   : > { %v11189_v42 = vld [vmem:[%s21498_s3 + $0xba0] sm:$0xff] }
 0x442   : > { %13495 = vmatmul.mubr.f32.gmra.mrb[6].mxu1 %v7860_v11  ;;  %15080 = vmatpush3.bf16.msra.mxu0 %v15079_v24  ;;  %v11171_v11 = vld [vmem:[%s21498_s3 + $0xb10] sm:$0xff]  ;;  %v7999_v24 = vsel %vm4431_vm6, %v19815_v3, %v7998_v53  ;;  %v11176_v3 = vld [vmem:[%s21498_s3 + $0xb38] sm:$0xff] }
 0x443   : > { %14965 = vmatpush3.bf16.msra.mxu1 %v14962_v38  ;;  %13529 = vmatprep.mubr.f32.mxu1 %v22131_v46  ;;  %v15082_v46 = vpack.c.bf16 %v8888_v9, %v8887_v15  ;;  %v8893_v38 = vld [vmem:[%s21500_s5 + $0x40] sm:$0xff]  ;;  %v11174_v15 = vld [vmem:[%s21498_s3 + $0xb28] sm:$0xff]  ;;  %v8000_v54 = vsel %vm4433_vm7, %v19819_v25, %v7999_v24  ;;  %v11175_v9 = vld [vmem:[%s21498_s3 + $0xb30] sm:$0xff] }
 0x444   : > { %14967 = vmatprep.subr.bf16.mxu1 %v14966_v13  ;;  %15081 = vmatprep.subr.bf16.mxu0 %v15836_v0  ;;  %v15091_v62 = vpack.c.bf16 %v8894_v6, %v8893_v38  ;;  %v14990_v36 = vpack.c.bf16 %v11174_v15, %v11173_v17  ;;  %v11177_v25 = vld [vmem:[%s21498_s3 + $0xb40] sm:$0xff]  ;;  %v11194_v38 = vld [vmem:[%s21498_s3 + $0xbc8] sm:$0xff] }
 0x445   : > { %v22188_v6 = vld [vmem:[#allocation92_spill] sm:$0xff]  ;;  %v11202_v24 = vld [vmem:[%s21498_s3 + $0xc08] sm:$0xff] }
 0x446   : > { %15083 = vmatpush3.bf16.msra.mxu0 %v15082_v46  ;;  %v11183_v46 = vld [vmem:[%s21498_s3 + $0xb70] sm:$0xff]  ;;  %v11201_v15 = vld [vmem:[%s21498_s3 + $0xc00] sm:$0xff] }
 0x447   : > { %14969 = vmatpush3.bf16.msra.mxu1 %v14966_v13  ;;  %15084 = vmatprep.subr.bf16.mxu0 %v15836_v0  ;;  %v11172_v13 = vld [vmem:[%s21498_s3 + $0xb18] sm:$0xff] }
 0x448   : > { %14971 = vmatprep.subr.bf16.mxu1 %v14970_v48  ;;  %v14986_v8 = vpack.c.bf16 %v11172_v13, %v11171_v11  ;;  %v22189_v11 = vld [vmem:[#allocation18_spill] sm:$0xff]  ;;  %v11197_v13 = vld [vmem:[%s21498_s3 + $0xbe0] sm:$0xff] }
 0x44a   : > { %15086 = vmatpush3.bf16.msra.mxu0 %v15085_v63  ;;  %v11188_v63 = vld [vmem:[%s21498_s3 + $0xb98] sm:$0xff] }
 0x44b   : > { %14973 = vmatpush3.bf16.msra.mxu1 %v14970_v48  ;;  %15087 = vmatprep.subr.bf16.mxu0 %v15836_v0  ;;  %v11178_v48 = vld [vmem:[%s21498_s3 + $0xb48] sm:$0xff]  ;;  %v15018_v14 = vpack.c.bf16 %v11188_v63, %v11187_v41 }
 0x44c   : > { %14975 = vmatprep.subr.bf16.mxu1 %v14974_v59 }
 0x44e   : > { %15089 = vmatpush3.bf16.msra.mxu0 %v15088_v27  ;;  %v11192_v27 = vld [vmem:[%s21498_s3 + $0xbb8] sm:$0xff] }
 0x44f   : > { %14977 = vmatpush3.bf16.msra.mxu1 %v14974_v59  ;;  %15090 = vmatprep.subr.bf16.mxu0 %v15836_v0  ;;  %v11186_v59 = vld [vmem:[%s21498_s3 + $0xb88] sm:$0xff] }
 0x450   : > { %14979 = vmatprep.subr.bf16.mxu1 %v14978_v44  ;;  %v15014_v55 = vpack.c.bf16 %v11186_v59, %v11185_v43  ;;  %v22191_v43 = vld [vmem:[#allocation19_spill] sm:$0xff] }
 0x452   : > { %15092 = vmatpush3.bf16.msra.mxu0 %v15091_v62  ;;  %v11198_v62 = vld [vmem:[%s21498_s3 + $0xbe8] sm:$0xff] }
 0x453   : > { %14981 = vmatpush3.bf16.msra.mxu1 %v14978_v44  ;;  %15093 = vmatprep.subr.bf16.mxu0 %v15836_v0  ;;  %v11190_v44 = vld [vmem:[%s21498_s3 + $0xba8] sm:$0xff]  ;;  %v15038_v53 = vpack.c.bf16 %v11198_v62, %v11197_v13 }
 0x454   : > { %14983 = vmatprep.subr.bf16.mxu1 %v14982_v37  ;;  %v15022_v4 = vpack.c.bf16 %v11190_v44, %v11189_v42 }
 0x456   : > { %13530 = vmatmul.mubr.f32.vlgmr.msra.gmra.mrb[0].mxu1 %v22135_v19  ;;  %v8001_v19 = vsel %vm4435_vm8, %v19826_v21, %v8000_v54  ;;  %v11203_v54 = vld [vmem:[%s21498_s3 + $0xc10] sm:$0xff] }
 0x457   : > { %13532 = vmatprep.mubr.f32.mxu1 %v22136_v29  ;;  %14985 = vmatpush3.bf16.msra.mxu1 %v14982_v37  ;;  %v14994_v29 = vpack.c.bf16 %v11176_v3, %v11175_v9  ;;  %v11196_v37 = vld [vmem:[%s21498_s3 + $0xbd8] sm:$0xff] }
 0x458   : > { %14987 = vmatprep.subr.bf16.mxu1 %v14986_v8  ;;  %v11204_v9 = vld [vmem:[%s21498_s3 + $0xc18] sm:$0xff] }
 0x459   : > { %v15050_v3 = vpack.c.bf16 %v11204_v9, %v11203_v54 }
 0x45a   : > { %13533 = vmatmul.mubr.f32.gmra.mrb[2].mxu1 %v22137_v45  ;;  %v8002_v45 = vsel %vm4437_vm9, %v19840_v30, %v8001_v19  ;;  %v11205_v19 = vld [vmem:[%s21498_s3 + $0xc20] sm:$0xff] }
 0x45b   : > { %13535 = vmatprep.mubr.f32.mxu1 %v22138_v49  ;;  %14989 = vmatpush3.bf16.msra.mxu1 %v14986_v8  ;;  %v14998_v49 = vpack.c.bf16 %v11178_v48, %v11177_v25  ;;  %v8003_v21 = vsel %vm4439_vm10, %v19829_v58, %v8002_v45  ;;  %v11182_v58 = vld [vmem:[%s21498_s3 + $0xb68] sm:$0xff]  ;;  %v11200_v8 = vld [vmem:[%s21498_s3 + $0xbf8] sm:$0xff]  ;;  %v11207_v45 = vld [vmem:[%s21498_s3 + $0xc30] sm:$0xff] }
 0x45c   : > { %14991 = vmatprep.subr.bf16.mxu1 %v14990_v36  ;;  %v22190_v25 = vld [vmem:[#allocation28_spill] sm:$0xff] }
 0x45e   : > { %13536 = vmatmul.mubr.f32.gmra.mrb[4].mxu1 %v18993_v47  ;;  %v15002_v47 = vpack.c.bf16 %v11180_v23, %v11179_v18  ;;  %v11210_v18 = vld [vmem:[%s21498_s3 + $0xc48] sm:$0xff]  ;;  %v11212_v23 = vld [vmem:[%s21498_s3 + $0xc58] sm:$0xff] }
 0x45f   : > { %13538 = vmatprep.mubr.f32.mxu1 %v19672_v2  ;;  %14993 = vmatpush3.bf16.msra.mxu1 %v14990_v36  ;;  %v11181_v2 = vld [vmem:[%s21498_s3 + $0xb60] sm:$0xff]  ;;  %v15046_v36 = vpack.c.bf16 %v11202_v24, %v11201_v15  ;;  %v20304_v15 = vld [vmem:[%s21500_s5 + $0x98] sm:$0xff] }
 0x460   : > { %14995 = vmatprep.subr.bf16.mxu1 %v14994_v29  ;;  %v15006_v30 = vpack.c.bf16 %v11182_v58, %v11181_v2 }
 0x462   : > { %13539 = vmatmul.mubr.f32.gmra.mrb[6].mxu1 %v8003_v21 }
 0x463   : > { %14997 = vmatpush3.bf16.msra.mxu1 %v14994_v29  ;;  %13573 = vmatprep.mubr.f32.mxu1 %v22048_v12  ;;  %v11184_v12 = vld [vmem:[%s21498_s3 + $0xb78] sm:$0xff]  ;;  %v11206_v29 = vld [vmem:[%s21498_s3 + $0xc28] sm:$0xff] }
 0x464   : > { %14999 = vmatprep.subr.bf16.mxu1 %v14998_v49  ;;  %v15010_v20 = vpack.c.bf16 %v11184_v12, %v11183_v46  ;;  %v15054_v48 = vpack.c.bf16 %v11206_v29, %v11205_v19  ;;  %v15838_v12 = vmov 0.0  }
 0x465   : > { %13705 = vmatprep.mubr.msk.f32.mxu0 %vm15837_vm11, %v15838_v12 }
 0x467   : > { %15001 = vmatpush3.bf16.msra.mxu1 %v14998_v49  ;;  %v11208_v49 = vld [vmem:[%s21498_s3 + $0xc38] sm:$0xff] }
 0x468   : > { %15003 = vmatprep.subr.bf16.mxu1 %v15002_v47  ;;  %v15058_v21 = vpack.c.bf16 %v11208_v49, %v11207_v45  ;;  %v20313_v49 = vld [vmem:[%s21500_s5 + $0xa0] sm:$0xff] }
 0x46b   : > { %15005 = vmatpush3.bf16.msra.mxu1 %v15002_v47  ;;  %v11214_v47 = vld [vmem:[%s21498_s3 + $0xc68] sm:$0xff] }
 0x46c   : > { %15007 = vmatprep.subr.bf16.mxu1 %v15006_v30 }
 0x46f   : > { %15009 = vmatpush3.bf16.msra.mxu1 %v15006_v30  ;;  %v8895_v30 = vld [vmem:[%s21500_s5 + $0x50] sm:$0xff] }
 0x470   : > { %15011 = vmatprep.subr.bf16.mxu1 %v15010_v20 }
 0x473   : > { %15013 = vmatpush3.bf16.msra.mxu1 %v15010_v20  ;;  %v15769_v20 = vld [vmem:[%s21499_s4] ss:$0 sm:$0xff] }
 0x474   : > { %15015 = vmatprep.subr.bf16.mxu1 %v15014_v55  ;;  %v15486_v59 = vadd.f32 %v15769_v20, %v22191_v43 }
 0x476   : > { %13574 = vmatmul.mubr.f32.vlgmr.msra.gmra.mrb[0].mxu1 %v22049_v33  ;;  %v15026_v33 = vpack.c.bf16 %v11192_v27, %v11191_v60 }
 0x477   : > { %13576 = vmatprep.mubr.f32.mxu1 %v22050_v51  ;;  %15017 = vmatpush3.bf16.msra.mxu1 %v15014_v55  ;;  %v11193_v51 = vld [vmem:[%s21498_s3 + $0xbc0] sm:$0xff] }
 0x478   : > { %15019 = vmatprep.subr.bf16.mxu1 %v15018_v14  ;;  %v22192_v55 = vld [vmem:[#allocation44_spill] sm:$0xff] }
 0x479   : > { %v15488_v41 = vadd.f32 %v15769_v20, %v22192_v55 }
 0x47a   : > { %13577 = vmatmul.mubr.f32.gmra.mrb[2].mxu1 %v22161_v35  ;;  %v15030_v35 = vpack.c.bf16 %v11194_v38, %v11193_v51 }
 0x47b   : > { %13579 = vmatprep.mubr.f32.mxu1 %v22162_v57  ;;  %15021 = vmatpush3.bf16.msra.mxu1 %v15018_v14  ;;  %v11195_v57 = vld [vmem:[%s21498_s3 + $0xbd0] sm:$0xff] }
 0x47c   : > { %15023 = vmatprep.subr.bf16.mxu1 %v15022_v4 }
 0x47e   : > { %13580 = vmatmul.mubr.f32.gmra.mrb[4].mxu1 %v22163_v26  ;;  %v15034_v26 = vpack.c.bf16 %v11196_v37, %v11195_v57 }
 0x47f   : > { %13582 = vmatprep.mubr.f32.mxu1 %v22188_v6  ;;  %15025 = vmatpush3.bf16.msra.mxu1 %v15022_v4 }
 0x480   : > { %15027 = vmatprep.subr.bf16.mxu1 %v15026_v33 }
 0x482   : > { %13583 = vmatmul.mubr.f32.gmra.mrb[6].mxu1 %v19863_v61  ;;  %v11199_v61 = vld [vmem:[%s21498_s3 + $0xbf0] sm:$0xff] }
 0x483   : > { %15029 = vmatpush3.bf16.msra.mxu1 %v15026_v33  ;;  %13617 = vmatprep.mubr.f32.mxu1 %v22189_v11  ;;  %v15042_v17 = vpack.c.bf16 %v11200_v8, %v11199_v61  ;;  %v11249_v11 = vld [vmem:[%s21500_s5 + $0x80] sm:$0xff]  ;;  %v11250_v8 = vld [vmem:[%s21500_s5 + $0x88] sm:$0xff] }
 0x484   : > { %15031 = vmatprep.subr.bf16.mxu1 %v15030_v35 }
 0x487   : > { %15033 = vmatpush3.bf16.msra.mxu1 %v15030_v35  ;;  %v22193_v35 = vld [vmem:[#allocation47_spill] sm:$0xff] }
 0x488   : > { %15035 = vmatprep.subr.bf16.mxu1 %v15034_v26 }
 0x48b   : > { %15037 = vmatpush3.bf16.msra.mxu1 %v15034_v26 }
 0x48c   : > { %15039 = vmatprep.subr.bf16.mxu1 %v15038_v53 }
 0x48f   : > { %15041 = vmatpush3.bf16.msra.mxu1 %v15038_v53  ;;  %v22194_v53 = vld [vmem:[#allocation54_spill] sm:$0xff] }
 0x490   : > { %15043 = vmatprep.subr.bf16.mxu1 %v15042_v17 }
 0x493   : > { %15045 = vmatpush3.bf16.msra.mxu1 %v15042_v17  ;;  %v20299_v17 = vld [vmem:[%s21500_s5 + $0x90] sm:$0xff] }
 0x494   : > { %15047 = vmatprep.subr.bf16.mxu1 %v15046_v36  ;;  %v15106_v45 = vpack.c.bf16 %v20304_v15, %v20299_v17 }
 0x496   : > { %13618 = vmatmul.mubr.f32.vlgmr.msra.gmra.mrb[0].mxu1 %v22190_v25 }
 0x497   : > { %13620 = vmatprep.mubr.f32.mxu1 %v22092_v1  ;;  %15049 = vmatpush3.bf16.msra.mxu1 %v15046_v36  ;;  %v11209_v1 = vld [vmem:[%s21498_s3 + $0xc40] sm:$0xff] }
 0x498   : > { %15051 = vmatprep.subr.bf16.mxu1 %v15050_v3 }
 0x49a   : > { %13621 = vmatmul.mubr.f32.gmra.mrb[2].mxu1 %v22093_v31  ;;  %v15062_v31 = vpack.c.bf16 %v11210_v18, %v11209_v1  ;;  %v20323_v1 = vld [vmem:[%s21500_s5 + $0xb0] sm:$0xff] }
 0x49b   : > { %13623 = vmatprep.mubr.f32.mxu1 %v22097_v40  ;;  %15053 = vmatpush3.bf16.msra.mxu1 %v15050_v3  ;;  %v11211_v40 = vld [vmem:[%s21498_s3 + $0xc50] sm:$0xff] }
 0x49c   : > { %15055 = vmatprep.subr.bf16.mxu1 %v15054_v48 }
 0x49e   : > { %13624 = vmatmul.mubr.f32.gmra.mrb[4].mxu1 %v19096_v50  ;;  %v15066_v50 = vpack.c.bf16 %v11212_v23, %v11211_v40 }
 0x49f   : > { %13626 = vmatprep.mubr.f32.mxu1 %v19508_v28  ;;  %15057 = vmatpush3.bf16.msra.mxu1 %v15054_v48  ;;  %v11213_v28 = vld [vmem:[%s21498_s3 + $0xc60] sm:$0xff]  ;;  %v15103_v48 = vpack.c.bf16 %v11250_v8, %v11249_v11 }
 0x4a0   : > { %15059 = vmatprep.subr.bf16.mxu1 %v15058_v21  ;;  %v15070_v2 = vpack.c.bf16 %v11214_v47, %v11213_v28  ;;  %v20340_v28 = vld [vmem:[%s21500_s5 + $0xc0] sm:$0xff]  ;;  %v20345_v47 = vld [vmem:[%s21500_s5 + $0xc8] sm:$0xff] }
 0x4a2   : > { %13627 = vmatmul.mubr.f32.gmra.mrb[6].mxu1 %v19942_v39  ;;  %v11215_v39 = vld [vmem:[%s21498_s3 + $0xc70] sm:$0xff] }
 0x4a3   : > { %15061 = vmatpush3.bf16.msra.mxu1 %v15058_v21  ;;  %13661 = vmatprep.mubr.f32.mxu1 %v22104_v16  ;;  %v11216_v16 = vld [vmem:[%s21498_s3 + $0xc78] sm:$0xff]  ;;  %v20318_v21 = vld [vmem:[%s21500_s5 + $0xa8] sm:$0xff] }
 0x4a4   : > { %15063 = vmatprep.subr.bf16.mxu1 %v15062_v31  ;;  %v15074_v58 = vpack.c.bf16 %v11216_v16, %v11215_v39 }
 0x4a7   : > { %15065 = vmatpush3.bf16.msra.mxu1 %v15062_v31 }
 0x4a8   : > { %15067 = vmatprep.subr.bf16.mxu1 %v15066_v50 }
 0x4ab   : > { %15069 = vmatpush3.bf16.msra.mxu1 %v15066_v50  ;;  %v20335_v50 = vld [vmem:[%s21500_s5 + $0xb8] sm:$0xff] }
 0x4ac   : > { %15071 = vmatprep.subr.bf16.mxu1 %v15070_v2  ;;  %v15112_v55 = vpack.c.bf16 %v20335_v50, %v20323_v1 }
 0x4af   : > { %15073 = vmatpush3.bf16.msra.mxu1 %v15070_v2 }
 0x4b0   : > { %15075 = vmatprep.subr.bf16.mxu1 %v15074_v58 }
 0x4b3   : > { %15077 = vmatpush3.bf16.msra.mxu1 %v15074_v58 }
 0x4b6   : > { %13662 = vmatmul.mubr.f32.vlgmr.msra.gmra.mrb[0].mxu1 %v22105_v22  ;;  %v8896_v22 = vld [vmem:[%s21500_s5 + $0x58] sm:$0xff] }
 0x4b7   : > { %13664 = vmatprep.mubr.f32.mxu1 %v22107_v34  ;;  %v15094_v46 = vpack.c.bf16 %v8896_v22, %v8895_v30  ;;  %v8898_v34 = vld [vmem:[%s21500_s5 + $0x68] sm:$0xff] }
 0x4b8   : > { %v22195_v22 = vld [vmem:[#allocation5_spill] sm:$0xff] }
 0x4b9   : > { %15095 = vmatpush3.bf16.msra.mxu0 %v15094_v46 }
 0x4ba   : > { %13665 = vmatmul.mubr.f32.gmra.mrb[2].mxu1 %v22109_v56  ;;  %15096 = vmatprep.subr.bf16.mxu0 %v15836_v0 }
 0x4bb   : > { %13667 = vmatprep.mubr.f32.mxu1 %v18748_v5  ;;  %v8897_v5 = vld [vmem:[%s21500_s5 + $0x60] sm:$0xff] }
 0x4bc   : > { %v15097_v56 = vpack.c.bf16 %v8898_v34, %v8897_v5  ;;  %v22196_v5 = vld [vmem:[#allocation63_spill] sm:$0xff] }
 0x4be   : > { %13668 = vmatmul.mubr.f32.gmra.mrb[4].mxu1 %v19154_v52  ;;  %15098 = vmatpush3.bf16.msra.mxu0 %v15097_v56  ;;  %v8899_v52 = vld [vmem:[%s21500_s5 + $0x70] sm:$0xff] }
 0x4bf   : > { %13670 = vmatprep.mubr.f32.mxu1 %v19563_v10  ;;  %15099 = vmatprep.subr.bf16.mxu0 %v15836_v0  ;;  %v8900_v10 = vld [vmem:[%s21500_s5 + $0x78] sm:$0xff] }
 0x4c2   : > { %13671 = vmatmul.mubr.f32.gmra.mrb[6].mxu1 %v19997_v7  ;;  %v15100_v7 = vpack.c.bf16 %v8900_v10, %v8899_v52  ;;  %v20355_v52 = vld [vmem:[%s21500_s5 + $0xd0] sm:$0xff]  ;;  %v20360_v10 = vld [vmem:[%s21500_s5 + $0xd8] sm:$0xff] }
 0x4c4   : > { %15101 = vmatpush3.bf16.msra.mxu0 %v15100_v7 }
 0x4c5   : > { %15102 = vmatprep.subr.bf16.mxu0 %v15836_v0 }
 0x589   : > { %v13663_v63 = vpop.f32.mrb[0].mxu1 }
 0x58a   : > { %v15487_v14 = vadd.f32 %v15486_v59, %v13663_v63  ;;  %v8500_v42 = vpop.f32.mrb[1].mxu1  ;;  %v15109_v59 = vpack.c.bf16 %v20318_v21, %v20313_v49  ;;  %v20373_v63 = vld [vmem:[%s21500_s5 + $0xe0] sm:$0xff] }
 0x58b   : > { %v15489_v44 = vadd.f32 %v15488_v41, %v8500_v42  ;;  %v15115_v41 = vpack.c.bf16 %v20345_v47, %v20340_v28 }
 0x58c   : > { %v8572_v4 = vcombine.high %v15487_v14, %v15487_v14  ;;  %v8579_v60 = vrot.slane %v15487_v14, %v22003_v32  ;;  %v20378_v14 = vld [vmem:[%s21500_s5 + $0xe8] sm:$0xff] }
 0x58d   : > { %v8562_v27 = vrot.slane %v15489_v44, %v22003_v32  ;;  %v13666_v33 = vpop.f32.mrb[2].mxu1  ;;  %v8555_v6 = vcombine.high %v15489_v44, %v15489_v44 }
 0x58e   : > { %v8587_v51 = vcombine.high %v8579_v60, %v8579_v60  ;;  %v11233_v38 = vrot.slane %v8579_v60, 9  ;;  %v15491_v57 = vadd.f32 %v22193_v35, %v13666_v33  ;;  %v8510_v37 = vpop.f32.mrb[3].mxu1  ;;  %v20290_v26 = vrot.slane %v8572_v4, %v22003_v32 }
 0x58f   : > { %v8570_v13 = vcombine.high %v8562_v27, %v8562_v27  ;;  %v11217_v62 = vrot.slane %v8562_v27, 9  ;;  %v15493_v61 = vadd.f32 %v22194_v53, %v8510_v37  ;;  %v8569_v31 = vrot.slane %v8555_v6, %v22003_v32 }
 0x590   : > { %v11234_v24 = vrot.slane %v8587_v51, 9  ;;  %v8835_v36 = vmax.f32 %v8579_v60, %v11233_v38  ;;  %v8606_v29 = vcombine.high %v15491_v57, %v15491_v57  ;;  %v20327_v18 = vcombine.high %v20290_v26, %v20290_v26 }
 0x591   : > { %v11218_v54 = vrot.slane %v8570_v13, 9  ;;  %v8771_v9 = vmax.f32 %v8562_v27, %v11217_v62  ;;  %v13669_v3 = vpop.f32.mrb[4].mxu1  ;;  %v8613_v2 = vrot.slane %v15491_v57, %v22003_v32  ;;  %v8589_v16 = vcombine.high %v15493_v61, %v15493_v61 }
 0x592   : > { %v20306_v19 = vmax.f32 %v8587_v51, %v11234_v24  ;;  %v8520_v25 = vpop.f32.mrb[5].mxu1  ;;  %v8620_v39 = vrot.slane %v8606_v29, %v22003_v32  ;;  %v8596_v58 = vrot.slane %v15493_v61, %v22003_v32  ;;  %v15495_v46 = vadd.f32 %v22195_v22, %v13669_v3 }
 0x593   : > { %v20330_v40 = vmax.f32 %v8570_v13, %v11218_v54  ;;  %v8851_v23 = vmax.f32 %v8771_v9, %v8835_v36  ;;  %v15497_v34 = vadd.f32 %v22196_v5, %v8520_v25  ;;  %v8621_v20 = vcombine.high %v8613_v2, %v8613_v2 }
 0x594   : > { %v11235_v42 = vrot.slane %v20290_v26, 9  ;;  %v8603_v44 = vrot.slane %v8589_v16, %v22003_v32  ;;  %v8604_v4 = vcombine.high %v8596_v58, %v8596_v58  ;;  %v8640_v60 = vcombine.high %v15495_v46, %v15495_v46 }
 0x595   : > { %v8867_v30 = vmax.f32 %v8851_v23, 0.0  ;;  %v13672_v56 = vpop.f32.mrb[6].mxu1  ;;  %v8852_v7 = vmax.f32 %v20330_v40, %v20306_v19  ;;  %v8571_v27 = vcombine.high %v8569_v31, %v8569_v31  ;;  %v11219_v33 = vrot.slane %v8569_v31, 9  ;;  %v11269_v19 = vld [vmem:[%s21500_s5 + $0x120] sm:$0xff]  ;;  %v11270_v40 = vld [vmem:[%s21500_s5 + $0x128] sm:$0xff] }
 0x596   : > { %v8530_v43 = vpop.f32.mrb[7].mxu1  ;;  %v20382_v51 = vcombine.high %v8620_v39, %v8620_v39  ;;  %v15118_v38 = vpack.c.bf16 %v20360_v10, %v20355_v52  ;;  %v11236_v6 = vrot.slane %v20327_v18, 9  ;;  %v11237_v35 = vrot.slane %v8613_v2, 9  ;;  %v11263_v52 = vld [vmem:[%s21500_s5 + $0xf0] sm:$0xff]  ;;  %v11264_v10 = vld [vmem:[%s21500_s5 + $0xf8] sm:$0xff] }
 0x597   : > { %13706 = vmatmul.mubr.f32.vlgmr.msra.gmra.mrb[80].mxu0 %v8867_v30  ;;  %v11239_v57 = vrot.slane %v8620_v39, 9  ;;  %v15121_v37 = vpack.c.bf16 %v20378_v14, %v20373_v63  ;;  %v11238_v11 = vrot.slane %v8621_v20, 9  ;;  %v11221_v13 = vrot.slane %v8596_v58, 9 }
 0x598   : > { %15104 = vmatpush3.bf16.msra.mxu0 %v15103_v48  ;;  %13740 = vmatprep.mubr.msk.f32.mxu0 %vm15837_vm11, %v15838_v12  ;;  %v8647_v62 = vrot.slane %v15495_v46, %v22003_v32  ;;  %v8654_v53 = vrot.slane %v8640_v60, %v22003_v32  ;;  %v20395_v61 = vmax.f32 %v20290_v26, %v11235_v42  ;;  %v11222_v17 = vrot.slane %v8604_v4, 9  ;;  %v22197_v48 = vld [vmem:[#allocation89_spill] sm:$0xff] }
 0x599   : > { %15105 = vmatprep.subr.bf16.mxu0 %v15836_v0  ;;  %v20397_v8 = vcombine.high %v8603_v44, %v8603_v44  ;;  %v8623_v15 = vcombine.high %v15497_v34, %v15497_v34  ;;  %v11220_v24 = vrot.slane %v8571_v27, 9  ;;  %v20399_v36 = vmax.f32 %v8569_v31, %v11219_v33 }
 0x59a   : > { %v11240_v54 = vrot.slane %v20382_v51, 9  ;;  %v8630_v9 = vrot.slane %v15497_v34, %v22003_v32  ;;  %v20403_v3 = vmax.f32 %v8613_v2, %v11237_v35  ;;  %v11223_v29 = vrot.slane %v8603_v44, 9  ;;  %v22198_v34 = vld [vmem:[#allocation91_spill] sm:$0xff] }
 0x59b   : > { %v8655_v25 = vcombine.high %v8647_v62, %v8647_v62  ;;  %v15499_v49 = vadd.f32 %v22197_v48, %v13672_v56  ;;  %v20407_v26 = vmax.f32 %v8621_v20, %v11238_v11  ;;  %v20409_v21 = vmax.f32 %v8620_v39, %v11239_v57 }
 0x59c   : > { %15107 = vmatpush3.bf16.msra.mxu0 %v15106_v45  ;;  %v20411_v23 = vmax.f32 %v8596_v58, %v11221_v13  ;;  %v20413_v31 = vcombine.high %v8654_v53, %v8654_v53  ;;  %v11224_v16 = vrot.slane %v20397_v8, 9  ;;  %v20416_v30 = vmax.f32 %v8604_v4, %v11222_v17 }
 0x59d   : > { %15108 = vmatprep.subr.bf16.mxu0 %v15836_v0  ;;  %v11241_v45 = vrot.slane %v8647_v62, 9  ;;  %v8637_v2 = vrot.slane %v8623_v15, %v22003_v32  ;;  %v8638_v22 = vcombine.high %v8630_v9, %v8630_v9  ;;  %v8674_v46 = vcombine.high %v15499_v49, %v15499_v49 }
 0x59e   : > { %v8681_v5 = vrot.slane %v15499_v49, %v22003_v32  ;;  %v15501_v56 = vadd.f32 %v22198_v34, %v8530_v43  ;;  %v20421_v39 = vmax.f32 %v8603_v44, %v11223_v29  ;;  %v11242_v58 = vrot.slane %v8655_v25, 9 }
 0x59f   : > { %v11243_v20 = vrot.slane %v8654_v53, 9  ;;  %v11225_v42 = vrot.slane %v8630_v9, 9  ;;  %v11244_v4 = vrot.slane %v20413_v31, 9  ;;  %v8688_v60 = vrot.slane %v8674_v46, %v22003_v32 }
 0x5a0   : > { %15110 = vmatpush3.bf16.msra.mxu0 %v15109_v59  ;;  %v8689_v33 = vcombine.high %v8681_v5, %v8681_v5  ;;  %v8657_v35 = vcombine.high %v15501_v56, %v15501_v56  ;;  %v8664_v57 = vrot.slane %v15501_v56, %v22003_v32  ;;  %v8853_v11 = vmax.f32 %v20399_v36, %v20395_v61  ;;  %v11285_v61 = vld [vmem:[%s21500_s5 + $0x1a0] sm:$0xff]  ;;  %v11286_v36 = vld [vmem:[%s21500_s5 + $0x1a8] sm:$0xff] }
 0x5a1   : > { %15111 = vmatprep.subr.bf16.mxu0 %v15836_v0  ;;  %v20429_v43 = vmax.f32 %v8571_v27, %v11220_v24  ;;  %v20432_v59 = vmax.f32 %v20327_v18, %v11236_v6  ;;  %v20434_v44 = vmax.f32 %v8647_v62, %v11241_v45  ;;  %v8639_v13 = vcombine.high %v8637_v2, %v8637_v2 }
 0x5a2   : > { %v11226_v17 = vrot.slane %v8638_v22, 9  ;;  %v11227_v15 = vrot.slane %v8637_v2, 9  ;;  %v8690_v29 = vcombine.high %v8688_v60, %v8688_v60  ;;  %v11245_v48 = vrot.slane %v8681_v5, 9 }
 0x5a3   : > { %v8671_v49 = vrot.slane %v8657_v35, %v22003_v32  ;;  %v8672_v46 = vcombine.high %v8664_v57, %v8664_v57  ;;  %v11246_v27 = vrot.slane %v8689_v33, 9  ;;  %v11247_v24 = vrot.slane %v8688_v60, 9 }
 0x5a4   : > { %15113 = vmatpush3.bf16.msra.mxu0 %v15112_v55  ;;  %v11229_v18 = vrot.slane %v8664_v57, 9  ;;  %v20443_v62 = vmax.f32 %v8654_v53, %v11243_v20  ;;  %v20445_v1 = vmax.f32 %v8655_v25, %v11242_v58  ;;  %v20447_v50 = vmax.f32 %v8630_v9, %v11225_v42 }
 0x5a5   : > { %15114 = vmatprep.subr.bf16.mxu0 %v15836_v0  ;;  %v8673_v45 = vcombine.high %v8671_v49, %v8671_v49  ;;  %v11230_v34 = vrot.slane %v8672_v46, 9  ;;  %v11231_v56 = vrot.slane %v8671_v49, 9  ;;  %v20449_v55 = vmax.f32 %v8638_v22, %v11226_v17 }
 0x5a6   : > { %v8855_v32 = vmax.f32 %v20411_v23, %v20403_v3  ;;  %v11228_v35 = vrot.slane %v8639_v13, 9  ;;  %v20456_v6 = vmax.f32 %v8637_v2, %v11227_v15  ;;  %v11248_v53 = vrot.slane %v8690_v29, 9  ;;  %v11317_v3 = vld [vmem:[%s21500_s5 + $0x2a0] sm:$0xff]  ;;  %v11318_v23 = vld [vmem:[%s21500_s5 + $0x2a8] sm:$0xff] }
 0x5a7   : > { %v20458_v20 = vmax.f32 %v8681_v5, %v11245_v48  ;;  %v20461_v25 = vmax.f32 %v8689_v33, %v11246_v27  ;;  %v20463_v9 = vmax.f32 %v8688_v60, %v11247_v24  ;;  %v11232_v22 = vrot.slane %v8673_v45, 9  ;;  %v11271_v24 = vld [vmem:[%s21500_s5 + $0x130] sm:$0xff] }
 0x5a8   : > { %15116 = vmatpush3.bf16.msra.mxu0 %v15115_v41  ;;  %v20465_v58 = vmax.f32 %v8664_v57, %v11229_v18  ;;  %v20467_v28 = vmax.f32 %v8672_v46, %v11230_v34  ;;  %v20469_v47 = vmax.f32 %v8671_v49, %v11231_v56  ;;  %v8856_v41 = vmax.f32 %v20416_v30, %v20407_v26  ;;  %v11267_v49 = vld [vmem:[%s21500_s5 + $0x110] sm:$0xff]  ;;  %v11268_v46 = vld [vmem:[%s21500_s5 + $0x118] sm:$0xff]  ;;  %v11273_v34 = vld [vmem:[%s21500_s5 + $0x140] sm:$0xff] }
 0x5a9   : > { %15117 = vmatprep.subr.bf16.mxu0 %v15836_v0  ;;  %v8857_v2 = vmax.f32 %v20421_v39, %v20409_v21  ;;  %v20479_v5 = vmax.f32 %v20397_v8, %v11224_v16  ;;  %v20484_v42 = vmax.f32 %v20382_v51, %v11240_v54  ;;  %v8859_v60 = vmax.f32 %v20447_v50, %v20434_v44  ;;  %v11272_v18 = vld [vmem:[%s21500_s5 + $0x138] sm:$0xff]  ;;  %v11274_v56 = vld [vmem:[%s21500_s5 + $0x148] sm:$0xff]  ;;  %v11333_v26 = vld [vmem:[%s21500_s5 + $0x320] sm:$0xff] }
 0x5aa   : > { %v8860_v33 = vmax.f32 %v20449_v55, %v20445_v1  ;;  %v8861_v51 = vmax.f32 %v20456_v6, %v20443_v62  ;;  %v20504_v54 = vmax.f32 %v20413_v31, %v11244_v4  ;;  %v8863_v16 = vmax.f32 %v20465_v58, %v20458_v20  ;;  %v11265_v31 = vld [vmem:[%s21500_s5 + $0x100] sm:$0xff]  ;;  %v11266_v4 = vld [vmem:[%s21500_s5 + $0x108] sm:$0xff] }
 0x5ab   : > { %v8858_v8 = vmax.f32 %v20479_v5, %v20484_v42  ;;  %v8864_v57 = vmax.f32 %v20467_v28, %v20461_v25  ;;  %v15124_v17 = vpack.c.bf16 %v11264_v10, %v11263_v52  ;;  %v20515_v15 = vmax.f32 %v8673_v45, %v11232_v22  ;;  %v11276_v22 = vld [vmem:[%s21500_s5 + $0x158] sm:$0xff]  ;;  %v11277_v10 = vld [vmem:[%s21500_s5 + $0x160] sm:$0xff]  ;;  %v11334_v30 = vld [vmem:[%s21500_s5 + $0x328] sm:$0xff] }
 0x5ac   : > { %15119 = vmatpush3.bf16.msra.mxu0 %v15118_v38  ;;  %v20499_v38 = vmax.f32 %v8639_v13, %v11228_v35  ;;  %v8865_v13 = vmax.f32 %v20469_v47, %v20463_v9  ;;  %v20517_v48 = vmax.f32 %v8690_v29, %v11248_v53  ;;  %v8868_v29 = vmax.f32 %v8852_v7, 0.0  ;;  %v11275_v53 = vld [vmem:[%s21500_s5 + $0x150] sm:$0xff]  ;;  %v11349_v21 = vld [vmem:[%s21500_s5 + $0x3a0] sm:$0xff]  ;;  %v11350_v39 = vld [vmem:[%s21500_s5 + $0x3a8] sm:$0xff] }
 0x5ad   : > { %15120 = vmatprep.subr.bf16.mxu0 %v15836_v0  ;;  %v15130_v27 = vpack.c.bf16 %v11268_v46, %v11267_v49  ;;  %v15133_v7 = vpack.c.bf16 %v11270_v40, %v11269_v19  ;;  %v15136_v45 = vpack.c.bf16 %v11272_v18, %v11271_v24  ;;  %v15139_v35 = vpack.c.bf16 %v11274_v56, %v11273_v34  ;;  %v11281_v49 = vld [vmem:[%s21500_s5 + $0x180] sm:$0xff]  ;;  %v11282_v46 = vld [vmem:[%s21500_s5 + $0x188] sm:$0xff]  ;;  %v11283_v40 = vld [vmem:[%s21500_s5 + $0x190] sm:$0xff] }
 0x5ae   : > { %v8862_v63 = vmax.f32 %v20499_v38, %v20504_v54  ;;  %v8866_v14 = vmax.f32 %v20515_v15, %v20517_v48  ;;  %v15142_v52 = vpack.c.bf16 %v11276_v22, %v11275_v53  ;;  %v8869_v19 = vmax.f32 %v8853_v11, 0.0  ;;  %v11287_v18 = vld [vmem:[%s21500_s5 + $0x1b0] sm:$0xff]  ;;  %v11289_v56 = vld [vmem:[%s21500_s5 + $0x1c0] sm:$0xff]  ;;  %v11366_v42 = vld [vmem:[%s21500_s5 + $0x428] sm:$0xff] }
 0x5af   : > { %v15157_v11 = vpack.c.bf16 %v11286_v36, %v11285_v61  ;;  %v11291_v22 = vld [vmem:[%s21500_s5 + $0x1d0] sm:$0xff]  ;;  %v11300_v61 = vld [vmem:[%s21500_s5 + $0x218] sm:$0xff]  ;;  %v11365_v5 = vld [vmem:[%s21500_s5 + $0x420] sm:$0xff] }
 0x5b0   : > { %15122 = vmatpush3.bf16.msra.mxu0 %v15121_v37  ;;  %v15127_v37 = vpack.c.bf16 %v11266_v4, %v11265_v31  ;;  %v11279_v4 = vld [vmem:[%s21500_s5 + $0x170] sm:$0xff]  ;;  %v11381_v44 = vld [vmem:[%s21500_s5 + $0x4a0] sm:$0xff]  ;;  %v11382_v50 = vld [vmem:[%s21500_s5 + $0x4a8] sm:$0xff] }
 0x5b1   : > { %15123 = vmatprep.subr.bf16.mxu0 %v15836_v0  ;;  %v11397_v1 = vld [vmem:[%s21500_s5 + $0x520] sm:$0xff]  ;;  %v11398_v55 = vld [vmem:[%s21500_s5 + $0x528] sm:$0xff] }
 0x5b2   : > { %v11413_v6 = vld [vmem:[%s21500_s5 + $0x5a0] sm:$0xff]  ;;  %v11414_v62 = vld [vmem:[%s21500_s5 + $0x5a8] sm:$0xff] }
 0x5b3   : > { %v11429_v38 = vld [vmem:[%s21500_s5 + $0x620] sm:$0xff]  ;;  %v11430_v54 = vld [vmem:[%s21500_s5 + $0x628] sm:$0xff] }
 0x5b4   : > { %15125 = vmatpush3.bf16.msra.mxu0 %v15124_v17  ;;  %v11278_v17 = vld [vmem:[%s21500_s5 + $0x168] sm:$0xff]  ;;  %v11445_v20 = vld [vmem:[%s21500_s5 + $0x6a0] sm:$0xff] }
 0x5b5   : > { %15126 = vmatprep.subr.bf16.mxu0 %v15836_v0  ;;  %v15145_v31 = vpack.c.bf16 %v11278_v17, %v11277_v10  ;;  %v11293_v17 = vld [vmem:[%s21500_s5 + $0x1e0] sm:$0xff]  ;;  %v11446_v58 = vld [vmem:[%s21500_s5 + $0x6a8] sm:$0xff] }
 0x5b6   : > { %v11461_v25 = vld [vmem:[%s21500_s5 + $0x720] sm:$0xff]  ;;  %v11462_v28 = vld [vmem:[%s21500_s5 + $0x728] sm:$0xff] }
 0x5b7   : > { %13741 = vmatmul.mubr.f32.vlgmr.msra.gmra.mrb[80].mxu0 %v8868_v29  ;;  %v11477_v9 = vld [vmem:[%s21500_s5 + $0x7a0] sm:$0xff]  ;;  %v11478_v47 = vld [vmem:[%s21500_s5 + $0x7a8] sm:$0xff] }
 0x5b8   : > { %15128 = vmatpush3.bf16.msra.mxu0 %v15127_v37  ;;  %13775 = vmatprep.mubr.msk.f32.mxu0 %vm15837_vm11, %v15838_v12  ;;  %v11280_v37 = vld [vmem:[%s21500_s5 + $0x178] sm:$0xff]  ;;  %v10297_v15 = vld [vmem:[%s21502_s7 + $0x20] sm:$0xff]  ;;  %v10298_v48 = vld [vmem:[%s21502_s7 + $0x28] sm:$0xff] }
 0x5b9   : > { %15129 = vmatprep.subr.bf16.mxu0 %v15836_v0  ;;  %v15148_v29 = vpack.c.bf16 %v11280_v37, %v11279_v4  ;;  %v11295_v37 = vld [vmem:[%s21500_s5 + $0x1f0] sm:$0xff] }
 0x5bc   : > { %15131 = vmatpush3.bf16.msra.mxu0 %v15130_v27  ;;  %v15151_v27 = vpack.c.bf16 %v11282_v46, %v11281_v49  ;;  %v11297_v46 = vld [vmem:[%s21500_s5 + $0x200] sm:$0xff] }
 0x5bd   : > { %15132 = vmatprep.subr.bf16.mxu0 %v15836_v0 }
 0x5c0   : > { %15134 = vmatpush3.bf16.msra.mxu0 %v15133_v7  ;;  %v11284_v7 = vld [vmem:[%s21500_s5 + $0x198] sm:$0xff] }
 0x5c1   : > { %15135 = vmatprep.subr.bf16.mxu0 %v15836_v0  ;;  %v15154_v24 = vpack.c.bf16 %v11284_v7, %v11283_v40  ;;  %v22199_v40 = vmax.f32 %v20429_v43, %v20432_v59  ;;  %v11301_v43 = vld [vmem:[%s21500_s5 + $0x220] sm:$0xff]  ;;  %v11302_v59 = vld [vmem:[%s21500_s5 + $0x228] sm:$0xff] }
 0x5c3   : > { %v8870_v7 = vmax.f32 %v22199_v40, 0.0  ;;  %v8871_v40 = vmax.f32 %v8855_v32, 0.0  ;;  %v15205_v32 = vpack.c.bf16 %v11318_v23, %v11317_v3  ;;  %v11338_v3 = vld [vmem:[%s21500_s5 + $0x348] sm:$0xff] }
 0x5c4   : > { %15137 = vmatpush3.bf16.msra.mxu0 %v15136_v45  ;;  %v11288_v45 = vld [vmem:[%s21500_s5 + $0x1b8] sm:$0xff] }
 0x5c5   : > { %15138 = vmatprep.subr.bf16.mxu0 %v15836_v0  ;;  %v15160_v34 = vpack.c.bf16 %v11288_v45, %v11287_v18  ;;  %v11303_v18 = vld [vmem:[%s21500_s5 + $0x230] sm:$0xff]  ;;  %v11304_v45 = vld [vmem:[%s21500_s5 + $0x238] sm:$0xff] }
 0x5c8   : > { %15140 = vmatpush3.bf16.msra.mxu0 %v15139_v35  ;;  %v11290_v35 = vld [vmem:[%s21500_s5 + $0x1c8] sm:$0xff] }
 0x5c9   : > { %15141 = vmatprep.subr.bf16.mxu0 %v15836_v0  ;;  %v15163_v53 = vpack.c.bf16 %v11290_v35, %v11289_v56  ;;  %v11305_v56 = vld [vmem:[%s21500_s5 + $0x240] sm:$0xff]  ;;  %v11306_v35 = vld [vmem:[%s21500_s5 + $0x248] sm:$0xff] }
 0x5cc   : > { %15143 = vmatpush3.bf16.msra.mxu0 %v15142_v52  ;;  %v11292_v52 = vld [vmem:[%s21500_s5 + $0x1d8] sm:$0xff] }
 0x5cd   : > { %15144 = vmatprep.subr.bf16.mxu0 %v15836_v0  ;;  %v15166_v10 = vpack.c.bf16 %v11292_v52, %v11291_v22  ;;  %v11307_v22 = vld [vmem:[%s21500_s5 + $0x250] sm:$0xff]  ;;  %v11308_v52 = vld [vmem:[%s21500_s5 + $0x258] sm:$0xff] }
 0x5d0   : > { %15146 = vmatpush3.bf16.msra.mxu0 %v15145_v31  ;;  %v11294_v31 = vld [vmem:[%s21500_s5 + $0x1e8] sm:$0xff] }
 0x5d1   : > { %15147 = vmatprep.subr.bf16.mxu0 %v15836_v0  ;;  %v15169_v4 = vpack.c.bf16 %v11294_v31, %v11293_v17  ;;  %v11309_v17 = vld [vmem:[%s21500_s5 + $0x260] sm:$0xff]  ;;  %v11310_v31 = vld [vmem:[%s21500_s5 + $0x268] sm:$0xff] }
 0x5d4   : > { %15149 = vmatpush3.bf16.msra.mxu0 %v15148_v29  ;;  %v11296_v29 = vld [vmem:[%s21500_s5 + $0x1f8] sm:$0xff] }
 0x5d5   : > { %15150 = vmatprep.subr.bf16.mxu0 %v15836_v0  ;;  %v15172_v49 = vpack.c.bf16 %v11296_v29, %v11295_v37  ;;  %v11311_v37 = vld [vmem:[%s21500_s5 + $0x270] sm:$0xff]  ;;  %v11312_v29 = vld [vmem:[%s21500_s5 + $0x278] sm:$0xff] }
 0x5d7   : > { %13776 = vmatmul.mubr.f32.vlgmr.msra.gmra.mrb[80].mxu0 %v8869_v19 }
 0x5d8   : > { %15152 = vmatpush3.bf16.msra.mxu0 %v15151_v27  ;;  %13810 = vmatprep.mubr.msk.f32.mxu0 %vm15837_vm11, %v15838_v12  ;;  %v11298_v27 = vld [vmem:[%s21500_s5 + $0x208] sm:$0xff] }
 0x5d9   : > { %15153 = vmatprep.subr.bf16.mxu0 %v15836_v0  ;;  %v15175_v19 = vpack.c.bf16 %v11298_v27, %v11297_v46  ;;  %v11313_v46 = vld [vmem:[%s21500_s5 + $0x280] sm:$0xff]  ;;  %v11314_v27 = vld [vmem:[%s21500_s5 + $0x288] sm:$0xff] }
 0x5dc   : > { %15155 = vmatpush3.bf16.msra.mxu0 %v15154_v24  ;;  %v11299_v24 = vld [vmem:[%s21500_s5 + $0x210] sm:$0xff] }
 0x5dd   : > { %15156 = vmatprep.subr.bf16.mxu0 %v15836_v0  ;;  %v15178_v36 = vpack.c.bf16 %v11300_v61, %v11299_v24  ;;  %v11316_v24 = vld [vmem:[%s21500_s5 + $0x298] sm:$0xff] }
 0x5e0   : > { %15158 = vmatpush3.bf16.msra.mxu0 %v15157_v11  ;;  %v15181_v11 = vpack.c.bf16 %v11302_v59, %v11301_v43  ;;  %v11320_v43 = vld [vmem:[%s21500_s5 + $0x2b8] sm:$0xff] }
 0x5e1   : > { %15159 = vmatprep.subr.bf16.mxu0 %v15836_v0 }
 0x5e4   : > { %15161 = vmatpush3.bf16.msra.mxu0 %v15160_v34  ;;  %v15184_v34 = vpack.c.bf16 %v11304_v45, %v11303_v18  ;;  %v11322_v18 = vld [vmem:[%s21500_s5 + $0x2c8] sm:$0xff] }
 0x5e5   : > { %15162 = vmatprep.subr.bf16.mxu0 %v15836_v0 }
 0x5e8   : > { %15164 = vmatpush3.bf16.msra.mxu0 %v15163_v53  ;;  %v15187_v53 = vpack.c.bf16 %v11306_v35, %v11305_v56  ;;  %v11324_v56 = vld [vmem:[%s21500_s5 + $0x2d8] sm:$0xff] }
 0x5e9   : > { %15165 = vmatprep.subr.bf16.mxu0 %v15836_v0 }
 0x5ec   : > { %15167 = vmatpush3.bf16.msra.mxu0 %v15166_v10  ;;  %v15190_v10 = vpack.c.bf16 %v11308_v52, %v11307_v22  ;;  %v11326_v22 = vld [vmem:[%s21500_s5 + $0x2e8] sm:$0xff] }
 0x5ed   : > { %15168 = vmatprep.subr.bf16.mxu0 %v15836_v0 }
 0x5f0   : > { %15170 = vmatpush3.bf16.msra.mxu0 %v15169_v4  ;;  %v15193_v4 = vpack.c.bf16 %v11310_v31, %v11309_v17  ;;  %v11328_v17 = vld [vmem:[%s21500_s5 + $0x2f8] sm:$0xff] }
 0x5f1   : > { %15171 = vmatprep.subr.bf16.mxu0 %v15836_v0 }
 0x5f4   : > { %15173 = vmatpush3.bf16.msra.mxu0 %v15172_v49  ;;  %v15196_v49 = vpack.c.bf16 %v11312_v29, %v11311_v37  ;;  %v11330_v37 = vld [vmem:[%s21500_s5 + $0x308] sm:$0xff] }
 0x5f5   : > { %15174 = vmatprep.subr.bf16.mxu0 %v15836_v0 }
 0x5f7   : > { %13811 = vmatmul.mubr.f32.vlgmr.msra.gmra.mrb[80].mxu0 %v8870_v7  ;;  %v11315_v7 = vld [vmem:[%s21500_s5 + $0x290] sm:$0xff] }
 0x5f8   : > { %15176 = vmatpush3.bf16.msra.mxu0 %v15175_v19  ;;  %13845 = vmatprep.mubr.msk.f32.mxu0 %vm15837_vm11, %v15838_v12  ;;  %v15199_v19 = vpack.c.bf16 %v11314_v27, %v11313_v46  ;;  %v15202_v61 = vpack.c.bf16 %v11316_v24, %v11315_v7  ;;  %v11331_v46 = vld [vmem:[%s21500_s5 + $0x310] sm:$0xff]  ;;  %v11332_v27 = vld [vmem:[%s21500_s5 + $0x318] sm:$0xff] }
 0x5f9   : > { %15177 = vmatprep.subr.bf16.mxu0 %v15836_v0  ;;  %v11336_v7 = vld [vmem:[%s21500_s5 + $0x338] sm:$0xff] }
 0x5fc   : > { %15179 = vmatpush3.bf16.msra.mxu0 %v15178_v36  ;;  %v11319_v36 = vld [vmem:[%s21500_s5 + $0x2b0] sm:$0xff] }
 0x5fd   : > { %15180 = vmatprep.subr.bf16.mxu0 %v15836_v0  ;;  %v15208_v59 = vpack.c.bf16 %v11320_v43, %v11319_v36  ;;  %v11340_v36 = vld [vmem:[%s21500_s5 + $0x358] sm:$0xff] }
 0x600   : > { %15182 = vmatpush3.bf16.msra.mxu0 %v15181_v11  ;;  %v11321_v11 = vld [vmem:[%s21500_s5 + $0x2c0] sm:$0xff] }
 0x601   : > { %15183 = vmatprep.subr.bf16.mxu0 %v15836_v0  ;;  %v15211_v45 = vpack.c.bf16 %v11322_v18, %v11321_v11  ;;  %v11342_v11 = vld [vmem:[%s21500_s5 + $0x368] sm:$0xff] }
 0x604   : > { %15185 = vmatpush3.bf16.msra.mxu0 %v15184_v34  ;;  %v11323_v34 = vld [vmem:[%s21500_s5 + $0x2d0] sm:$0xff] }
 0x605   : > { %15186 = vmatprep.subr.bf16.mxu0 %v15836_v0  ;;  %v15214_v35 = vpack.c.bf16 %v11324_v56, %v11323_v34  ;;  %v11344_v34 = vld [vmem:[%s21500_s5 + $0x378] sm:$0xff] }
 0x608   : > { %15188 = vmatpush3.bf16.msra.mxu0 %v15187_v53  ;;  %v11325_v53 = vld [vmem:[%s21500_s5 + $0x2e0] sm:$0xff] }
 0x609   : > { %15189 = vmatprep.subr.bf16.mxu0 %v15836_v0  ;;  %v15217_v52 = vpack.c.bf16 %v11326_v22, %v11325_v53  ;;  %v11346_v53 = vld [vmem:[%s21500_s5 + $0x388] sm:$0xff] }
 0x60c   : > { %15191 = vmatpush3.bf16.msra.mxu0 %v15190_v10  ;;  %v11327_v10 = vld [vmem:[%s21500_s5 + $0x2f0] sm:$0xff] }
 0x60d   : > { %15192 = vmatprep.subr.bf16.mxu0 %v15836_v0  ;;  %v15220_v31 = vpack.c.bf16 %v11328_v17, %v11327_v10  ;;  %v11347_v10 = vld [vmem:[%s21500_s5 + $0x390] sm:$0xff]  ;;  %v11348_v17 = vld [vmem:[%s21500_s5 + $0x398] sm:$0xff] }
 0x610   : > { %15194 = vmatpush3.bf16.msra.mxu0 %v15193_v4  ;;  %v11329_v4 = vld [vmem:[%s21500_s5 + $0x300] sm:$0xff] }
 0x611   : > { %15195 = vmatprep.subr.bf16.mxu0 %v15836_v0  ;;  %v15223_v29 = vpack.c.bf16 %v11330_v37, %v11329_v4  ;;  %v11351_v4 = vld [vmem:[%s21500_s5 + $0x3b0] sm:$0xff]  ;;  %v11352_v37 = vld [vmem:[%s21500_s5 + $0x3b8] sm:$0xff] }
 0x614   : > { %15197 = vmatpush3.bf16.msra.mxu0 %v15196_v49  ;;  %v8872_v49 = vmax.f32 %v8856_v41, 0.0  ;;  %v15229_v41 = vpack.c.bf16 %v11334_v30, %v11333_v26  ;;  %v11356_v26 = vld [vmem:[%s21500_s5 + $0x3d8] sm:$0xff] }
 0x615   : > { %15198 = vmatprep.subr.bf16.mxu0 %v15836_v0 }
 0x617   : > { %13846 = vmatmul.mubr.f32.vlgmr.msra.gmra.mrb[80].mxu0 %v8871_v40  ;;  %v11335_v40 = vld [vmem:[%s21500_s5 + $0x330] sm:$0xff] }
 0x618   : > { %15200 = vmatpush3.bf16.msra.mxu0 %v15199_v19  ;;  %13880 = vmatprep.mubr.msk.f32.mxu0 %vm15837_vm11, %v15838_v12  ;;  %v15226_v19 = vpack.c.bf16 %v11332_v27, %v11331_v46  ;;  %v15232_v24 = vpack.c.bf16 %v11336_v7, %v11335_v40  ;;  %v11354_v46 = vld [vmem:[%s21500_s5 + $0x3c8] sm:$0xff] }
 0x619   : > { %15201 = vmatprep.subr.bf16.mxu0 %v15836_v0  ;;  %v11358_v40 = vld [vmem:[%s21500_s5 + $0x3e8] sm:$0xff] }
 0x61c   : > { %15203 = vmatpush3.bf16.msra.mxu0 %v15202_v61  ;;  %v11337_v61 = vld [vmem:[%s21500_s5 + $0x340] sm:$0xff] }
 0x61d   : > { %15204 = vmatprep.subr.bf16.mxu0 %v15836_v0  ;;  %v15235_v23 = vpack.c.bf16 %v11338_v3, %v11337_v61  ;;  %v11360_v61 = vld [vmem:[%s21500_s5 + $0x3f8] sm:$0xff] }
 0x620   : > { %15206 = vmatpush3.bf16.msra.mxu0 %v15205_v32  ;;  %v11339_v32 = vld [vmem:[%s21500_s5 + $0x350] sm:$0xff] }
 0x621   : > { %15207 = vmatprep.subr.bf16.mxu0 %v15836_v0  ;;  %v15238_v43 = vpack.c.bf16 %v11340_v36, %v11339_v32  ;;  %v11362_v32 = vld [vmem:[%s21500_s5 + $0x408] sm:$0xff] }
 0x624   : > { %15209 = vmatpush3.bf16.msra.mxu0 %v15208_v59  ;;  %v11341_v59 = vld [vmem:[%s21500_s5 + $0x360] sm:$0xff] }
 0x625   : > { %15210 = vmatprep.subr.bf16.mxu0 %v15836_v0  ;;  %v15241_v18 = vpack.c.bf16 %v11342_v11, %v11341_v59  ;;  %v11363_v59 = vld [vmem:[%s21500_s5 + $0x410] sm:$0xff]  ;;  %v11364_v11 = vld [vmem:[%s21500_s5 + $0x418] sm:$0xff] }
 0x628   : > { %15212 = vmatpush3.bf16.msra.mxu0 %v15211_v45  ;;  %v11343_v45 = vld [vmem:[%s21500_s5 + $0x370] sm:$0xff] }
 0x629   : > { %15213 = vmatprep.subr.bf16.mxu0 %v15836_v0  ;;  %v15244_v56 = vpack.c.bf16 %v11344_v34, %v11343_v45  ;;  %v11367_v45 = vld [vmem:[%s21500_s5 + $0x430] sm:$0xff]  ;;  %v11368_v34 = vld [vmem:[%s21500_s5 + $0x438] sm:$0xff] }
 0x62c   : > { %15215 = vmatpush3.bf16.msra.mxu0 %v15214_v35  ;;  %v11345_v35 = vld [vmem:[%s21500_s5 + $0x380] sm:$0xff] }
 0x62d   : > { %15216 = vmatprep.subr.bf16.mxu0 %v15836_v0  ;;  %v15247_v22 = vpack.c.bf16 %v11346_v53, %v11345_v35  ;;  %v11369_v35 = vld [vmem:[%s21500_s5 + $0x440] sm:$0xff]  ;;  %v11370_v53 = vld [vmem:[%s21500_s5 + $0x448] sm:$0xff] }
 0x630   : > { %15218 = vmatpush3.bf16.msra.mxu0 %v15217_v52  ;;  %v8873_v52 = vmax.f32 %v8857_v2, 0.0  ;;  %v15253_v2 = vpack.c.bf16 %v11350_v39, %v11349_v21  ;;  %v11374_v21 = vld [vmem:[%s21500_s5 + $0x468] sm:$0xff] }
 0x631   : > { %15219 = vmatprep.subr.bf16.mxu0 %v15836_v0 }
 0x634   : > { %15221 = vmatpush3.bf16.msra.mxu0 %v15220_v31  ;;  %v15250_v31 = vpack.c.bf16 %v11348_v17, %v11347_v10  ;;  %v11372_v10 = vld [vmem:[%s21500_s5 + $0x458] sm:$0xff] }
 0x635   : > { %15222 = vmatprep.subr.bf16.mxu0 %v15836_v0 }
 0x637   : > { %13881 = vmatmul.mubr.f32.vlgmr.msra.gmra.mrb[80].mxu0 %v8872_v49  ;;  %v11353_v49 = vld [vmem:[%s21500_s5 + $0x3c0] sm:$0xff] }
 0x638   : > { %15224 = vmatpush3.bf16.msra.mxu0 %v15223_v29  ;;  %13915 = vmatprep.mubr.msk.f32.mxu0 %vm15837_vm11, %v15838_v12  ;;  %v15256_v29 = vpack.c.bf16 %v11352_v37, %v11351_v4  ;;  %v15259_v27 = vpack.c.bf16 %v11354_v46, %v11353_v49  ;;  %v11376_v4 = vld [vmem:[%s21500_s5 + $0x478] sm:$0xff]  ;;  %v11378_v49 = vld [vmem:[%s21500_s5 + $0x488] sm:$0xff] }
 0x639   : > { %15225 = vmatprep.subr.bf16.mxu0 %v15836_v0 }
 0x63c   : > { %15227 = vmatpush3.bf16.msra.mxu0 %v15226_v19  ;;  %v11355_v19 = vld [vmem:[%s21500_s5 + $0x3d0] sm:$0xff] }
 0x63d   : > { %15228 = vmatprep.subr.bf16.mxu0 %v15836_v0  ;;  %v15262_v30 = vpack.c.bf16 %v11356_v26, %v11355_v19  ;;  %v11379_v19 = vld [vmem:[%s21500_s5 + $0x490] sm:$0xff]  ;;  %v11380_v26 = vld [vmem:[%s21500_s5 + $0x498] sm:$0xff] }
 0x640   : > { %15230 = vmatpush3.bf16.msra.mxu0 %v15229_v41  ;;  %v11357_v41 = vld [vmem:[%s21500_s5 + $0x3e0] sm:$0xff] }
 0x641   : > { %15231 = vmatprep.subr.bf16.mxu0 %v15836_v0  ;;  %v15265_v7 = vpack.c.bf16 %v11358_v40, %v11357_v41  ;;  %v11383_v41 = vld [vmem:[%s21500_s5 + $0x4b0] sm:$0xff]  ;;  %v11384_v40 = vld [vmem:[%s21500_s5 + $0x4b8] sm:$0xff] }
 0x644   : > { %15233 = vmatpush3.bf16.msra.mxu0 %v15232_v24  ;;  %v11359_v24 = vld [vmem:[%s21500_s5 + $0x3f0] sm:$0xff] }
 0x645   : > { %15234 = vmatprep.subr.bf16.mxu0 %v15836_v0  ;;  %v15268_v3 = vpack.c.bf16 %v11360_v61, %v11359_v24  ;;  %v11385_v24 = vld [vmem:[%s21500_s5 + $0x4c0] sm:$0xff]  ;;  %v11386_v61 = vld [vmem:[%s21500_s5 + $0x4c8] sm:$0xff] }
 0x648   : > { %15236 = vmatpush3.bf16.msra.mxu0 %v15235_v23  ;;  %v11361_v23 = vld [vmem:[%s21500_s5 + $0x400] sm:$0xff] }
 0x649   : > { %15237 = vmatprep.subr.bf16.mxu0 %v15836_v0  ;;  %v15271_v36 = vpack.c.bf16 %v11362_v32, %v11361_v23  ;;  %v11387_v23 = vld [vmem:[%s21500_s5 + $0x4d0] sm:$0xff]  ;;  %v11388_v32 = vld [vmem:[%s21500_s5 + $0x4d8] sm:$0xff] }
 0x64c   : > { %15239 = vmatpush3.bf16.msra.mxu0 %v15238_v43  ;;  %v8874_v43 = vmax.f32 %v8858_v8, 0.0  ;;  %v15277_v8 = vpack.c.bf16 %v11366_v42, %v11365_v5  ;;  %v11392_v5 = vld [vmem:[%s21500_s5 + $0x4f8] sm:$0xff] }
 0x64d   : > { %15240 = vmatprep.subr.bf16.mxu0 %v15836_v0 }
 0x650   : > { %15242 = vmatpush3.bf16.msra.mxu0 %v15241_v18  ;;  %v15274_v18 = vpack.c.bf16 %v11364_v11, %v11363_v59  ;;  %v11390_v59 = vld [vmem:[%s21500_s5 + $0x4e8] sm:$0xff] }
 0x651   : > { %15243 = vmatprep.subr.bf16.mxu0 %v15836_v0 }
 0x654   : > { %15245 = vmatpush3.bf16.msra.mxu0 %v15244_v56  ;;  %v15280_v56 = vpack.c.bf16 %v11368_v34, %v11367_v45  ;;  %v11394_v45 = vld [vmem:[%s21500_s5 + $0x508] sm:$0xff] }
 0x655   : > { %15246 = vmatprep.subr.bf16.mxu0 %v15836_v0 }
 0x657   : > { %13916 = vmatmul.mubr.f32.vlgmr.msra.gmra.mrb[80].mxu0 %v8873_v52  ;;  %v11371_v52 = vld [vmem:[%s21500_s5 + $0x450] sm:$0xff] }
 0x658   : > { %15248 = vmatpush3.bf16.msra.mxu0 %v15247_v22  ;;  %13950 = vmatprep.mubr.msk.f32.mxu0 %vm15837_vm11, %v15838_v12  ;;  %v15283_v22 = vpack.c.bf16 %v11370_v53, %v11369_v35  ;;  %v15286_v17 = vpack.c.bf16 %v11372_v10, %v11371_v52  ;;  %v11395_v35 = vld [vmem:[%s21500_s5 + $0x510] sm:$0xff]  ;;  %v11396_v53 = vld [vmem:[%s21500_s5 + $0x518] sm:$0xff] }
 0x659   : > { %15249 = vmatprep.subr.bf16.mxu0 %v15836_v0  ;;  %v11399_v52 = vld [vmem:[%s21500_s5 + $0x530] sm:$0xff]  ;;  %v11400_v10 = vld [vmem:[%s21500_s5 + $0x538] sm:$0xff] }
 0x65c   : > { %15251 = vmatpush3.bf16.msra.mxu0 %v15250_v31  ;;  %v11373_v31 = vld [vmem:[%s21500_s5 + $0x460] sm:$0xff] }
 0x65d   : > { %15252 = vmatprep.subr.bf16.mxu0 %v15836_v0  ;;  %v15289_v39 = vpack.c.bf16 %v11374_v21, %v11373_v31  ;;  %v11401_v31 = vld [vmem:[%s21500_s5 + $0x540] sm:$0xff]  ;;  %v11402_v21 = vld [vmem:[%s21500_s5 + $0x548] sm:$0xff] }
 0x660   : > { %15254 = vmatpush3.bf16.msra.mxu0 %v15253_v2  ;;  %v11375_v2 = vld [vmem:[%s21500_s5 + $0x470] sm:$0xff] }
 0x661   : > { %15255 = vmatprep.subr.bf16.mxu0 %v15836_v0  ;;  %v15292_v37 = vpack.c.bf16 %v11376_v4, %v11375_v2  ;;  %v11403_v2 = vld [vmem:[%s21500_s5 + $0x550] sm:$0xff]  ;;  %v11404_v4 = vld [vmem:[%s21500_s5 + $0x558] sm:$0xff] }
 0x664   : > { %15257 = vmatpush3.bf16.msra.mxu0 %v15256_v29  ;;  %v11377_v29 = vld [vmem:[%s21500_s5 + $0x480] sm:$0xff] }
 0x665   : > { %15258 = vmatprep.subr.bf16.mxu0 %v15836_v0  ;;  %v15295_v46 = vpack.c.bf16 %v11378_v49, %v11377_v29  ;;  %v11405_v29 = vld [vmem:[%s21500_s5 + $0x560] sm:$0xff]  ;;  %v11406_v49 = vld [vmem:[%s21500_s5 + $0x568] sm:$0xff] }
 0x668   : > { %15260 = vmatpush3.bf16.msra.mxu0 %v15259_v27  ;;  %v8875_v27 = vmax.f32 %v8859_v60, 0.0  ;;  %v15301_v60 = vpack.c.bf16 %v11382_v50, %v11381_v44  ;;  %v11410_v44 = vld [vmem:[%s21500_s5 + $0x588] sm:$0xff] }
 0x669   : > { %15261 = vmatprep.subr.bf16.mxu0 %v15836_v0 }
 0x66c   : > { %15263 = vmatpush3.bf16.msra.mxu0 %v15262_v30  ;;  %v15298_v30 = vpack.c.bf16 %v11380_v26, %v11379_v19  ;;  %v11408_v19 = vld [vmem:[%s21500_s5 + $0x578] sm:$0xff] }
 0x66d   : > { %15264 = vmatprep.subr.bf16.mxu0 %v15836_v0 }
 0x670   : > { %15266 = vmatpush3.bf16.msra.mxu0 %v15265_v7  ;;  %v15304_v7 = vpack.c.bf16 %v11384_v40, %v11383_v41  ;;  %v11411_v41 = vld [vmem:[%s21500_s5 + $0x590] sm:$0xff]  ;;  %v11412_v40 = vld [vmem:[%s21500_s5 + $0x598] sm:$0xff] }
 0x671   : > { %15267 = vmatprep.subr.bf16.mxu0 %v15836_v0 }
 0x674   : > { %15269 = vmatpush3.bf16.msra.mxu0 %v15268_v3  ;;  %v15307_v3 = vpack.c.bf16 %v11386_v61, %v11385_v24  ;;  %v11415_v24 = vld [vmem:[%s21500_s5 + $0x5b0] sm:$0xff]  ;;  %v11416_v61 = vld [vmem:[%s21500_s5 + $0x5b8] sm:$0xff] }
 0x675   : > { %15270 = vmatprep.subr.bf16.mxu0 %v15836_v0 }
 0x677   : > { %13951 = vmatmul.mubr.f32.vlgmr.msra.gmra.mrb[80].mxu0 %v8874_v43  ;;  %v11389_v43 = vld [vmem:[%s21500_s5 + $0x4e0] sm:$0xff] }
 0x678   : > { %15272 = vmatpush3.bf16.msra.mxu0 %v15271_v36  ;;  %13985 = vmatprep.mubr.msk.f32.mxu0 %vm15837_vm11, %v15838_v12  ;;  %v15310_v36 = vpack.c.bf16 %v11388_v32, %v11387_v23  ;;  %v15313_v11 = vpack.c.bf16 %v11390_v59, %v11389_v43  ;;  %v11417_v23 = vld [vmem:[%s21500_s5 + $0x5c0] sm:$0xff]  ;;  %v11418_v32 = vld [vmem:[%s21500_s5 + $0x5c8] sm:$0xff]  ;;  %v11419_v43 = vld [vmem:[%s21500_s5 + $0x5d0] sm:$0xff] }
 0x679   : > { %15273 = vmatprep.subr.bf16.mxu0 %v15836_v0  ;;  %v11420_v59 = vld [vmem:[%s21500_s5 + $0x5d8] sm:$0xff] }
 0x67c   : > { %15275 = vmatpush3.bf16.msra.mxu0 %v15274_v18  ;;  %v11391_v18 = vld [vmem:[%s21500_s5 + $0x4f0] sm:$0xff] }
 0x67d   : > { %15276 = vmatprep.subr.bf16.mxu0 %v15836_v0  ;;  %v15316_v42 = vpack.c.bf16 %v11392_v5, %v11391_v18  ;;  %v11421_v18 = vld [vmem:[%s21500_s5 + $0x5e0] sm:$0xff]  ;;  %v11422_v5 = vld [vmem:[%s21500_s5 + $0x5e8] sm:$0xff] }
 0x680   : > { %15278 = vmatpush3.bf16.msra.mxu0 %v15277_v8  ;;  %v11393_v8 = vld [vmem:[%s21500_s5 + $0x500] sm:$0xff] }
 0x681   : > { %15279 = vmatprep.subr.bf16.mxu0 %v15836_v0  ;;  %v15319_v34 = vpack.c.bf16 %v11394_v45, %v11393_v8  ;;  %v11423_v8 = vld [vmem:[%s21500_s5 + $0x5f0] sm:$0xff]  ;;  %v11424_v45 = vld [vmem:[%s21500_s5 + $0x5f8] sm:$0xff] }
 0x684   : > { %15281 = vmatpush3.bf16.msra.mxu0 %v15280_v56  ;;  %v8876_v56 = vmax.f32 %v8860_v33, 0.0  ;;  %v15325_v33 = vpack.c.bf16 %v11398_v55, %v11397_v1  ;;  %v11427_v1 = vld [vmem:[%s21500_s5 + $0x610] sm:$0xff]  ;;  %v11428_v55 = vld [vmem:[%s21500_s5 + $0x618] sm:$0xff] }
 0x685   : > { %15282 = vmatprep.subr.bf16.mxu0 %v15836_v0 }
 0x688   : > { %15284 = vmatpush3.bf16.msra.mxu0 %v15283_v22  ;;  %v15322_v22 = vpack.c.bf16 %v11396_v53, %v11395_v35  ;;  %v11426_v35 = vld [vmem:[%s21500_s5 + $0x608] sm:$0xff] }
 0x689   : > { %15285 = vmatprep.subr.bf16.mxu0 %v15836_v0 }
 0x68c   : > { %15287 = vmatpush3.bf16.msra.mxu0 %v15286_v17  ;;  %v15328_v17 = vpack.c.bf16 %v11400_v10, %v11399_v52  ;;  %v11431_v52 = vld [vmem:[%s21500_s5 + $0x630] sm:$0xff]  ;;  %v11432_v10 = vld [vmem:[%s21500_s5 + $0x638] sm:$0xff] }
 0x68d   : > { %15288 = vmatprep.subr.bf16.mxu0 %v15836_v0 }
 0x690   : > { %15290 = vmatpush3.bf16.msra.mxu0 %v15289_v39  ;;  %v15331_v39 = vpack.c.bf16 %v11402_v21, %v11401_v31  ;;  %v11433_v31 = vld [vmem:[%s21500_s5 + $0x640] sm:$0xff]  ;;  %v11434_v21 = vld [vmem:[%s21500_s5 + $0x648] sm:$0xff] }
 0x691   : > { %15291 = vmatprep.subr.bf16.mxu0 %v15836_v0 }
 0x694   : > { %15293 = vmatpush3.bf16.msra.mxu0 %v15292_v37  ;;  %v15334_v37 = vpack.c.bf16 %v11404_v4, %v11403_v2  ;;  %v11435_v2 = vld [vmem:[%s21500_s5 + $0x650] sm:$0xff]  ;;  %v11436_v4 = vld [vmem:[%s21500_s5 + $0x658] sm:$0xff] }
 0x695   : > { %15294 = vmatprep.subr.bf16.mxu0 %v15836_v0 }
 0x697   : > { %13986 = vmatmul.mubr.f32.vlgmr.msra.gmra.mrb[80].mxu0 %v8875_v27  ;;  %v11407_v27 = vld [vmem:[%s21500_s5 + $0x570] sm:$0xff] }
 0x698   : > { %15296 = vmatpush3.bf16.msra.mxu0 %v15295_v46  ;;  %14020 = vmatprep.mubr.msk.f32.mxu0 %vm15837_vm11, %v15838_v12  ;;  %v15337_v46 = vpack.c.bf16 %v11406_v49, %v11405_v29  ;;  %v15340_v26 = vpack.c.bf16 %v11408_v19, %v11407_v27  ;;  %v11437_v29 = vld [vmem:[%s21500_s5 + $0x660] sm:$0xff]  ;;  %v11438_v49 = vld [vmem:[%s21500_s5 + $0x668] sm:$0xff]  ;;  %v11439_v27 = vld [vmem:[%s21500_s5 + $0x670] sm:$0xff] }
 0x699   : > { %15297 = vmatprep.subr.bf16.mxu0 %v15836_v0  ;;  %v11440_v19 = vld [vmem:[%s21500_s5 + $0x678] sm:$0xff] }
 0x69c   : > { %15299 = vmatpush3.bf16.msra.mxu0 %v15298_v30  ;;  %v11409_v30 = vld [vmem:[%s21500_s5 + $0x580] sm:$0xff] }
 0x69d   : > { %15300 = vmatprep.subr.bf16.mxu0 %v15836_v0  ;;  %v15343_v50 = vpack.c.bf16 %v11410_v44, %v11409_v30  ;;  %v11441_v30 = vld [vmem:[%s21500_s5 + $0x680] sm:$0xff]  ;;  %v11442_v44 = vld [vmem:[%s21500_s5 + $0x688] sm:$0xff] }
 0x6a0   : > { %15302 = vmatpush3.bf16.msra.mxu0 %v15301_v60  ;;  %v8877_v60 = vmax.f32 %v8861_v51, 0.0  ;;  %v15349_v51 = vpack.c.bf16 %v11414_v62, %v11413_v6  ;;  %v11447_v6 = vld [vmem:[%s21500_s5 + $0x6b0] sm:$0xff]  ;;  %v11448_v62 = vld [vmem:[%s21500_s5 + $0x6b8] sm:$0xff] }
 0x6a1   : > { %15303 = vmatprep.subr.bf16.mxu0 %v15836_v0 }
 0x6a4   : > { %15305 = vmatpush3.bf16.msra.mxu0 %v15304_v7  ;;  %v15346_v7 = vpack.c.bf16 %v11412_v40, %v11411_v41  ;;  %v11443_v41 = vld [vmem:[%s21500_s5 + $0x690] sm:$0xff]  ;;  %v11444_v40 = vld [vmem:[%s21500_s5 + $0x698] sm:$0xff] }
 0x6a5   : > { %15306 = vmatprep.subr.bf16.mxu0 %v15836_v0 }
 0x6a8   : > { %15308 = vmatpush3.bf16.msra.mxu0 %v15307_v3  ;;  %v15352_v3 = vpack.c.bf16 %v11416_v61, %v11415_v24  ;;  %v11449_v24 = vld [vmem:[%s21500_s5 + $0x6c0] sm:$0xff]  ;;  %v11450_v61 = vld [vmem:[%s21500_s5 + $0x6c8] sm:$0xff] }
 0x6a9   : > { %15309 = vmatprep.subr.bf16.mxu0 %v15836_v0 }
 0x6ac   : > { %15311 = vmatpush3.bf16.msra.mxu0 %v15310_v36  ;;  %v15355_v36 = vpack.c.bf16 %v11418_v32, %v11417_v23  ;;  %v11451_v23 = vld [vmem:[%s21500_s5 + $0x6d0] sm:$0xff]  ;;  %v11452_v32 = vld [vmem:[%s21500_s5 + $0x6d8] sm:$0xff] }
 0x6ad   : > { %15312 = vmatprep.subr.bf16.mxu0 %v15836_v0 }
 0x6b0   : > { %15314 = vmatpush3.bf16.msra.mxu0 %v15313_v11  ;;  %v15358_v11 = vpack.c.bf16 %v11420_v59, %v11419_v43  ;;  %v11453_v43 = vld [vmem:[%s21500_s5 + $0x6e0] sm:$0xff]  ;;  %v11454_v59 = vld [vmem:[%s21500_s5 + $0x6e8] sm:$0xff] }
 0x6b1   : > { %15315 = vmatprep.subr.bf16.mxu0 %v15836_v0 }
 0x6b4   : > { %15317 = vmatpush3.bf16.msra.mxu0 %v15316_v42  ;;  %v15361_v42 = vpack.c.bf16 %v11422_v5, %v11421_v18  ;;  %v11455_v18 = vld [vmem:[%s21500_s5 + $0x6f0] sm:$0xff]  ;;  %v11456_v5 = vld [vmem:[%s21500_s5 + $0x6f8] sm:$0xff] }
 0x6b5   : > { %15318 = vmatprep.subr.bf16.mxu0 %v15836_v0 }
 0x6b7   : > { %14021 = vmatmul.mubr.f32.vlgmr.msra.gmra.mrb[80].mxu0 %v8876_v56  ;;  %v11425_v56 = vld [vmem:[%s21500_s5 + $0x600] sm:$0xff] }
 0x6b8   : > { %15320 = vmatpush3.bf16.msra.mxu0 %v15319_v34  ;;  %14055 = vmatprep.mubr.msk.f32.mxu0 %vm15837_vm11, %v15838_v12  ;;  %v15364_v34 = vpack.c.bf16 %v11424_v45, %v11423_v8  ;;  %v15367_v53 = vpack.c.bf16 %v11426_v35, %v11425_v56  ;;  %v11457_v8 = vld [vmem:[%s21500_s5 + $0x700] sm:$0xff]  ;;  %v11458_v45 = vld [vmem:[%s21500_s5 + $0x708] sm:$0xff]  ;;  %v8880_v56 = vmax.f32 %v8864_v57, 0.0  ;;  %v11459_v35 = vld [vmem:[%s21500_s5 + $0x710] sm:$0xff]  ;;  %v15421_v57 = vpack.c.bf16 %v11462_v28, %v11461_v25 }
 0x6b9   : > { %15321 = vmatprep.subr.bf16.mxu0 %v15836_v0  ;;  %v10306_v25 = vld [vmem:[%s21502_s7 + $0x68] sm:$0xff] }
 0x6bc   : > { %15323 = vmatpush3.bf16.msra.mxu0 %v15322_v22  ;;  %v8878_v22 = vmax.f32 %v8862_v63, 0.0  ;;  %v15373_v63 = vpack.c.bf16 %v11430_v54, %v11429_v38  ;;  %v11465_v38 = vld [vmem:[%s21500_s5 + $0x740] sm:$0xff]  ;;  %v11466_v54 = vld [vmem:[%s21500_s5 + $0x748] sm:$0xff] }
 0x6bd   : > { %15324 = vmatprep.subr.bf16.mxu0 %v15836_v0 }
 0x6c0   : > { %15326 = vmatpush3.bf16.msra.mxu0 %v15325_v33  ;;  %v15370_v33 = vpack.c.bf16 %v11428_v55, %v11427_v1  ;;  %v11463_v1 = vld [vmem:[%s21500_s5 + $0x730] sm:$0xff]  ;;  %v11464_v55 = vld [vmem:[%s21500_s5 + $0x738] sm:$0xff] }
 0x6c1   : > { %15327 = vmatprep.subr.bf16.mxu0 %v15836_v0 }
 0x6c4   : > { %15329 = vmatpush3.bf16.msra.mxu0 %v15328_v17  ;;  %v15376_v17 = vpack.c.bf16 %v11432_v10, %v11431_v52  ;;  %v11467_v52 = vld [vmem:[%s21500_s5 + $0x750] sm:$0xff]  ;;  %v11468_v10 = vld [vmem:[%s21500_s5 + $0x758] sm:$0xff] }
 0x6c5   : > { %15330 = vmatprep.subr.bf16.mxu0 %v15836_v0 }
 0x6c8   : > { %15332 = vmatpush3.bf16.msra.mxu0 %v15331_v39  ;;  %v15379_v39 = vpack.c.bf16 %v11434_v21, %v11433_v31  ;;  %v11469_v31 = vld [vmem:[%s21500_s5 + $0x760] sm:$0xff]  ;;  %v11470_v21 = vld [vmem:[%s21500_s5 + $0x768] sm:$0xff] }
 0x6c9   : > { %15333 = vmatprep.subr.bf16.mxu0 %v15836_v0 }
 0x6cc   : > { %15335 = vmatpush3.bf16.msra.mxu0 %v15334_v37  ;;  %v15382_v37 = vpack.c.bf16 %v11436_v4, %v11435_v2  ;;  %v11471_v2 = vld [vmem:[%s21500_s5 + $0x770] sm:$0xff]  ;;  %v11472_v4 = vld [vmem:[%s21500_s5 + $0x778] sm:$0xff] }
 0x6cd   : > { %15336 = vmatprep.subr.bf16.mxu0 %v15836_v0 }
 0x6d0   : > { %15338 = vmatpush3.bf16.msra.mxu0 %v15337_v46  ;;  %v15385_v46 = vpack.c.bf16 %v11438_v49, %v11437_v29  ;;  %v11473_v29 = vld [vmem:[%s21500_s5 + $0x780] sm:$0xff]  ;;  %v11474_v49 = vld [vmem:[%s21500_s5 + $0x788] sm:$0xff] }
 0x6d1   : > { %15339 = vmatprep.subr.bf16.mxu0 %v15836_v0 }
 0x6d4   : > { %15341 = vmatpush3.bf16.msra.mxu0 %v15340_v26  ;;  %v15388_v26 = vpack.c.bf16 %v11440_v19, %v11439_v27  ;;  %v8881_v27 = vmax.f32 %v8865_v13, 0.0  ;;  %v11475_v19 = vld [vmem:[%s21500_s5 + $0x790] sm:$0xff]  ;;  %v15445_v13 = vpack.c.bf16 %v11478_v47, %v11477_v9 }
 0x6d5   : > { %15342 = vmatprep.subr.bf16.mxu0 %v15836_v0 }
 0x6d7   : > { %14056 = vmatmul.mubr.f32.vlgmr.msra.gmra.mrb[80].mxu0 %v8877_v60  ;;  %v8879_v60 = vmax.f32 %v8863_v16, 0.0  ;;  %v15397_v16 = vpack.c.bf16 %v11446_v58, %v11445_v20  ;;  %v11483_v20 = vld [vmem:[%s21500_s5 + $0x7d0] sm:$0xff]  ;;  %v11484_v58 = vld [vmem:[%s21500_s5 + $0x7d8] sm:$0xff] }
 0x6d8   : > { %15344 = vmatpush3.bf16.msra.mxu0 %v15343_v50  ;;  %14090 = vmatprep.mubr.msk.f32.mxu0 %vm15837_vm11, %v15838_v12  ;;  %v15391_v50 = vpack.c.bf16 %v11442_v44, %v11441_v30  ;;  %v11479_v44 = vld [vmem:[%s21500_s5 + $0x7b0] sm:$0xff] }
 0x6d9   : > { %15345 = vmatprep.subr.bf16.mxu0 %v15836_v0 }
 0x6dc   : > { %15347 = vmatpush3.bf16.msra.mxu0 %v15346_v7  ;;  %v15394_v7 = vpack.c.bf16 %v11444_v40, %v11443_v41  ;;  %v11481_v41 = vld [vmem:[%s21500_s5 + $0x7c0] sm:$0xff]  ;;  %v11482_v40 = vld [vmem:[%s21500_s5 + $0x7c8] sm:$0xff] }
 0x6dd   : > { %15348 = vmatprep.subr.bf16.mxu0 %v15836_v0 }
 0x6e0   : > { %15350 = vmatpush3.bf16.msra.mxu0 %v15349_v51  ;;  %v15400_v51 = vpack.c.bf16 %v11448_v62, %v11447_v6  ;;  %v11485_v6 = vld [vmem:[%s21500_s5 + $0x7e0] sm:$0xff]  ;;  %v11486_v62 = vld [vmem:[%s21500_s5 + $0x7e8] sm:$0xff] }
 0x6e1   : > { %15351 = vmatprep.subr.bf16.mxu0 %v15836_v0 }
 0x6e4   : > { %15353 = vmatpush3.bf16.msra.mxu0 %v15352_v3  ;;  %v15403_v3 = vpack.c.bf16 %v11450_v61, %v11449_v24  ;;  %v11487_v24 = vld [vmem:[%s21500_s5 + $0x7f0] sm:$0xff]  ;;  %v11488_v61 = vld [vmem:[%s21500_s5 + $0x7f8] sm:$0xff] }
 0x6e5   : > { %15354 = vmatprep.subr.bf16.mxu0 %v15836_v0 }
 0x6e8   : > { %15356 = vmatpush3.bf16.msra.mxu0 %v15355_v36  ;;  %v15406_v36 = vpack.c.bf16 %v11452_v32, %v11451_v23  ;;  %v10293_v23 = vld [vmem:[%s21502_s7] sm:$0xff]  ;;  %v10294_v32 = vld [vmem:[%s21502_s7 + $0x8] sm:$0xff] }
 0x6e9   : > { %15357 = vmatprep.subr.bf16.mxu0 %v15836_v0 }
 0x6ec   : > { %15359 = vmatpush3.bf16.msra.mxu0 %v15358_v11  ;;  %v15409_v11 = vpack.c.bf16 %v11454_v59, %v11453_v43  ;;  %v8882_v43 = vmax.f32 %v8866_v14, 0.0  ;;  %v10295_v59 = vld [vmem:[%s21502_s7 + $0x10] sm:$0xff]  ;;  %v15469_v14 = vpack.c.bf16 %v10298_v48, %v10297_v15 }
 0x6ed   : > { %15360 = vmatprep.subr.bf16.mxu0 %v15836_v0 }
 0x6f0   : > { %15362 = vmatpush3.bf16.msra.mxu0 %v15361_v42  ;;  %v15412_v42 = vpack.c.bf16 %v11456_v5, %v11455_v18  ;;  %v10299_v5 = vld [vmem:[%s21502_s7 + $0x30] sm:$0xff] }
 0x6f1   : > { %15363 = vmatprep.subr.bf16.mxu0 %v15836_v0 }
 0x6f4   : > { %15365 = vmatpush3.bf16.msra.mxu0 %v15364_v34  ;;  %v15415_v34 = vpack.c.bf16 %v11458_v45, %v11457_v8  ;;  %v10301_v8 = vld [vmem:[%s21502_s7 + $0x40] sm:$0xff]  ;;  %v10302_v45 = vld [vmem:[%s21502_s7 + $0x48] sm:$0xff] }
 0x6f5   : > { %15366 = vmatprep.subr.bf16.mxu0 %v15836_v0 }
 0x6f7   : > { %14091 = vmatmul.mubr.f32.vlgmr.msra.gmra.mrb[80].mxu0 %v8878_v22 }
 0x6f8   : > { %15368 = vmatpush3.bf16.msra.mxu0 %v15367_v53  ;;  %14125 = vmatprep.mubr.msk.f32.mxu0 %vm15837_vm11, %v15838_v12  ;;  %v11460_v53 = vld [vmem:[%s21500_s5 + $0x718] sm:$0xff] }
 0x6f9   : > { %15369 = vmatprep.subr.bf16.mxu0 %v15836_v0  ;;  %v15418_v22 = vpack.c.bf16 %v11460_v53, %v11459_v35  ;;  %v10304_v35 = vld [vmem:[%s21502_s7 + $0x58] sm:$0xff] }
 0x6fc   : > { %15371 = vmatpush3.bf16.msra.mxu0 %v15370_v33  ;;  %v15424_v33 = vpack.c.bf16 %v11464_v55, %v11463_v1  ;;  %v10308_v1 = vld [vmem:[%s21502_s7 + $0x78] sm:$0xff] }
 0x6fd   : > { %15372 = vmatprep.subr.bf16.mxu0 %v15836_v0 }
 0x700   : > { %15374 = vmatpush3.bf16.msra.mxu0 %v15373_v63  ;;  %v15427_v63 = vpack.c.bf16 %v11466_v54, %v11465_v38 }
 0x701   : > { %15375 = vmatprep.subr.bf16.mxu0 %v15836_v0 }
 0x704   : > { %15377 = vmatpush3.bf16.msra.mxu0 %v15376_v17  ;;  %v15430_v17 = vpack.c.bf16 %v11468_v10, %v11467_v52 }
 0x705   : > { %15378 = vmatprep.subr.bf16.mxu0 %v15836_v0 }
 0x708   : > { %15380 = vmatpush3.bf16.msra.mxu0 %v15379_v39  ;;  %v15433_v39 = vpack.c.bf16 %v11470_v21, %v11469_v31 }
 0x709   : > { %15381 = vmatprep.subr.bf16.mxu0 %v15836_v0 }
 0x70c   : > { %15383 = vmatpush3.bf16.msra.mxu0 %v15382_v37  ;;  %v15436_v37 = vpack.c.bf16 %v11472_v4, %v11471_v2 }
 0x70d   : > { %15384 = vmatprep.subr.bf16.mxu0 %v15836_v0 }
 0x710   : > { %15386 = vmatpush3.bf16.msra.mxu0 %v15385_v46  ;;  %v15439_v46 = vpack.c.bf16 %v11474_v49, %v11473_v29 }
 0x711   : > { %15387 = vmatprep.subr.bf16.mxu0 %v15836_v0 }
 0x714   : > { %15389 = vmatpush3.bf16.msra.mxu0 %v15388_v26  ;;  %v11476_v26 = vld [vmem:[%s21500_s5 + $0x798] sm:$0xff] }
 0x715   : > { %15390 = vmatprep.subr.bf16.mxu0 %v15836_v0  ;;  %v15442_v30 = vpack.c.bf16 %v11476_v26, %v11475_v19 }
 0x717   : > { %14126 = vmatmul.mubr.f32.vlgmr.msra.gmra.mrb[80].mxu0 %v8879_v60 }
 0x718   : > { %15392 = vmatpush3.bf16.msra.mxu0 %v15391_v50  ;;  %14160 = vmatprep.mubr.msk.f32.mxu0 %vm15837_vm11, %v15838_v12  ;;  %v11480_v50 = vld [vmem:[%s21500_s5 + $0x7b8] sm:$0xff] }
 0x719   : > { %15393 = vmatprep.subr.bf16.mxu0 %v15836_v0  ;;  %v15448_v60 = vpack.c.bf16 %v11480_v50, %v11479_v44 }
 0x71c   : > { %15395 = vmatpush3.bf16.msra.mxu0 %v15394_v7  ;;  %v15451_v7 = vpack.c.bf16 %v11482_v40, %v11481_v41 }
 0x71d   : > { %15396 = vmatprep.subr.bf16.mxu0 %v15836_v0 }
 0x720   : > { %15398 = vmatpush3.bf16.msra.mxu0 %v15397_v16  ;;  %v15454_v16 = vpack.c.bf16 %v11484_v58, %v11483_v20 }
 0x721   : > { %15399 = vmatprep.subr.bf16.mxu0 %v15836_v0 }
 0x724   : > { %15401 = vmatpush3.bf16.msra.mxu0 %v15400_v51  ;;  %v15457_v51 = vpack.c.bf16 %v11486_v62, %v11485_v6 }
 0x725   : > { %15402 = vmatprep.subr.bf16.mxu0 %v15836_v0 }
 0x728   : > { %15404 = vmatpush3.bf16.msra.mxu0 %v15403_v3  ;;  %v15460_v3 = vpack.c.bf16 %v11488_v61, %v11487_v24 }
 0x729   : > { %15405 = vmatprep.subr.bf16.mxu0 %v15836_v0 }
 0x72c   : > { %15407 = vmatpush3.bf16.msra.mxu0 %v15406_v36  ;;  %v15463_v36 = vpack.c.bf16 %v10294_v32, %v10293_v23 }
 0x72d   : > { %15408 = vmatprep.subr.bf16.mxu0 %v15836_v0 }
 0x730   : > { %15410 = vmatpush3.bf16.msra.mxu0 %v15409_v11  ;;  %v10296_v11 = vld [vmem:[%s21502_s7 + $0x18] sm:$0xff] }
 0x731   : > { %15411 = vmatprep.subr.bf16.mxu0 %v15836_v0  ;;  %v15466_v18 = vpack.c.bf16 %v10296_v11, %v10295_v59 }
 0x734   : > { %15413 = vmatpush3.bf16.msra.mxu0 %v15412_v42 }
 0x735   : > { %15414 = vmatprep.subr.bf16.mxu0 %v15836_v0 }
 0x737   : > { %14161 = vmatmul.mubr.f32.vlgmr.msra.gmra.mrb[80].mxu0 %v8880_v56  ;;  %v10303_v56 = vld [vmem:[%s21502_s7 + $0x50] sm:$0xff] }
 0x738   : > { %15416 = vmatpush3.bf16.msra.mxu0 %v15415_v34  ;;  %14195 = vmatprep.mubr.msk.f32.mxu0 %vm15837_vm11, %v15838_v12  ;;  %v15475_v34 = vpack.c.bf16 %v10302_v45, %v10301_v8  ;;  %v15478_v53 = vpack.c.bf16 %v10304_v35, %v10303_v56 }
 0x739   : > { %15417 = vmatprep.subr.bf16.mxu0 %v15836_v0 }
 0x73c   : > { %15419 = vmatpush3.bf16.msra.mxu0 %v15418_v22  ;;  %v10305_v22 = vld [vmem:[%s21502_s7 + $0x60] sm:$0xff] }
 0x73d   : > { %15420 = vmatprep.subr.bf16.mxu0 %v15836_v0  ;;  %v15481_v28 = vpack.c.bf16 %v10306_v25, %v10305_v22 }
 0x740   : > { %15422 = vmatpush3.bf16.msra.mxu0 %v15421_v57  ;;  %v10307_v57 = vld [vmem:[%s21502_s7 + $0x70] sm:$0xff] }
 0x741   : > { %15423 = vmatprep.subr.bf16.mxu0 %v15836_v0  ;;  %v15484_v55 = vpack.c.bf16 %v10308_v1, %v10307_v57 }
 0x744   : > { %15425 = vmatpush3.bf16.msra.mxu0 %v15424_v33  ;;  %v8883_v33 = vld [vmem:[%s21501_s6] sm:$0x1] }
 0x745   : > { %15426 = vmatprep.subr.bf16.mxu0 %v15836_v0 }
 0x748   : > { %15428 = vmatpush3.bf16.msra.mxu0 %v15427_v63 }
 0x749   : > { %15429 = vmatprep.subr.bf16.mxu0 %v15836_v0 }
 0x74c   : > { %15431 = vmatpush3.bf16.msra.mxu0 %v15430_v17  ;;  %v10309_v17 = vld [vmem:[%s21503_s8] sm:$0x1] }
 0x74d   : > { %15432 = vmatprep.subr.bf16.mxu0 %v15836_v0 }
 0x750   : > { %15434 = vmatpush3.bf16.msra.mxu0 %v15433_v39 }
 0x751   : > { %15435 = vmatprep.subr.bf16.mxu0 %v15836_v0 }
 0x754   : > { %15437 = vmatpush3.bf16.msra.mxu0 %v15436_v37 }
 0x755   : > { %15438 = vmatprep.subr.bf16.mxu0 %v15836_v0 }
 0x757   : > { %14196 = vmatmul.mubr.f32.vlgmr.msra.gmra.mrb[80].mxu0 %v8881_v27 }
 0x758   : > { %15440 = vmatpush3.bf16.msra.mxu0 %v15439_v46  ;;  %14230 = vmatprep.mubr.msk.f32.mxu0 %vm15837_vm11, %v15838_v12 }
 0x759   : > { %15441 = vmatprep.subr.bf16.mxu0 %v15836_v0 }
 0x75c   : > { %15443 = vmatpush3.bf16.msra.mxu0 %v15442_v30 }
 0x75d   : > { %15444 = vmatprep.subr.bf16.mxu0 %v15836_v0 }
 0x760   : > { %15446 = vmatpush3.bf16.msra.mxu0 %v15445_v13 }
 0x761   : > { %15447 = vmatprep.subr.bf16.mxu0 %v15836_v0 }
 0x764   : > { %15449 = vmatpush3.bf16.msra.mxu0 %v15448_v60 }
 0x765   : > { %15450 = vmatprep.subr.bf16.mxu0 %v15836_v0 }
 0x768   : > { %15452 = vmatpush3.bf16.msra.mxu0 %v15451_v7 }
 0x769   : > { %15453 = vmatprep.subr.bf16.mxu0 %v15836_v0 }
 0x76c   : > { %15455 = vmatpush3.bf16.msra.mxu0 %v15454_v16 }
 0x76d   : > { %15456 = vmatprep.subr.bf16.mxu0 %v15836_v0 }
 0x770   : > { %15458 = vmatpush3.bf16.msra.mxu0 %v15457_v51 }
 0x771   : > { %15459 = vmatprep.subr.bf16.mxu0 %v15836_v0 }
 0x774   : > { %15461 = vmatpush3.bf16.msra.mxu0 %v15460_v3 }
 0x775   : > { %15462 = vmatprep.subr.bf16.mxu0 %v15836_v0 }
 0x777   : > { %14231 = vmatmul.mubr.f32.vlgmr.msra.gmra.mrb[80].mxu0 %v8882_v43 }
 0x778   : > { %15464 = vmatpush3.bf16.msra.mxu0 %v15463_v36  ;;  %14265 = vmatprep.mubr.msk.f32.mxu0 %vm15837_vm11, %v15838_v12  ;;  %v10300_v12 = vld [vmem:[%s21502_s7 + $0x38] sm:$0xff] }
 0x779   : > { %15465 = vmatprep.subr.bf16.mxu0 %v15836_v0  ;;  %v15472_v42 = vpack.c.bf16 %v10300_v12, %v10299_v5 }
 0x77c   : > { %15467 = vmatpush3.bf16.msra.mxu0 %v15466_v18 }
 0x77d   : > { %15468 = vmatprep.subr.bf16.mxu0 %v15836_v0 }
 0x780   : > { %15470 = vmatpush3.bf16.msra.mxu0 %v15469_v14 }
 0x781   : > { %15471 = vmatprep.subr.bf16.mxu0 %v15836_v0 }
 0x784   : > { %15473 = vmatpush3.bf16.msra.mxu0 %v15472_v42 }
 0x785   : > { %15474 = vmatprep.subr.bf16.mxu0 %v15836_v0 }
 0x788   : > { %15476 = vmatpush3.bf16.msra.mxu0 %v15475_v34 }
 0x789   : > { %15477 = vmatprep.subr.bf16.mxu0 %v15836_v0 }
 0x78c   : > { %15479 = vmatpush3.bf16.msra.mxu0 %v15478_v53 }
 0x78d   : > { %15480 = vmatprep.subr.bf16.mxu0 %v15836_v0 }
 0x790   : > { %15482 = vmatpush3.bf16.msra.mxu0 %v15481_v28 }
 0x791   : > { %15483 = vmatprep.subr.bf16.mxu0 %v15836_v0  ;;  %v22200_v0 = vlaneseq }
 0x793   : > { %v10381_v10 = vand.u32 127, %v22200_v0 }
 0x794   : > { %15485 = vmatpush3.bf16.msra.mxu0 %v15484_v55 }
 0x795   : > { %vm10382_vm12 = vcmp.lt.s32.totalorder %v10381_v10, 10 }
 0x84a   : > { %v10287_v38 = vpop.f32.mrb[80].mxu0 }
 0x84b   : > { %v15502_v54 = vadd.f32 %v10287_v38, %v8883_v33  ;;  %v14232_v63 = vpop.f32.mrb[81].mxu0 }
 0x84d   : > { %v10292_v52 = vmax.f32 %v15502_v54, 0.0 }
 0x84f   : > { %14266 = vmatmul.mubr.f32.vlgmr.msra.gmra.mrb[82].mxu0 %v10292_v52 }
 0x922   : > { %v10376_v31 = vpop.f32.mrb[82].mxu0 }
 0x923   : > { %v10377_v21 = vadd.f32 %v10376_v31, %v10309_v17  ;;  %v14267_v39 = vpop.f32.mrb[83].mxu0 }
 0x925   : > { %v10383_v2 = vsel %vm10382_vm12, %v10377_v21, -1e+30 }
 0x926   : > { %v10384_v4 = vsel %vm630_vm0, %v10383_v2, -inf }
 0x927   : > { %10385 = vmax.xlane.f32.xlu0 %v10384_v4 }
 0x9b4   : > { %v10386_v37 = vpop.xlane.xlu0 %10385 }
 0x9b5   : > { %v10387_v29 = vsub.f32 %v10383_v2, %v10386_v37 }
 0x9b7   : > { %v10388_v49 = vmul.f32 1.442695, %v10387_v29 }
 0x9b9   : > { %15762 = vpow2.f32 %v10388_v49 }
 0x9c3   : > { %v15763_v46 = vpop.eup %15762 }
 0x9c4   : > { %v10390_v27 = vsel %vm630_vm0, %v15763_v46, 0.0 }
 0x9c5   : > { %10391 = vadd.xlane.f32.xlu0 %v10390_v27 }
 0xa52   : > { %v10392_v19 = vpop.xlane.xlu0 %10391 }
 0xa53   : > { %15764 = vlog2.f32 %v10392_v19 }
 0xa5d   : > { %v15765_v26 = vpop.eup %15764 }
 0xa5e   : > { %v10394_v30 = vmul.f32 0.6931472, %v15765_v26 }
 0xa60   : > { %v10395_v9 = vsub.f32 %v10387_v29, %v10394_v30 }
 0xa62   : > { %10396 = vst [vmem:[%s324_s16] sm:$0x1] %v10395_v9 }
 0xa63   : > { %15783 = shalt.err (!%p15780_p3)
}
 0xa64   : > { %s15784_s28 = scalar_lea.hbm %s21453_s24, 16  ;;  %s15788_s16 = scalar_lea.hbm %s21504_s9, 32 }
 0xa65   : > { %p15785_p4 = scmp.ne.s32.totalorder %s21453_s24, %s15784_s28  ;;  %p15789_p9 = scmp.lt.u32.totalorder %s21453_s24, %s21504_s9 }
 0xa66   : > { %p15790_p10 = scmp.lt.u32.totalorder %s15788_s16, %s15784_s28  ;;  %p15792_p12 = scmp.lt.u32.totalorder %s15784_s28, %s21453_s24 }
 0xa67   : > { %p15786_p7 = pnand %p15785_p4, %p15928_p5 }
 0xa68   : > { %p15791_p11 = por %p15790_p10, %p15789_p9 }
 0xa69   : > { %p15787_p8 = pneg %p15786_p7 }
 0xa6a   : > { %p15793_p13 = por %p15792_p12, %p15791_p11 }
 0xa6c   : > { %p15794_p0 = pnand %p15793_p13, %p15787_p8 }
 0xa6e   : > { %15797 = shalt.err (!%p15794_p0)
}
 0xa6f   : > { %15718 = dma.vmem_to_hbm [thread:$0]  (%p15928_p5), %s21455_s17, 16, %s21453_s24, %s10398_s21  }
 0xa70 PF: > { %p15724_p1 = scmp.ge.s32.totalorder %s15832_s12, 2  ;;  %s10422_s25 = sand.u32 1, %s15820_s30  }
 0xa71   : > { %s10423_s13 = scalar_lea.sflag [#allocation3], %s10422_s25 }
 0xa72   : > { %p15721_p2 = pnand %p15724_p1, %p15932_p6 }
 0xa74   : > { %15815 = dma.done.wait (!%p15721_p2), %s10423_s13, 16  }
 0xa75   : > { %15817 = vsyncadd (!%p15721_p2), %s10423_s13, 4294967280  ;;  %p19_p3 = scmp.ge.s32.totalorder %s15915_s15, 4   ;;  %s22201_s30 = smov %s15824_s10 }
 0xa76   : > { %s22202_s10 = smov %s15828_s11  ;;  %s22203_s11 = smov %s15926_s18 }
 0xa77   : > { %s22204_s12 = smov %s15915_s15  ;;  %21 = sbr.rel (!%p19_p3) target bundleno = 3 (0x3), region = 130 }
 0xa7e   :  { %10427 = vsyncpa [#allocation3], 1 }
 0xa7f   :  { %10429 = vsyncpa [#allocation3 + $0x1], 1 }

</bundles_post_ra>
